<compile_context>
chip_gen: v6e
topology: v6e:2x2x1
jax: 0.10.0
libtpu: 0.0.40
codegen_flags: <defaults>
</compile_context>

<pallas_src>
import functools

import jax
import jax.numpy as jnp
import numpy as np
from jax.experimental import pallas as pl
from jax.experimental.pallas import tpu as pltpu


# ----------------------------------------------------------------------------
# GRU kernel: one grid step per batch tile, full T loop in-kernel,
# hidden state carried in a VMEM scratch.
# Inputs are the PRE-COMPUTED input gates ig[t] = x_t @ W_ih^T + merged biases.
# ----------------------------------------------------------------------------
def gru_kernel(ig_ref, h0_ref, w_hh_ref, b_hn_ref, out_ref, h_ref):
    T = ig_ref.shape[0]
    H = h0_ref.shape[-1]

    h_ref[...] = h0_ref[...]

    def step(t, carry):
        h = h_ref[...]                                # (TB, H)
        ig = ig_ref[t]                                # (TB, 3H)  precomputed gates
        # single fused recurrent matmul: [r|z|n] in one (H, 3H) MXU op
        hh = jnp.dot(h, w_hh_ref[...], preferred_element_type=jnp.float32)
        r = jax.nn.sigmoid(ig[:, :H] + hh[:, :H])
        z = jax.nn.sigmoid(ig[:, H:2 * H] + hh[:, H:2 * H])
        n = jnp.tanh(ig[:, 2 * H:] + r * (hh[:, 2 * H:] + b_hn_ref[...]))
        h_new = (1.0 - z) * n + z * h
        h_ref[...] = h_new
        out_ref[t] = h_new                            # contiguous (TB, H) store
        return carry

    jax.lax.fori_loop(0, T, step, 0, unroll=True)


def gru_forward(ig, h0, w_hh3, b_hn, *, batch_tile=None):
    """ig: (T, B, 3H) precomputed input gates, h0: (B, H).  Returns (T, B, H)."""
    T, B, H3 = ig.shape
    H = h0.shape[-1]

    if batch_tile is None:
        # split batch across TensorCores (v7x) when it stays (8,128)-tileable
        batch_tile = B // 2 if (B % 16 == 0) else B
    if batch_tile != B and batch_tile % 8 != 0:
        batch_tile = B
    TBg = batch_tile
    assert B % TBg == 0

    return pl.pallas_call(
        gru_kernel,
        grid=(B // TBg,),
        in_specs=[
            pl.BlockSpec((T, TBg, H3), lambda b: (0, b, 0)),   # precomputed gates
            pl.BlockSpec((TBg, H), lambda b: (b, 0)),          # h0 tile
            pl.BlockSpec((H, H3), lambda b: (0, 0)),           # W_hh^T (fused r|z|n)
            pl.BlockSpec((1, H), lambda b: (0, 0)),            # b_hn
        ],
        out_specs=pl.BlockSpec((T, TBg, H), lambda b: (0, b, 0)),
        out_shape=jax.ShapeDtypeStruct((T, B, H), jnp.float32),
        scratch_shapes=[pltpu.VMEM((TBg, H), jnp.float32)],
        compiler_params=pltpu.CompilerParams(dimension_semantics=("parallel",)),
    )(ig, h0, w_hh3, b_hn)


# ----------------------------------------------------------------------------
# Attention + output projection kernel.
# Grid = (B/TB, V/TILE_V).  attn_h is computed once per batch tile (v == 0)
# into a VMEM scratch and reused for every vocab tile.
# ----------------------------------------------------------------------------
def attn_kernel(ctxlen_ref,                      # scalar prefetch: (B,) int32 in SMEM
                dec_ref, ctx_ref,                # (TB, T, H), (TB, S, He)
                w_c_ref, w_d_ref, b_ao_ref,      # (He, H), (H, H), (1, H)
                w_v_ref, b_v_ref,                # (H, TILE_V), (1, TILE_V)
                out_ref,                         # (TB, T, TILE_V)
                c_scr, attn_h_scr):              # VMEM (TB*T, He), (TB*T, H)
    b_tile = pl.program_id(0)
    TB, T, H = dec_ref.shape
    S = ctx_ref.shape[1]

    @pl.when(pl.program_id(1) == 0)
    def _():
        # --- score / mask / softmax / context: inherently per-batch bmm -----
        for i in range(TB):                      # static, small
            dec_i = dec_ref[i]                   # (T, H)
            ctx_i = ctx_ref[i]                   # (S, He)
            # align = dec_i @ ctx_i^T  (NT dot_general, no in-kernel transpose)
            align = jax.lax.dot_general(
                dec_i, ctx_i, (((1,), (1,)), ((), ())),
                preferred_element_type=jnp.float32)          # (T, S)
            length = ctxlen_ref[b_tile * TB + i]
            s_pos = jax.lax.broadcasted_iota(jnp.int32, (T, S), 1)
            align = jnp.where(s_pos < length, align, -jnp.inf)
            align = align - jnp.max(align, axis=-1, keepdims=True)
            e = jnp.exp(align)
            p = e * pl.reciprocal(jnp.sum(e, axis=-1, keepdims=True), approx=True)
            c_scr[pl.ds(i * T, T), :] = jnp.dot(
                p, ctx_i, preferred_element_type=jnp.float32)   # (T, He)

        # --- linear_out, batched over the whole tile (M = TB*T rows) --------
        # concat([c, dec]) @ W_ao^T  ==  c @ W_c + dec @ W_d   (no lane concat)
        dec_all = dec_ref[...].reshape(TB * T, H)
        attn_h_scr[...] = jnp.tanh(
            jnp.dot(c_scr[...], w_c_ref[...], preferred_element_type=jnp.float32)
            + jnp.dot(dec_all, w_d_ref[...], preferred_element_type=jnp.float32)
            + b_ao_ref[...])

    # --- vocab projection for this V tile, reusing attn_h across tiles ------
    logits = jnp.dot(attn_h_scr[...], w_v_ref[...],
                     preferred_element_type=jnp.float32) + b_v_ref[...]
    out_ref[...] = logits.reshape(TB, T, -1)


def _pick_batch_tile(B, T, target_rows=256):
    best = 1
    for tb in range(1, B + 1):
        if B % tb == 0 and tb * T <= max(target_rows, T):
            best = tb
    return best


def _pick_vocab_tile(V, H, budget_bytes=16 << 20):
    if V % 128 != 0:
        return V
    max_tile = max(128, (budget_bytes // (2 * H * 4)) // 128 * 128)
    tile = min(V, max_tile)
    while V % tile != 0:
        tile -= 128
    return max(tile, 128)


def attn_output(dec_bt, ctx_bt, ctx_len, w_c, w_d, b_ao, w_v_t, b_v,
                *, batch_tile=None, vocab_tile=None):
    """dec_bt: (B, T, H), ctx_bt: (B, S, He).  Returns logits (B, T, V)."""
    B, T, H = dec_bt.shape
    _, S, He = ctx_bt.shape
    V = w_v_t.shape[-1]

    TB = batch_tile if batch_tile is not None else _pick_batch_tile(B, T)
    TV = vocab_tile if vocab_tile is not None else _pick_vocab_tile(V, H)
    assert B % TB == 0 and V % TV == 0

    grid_spec = pltpu.PrefetchScalarGridSpec(
        num_scalar_prefetch=1,
        grid=(B // TB, V // TV),
        in_specs=[
            pl.BlockSpec((TB, T, H), lambda b, v, cl: (b, 0, 0)),
            pl.BlockSpec((TB, S, He), lambda b, v, cl: (b, 0, 0)),
            pl.BlockSpec((He, H), lambda b, v, cl: (0, 0)),
            pl.BlockSpec((H, H), lambda b, v, cl: (0, 0)),
            pl.BlockSpec((1, H), lambda b, v, cl: (0, 0)),
            pl.BlockSpec((H, TV), lambda b, v, cl: (0, v)),     # streamed w_v tile
            pl.BlockSpec((1, TV), lambda b, v, cl: (0, v)),
        ],
        out_specs=pl.BlockSpec((TB, T, TV), lambda b, v, cl: (b, 0, v)),
        scratch_shapes=[
            pltpu.VMEM((TB * T, He), jnp.float32),   # context vectors
            pltpu.VMEM((TB * T, H), jnp.float32),    # attn_h, reused across V tiles
        ],
    )
    return pl.pallas_call(
        attn_kernel,
        grid_spec=grid_spec,
        out_shape=jax.ShapeDtypeStruct((B, T, V), jnp.float32),
        compiler_params=pltpu.CompilerParams(
            dimension_semantics=("parallel", "arbitrary")),
    )(ctx_len, dec_bt, ctx_bt, w_c, w_d, b_ao, w_v_t, b_v)


# ----------------------------------------------------------------------------
# Parameters + full forward (glue in plain JAX)
# ----------------------------------------------------------------------------
def init_params(key, vocab_size, embed_size, hidden_size, enc_hidden, padding_idx=1):
    ks = jax.random.split(key, 8)
    s = 0.1
    embedding = s * jax.random.normal(ks[0], (vocab_size, embed_size), jnp.float32)
    embedding = embedding.at[padding_idx].set(0.0)
    w_ih = s * jax.random.normal(ks[1], (3 * hidden_size, embed_size), jnp.float32)
    w_hh = s * jax.random.normal(ks[2], (3 * hidden_size, hidden_size), jnp.float32)
    b_ih = s * jax.random.normal(ks[3], (3 * hidden_size,), jnp.float32)
    b_hh = s * jax.random.normal(ks[4], (3 * hidden_size,), jnp.float32)
    # attn.linear_out: Linear(enc_hidden + dec_hidden, dec_hidden); concat order [c, dec]
    w_ao = s * jax.random.normal(ks[5], (hidden_size, enc_hidden + hidden_size), jnp.float32)
    b_ao = s * jax.random.normal(ks[6], (hidden_size,), jnp.float32)
    # decoder linear_out: Linear(hidden_size, vocab_size)
    w_v = s * jax.random.normal(ks[7], (vocab_size, hidden_size), jnp.float32)
    b_v = jnp.zeros((vocab_size,), jnp.float32)
    # NOTE: attn.linear_in exists in the PyTorch module but its output is
    # discarded in forward(), so it is omitted.
    return dict(embedding=embedding, w_ih=w_ih, w_hh=w_hh, b_ih=b_ih, b_hh=b_hh,
                w_ao=w_ao, b_ao=b_ao, w_v=w_v, b_v=b_v)


def decoder_rnn_forward(params, inputs, hidden, context, context_lengths,
                        *, gru_batch_tile=None, attn_batch_tile=None, vocab_tile=None):
    """Pallas-backed forward.  inputs (T,B) int32, hidden (1,B,H), context (S,B,He)."""
    T, B = inputs.shape
    H = hidden.shape[-1]
    He = context.shape[-1]

    emb = params["embedding"][inputs]                          # (T, B, E) gather (glue)
    # TODO(synk): nn.Dropout(p=0.2) in train mode is stochastic; eval-mode identity used.

    # Hoisted input-gate matmul for ALL timesteps: one (T*B, E) x (E, 3H) matmul.
    # Biases for r/z are pre-merged (b_ir+b_hr, b_iz+b_hz); b_in stays with the
    # input side, b_hn stays on the recurrent side (inside the r * (...) term).
    w_ih, w_hh = params["w_ih"], params["w_hh"]
    b_ih, b_hh = params["b_ih"], params["b_hh"]
    b_gate = jnp.concatenate([b_ih[:H] + b_hh[:H],
                              b_ih[H:2 * H] + b_hh[H:2 * H],
                              b_ih[2 * H:]], axis=0)           # (3H,)
    ig = (emb.reshape(T * B, -1) @ w_ih.T + b_gate).reshape(T, B, 3 * H)

    dec_out = gru_forward(ig, hidden[0], w_hh.T,
                          b_hh[2 * H:].reshape(1, H),
                          batch_tile=gru_batch_tile)           # (T, B, H)
    dec_hidden = dec_out[-1][None]                             # (1, B, H)  slice, no extra output

    # batch-major views for the attention kernel (small relative to the logits)
    dec_bt = jnp.transpose(dec_out, (1, 0, 2))                 # (B, T, H)
    ctx_bt = jnp.transpose(context, (1, 0, 2))                 # (B, S, He)

    w_ao, b_ao = params["w_ao"], params["b_ao"]
    w_c = w_ao[:, :He].T                                       # (He, H) -> applies to c
    w_d = w_ao[:, He:].T                                       # (H, H)  -> applies to dec

    out_btv = attn_output(dec_bt, ctx_bt, context_lengths.astype(jnp.int32),
                          w_c, w_d, b_ao.reshape(1, -1),
                          params["w_v"].T, params["b_v"].reshape(1, -1),
                          batch_tile=attn_batch_tile, vocab_tile=vocab_tile)

    # single transpose back to the module's (T, B, V) output contract
    outputs = jnp.transpose(out_btv, (1, 0, 2))
    return outputs, dec_hidden


# ----------------------------------------------------------------------------
# Pure-JAX reference (mirrors the PyTorch forward) for validation
# ----------------------------------------------------------------------------
def reference_forward(params, inputs, hidden, context, context_lengths):
    emb = params["embedding"][inputs]

    def gru_step(h, x_t):
        gi = x_t @ params["w_ih"].T + params["b_ih"]
        gh = h @ params["w_hh"].T + params["b_hh"]
        i_r, i_z, i_n = jnp.split(gi, 3, axis=-1)
        h_r, h_z, h_n = jnp.split(gh, 3, axis=-1)
        r = jax.nn.sigmoid(i_r + h_r)
        z = jax.nn.sigmoid(i_z + h_z)
        n = jnp.tanh(i_n + r * h_n)
        h_new = (1.0 - z) * n + z * h
        return h_new, h_new

    h_last, dec = jax.lax.scan(gru_step, hidden[0], emb)        # (T, B, H)
    dec_bt = dec.transpose(1, 0, 2)
    ctx_bt = context.transpose(1, 0, 2)
    align = jnp.einsum("bth,bsh->bts", dec_bt, ctx_bt)
    S = ctx_bt.shape[1]
    mask = jnp.arange(S)[None, :] < context_lengths[:, None]
    align = jnp.where(mask[:, None, :], align, -jnp.inf)
    attn = jax.nn.softmax(align, axis=-1)
    c = jnp.einsum("bts,bsh->bth", attn, ctx_bt)
    concat = jnp.concatenate([c, dec_bt], axis=-1)
    attn_h = jnp.tanh(concat @ params["w_ao"].T + params["b_ao"])
    out = attn_h @ params["w_v"].T + params["b_v"]              # (B, T, V)
    return out.transpose(1, 0, 2), h_last[None]


if __name__ == "__main__":
    T, B, S = 32, 8, 16                     # tgt_len, batch, src_len
    E, H, He, V = 32, 128, 128, 256         # embed, hidden, encoder_hidden, vocab

    key = jax.random.PRNGKey(0)
    kp, ki, kh, kc = jax.random.split(key, 4)

    params = init_params(kp, V, E, H, He, padding_idx=1)

    inputs = jax.random.randint(ki, (T, B), 0, V, dtype=jnp.int32)
    inputs = inputs.at[-2:, :].set(1)       # some padding tokens
    hidden = 0.1 * jax.random.normal(kh, (1, B, H), jnp.float32)
    context = 0.1 * jax.random.normal(kc, (S, B, He), jnp.float32)
    context_lengths = jnp.array([S, S - 3, S, 9, S, 5, S - 1, S], dtype=jnp.int32)

    # batch_tile=4 / vocab_tile=128 so the toy run exercises both grid axes
    fwd = jax.jit(functools.partial(decoder_rnn_forward, params,
                                    attn_batch_tile=4, vocab_tile=128))
    outputs, dec_hidden = fwd(inputs, hidden, context, context_lengths)
    jax.block_until_ready((outputs, dec_hidden))

    ref_out, ref_hidden = jax.jit(functools.partial(reference_forward, params))(
        inputs, hidden, context, context_lengths)
    jax.block_until_ready((ref_out, ref_hidden))

    assert outputs.shape == (T, B, V) and dec_hidden.shape == (1, B, H)
    np.testing.assert_allclose(np.asarray(outputs), np.asarray(ref_out),
                               atol=2e-2, rtol=2e-2)
    np.testing.assert_allclose(np.asarray(dec_hidden), np.asarray(ref_hidden),
                               atol=2e-2, rtol=2e-2)

    print("KERNEL_OK")
</pallas_src>

<mosaic_0001>
module attributes {stable_mosaic.version = 11 : i64} {
  func.func @attn_kernel(%arg0: i32, %arg1: i32, %arg2: memref<8xi32, #tpu.memory_space<smem>>, %arg3: memref<4x32x128xf32, #tpu.memory_space<vmem>>, %arg4: memref<4x16x128xf32, #tpu.memory_space<vmem>>, %arg5: memref<128x128xf32, #tpu.memory_space<vmem>>, %arg6: memref<128x128xf32, #tpu.memory_space<vmem>>, %arg7: memref<1x128xf32, #tpu.memory_space<vmem>>, %arg8: memref<128x128xf32, #tpu.memory_space<vmem>>, %arg9: memref<1x128xf32, #tpu.memory_space<vmem>>, %arg10: memref<4x32x128xf32, #tpu.memory_space<vmem>>, %arg11: memref<128x128xf32, #tpu.memory_space<vmem>>, %arg12: memref<128x128xf32, #tpu.memory_space<vmem>>) attributes {dimension_semantics = [#tpu.dimension_semantics<parallel>, #tpu.dimension_semantics<arbitrary>], iteration_bounds = array<i64: 2, 2>, scalar_prefetch = 1 : i64, scratch_operands = 2 : i64, tpu.core_type = #tpu.core_type<tc>, window_params = [{transform_indices = @transform_0, window_bounds = array<i64: 4, 32, 128>}, {transform_indices = @transform_1, window_bounds = array<i64: 4, 16, 128>}, {pipeline_mode = #tpu.pipeline_mode<synchronous>, transform_indices = @transform_2, window_bounds = array<i64: 128, 128>}, {pipeline_mode = #tpu.pipeline_mode<synchronous>, transform_indices = @transform_3, window_bounds = array<i64: 128, 128>}, {pipeline_mode = #tpu.pipeline_mode<synchronous>, transform_indices = @transform_4, window_bounds = array<i64: 1, 128>}, {transform_indices = @transform_5, window_bounds = array<i64: 128, 128>}, {transform_indices = @transform_6, window_bounds = array<i64: 1, 128>}, {transform_indices = @transform_7, window_bounds = array<i64: 4, 32, 128>}]} {
    %c0_i32 = arith.constant 0 : i32
    %0 = arith.cmpi eq, %arg1, %c0_i32 : i32
    %1 = arith.extui %0 : i1 to i32
    %c0_i32_0 = arith.constant 0 : i32
    %2 = arith.cmpi ne, %1, %c0_i32_0 : i32
    scf.if %2 {
      %c0_9 = arith.constant 0 : index
      %c0_10 = arith.constant 0 : index
      %c0_11 = arith.constant 0 : index
      %11 = vector.load %arg3[%c0_9, %c0_10, %c0_11] : memref<4x32x128xf32, #tpu.memory_space<vmem>>, vector<1x32x128xf32>
      %12 = vector.shape_cast %11 : vector<1x32x128xf32> to vector<32x128xf32>
      %c0_12 = arith.constant 0 : index
      %c0_13 = arith.constant 0 : index
      %c0_14 = arith.constant 0 : index
      %13 = vector.load %arg4[%c0_12, %c0_13, %c0_14] : memref<4x16x128xf32, #tpu.memory_space<vmem>>, vector<1x16x128xf32>
      %14 = vector.shape_cast %13 : vector<1x16x128xf32> to vector<16x128xf32>
      %cst_15 = arith.constant dense<0.000000e+00> : vector<32x16xf32>
      %15 = tpu.matmul %12, %14, %cst_15 {dimension_numbers = #tpu.dot_dimension_numbers<[1], [1], [0], [0], [0, 0, 1, 0], [], []>} : vector<32x128xf32>, vector<16x128xf32>, vector<32x16xf32> -> vector<32x16xf32>
      %c4_i32 = arith.constant 4 : i32
      %16 = arith.muli %arg0, %c4_i32 : i32
      %c0_i32_16 = arith.constant 0 : i32
      %17 = arith.addi %16, %c0_i32_16 : i32
      %18 = arith.index_cast %17 : i32 to index
      %19 = memref.load %arg2[%18] : memref<8xi32, #tpu.memory_space<smem>>
      %20 = tpu.iota {dimensions = array<i32: 1>} : vector<32x16xi32>
      %21 = vector.broadcast %19 : i32 to vector<32x16xi32>
      %22 = arith.cmpi slt, %20, %21 : vector<32x16xi32>
      %cst_17 = arith.constant 0xFF800000 : f32
      %23 = vector.broadcast %cst_17 : f32 to vector<32x16xf32>
      %24 = arith.select %22, %15, %23 : vector<32x16xi1>, vector<32x16xf32>
      %cst_18 = arith.constant dense<0xFF800000> : vector<32xf32>
      %25 = vector.multi_reduction <maximumf>, %24, %cst_18 [1] : vector<32x16xf32> to vector<32xf32>
      %26 = vector.shape_cast %25 : vector<32xf32> to vector<32x1xf32>
      %27 = vector.broadcast %26 : vector<32x1xf32> to vector<32x16xf32>
      %28 = arith.subf %24, %27 : vector<32x16xf32>
      %29 = math.exp %28 : vector<32x16xf32>
      %cst_19 = arith.constant dense<0.000000e+00> : vector<32xf32>
      %30 = vector.multi_reduction <add>, %29, %cst_19 [1] : vector<32x16xf32> to vector<32xf32>
      %31 = vector.shape_cast %30 : vector<32xf32> to vector<32x1xf32>
      %32 = tpu.reciprocal %31 {approx = true} : vector<32x1xf32> -> vector<32x1xf32>
      %33 = vector.broadcast %32 : vector<32x1xf32> to vector<32x16xf32>
      %34 = arith.mulf %29, %33 : vector<32x16xf32>
      %cst_20 = arith.constant dense<0.000000e+00> : vector<32x128xf32>
      %35 = tpu.matmul %34, %14, %cst_20 {dimension_numbers = #tpu.dot_dimension_numbers<[1], [0], [0], [1], [0, 0, 1, 1], [], []>} : vector<32x16xf32>, vector<16x128xf32>, vector<32x128xf32> -> vector<32x128xf32>
      %c0_21 = arith.constant 0 : index
      %c0_22 = arith.constant 0 : index
      %36 = vector.load %arg11[%c0_21, %c0_22] : memref<128x128xf32, #tpu.memory_space<vmem>>, vector<32x128xf32>
      tpu.vector_store %arg11[%c0_21, %c0_22], %35 {strides = array<i32>} : memref<128x128xf32, #tpu.memory_space<vmem>>, vector<32x128xf32>,
      %c1 = arith.constant 1 : index
      %c0_23 = arith.constant 0 : index
      %c0_24 = arith.constant 0 : index
      %37 = vector.load %arg3[%c1, %c0_23, %c0_24] : memref<4x32x128xf32, #tpu.memory_space<vmem>>, vector<1x32x128xf32>
      %38 = vector.shape_cast %37 : vector<1x32x128xf32> to vector<32x128xf32>
      %c1_25 = arith.constant 1 : index
      %c0_26 = arith.constant 0 : index
      %c0_27 = arith.constant 0 : index
      %39 = vector.load %arg4[%c1_25, %c0_26, %c0_27] : memref<4x16x128xf32, #tpu.memory_space<vmem>>, vector<1x16x128xf32>
      %40 = vector.shape_cast %39 : vector<1x16x128xf32> to vector<16x128xf32>
      %cst_28 = arith.constant dense<0.000000e+00> : vector<32x16xf32>
      %41 = tpu.matmul %38, %40, %cst_28 {dimension_numbers = #tpu.dot_dimension_numbers<[1], [1], [0], [0], [0, 0, 1, 0], [], []>} : vector<32x128xf32>, vector<16x128xf32>, vector<32x16xf32> -> vector<32x16xf32>
      %c4_i32_29 = arith.constant 4 : i32
      %42 = arith.muli %arg0, %c4_i32_29 : i32
      %c1_i32 = arith.constant 1 : i32
      %43 = arith.addi %42, %c1_i32 : i32
      %44 = arith.index_cast %43 : i32 to index
      %45 = memref.load %arg2[%44] : memref<8xi32, #tpu.memory_space<smem>>
      %46 = tpu.iota {dimensions = array<i32: 1>} : vector<32x16xi32>
      %47 = vector.broadcast %45 : i32 to vector<32x16xi32>
      %48 = arith.cmpi slt, %46, %47 : vector<32x16xi32>
      %cst_30 = arith.constant 0xFF800000 : f32
      %49 = vector.broadcast %cst_30 : f32 to vector<32x16xf32>
      %50 = arith.select %48, %41, %49 : vector<32x16xi1>, vector<32x16xf32>
      %cst_31 = arith.constant dense<0xFF800000> : vector<32xf32>
      %51 = vector.multi_reduction <maximumf>, %50, %cst_31 [1] : vector<32x16xf32> to vector<32xf32>
      %52 = vector.shape_cast %51 : vector<32xf32> to vector<32x1xf32>
      %53 = vector.broadcast %52 : vector<32x1xf32> to vector<32x16xf32>
      %54 = arith.subf %50, %53 : vector<32x16xf32>
      %55 = math.exp %54 : vector<32x16xf32>
      %cst_32 = arith.constant dense<0.000000e+00> : vector<32xf32>
      %56 = vector.multi_reduction <add>, %55, %cst_32 [1] : vector<32x16xf32> to vector<32xf32>
      %57 = vector.shape_cast %56 : vector<32xf32> to vector<32x1xf32>
      %58 = tpu.reciprocal %57 {approx = true} : vector<32x1xf32> -> vector<32x1xf32>
      %59 = vector.broadcast %58 : vector<32x1xf32> to vector<32x16xf32>
      %60 = arith.mulf %55, %59 : vector<32x16xf32>
      %cst_33 = arith.constant dense<0.000000e+00> : vector<32x128xf32>
      %61 = tpu.matmul %60, %40, %cst_33 {dimension_numbers = #tpu.dot_dimension_numbers<[1], [0], [0], [1], [0, 0, 1, 1], [], []>} : vector<32x16xf32>, vector<16x128xf32>, vector<32x128xf32> -> vector<32x128xf32>
      %c32 = arith.constant 32 : index
      %c0_34 = arith.constant 0 : index
      %62 = vector.load %arg11[%c32, %c0_34] : memref<128x128xf32, #tpu.memory_space<vmem>>, vector<32x128xf32>
      tpu.vector_store %arg11[%c32, %c0_34], %61 {strides = array<i32>} : memref<128x128xf32, #tpu.memory_space<vmem>>, vector<32x128xf32>,
      %c2 = arith.constant 2 : index
      %c0_35 = arith.constant 0 : index
      %c0_36 = arith.constant 0 : index
      %63 = vector.load %arg3[%c2, %c0_35, %c0_36] : memref<4x32x128xf32, #tpu.memory_space<vmem>>, vector<1x32x128xf32>
      %64 = vector.shape_cast %63 : vector<1x32x128xf32> to vector<32x128xf32>
      %c2_37 = arith.constant 2 : index
      %c0_38 = arith.constant 0 : index
      %c0_39 = arith.constant 0 : index
      %65 = vector.load %arg4[%c2_37, %c0_38, %c0_39] : memref<4x16x128xf32, #tpu.memory_space<vmem>>, vector<1x16x128xf32>
      %66 = vector.shape_cast %65 : vector<1x16x128xf32> to vector<16x128xf32>
      %cst_40 = arith.constant dense<0.000000e+00> : vector<32x16xf32>
      %67 = tpu.matmul %64, %66, %cst_40 {dimension_numbers = #tpu.dot_dimension_numbers<[1], [1], [0], [0], [0, 0, 1, 0], [], []>} : vector<32x128xf32>, vector<16x128xf32>, vector<32x16xf32> -> vector<32x16xf32>
      %c4_i32_41 = arith.constant 4 : i32
      %68 = arith.muli %arg0, %c4_i32_41 : i32
      %c2_i32 = arith.constant 2 : i32
      %69 = arith.addi %68, %c2_i32 : i32
      %70 = arith.index_cast %69 : i32 to index
      %71 = memref.load %arg2[%70] : memref<8xi32, #tpu.memory_space<smem>>
      %72 = tpu.iota {dimensions = array<i32: 1>} : vector<32x16xi32>
      %73 = vector.broadcast %71 : i32 to vector<32x16xi32>
      %74 = arith.cmpi slt, %72, %73 : vector<32x16xi32>
      %cst_42 = arith.constant 0xFF800000 : f32
      %75 = vector.broadcast %cst_42 : f32 to vector<32x16xf32>
      %76 = arith.select %74, %67, %75 : vector<32x16xi1>, vector<32x16xf32>
      %cst_43 = arith.constant dense<0xFF800000> : vector<32xf32>
      %77 = vector.multi_reduction <maximumf>, %76, %cst_43 [1] : vector<32x16xf32> to vector<32xf32>
      %78 = vector.shape_cast %77 : vector<32xf32> to vector<32x1xf32>
      %79 = vector.broadcast %78 : vector<32x1xf32> to vector<32x16xf32>
      %80 = arith.subf %76, %79 : vector<32x16xf32>
      %81 = math.exp %80 : vector<32x16xf32>
      %cst_44 = arith.constant dense<0.000000e+00> : vector<32xf32>
      %82 = vector.multi_reduction <add>, %81, %cst_44 [1] : vector<32x16xf32> to vector<32xf32>
      %83 = vector.shape_cast %82 : vector<32xf32> to vector<32x1xf32>
      %84 = tpu.reciprocal %83 {approx = true} : vector<32x1xf32> -> vector<32x1xf32>
      %85 = vector.broadcast %84 : vector<32x1xf32> to vector<32x16xf32>
      %86 = arith.mulf %81, %85 : vector<32x16xf32>
      %cst_45 = arith.constant dense<0.000000e+00> : vector<32x128xf32>
      %87 = tpu.matmul %86, %66, %cst_45 {dimension_numbers = #tpu.dot_dimension_numbers<[1], [0], [0], [1], [0, 0, 1, 1], [], []>} : vector<32x16xf32>, vector<16x128xf32>, vector<32x128xf32> -> vector<32x128xf32>
      %c64 = arith.constant 64 : index
      %c0_46 = arith.constant 0 : index
      %88 = vector.load %arg11[%c64, %c0_46] : memref<128x128xf32, #tpu.memory_space<vmem>>, vector<32x128xf32>
      tpu.vector_store %arg11[%c64, %c0_46], %87 {strides = array<i32>} : memref<128x128xf32, #tpu.memory_space<vmem>>, vector<32x128xf32>,
      %c3 = arith.constant 3 : index
      %c0_47 = arith.constant 0 : index
      %c0_48 = arith.constant 0 : index
      %89 = vector.load %arg3[%c3, %c0_47, %c0_48] : memref<4x32x128xf32, #tpu.memory_space<vmem>>, vector<1x32x128xf32>
      %90 = vector.shape_cast %89 : vector<1x32x128xf32> to vector<32x128xf32>
      %c3_49 = arith.constant 3 : index
      %c0_50 = arith.constant 0 : index
      %c0_51 = arith.constant 0 : index
      %91 = vector.load %arg4[%c3_49, %c0_50, %c0_51] : memref<4x16x128xf32, #tpu.memory_space<vmem>>, vector<1x16x128xf32>
      %92 = vector.shape_cast %91 : vector<1x16x128xf32> to vector<16x128xf32>
      %cst_52 = arith.constant dense<0.000000e+00> : vector<32x16xf32>
      %93 = tpu.matmul %90, %92, %cst_52 {dimension_numbers = #tpu.dot_dimension_numbers<[1], [1], [0], [0], [0, 0, 1, 0], [], []>} : vector<32x128xf32>, vector<16x128xf32>, vector<32x16xf32> -> vector<32x16xf32>
      %c4_i32_53 = arith.constant 4 : i32
      %94 = arith.muli %arg0, %c4_i32_53 : i32
      %c3_i32 = arith.constant 3 : i32
      %95 = arith.addi %94, %c3_i32 : i32
      %96 = arith.index_cast %95 : i32 to index
      %97 = memref.load %arg2[%96] : memref<8xi32, #tpu.memory_space<smem>>
      %98 = tpu.iota {dimensions = array<i32: 1>} : vector<32x16xi32>
      %99 = vector.broadcast %97 : i32 to vector<32x16xi32>
      %100 = arith.cmpi slt, %98, %99 : vector<32x16xi32>
      %cst_54 = arith.constant 0xFF800000 : f32
      %101 = vector.broadcast %cst_54 : f32 to vector<32x16xf32>
      %102 = arith.select %100, %93, %101 : vector<32x16xi1>, vector<32x16xf32>
      %cst_55 = arith.constant dense<0xFF800000> : vector<32xf32>
      %103 = vector.multi_reduction <maximumf>, %102, %cst_55 [1] : vector<32x16xf32> to vector<32xf32>
      %104 = vector.shape_cast %103 : vector<32xf32> to vector<32x1xf32>
      %105 = vector.broadcast %104 : vector<32x1xf32> to vector<32x16xf32>
      %106 = arith.subf %102, %105 : vector<32x16xf32>
      %107 = math.exp %106 : vector<32x16xf32>
      %cst_56 = arith.constant dense<0.000000e+00> : vector<32xf32>
      %108 = vector.multi_reduction <add>, %107, %cst_56 [1] : vector<32x16xf32> to vector<32xf32>
      %109 = vector.shape_cast %108 : vector<32xf32> to vector<32x1xf32>
      %110 = tpu.reciprocal %109 {approx = true} : vector<32x1xf32> -> vector<32x1xf32>
      %111 = vector.broadcast %110 : vector<32x1xf32> to vector<32x16xf32>
      %112 = arith.mulf %107, %111 : vector<32x16xf32>
      %cst_57 = arith.constant dense<0.000000e+00> : vector<32x128xf32>
      %113 = tpu.matmul %112, %92, %cst_57 {dimension_numbers = #tpu.dot_dimension_numbers<[1], [0], [0], [1], [0, 0, 1, 1], [], []>} : vector<32x16xf32>, vector<16x128xf32>, vector<32x128xf32> -> vector<32x128xf32>
      %c96 = arith.constant 96 : index
      %c0_58 = arith.constant 0 : index
      %114 = vector.load %arg11[%c96, %c0_58] : memref<128x128xf32, #tpu.memory_space<vmem>>, vector<32x128xf32>
      tpu.vector_store %arg11[%c96, %c0_58], %113 {strides = array<i32>} : memref<128x128xf32, #tpu.memory_space<vmem>>, vector<32x128xf32>,
      %c0_59 = arith.constant 0 : index
      %c0_60 = arith.constant 0 : index
      %c0_61 = arith.constant 0 : index
      %115 = vector.load %arg3[%c0_59, %c0_60, %c0_61] : memref<4x32x128xf32, #tpu.memory_space<vmem>>, vector<4x32x128xf32>
      %116 = vector.shape_cast %115 : vector<4x32x128xf32> to vector<128x128xf32>
      %c0_62 = arith.constant 0 : index
      %c0_63 = arith.constant 0 : index
      %117 = vector.load %arg11[%c0_62, %c0_63] : memref<128x128xf32, #tpu.memory_space<vmem>>, vector<128x128xf32>
      %c0_64 = arith.constant 0 : index
      %c0_65 = arith.constant 0 : index
      %118 = vector.load %arg5[%c0_64, %c0_65] : memref<128x128xf32, #tpu.memory_space<vmem>>, vector<128x128xf32>
      %cst_66 = arith.constant dense<0.000000e+00> : vector<128x128xf32>
      %119 = tpu.matmul %117, %118, %cst_66 {dimension_numbers = #tpu.dot_dimension_numbers<[1], [0], [0], [1], [0, 0, 1, 1], [], []>} : vector<128x128xf32>, vector<128x128xf32>, vector<128x128xf32> -> vector<128x128xf32>
      %c0_67 = arith.constant 0 : index
      %c0_68 = arith.constant 0 : index
      %120 = vector.load %arg6[%c0_67, %c0_68] : memref<128x128xf32, #tpu.memory_space<vmem>>, vector<128x128xf32>
      %cst_69 = arith.constant dense<0.000000e+00> : vector<128x128xf32>
      %121 = tpu.matmul %116, %120, %cst_69 {dimension_numbers = #tpu.dot_dimension_numbers<[1], [0], [0], [1], [0, 0, 1, 1], [], []>} : vector<128x128xf32>, vector<128x128xf32>, vector<128x128xf32> -> vector<128x128xf32>
      %122 = arith.addf %119, %121 : vector<128x128xf32>
      %c0_70 = arith.constant 0 : index
      %c0_71 = arith.constant 0 : index
      %123 = vector.load %arg7[%c0_70, %c0_71] : memref<1x128xf32, #tpu.memory_space<vmem>>, vector<1x128xf32>
      %124 = vector.broadcast %123 : vector<1x128xf32> to vector<128x128xf32>
      %125 = arith.addf %122, %124 : vector<128x128xf32>
      %126 = math.tanh %125 : vector<128x128xf32>
      %c0_72 = arith.constant 0 : index
      %c0_73 = arith.constant 0 : index
      %127 = vector.load %arg12[%c0_72, %c0_73] : memref<128x128xf32, #tpu.memory_space<vmem>>, vector<128x128xf32>
      tpu.vector_store %arg12[%c0_72, %c0_73], %126 {strides = array<i32>} : memref<128x128xf32, #tpu.memory_space<vmem>>, vector<128x128xf32>,
    } else {
    }
    %c0 = arith.constant 0 : index
    %c0_1 = arith.constant 0 : index
    %3 = vector.load %arg12[%c0, %c0_1] : memref<128x128xf32, #tpu.memory_space<vmem>>, vector<128x128xf32>
    %c0_2 = arith.constant 0 : index
    %c0_3 = arith.constant 0 : index
    %4 = vector.load %arg8[%c0_2, %c0_3] : memref<128x128xf32, #tpu.memory_space<vmem>>, vector<128x128xf32>
    %cst = arith.constant dense<0.000000e+00> : vector<128x128xf32>
    %5 = tpu.matmul %3, %4, %cst {dimension_numbers = #tpu.dot_dimension_numbers<[1], [0], [0], [1], [0, 0, 1, 1], [], []>} : vector<128x128xf32>, vector<128x128xf32>, vector<128x128xf32> -> vector<128x128xf32>
    %c0_4 = arith.constant 0 : index
    %c0_5 = arith.constant 0 : index
    %6 = vector.load %arg9[%c0_4, %c0_5] : memref<1x128xf32, #tpu.memory_space<vmem>>, vector<1x128xf32>
    %7 = vector.broadcast %6 : vector<1x128xf32> to vector<128x128xf32>
    %8 = arith.addf %5, %7 : vector<128x128xf32>
    %9 = vector.shape_cast %8 : vector<128x128xf32> to vector<4x32x128xf32>
    %c0_6 = arith.constant 0 : index
    %c0_7 = arith.constant 0 : index
    %c0_8 = arith.constant 0 : index
    %10 = vector.load %arg10[%c0_6, %c0_7, %c0_8] : memref<4x32x128xf32, #tpu.memory_space<vmem>>, vector<4x32x128xf32>
    tpu.vector_store %arg10[%c0_6, %c0_7, %c0_8], %9 {strides = array<i32>} : memref<4x32x128xf32, #tpu.memory_space<vmem>>, vector<4x32x128xf32>,
    return
  }
  func.func @transform_0(%arg0: i32, %arg1: i32, %arg2: memref<8xi32, #tpu.memory_space<smem>>) -> (i32, i32, i32) {
    %c0_i32 = arith.constant 0 : i32
    %c0_i32_0 = arith.constant 0 : i32
    %c0_i32_1 = arith.constant 0 : i32
    return %arg0, %c0_i32, %c0_i32_0 : i32, i32, i32
  }
  func.func @transform_1(%arg0: i32, %arg1: i32, %arg2: memref<8xi32, #tpu.memory_space<smem>>) -> (i32, i32, i32) {
    %c0_i32 = arith.constant 0 : i32
    %c0_i32_0 = arith.constant 0 : i32
    %c0_i32_1 = arith.constant 0 : i32
    return %arg0, %c0_i32, %c0_i32_0 : i32, i32, i32
  }
  func.func @transform_2(%arg0: i32, %arg1: i32, %arg2: memref<8xi32, #tpu.memory_space<smem>>) -> (i32, i32) {
    %c0_i32 = arith.constant 0 : i32
    %c0_i32_0 = arith.constant 0 : i32
    %c0_i32_1 = arith.constant 0 : i32
    return %c0_i32, %c0_i32_0 : i32, i32
  }
  func.func @transform_3(%arg0: i32, %arg1: i32, %arg2: memref<8xi32, #tpu.memory_space<smem>>) -> (i32, i32) {
    %c0_i32 = arith.constant 0 : i32
    %c0_i32_0 = arith.constant 0 : i32
    %c0_i32_1 = arith.constant 0 : i32
    return %c0_i32, %c0_i32_0 : i32, i32
  }
  func.func @transform_4(%arg0: i32, %arg1: i32, %arg2: memref<8xi32, #tpu.memory_space<smem>>) -> (i32, i32) {
    %c0_i32 = arith.constant 0 : i32
    %c0_i32_0 = arith.constant 0 : i32
    %c0_i32_1 = arith.constant 0 : i32
    return %c0_i32, %c0_i32_0 : i32, i32
  }
  func.func @transform_5(%arg0: i32, %arg1: i32, %arg2: memref<8xi32, #tpu.memory_space<smem>>) -> (i32, i32) {
    %c0_i32 = arith.constant 0 : i32
    %c0_i32_0 = arith.constant 0 : i32
    return %c0_i32, %arg1 : i32, i32
  }
  func.func @transform_6(%arg0: i32, %arg1: i32, %arg2: memref<8xi32, #tpu.memory_space<smem>>) -> (i32, i32) {
    %c0_i32 = arith.constant 0 : i32
    %c0_i32_0 = arith.constant 0 : i32
    return %c0_i32, %arg1 : i32, i32
  }
  func.func @transform_7(%arg0: i32, %arg1: i32, %arg2: memref<8xi32, #tpu.memory_space<smem>>) -> (i32, i32, i32) {
    %c0_i32 = arith.constant 0 : i32
    %c0_i32_0 = arith.constant 0 : i32
    return %arg0, %c0_i32, %arg1 : i32, i32, i32
  }
}

module attributes {stable_mosaic.version = 11 : i64} {
  func.func @gru_kernel(%arg0: i32, %arg1: memref<32x8x384xf32, #tpu.memory_space<vmem>>, %arg2: memref<8x128xf32, #tpu.memory_space<vmem>>, %arg3: memref<128x384xf32, #tpu.memory_space<vmem>>, %arg4: memref<1x128xf32, #tpu.memory_space<vmem>>, %arg5: memref<32x8x128xf32, #tpu.memory_space<vmem>>, %arg6: memref<8x128xf32, #tpu.memory_space<vmem>>) attributes {dimension_semantics = [#tpu.dimension_semantics<parallel>], iteration_bounds = array<i64: 1>, scalar_prefetch = 0 : i64, scratch_operands = 1 : i64, tpu.core_type = #tpu.core_type<tc>, window_params = [{transform_indices = @transform_0, window_bounds = array<i64: 32, 8, 384>}, {transform_indices = @transform_1, window_bounds = array<i64: 8, 128>}, {pipeline_mode = #tpu.pipeline_mode<synchronous>, transform_indices = @transform_2, window_bounds = array<i64: 128, 384>}, {pipeline_mode = #tpu.pipeline_mode<synchronous>, transform_indices = @transform_3, window_bounds = array<i64: 1, 128>}, {transform_indices = @transform_4, window_bounds = array<i64: 32, 8, 128>}]} {
    %c0 = arith.constant 0 : index
    %c0_0 = arith.constant 0 : index
    %0 = vector.load %arg2[%c0, %c0_0] : memref<8x128xf32, #tpu.memory_space<vmem>>, vector<8x128xf32>
    %c0_1 = arith.constant 0 : index
    %c0_2 = arith.constant 0 : index
    %1 = vector.load %arg6[%c0_1, %c0_2] : memref<8x128xf32, #tpu.memory_space<vmem>>, vector<8x128xf32>
    tpu.vector_store %arg6[%c0_1, %c0_2], %0 {strides = array<i32>} : memref<8x128xf32, #tpu.memory_space<vmem>>, vector<8x128xf32>,
    %c0_i32 = arith.constant 0 : i32
    %c0_3 = arith.constant 0 : index
    %c0_4 = arith.constant 0 : index
    %2 = vector.load %arg6[%c0_3, %c0_4] : memref<8x128xf32, #tpu.memory_space<vmem>>, vector<8x128xf32>
    %3 = arith.index_cast %c0_i32 : i32 to index
    %c0_5 = arith.constant 0 : index
    %c0_6 = arith.constant 0 : index
    %4 = vector.load %arg1[%3, %c0_5, %c0_6] : memref<32x8x384xf32, #tpu.memory_space<vmem>>, vector<1x8x384xf32>
    %5 = vector.shape_cast %4 : vector<1x8x384xf32> to vector<8x384xf32>
    %c0_7 = arith.constant 0 : index
    %c0_8 = arith.constant 0 : index
    %6 = vector.load %arg3[%c0_7, %c0_8] : memref<128x384xf32, #tpu.memory_space<vmem>>, vector<128x384xf32>
    %cst = arith.constant dense<0.000000e+00> : vector<8x384xf32>
    %7 = tpu.matmul %2, %6, %cst {dimension_numbers = #tpu.dot_dimension_numbers<[1], [0], [0], [1], [0, 0, 1, 1], [], []>} : vector<8x128xf32>, vector<128x384xf32>, vector<8x384xf32> -> vector<8x384xf32>
    %8 = vector.extract_strided_slice %5 {offsets = [0, 0], sizes = [8, 128], strides = [1, 1]} : vector<8x384xf32> to vector<8x128xf32>
    %9 = vector.extract_strided_slice %7 {offsets = [0, 0], sizes = [8, 128], strides = [1, 1]} : vector<8x384xf32> to vector<8x128xf32>
    %10 = arith.addf %8, %9 : vector<8x128xf32>
    %11 = arith.negf %10 : vector<8x128xf32>
    %12 = math.exp %11 : vector<8x128xf32>
    %cst_9 = arith.constant 1.000000e+00 : f32
    %13 = vector.broadcast %cst_9 : f32 to vector<8x128xf32>
    %14 = arith.addf %13, %12 : vector<8x128xf32>
    %15 = arith.divf %13, %14 : vector<8x128xf32>
    %16 = vector.extract_strided_slice %5 {offsets = [0, 128], sizes = [8, 128], strides = [1, 1]} : vector<8x384xf32> to vector<8x128xf32>
    %17 = vector.extract_strided_slice %7 {offsets = [0, 128], sizes = [8, 128], strides = [1, 1]} : vector<8x384xf32> to vector<8x128xf32>
    %18 = arith.addf %16, %17 : vector<8x128xf32>
    %19 = arith.negf %18 : vector<8x128xf32>
    %20 = math.exp %19 : vector<8x128xf32>
    %cst_10 = arith.constant 1.000000e+00 : f32
    %21 = vector.broadcast %cst_10 : f32 to vector<8x128xf32>
    %22 = arith.addf %21, %20 : vector<8x128xf32>
    %23 = arith.divf %21, %22 : vector<8x128xf32>
    %24 = vector.extract_strided_slice %5 {offsets = [0, 256], sizes = [8, 128], strides = [1, 1]} : vector<8x384xf32> to vector<8x128xf32>
    %25 = vector.extract_strided_slice %7 {offsets = [0, 256], sizes = [8, 128], strides = [1, 1]} : vector<8x384xf32> to vector<8x128xf32>
    %c0_11 = arith.constant 0 : index
    %c0_12 = arith.constant 0 : index
    %26 = vector.load %arg4[%c0_11, %c0_12] : memref<1x128xf32, #tpu.memory_space<vmem>>, vector<1x128xf32>
    %27 = vector.broadcast %26 : vector<1x128xf32> to vector<8x128xf32>
    %28 = arith.addf %25, %27 : vector<8x128xf32>
    %29 = arith.mulf %15, %28 : vector<8x128xf32>
    %30 = arith.addf %24, %29 : vector<8x128xf32>
    %31 = math.tanh %30 : vector<8x128xf32>
    %cst_13 = arith.constant 1.000000e+00 : f32
    %32 = vector.broadcast %cst_13 : f32 to vector<8x128xf32>
    %33 = arith.subf %32, %23 : vector<8x128xf32>
    %34 = arith.mulf %33, %31 : vector<8x128xf32>
    %35 = arith.mulf %23, %2 : vector<8x128xf32>
    %36 = arith.addf %34, %35 : vector<8x128xf32>
    %c0_14 = arith.constant 0 : index
    %c0_15 = arith.constant 0 : index
    %37 = vector.load %arg6[%c0_14, %c0_15] : memref<8x128xf32, #tpu.memory_space<vmem>>, vector<8x128xf32>
    tpu.vector_store %arg6[%c0_14, %c0_15], %36 {strides = array<i32>} : memref<8x128xf32, #tpu.memory_space<vmem>>, vector<8x128xf32>,
    %38 = arith.index_cast %c0_i32 : i32 to index
    %c0_16 = arith.constant 0 : index
    %c0_17 = arith.constant 0 : index
    %39 = vector.load %arg5[%38, %c0_16, %c0_17] : memref<32x8x128xf32, #tpu.memory_space<vmem>>, vector<1x8x128xf32>
    %40 = vector.shape_cast %39 : vector<1x8x128xf32> to vector<8x128xf32>
    %41 = vector.shape_cast %36 : vector<8x128xf32> to vector<1x8x128xf32>
    tpu.vector_store %arg5[%38, %c0_16, %c0_17], %41 {strides = array<i32>} : memref<32x8x128xf32, #tpu.memory_space<vmem>>, vector<1x8x128xf32>,
    %c1_i32 = arith.constant 1 : i32
    %c0_18 = arith.constant 0 : index
    %c0_19 = arith.constant 0 : index
    %42 = vector.load %arg6[%c0_18, %c0_19] : memref<8x128xf32, #tpu.memory_space<vmem>>, vector<8x128xf32>
    %43 = arith.index_cast %c1_i32 : i32 to index
    %c0_20 = arith.constant 0 : index
    %c0_21 = arith.constant 0 : index
    %44 = vector.load %arg1[%43, %c0_20, %c0_21] : memref<32x8x384xf32, #tpu.memory_space<vmem>>, vector<1x8x384xf32>
    %45 = vector.shape_cast %44 : vector<1x8x384xf32> to vector<8x384xf32>
    %c0_22 = arith.constant 0 : index
    %c0_23 = arith.constant 0 : index
    %46 = vector.load %arg3[%c0_22, %c0_23] : memref<128x384xf32, #tpu.memory_space<vmem>>, vector<128x384xf32>
    %cst_24 = arith.constant dense<0.000000e+00> : vector<8x384xf32>
    %47 = tpu.matmul %42, %46, %cst_24 {dimension_numbers = #tpu.dot_dimension_numbers<[1], [0], [0], [1], [0, 0, 1, 1], [], []>} : vector<8x128xf32>, vector<128x384xf32>, vector<8x384xf32> -> vector<8x384xf32>
    %48 = vector.extract_strided_slice %45 {offsets = [0, 0], sizes = [8, 128], strides = [1, 1]} : vector<8x384xf32> to vector<8x128xf32>
    %49 = vector.extract_strided_slice %47 {offsets = [0, 0], sizes = [8, 128], strides = [1, 1]} : vector<8x384xf32> to vector<8x128xf32>
    %50 = arith.addf %48, %49 : vector<8x128xf32>
    %51 = arith.negf %50 : vector<8x128xf32>
    %52 = math.exp %51 : vector<8x128xf32>
    %cst_25 = arith.constant 1.000000e+00 : f32
    %53 = vector.broadcast %cst_25 : f32 to vector<8x128xf32>
    %54 = arith.addf %53, %52 : vector<8x128xf32>
    %55 = arith.divf %53, %54 : vector<8x128xf32>
    %56 = vector.extract_strided_slice %45 {offsets = [0, 128], sizes = [8, 128], strides = [1, 1]} : vector<8x384xf32> to vector<8x128xf32>
    %57 = vector.extract_strided_slice %47 {offsets = [0, 128], sizes = [8, 128], strides = [1, 1]} : vector<8x384xf32> to vector<8x128xf32>
    %58 = arith.addf %56, %57 : vector<8x128xf32>
    %59 = arith.negf %58 : vector<8x128xf32>
    %60 = math.exp %59 : vector<8x128xf32>
    %cst_26 = arith.constant 1.000000e+00 : f32
    %61 = vector.broadcast %cst_26 : f32 to vector<8x128xf32>
    %62 = arith.addf %61, %60 : vector<8x128xf32>
    %63 = arith.divf %61, %62 : vector<8x128xf32>
    %64 = vector.extract_strided_slice %45 {offsets = [0, 256], sizes = [8, 128], strides = [1, 1]} : vector<8x384xf32> to vector<8x128xf32>
    %65 = vector.extract_strided_slice %47 {offsets = [0, 256], sizes = [8, 128], strides = [1, 1]} : vector<8x384xf32> to vector<8x128xf32>
    %c0_27 = arith.constant 0 : index
    %c0_28 = arith.constant 0 : index
    %66 = vector.load %arg4[%c0_27, %c0_28] : memref<1x128xf32, #tpu.memory_space<vmem>>, vector<1x128xf32>
    %67 = vector.broadcast %66 : vector<1x128xf32> to vector<8x128xf32>
    %68 = arith.addf %65, %67 : vector<8x128xf32>
    %69 = arith.mulf %55, %68 : vector<8x128xf32>
    %70 = arith.addf %64, %69 : vector<8x128xf32>
    %71 = math.tanh %70 : vector<8x128xf32>
    %cst_29 = arith.constant 1.000000e+00 : f32
    %72 = vector.broadcast %cst_29 : f32 to vector<8x128xf32>
    %73 = arith.subf %72, %63 : vector<8x128xf32>
    %74 = arith.mulf %73, %71 : vector<8x128xf32>
    %75 = arith.mulf %63, %42 : vector<8x128xf32>
    %76 = arith.addf %74, %75 : vector<8x128xf32>
    %c0_30 = arith.constant 0 : index
    %c0_31 = arith.constant 0 : index
    %77 = vector.load %arg6[%c0_30, %c0_31] : memref<8x128xf32, #tpu.memory_space<vmem>>, vector<8x128xf32>
    tpu.vector_store %arg6[%c0_30, %c0_31], %76 {strides = array<i32>} : memref<8x128xf32, #tpu.memory_space<vmem>>, vector<8x128xf32>,
    %78 = arith.index_cast %c1_i32 : i32 to index
    %c0_32 = arith.constant 0 : index
    %c0_33 = arith.constant 0 : index
    %79 = vector.load %arg5[%78, %c0_32, %c0_33] : memref<32x8x128xf32, #tpu.memory_space<vmem>>, vector<1x8x128xf32>
    %80 = vector.shape_cast %79 : vector<1x8x128xf32> to vector<8x128xf32>
    %81 = vector.shape_cast %76 : vector<8x128xf32> to vector<1x8x128xf32>
    tpu.vector_store %arg5[%78, %c0_32, %c0_33], %81 {strides = array<i32>} : memref<32x8x128xf32, #tpu.memory_space<vmem>>, vector<1x8x128xf32>,
    %c2_i32 = arith.constant 2 : i32
    %c0_34 = arith.constant 0 : index
    %c0_35 = arith.constant 0 : index
    %82 = vector.load %arg6[%c0_34, %c0_35] : memref<8x128xf32, #tpu.memory_space<vmem>>, vector<8x128xf32>
    %83 = arith.index_cast %c2_i32 : i32 to index
    %c0_36 = arith.constant 0 : index
    %c0_37 = arith.constant 0 : index
    %84 = vector.load %arg1[%83, %c0_36, %c0_37] : memref<32x8x384xf32, #tpu.memory_space<vmem>>, vector<1x8x384xf32>
    %85 = vector.shape_cast %84 : vector<1x8x384xf32> to vector<8x384xf32>
    %c0_38 = arith.constant 0 : index
    %c0_39 = arith.constant 0 : index
    %86 = vector.load %arg3[%c0_38, %c0_39] : memref<128x384xf32, #tpu.memory_space<vmem>>, vector<128x384xf32>
    %cst_40 = arith.constant dense<0.000000e+00> : vector<8x384xf32>
    %87 = tpu.matmul %82, %86, %cst_40 {dimension_numbers = #tpu.dot_dimension_numbers<[1], [0], [0], [1], [0, 0, 1, 1], [], []>} : vector<8x128xf32>, vector<128x384xf32>, vector<8x384xf32> -> vector<8x384xf32>
    %88 = vector.extract_strided_slice %85 {offsets = [0, 0], sizes = [8, 128], strides = [1, 1]} : vector<8x384xf32> to vector<8x128xf32>
    %89 = vector.extract_strided_slice %87 {offsets = [0, 0], sizes = [8, 128], strides = [1, 1]} : vector<8x384xf32> to vector<8x128xf32>
    %90 = arith.addf %88, %89 : vector<8x128xf32>
    %91 = arith.negf %90 : vector<8x128xf32>
    %92 = math.exp %91 : vector<8x128xf32>
    %cst_41 = arith.constant 1.000000e+00 : f32
    %93 = vector.broadcast %cst_41 : f32 to vector<8x128xf32>
    %94 = arith.addf %93, %92 : vector<8x128xf32>
    %95 = arith.divf %93, %94 : vector<8x128xf32>
    %96 = vector.extract_strided_slice %85 {offsets = [0, 128], sizes = [8, 128], strides = [1, 1]} : vector<8x384xf32> to vector<8x128xf32>
    %97 = vector.extract_strided_slice %87 {offsets = [0, 128], sizes = [8, 128], strides = [1, 1]} : vector<8x384xf32> to vector<8x128xf32>
    %98 = arith.addf %96, %97 : vector<8x128xf32>
    %99 = arith.negf %98 : vector<8x128xf32>
    %100 = math.exp %99 : vector<8x128xf32>
    %cst_42 = arith.constant 1.000000e+00 : f32
    %101 = vector.broadcast %cst_42 : f32 to vector<8x128xf32>
    %102 = arith.addf %101, %100 : vector<8x128xf32>
    %103 = arith.divf %101, %102 : vector<8x128xf32>
    %104 = vector.extract_strided_slice %85 {offsets = [0, 256], sizes = [8, 128], strides = [1, 1]} : vector<8x384xf32> to vector<8x128xf32>
    %105 = vector.extract_strided_slice %87 {offsets = [0, 256], sizes = [8, 128], strides = [1, 1]} : vector<8x384xf32> to vector<8x128xf32>
    %c0_43 = arith.constant 0 : index
    %c0_44 = arith.constant 0 : index
    %106 = vector.load %arg4[%c0_43, %c0_44] : memref<1x128xf32, #tpu.memory_space<vmem>>, vector<1x128xf32>
    %107 = vector.broadcast %106 : vector<1x128xf32> to vector<8x128xf32>
    %108 = arith.addf %105, %107 : vector<8x128xf32>
    %109 = arith.mulf %95, %108 : vector<8x128xf32>
    %110 = arith.addf %104, %109 : vector<8x128xf32>
    %111 = math.tanh %110 : vector<8x128xf32>
    %cst_45 = arith.constant 1.000000e+00 : f32
    %112 = vector.broadcast %cst_45 : f32 to vector<8x128xf32>
    %113 = arith.subf %112, %103 : vector<8x128xf32>
    %114 = arith.mulf %113, %111 : vector<8x128xf32>
    %115 = arith.mulf %103, %82 : vector<8x128xf32>
    %116 = arith.addf %114, %115 : vector<8x128xf32>
    %c0_46 = arith.constant 0 : index
    %c0_47 = arith.constant 0 : index
    %117 = vector.load %arg6[%c0_46, %c0_47] : memref<8x128xf32, #tpu.memory_space<vmem>>, vector<8x128xf32>
    tpu.vector_store %arg6[%c0_46, %c0_47], %116 {strides = array<i32>} : memref<8x128xf32, #tpu.memory_space<vmem>>, vector<8x128xf32>,
    %118 = arith.index_cast %c2_i32 : i32 to index
    %c0_48 = arith.constant 0 : index
    %c0_49 = arith.constant 0 : index
    %119 = vector.load %arg5[%118, %c0_48, %c0_49] : memref<32x8x128xf32, #tpu.memory_space<vmem>>, vector<1x8x128xf32>
    %120 = vector.shape_cast %119 : vector<1x8x128xf32> to vector<8x128xf32>
    %121 = vector.shape_cast %116 : vector<8x128xf32> to vector<1x8x128xf32>
    tpu.vector_store %arg5[%118, %c0_48, %c0_49], %121 {strides = array<i32>} : memref<32x8x128xf32, #tpu.memory_space<vmem>>, vector<1x8x128xf32>,
    %c3_i32 = arith.constant 3 : i32
    %c0_50 = arith.constant 0 : index
    %c0_51 = arith.constant 0 : index
    %122 = vector.load %arg6[%c0_50, %c0_51] : memref<8x128xf32, #tpu.memory_space<vmem>>, vector<8x128xf32>
    %123 = arith.index_cast %c3_i32 : i32 to index
    %c0_52 = arith.constant 0 : index
    %c0_53 = arith.constant 0 : index
    %124 = vector.load %arg1[%123, %c0_52, %c0_53] : memref<32x8x384xf32, #tpu.memory_space<vmem>>, vector<1x8x384xf32>
    %125 = vector.shape_cast %124 : vector<1x8x384xf32> to vector<8x384xf32>
    %c0_54 = arith.constant 0 : index
    %c0_55 = arith.constant 0 : index
    %126 = vector.load %arg3[%c0_54, %c0_55] : memref<128x384xf32, #tpu.memory_space<vmem>>, vector<128x384xf32>
    %cst_56 = arith.constant dense<0.000000e+00> : vector<8x384xf32>
    %127 = tpu.matmul %122, %126, %cst_56 {dimension_numbers = #tpu.dot_dimension_numbers<[1], [0], [0], [1], [0, 0, 1, 1], [], []>} : vector<8x128xf32>, vector<128x384xf32>, vector<8x384xf32> -> vector<8x384xf32>
    %128 = vector.extract_strided_slice %125 {offsets = [0, 0], sizes = [8, 128], strides = [1, 1]} : vector<8x384xf32> to vector<8x128xf32>
    %129 = vector.extract_strided_slice %127 {offsets = [0, 0], sizes = [8, 128], strides = [1, 1]} : vector<8x384xf32> to vector<8x128xf32>
    %130 = arith.addf %128, %129 : vector<8x128xf32>
    %131 = arith.negf %130 : vector<8x128xf32>
    %132 = math.exp %131 : vector<8x128xf32>
    %cst_57 = arith.constant 1.000000e+00 : f32
    %133 = vector.broadcast %cst_57 : f32 to vector<8x128xf32>
    %134 = arith.addf %133, %132 : vector<8x128xf32>
    %135 = arith.divf %133, %134 : vector<8x128xf32>
    %136 = vector.extract_strided_slice %125 {offsets = [0, 128], sizes = [8, 128], strides = [1, 1]} : vector<8x384xf32> to vector<8x128xf32>
    %137 = vector.extract_strided_slice %127 {offsets = [0, 128], sizes = [8, 128], strides = [1, 1]} : vector<8x384xf32> to vector<8x128xf32>
    %138 = arith.addf %136, %137 : vector<8x128xf32>
    %139 = arith.negf %138 : vector<8x128xf32>
    %140 = math.exp %139 : vector<8x128xf32>
    %cst_58 = arith.constant 1.000000e+00 : f32
    %141 = vector.broadcast %cst_58 : f32 to vector<8x128xf32>
    %142 = arith.addf %141, %140 : vector<8x128xf32>
    %143 = arith.divf %141, %142 : vector<8x128xf32>
    %144 = vector.extract_strided_slice %125 {offsets = [0, 256], sizes = [8, 128], strides = [1, 1]} : vector<8x384xf32> to vector<8x128xf32>
    %145 = vector.extract_strided_slice %127 {offsets = [0, 256], sizes = [8, 128], strides = [1, 1]} : vector<8x384xf32> to vector<8x128xf32>
    %c0_59 = arith.constant 0 : index
    %c0_60 = arith.constant 0 : index
    %146 = vector.load %arg4[%c0_59, %c0_60] : memref<1x128xf32, #tpu.memory_space<vmem>>, vector<1x128xf32>
    %147 = vector.broadcast %146 : vector<1x128xf32> to vector<8x128xf32>
    %148 = arith.addf %145, %147 : vector<8x128xf32>
    %149 = arith.mulf %135, %148 : vector<8x128xf32>
    %150 = arith.addf %144, %149 : vector<8x128xf32>
    %151 = math.tanh %150 : vector<8x128xf32>
    %cst_61 = arith.constant 1.000000e+00 : f32
    %152 = vector.broadcast %cst_61 : f32 to vector<8x128xf32>
    %153 = arith.subf %152, %143 : vector<8x128xf32>
    %154 = arith.mulf %153, %151 : vector<8x128xf32>
    %155 = arith.mulf %143, %122 : vector<8x128xf32>
    %156 = arith.addf %154, %155 : vector<8x128xf32>
    %c0_62 = arith.constant 0 : index
    %c0_63 = arith.constant 0 : index
    %157 = vector.load %arg6[%c0_62, %c0_63] : memref<8x128xf32, #tpu.memory_space<vmem>>, vector<8x128xf32>
    tpu.vector_store %arg6[%c0_62, %c0_63], %156 {strides = array<i32>} : memref<8x128xf32, #tpu.memory_space<vmem>>, vector<8x128xf32>,
    %158 = arith.index_cast %c3_i32 : i32 to index
    %c0_64 = arith.constant 0 : index
    %c0_65 = arith.constant 0 : index
    %159 = vector.load %arg5[%158, %c0_64, %c0_65] : memref<32x8x128xf32, #tpu.memory_space<vmem>>, vector<1x8x128xf32>
    %160 = vector.shape_cast %159 : vector<1x8x128xf32> to vector<8x128xf32>
    %161 = vector.shape_cast %156 : vector<8x128xf32> to vector<1x8x128xf32>
    tpu.vector_store %arg5[%158, %c0_64, %c0_65], %161 {strides = array<i32>} : memref<32x8x128xf32, #tpu.memory_space<vmem>>, vector<1x8x128xf32>,
    %c4_i32 = arith.constant 4 : i32
    %c0_66 = arith.constant 0 : index
    %c0_67 = arith.constant 0 : index
    %162 = vector.load %arg6[%c0_66, %c0_67] : memref<8x128xf32, #tpu.memory_space<vmem>>, vector<8x128xf32>
    %163 = arith.index_cast %c4_i32 : i32 to index
    %c0_68 = arith.constant 0 : index
    %c0_69 = arith.constant 0 : index
    %164 = vector.load %arg1[%163, %c0_68, %c0_69] : memref<32x8x384xf32, #tpu.memory_space<vmem>>, vector<1x8x384xf32>
    %165 = vector.shape_cast %164 : vector<1x8x384xf32> to vector<8x384xf32>
    %c0_70 = arith.constant 0 : index
    %c0_71 = arith.constant 0 : index
    %166 = vector.load %arg3[%c0_70, %c0_71] : memref<128x384xf32, #tpu.memory_space<vmem>>, vector<128x384xf32>
    %cst_72 = arith.constant dense<0.000000e+00> : vector<8x384xf32>
    %167 = tpu.matmul %162, %166, %cst_72 {dimension_numbers = #tpu.dot_dimension_numbers<[1], [0], [0], [1], [0, 0, 1, 1], [], []>} : vector<8x128xf32>, vector<128x384xf32>, vector<8x384xf32> -> vector<8x384xf32>
    %168 = vector.extract_strided_slice %165 {offsets = [0, 0], sizes = [8, 128], strides = [1, 1]} : vector<8x384xf32> to vector<8x128xf32>
    %169 = vector.extract_strided_slice %167 {offsets = [0, 0], sizes = [8, 128], strides = [1, 1]} : vector<8x384xf32> to vector<8x128xf32>
    %170 = arith.addf %168, %169 : vector<8x128xf32>
    %171 = arith.negf %170 : vector<8x128xf32>
    %172 = math.exp %171 : vector<8x128xf32>
    %cst_73 = arith.constant 1.000000e+00 : f32
    %173 = vector.broadcast %cst_73 : f32 to vector<8x128xf32>
    %174 = arith.addf %173, %172 : vector<8x128xf32>
    %175 = arith.divf %173, %174 : vector<8x128xf32>
    %176 = vector.extract_strided_slice %165 {offsets = [0, 128], sizes = [8, 128], strides = [1, 1]} : vector<8x384xf32> to vector<8x128xf32>
    %177 = vector.extract_strided_slice %167 {offsets = [0, 128], sizes = [8, 128], strides = [1, 1]} : vector<8x384xf32> to vector<8x128xf32>
    %178 = arith.addf %176, %177 : vector<8x128xf32>
    %179 = arith.negf %178 : vector<8x128xf32>
    %180 = math.exp %179 : vector<8x128xf32>
    %cst_74 = arith.constant 1.000000e+00 : f32
    %181 = vector.broadcast %cst_74 : f32 to vector<8x128xf32>
    %182 = arith.addf %181, %180 : vector<8x128xf32>
    %183 = arith.divf %181, %182 : vector<8x128xf32>
    %184 = vector.extract_strided_slice %165 {offsets = [0, 256], sizes = [8, 128], strides = [1, 1]} : vector<8x384xf32> to vector<8x128xf32>
    %185 = vector.extract_strided_slice %167 {offsets = [0, 256], sizes = [8, 128], strides = [1, 1]} : vector<8x384xf32> to vector<8x128xf32>
    %c0_75 = arith.constant 0 : index
    %c0_76 = arith.constant 0 : index
    %186 = vector.load %arg4[%c0_75, %c0_76] : memref<1x128xf32, #tpu.memory_space<vmem>>, vector<1x128xf32>
    %187 = vector.broadcast %186 : vector<1x128xf32> to vector<8x128xf32>
    %188 = arith.addf %185, %187 : vector<8x128xf32>
    %189 = arith.mulf %175, %188 : vector<8x128xf32>
    %190 = arith.addf %184, %189 : vector<8x128xf32>
    %191 = math.tanh %190 : vector<8x128xf32>
    %cst_77 = arith.constant 1.000000e+00 : f32
    %192 = vector.broadcast %cst_77 : f32 to vector<8x128xf32>
    %193 = arith.subf %192, %183 : vector<8x128xf32>
    %194 = arith.mulf %193, %191 : vector<8x128xf32>
    %195 = arith.mulf %183, %162 : vector<8x128xf32>
    %196 = arith.addf %194, %195 : vector<8x128xf32>
    %c0_78 = arith.constant 0 : index
    %c0_79 = arith.constant 0 : index
    %197 = vector.load %arg6[%c0_78, %c0_79] : memref<8x128xf32, #tpu.memory_space<vmem>>, vector<8x128xf32>
    tpu.vector_store %arg6[%c0_78, %c0_79], %196 {strides = array<i32>} : memref<8x128xf32, #tpu.memory_space<vmem>>, vector<8x128xf32>,
    %198 = arith.index_cast %c4_i32 : i32 to index
    %c0_80 = arith.constant 0 : index
    %c0_81 = arith.constant 0 : index
    %199 = vector.load %arg5[%198, %c0_80, %c0_81] : memref<32x8x128xf32, #tpu.memory_space<vmem>>, vector<1x8x128xf32>
    %200 = vector.shape_cast %199 : vector<1x8x128xf32> to vector<8x128xf32>
    %201 = vector.shape_cast %196 : vector<8x128xf32> to vector<1x8x128xf32>
    tpu.vector_store %arg5[%198, %c0_80, %c0_81], %201 {strides = array<i32>} : memref<32x8x128xf32, #tpu.memory_space<vmem>>, vector<1x8x128xf32>,
    %c5_i32 = arith.constant 5 : i32
    %c0_82 = arith.constant 0 : index
    %c0_83 = arith.constant 0 : index
    %202 = vector.load %arg6[%c0_82, %c0_83] : memref<8x128xf32, #tpu.memory_space<vmem>>, vector<8x128xf32>
    %203 = arith.index_cast %c5_i32 : i32 to index
    %c0_84 = arith.constant 0 : index
    %c0_85 = arith.constant 0 : index
    %204 = vector.load %arg1[%203, %c0_84, %c0_85] : memref<32x8x384xf32, #tpu.memory_space<vmem>>, vector<1x8x384xf32>
    %205 = vector.shape_cast %204 : vector<1x8x384xf32> to vector<8x384xf32>
    %c0_86 = arith.constant 0 : index
    %c0_87 = arith.constant 0 : index
    %206 = vector.load %arg3[%c0_86, %c0_87] : memref<128x384xf32, #tpu.memory_space<vmem>>, vector<128x384xf32>
    %cst_88 = arith.constant dense<0.000000e+00> : vector<8x384xf32>
    %207 = tpu.matmul %202, %206, %cst_88 {dimension_numbers = #tpu.dot_dimension_numbers<[1], [0], [0], [1], [0, 0, 1, 1], [], []>} : vector<8x128xf32>, vector<128x384xf32>, vector<8x384xf32> -> vector<8x384xf32>
    %208 = vector.extract_strided_slice %205 {offsets = [0, 0], sizes = [8, 128], strides = [1, 1]} : vector<8x384xf32> to vector<8x128xf32>
    %209 = vector.extract_strided_slice %207 {offsets = [0, 0], sizes = [8, 128], strides = [1, 1]} : vector<8x384xf32> to vector<8x128xf32>
    %210 = arith.addf %208, %209 : vector<8x128xf32>
    %211 = arith.negf %210 : vector<8x128xf32>
    %212 = math.exp %211 : vector<8x128xf32>
    %cst_89 = arith.constant 1.000000e+00 : f32
    %213 = vector.broadcast %cst_89 : f32 to vector<8x128xf32>
    %214 = arith.addf %213, %212 : vector<8x128xf32>
    %215 = arith.divf %213, %214 : vector<8x128xf32>
    %216 = vector.extract_strided_slice %205 {offsets = [0, 128], sizes = [8, 128], strides = [1, 1]} : vector<8x384xf32> to vector<8x128xf32>
    %217 = vector.extract_strided_slice %207 {offsets = [0, 128], sizes = [8, 128], strides = [1, 1]} : vector<8x384xf32> to vector<8x128xf32>
    %218 = arith.addf %216, %217 : vector<8x128xf32>
    %219 = arith.negf %218 : vector<8x128xf32>
    %220 = math.exp %219 : vector<8x128xf32>
    %cst_90 = arith.constant 1.000000e+00 : f32
    %221 = vector.broadcast %cst_90 : f32 to vector<8x128xf32>
    %222 = arith.addf %221, %220 : vector<8x128xf32>
    %223 = arith.divf %221, %222 : vector<8x128xf32>
    %224 = vector.extract_strided_slice %205 {offsets = [0, 256], sizes = [8, 128], strides = [1, 1]} : vector<8x384xf32> to vector<8x128xf32>
    %225 = vector.extract_strided_slice %207 {offsets = [0, 256], sizes = [8, 128], strides = [1, 1]} : vector<8x384xf32> to vector<8x128xf32>
    %c0_91 = arith.constant 0 : index
    %c0_92 = arith.constant 0 : index
    %226 = vector.load %arg4[%c0_91, %c0_92] : memref<1x128xf32, #tpu.memory_space<vmem>>, vector<1x128xf32>
    %227 = vector.broadcast %226 : vector<1x128xf32> to vector<8x128xf32>
    %228 = arith.addf %225, %227 : vector<8x128xf32>
    %229 = arith.mulf %215, %228 : vector<8x128xf32>
    %230 = arith.addf %224, %229 : vector<8x128xf32>
    %231 = math.tanh %230 : vector<8x128xf32>
    %cst_93 = arith.constant 1.000000e+00 : f32
    %232 = vector.broadcast %cst_93 : f32 to vector<8x128xf32>
    %233 = arith.subf %232, %223 : vector<8x128xf32>
    %234 = arith.mulf %233, %231 : vector<8x128xf32>
    %235 = arith.mulf %223, %202 : vector<8x128xf32>
    %236 = arith.addf %234, %235 : vector<8x128xf32>
    %c0_94 = arith.constant 0 : index
    %c0_95 = arith.constant 0 : index
    %237 = vector.load %arg6[%c0_94, %c0_95] : memref<8x128xf32, #tpu.memory_space<vmem>>, vector<8x128xf32>
    tpu.vector_store %arg6[%c0_94, %c0_95], %236 {strides = array<i32>} : memref<8x128xf32, #tpu.memory_space<vmem>>, vector<8x128xf32>,
    %238 = arith.index_cast %c5_i32 : i32 to index
    %c0_96 = arith.constant 0 : index
    %c0_97 = arith.constant 0 : index
    %239 = vector.load %arg5[%238, %c0_96, %c0_97] : memref<32x8x128xf32, #tpu.memory_space<vmem>>, vector<1x8x128xf32>
    %240 = vector.shape_cast %239 : vector<1x8x128xf32> to vector<8x128xf32>
    %241 = vector.shape_cast %236 : vector<8x128xf32> to vector<1x8x128xf32>
    tpu.vector_store %arg5[%238, %c0_96, %c0_97], %241 {strides = array<i32>} : memref<32x8x128xf32, #tpu.memory_space<vmem>>, vector<1x8x128xf32>,
    %c6_i32 = arith.constant 6 : i32
    %c0_98 = arith.constant 0 : index
    %c0_99 = arith.constant 0 : index
    %242 = vector.load %arg6[%c0_98, %c0_99] : memref<8x128xf32, #tpu.memory_space<vmem>>, vector<8x128xf32>
    %243 = arith.index_cast %c6_i32 : i32 to index
    %c0_100 = arith.constant 0 : index
    %c0_101 = arith.constant 0 : index
    %244 = vector.load %arg1[%243, %c0_100, %c0_101] : memref<32x8x384xf32, #tpu.memory_space<vmem>>, vector<1x8x384xf32>
    %245 = vector.shape_cast %244 : vector<1x8x384xf32> to vector<8x384xf32>
    %c0_102 = arith.constant 0 : index
    %c0_103 = arith.constant 0 : index
    %246 = vector.load %arg3[%c0_102, %c0_103] : memref<128x384xf32, #tpu.memory_space<vmem>>, vector<128x384xf32>
    %cst_104 = arith.constant dense<0.000000e+00> : vector<8x384xf32>
    %247 = tpu.matmul %242, %246, %cst_104 {dimension_numbers = #tpu.dot_dimension_numbers<[1], [0], [0], [1], [0, 0, 1, 1], [], []>} : vector<8x128xf32>, vector<128x384xf32>, vector<8x384xf32> -> vector<8x384xf32>
    %248 = vector.extract_strided_slice %245 {offsets = [0, 0], sizes = [8, 128], strides = [1, 1]} : vector<8x384xf32> to vector<8x128xf32>
    %249 = vector.extract_strided_slice %247 {offsets = [0, 0], sizes = [8, 128], strides = [1, 1]} : vector<8x384xf32> to vector<8x128xf32>
    %250 = arith.addf %248, %249 : vector<8x128xf32>
    %251 = arith.negf %250 : vector<8x128xf32>
    %252 = math.exp %251 : vector<8x128xf32>
    %cst_105 = arith.constant 1.000000e+00 : f32
    %253 = vector.broadcast %cst_105 : f32 to vector<8x128xf32>
    %254 = arith.addf %253, %252 : vector<8x128xf32>
    %255 = arith.divf %253, %254 : vector<8x128xf32>
    %256 = vector.extract_strided_slice %245 {offsets = [0, 128], sizes = [8, 128], strides = [1, 1]} : vector<8x384xf32> to vector<8x128xf32>
    %257 = vector.extract_strided_slice %247 {offsets = [0, 128], sizes = [8, 128], strides = [1, 1]} : vector<8x384xf32> to vector<8x128xf32>
    %258 = arith.addf %256, %257 : vector<8x128xf32>
    %259 = arith.negf %258 : vector<8x128xf32>
    %260 = math.exp %259 : vector<8x128xf32>
    %cst_106 = arith.constant 1.000000e+00 : f32
    %261 = vector.broadcast %cst_106 : f32 to vector<8x128xf32>
    %262 = arith.addf %261, %260 : vector<8x128xf32>
    %263 = arith.divf %261, %262 : vector<8x128xf32>
    %264 = vector.extract_strided_slice %245 {offsets = [0, 256], sizes = [8, 128], strides = [1, 1]} : vector<8x384xf32> to vector<8x128xf32>
    %265 = vector.extract_strided_slice %247 {offsets = [0, 256], sizes = [8, 128], strides = [1, 1]} : vector<8x384xf32> to vector<8x128xf32>
    %c0_107 = arith.constant 0 : index
    %c0_108 = arith.constant 0 : index
    %266 = vector.load %arg4[%c0_107, %c0_108] : memref<1x128xf32, #tpu.memory_space<vmem>>, vector<1x128xf32>
    %267 = vector.broadcast %266 : vector<1x128xf32> to vector<8x128xf32>
    %268 = arith.addf %265, %267 : vector<8x128xf32>
    %269 = arith.mulf %255, %268 : vector<8x128xf32>
    %270 = arith.addf %264, %269 : vector<8x128xf32>
    %271 = math.tanh %270 : vector<8x128xf32>
    %cst_109 = arith.constant 1.000000e+00 : f32
    %272 = vector.broadcast %cst_109 : f32 to vector<8x128xf32>
    %273 = arith.subf %272, %263 : vector<8x128xf32>
    %274 = arith.mulf %273, %271 : vector<8x128xf32>
    %275 = arith.mulf %263, %242 : vector<8x128xf32>
    %276 = arith.addf %274, %275 : vector<8x128xf32>
    %c0_110 = arith.constant 0 : index
    %c0_111 = arith.constant 0 : index
    %277 = vector.load %arg6[%c0_110, %c0_111] : memref<8x128xf32, #tpu.memory_space<vmem>>, vector<8x128xf32>
    tpu.vector_store %arg6[%c0_110, %c0_111], %276 {strides = array<i32>} : memref<8x128xf32, #tpu.memory_space<vmem>>, vector<8x128xf32>,
    %278 = arith.index_cast %c6_i32 : i32 to index
    %c0_112 = arith.constant 0 : index
    %c0_113 = arith.constant 0 : index
    %279 = vector.load %arg5[%278, %c0_112, %c0_113] : memref<32x8x128xf32, #tpu.memory_space<vmem>>, vector<1x8x128xf32>
    %280 = vector.shape_cast %279 : vector<1x8x128xf32> to vector<8x128xf32>
    %281 = vector.shape_cast %276 : vector<8x128xf32> to vector<1x8x128xf32>
    tpu.vector_store %arg5[%278, %c0_112, %c0_113], %281 {strides = array<i32>} : memref<32x8x128xf32, #tpu.memory_space<vmem>>, vector<1x8x128xf32>,
    %c7_i32 = arith.constant 7 : i32
    %c0_114 = arith.constant 0 : index
    %c0_115 = arith.constant 0 : index
    %282 = vector.load %arg6[%c0_114, %c0_115] : memref<8x128xf32, #tpu.memory_space<vmem>>, vector<8x128xf32>
    %283 = arith.index_cast %c7_i32 : i32 to index
    %c0_116 = arith.constant 0 : index
    %c0_117 = arith.constant 0 : index
    %284 = vector.load %arg1[%283, %c0_116, %c0_117] : memref<32x8x384xf32, #tpu.memory_space<vmem>>, vector<1x8x384xf32>
    %285 = vector.shape_cast %284 : vector<1x8x384xf32> to vector<8x384xf32>
    %c0_118 = arith.constant 0 : index
    %c0_119 = arith.constant 0 : index
    %286 = vector.load %arg3[%c0_118, %c0_119] : memref<128x384xf32, #tpu.memory_space<vmem>>, vector<128x384xf32>
    %cst_120 = arith.constant dense<0.000000e+00> : vector<8x384xf32>
    %287 = tpu.matmul %282, %286, %cst_120 {dimension_numbers = #tpu.dot_dimension_numbers<[1], [0], [0], [1], [0, 0, 1, 1], [], []>} : vector<8x128xf32>, vector<128x384xf32>, vector<8x384xf32> -> vector<8x384xf32>
    %288 = vector.extract_strided_slice %285 {offsets = [0, 0], sizes = [8, 128], strides = [1, 1]} : vector<8x384xf32> to vector<8x128xf32>
    %289 = vector.extract_strided_slice %287 {offsets = [0, 0], sizes = [8, 128], strides = [1, 1]} : vector<8x384xf32> to vector<8x128xf32>
    %290 = arith.addf %288, %289 : vector<8x128xf32>
    %291 = arith.negf %290 : vector<8x128xf32>
    %292 = math.exp %291 : vector<8x128xf32>
    %cst_121 = arith.constant 1.000000e+00 : f32
    %293 = vector.broadcast %cst_121 : f32 to vector<8x128xf32>
    %294 = arith.addf %293, %292 : vector<8x128xf32>
    %295 = arith.divf %293, %294 : vector<8x128xf32>
    %296 = vector.extract_strided_slice %285 {offsets = [0, 128], sizes = [8, 128], strides = [1, 1]} : vector<8x384xf32> to vector<8x128xf32>
    %297 = vector.extract_strided_slice %287 {offsets = [0, 128], sizes = [8, 128], strides = [1, 1]} : vector<8x384xf32> to vector<8x128xf32>
    %298 = arith.addf %296, %297 : vector<8x128xf32>
    %299 = arith.negf %298 : vector<8x128xf32>
    %300 = math.exp %299 : vector<8x128xf32>
    %cst_122 = arith.constant 1.000000e+00 : f32
    %301 = vector.broadcast %cst_122 : f32 to vector<8x128xf32>
    %302 = arith.addf %301, %300 : vector<8x128xf32>
    %303 = arith.divf %301, %302 : vector<8x128xf32>
    %304 = vector.extract_strided_slice %285 {offsets = [0, 256], sizes = [8, 128], strides = [1, 1]} : vector<8x384xf32> to vector<8x128xf32>
    %305 = vector.extract_strided_slice %287 {offsets = [0, 256], sizes = [8, 128], strides = [1, 1]} : vector<8x384xf32> to vector<8x128xf32>
    %c0_123 = arith.constant 0 : index
    %c0_124 = arith.constant 0 : index
    %306 = vector.load %arg4[%c0_123, %c0_124] : memref<1x128xf32, #tpu.memory_space<vmem>>, vector<1x128xf32>
    %307 = vector.broadcast %306 : vector<1x128xf32> to vector<8x128xf32>
    %308 = arith.addf %305, %307 : vector<8x128xf32>
    %309 = arith.mulf %295, %308 : vector<8x128xf32>
    %310 = arith.addf %304, %309 : vector<8x128xf32>
    %311 = math.tanh %310 : vector<8x128xf32>
    %cst_125 = arith.constant 1.000000e+00 : f32
    %312 = vector.broadcast %cst_125 : f32 to vector<8x128xf32>
    %313 = arith.subf %312, %303 : vector<8x128xf32>
    %314 = arith.mulf %313, %311 : vector<8x128xf32>
    %315 = arith.mulf %303, %282 : vector<8x128xf32>
    %316 = arith.addf %314, %315 : vector<8x128xf32>
    %c0_126 = arith.constant 0 : index
    %c0_127 = arith.constant 0 : index
    %317 = vector.load %arg6[%c0_126, %c0_127] : memref<8x128xf32, #tpu.memory_space<vmem>>, vector<8x128xf32>
    tpu.vector_store %arg6[%c0_126, %c0_127], %316 {strides = array<i32>} : memref<8x128xf32, #tpu.memory_space<vmem>>, vector<8x128xf32>,
    %318 = arith.index_cast %c7_i32 : i32 to index
    %c0_128 = arith.constant 0 : index
    %c0_129 = arith.constant 0 : index
    %319 = vector.load %arg5[%318, %c0_128, %c0_129] : memref<32x8x128xf32, #tpu.memory_space<vmem>>, vector<1x8x128xf32>
    %320 = vector.shape_cast %319 : vector<1x8x128xf32> to vector<8x128xf32>
    %321 = vector.shape_cast %316 : vector<8x128xf32> to vector<1x8x128xf32>
    tpu.vector_store %arg5[%318, %c0_128, %c0_129], %321 {strides = array<i32>} : memref<32x8x128xf32, #tpu.memory_space<vmem>>, vector<1x8x128xf32>,
    %c8_i32 = arith.constant 8 : i32
    %c0_130 = arith.constant 0 : index
    %c0_131 = arith.constant 0 : index
    %322 = vector.load %arg6[%c0_130, %c0_131] : memref<8x128xf32, #tpu.memory_space<vmem>>, vector<8x128xf32>
    %323 = arith.index_cast %c8_i32 : i32 to index
    %c0_132 = arith.constant 0 : index
    %c0_133 = arith.constant 0 : index
    %324 = vector.load %arg1[%323, %c0_132, %c0_133] : memref<32x8x384xf32, #tpu.memory_space<vmem>>, vector<1x8x384xf32>
    %325 = vector.shape_cast %324 : vector<1x8x384xf32> to vector<8x384xf32>
    %c0_134 = arith.constant 0 : index
    %c0_135 = arith.constant 0 : index
    %326 = vector.load %arg3[%c0_134, %c0_135] : memref<128x384xf32, #tpu.memory_space<vmem>>, vector<128x384xf32>
    %cst_136 = arith.constant dense<0.000000e+00> : vector<8x384xf32>
    %327 = tpu.matmul %322, %326, %cst_136 {dimension_numbers = #tpu.dot_dimension_numbers<[1], [0], [0], [1], [0, 0, 1, 1], [], []>} : vector<8x128xf32>, vector<128x384xf32>, vector<8x384xf32> -> vector<8x384xf32>
    %328 = vector.extract_strided_slice %325 {offsets = [0, 0], sizes = [8, 128], strides = [1, 1]} : vector<8x384xf32> to vector<8x128xf32>
    %329 = vector.extract_strided_slice %327 {offsets = [0, 0], sizes = [8, 128], strides = [1, 1]} : vector<8x384xf32> to vector<8x128xf32>
    %330 = arith.addf %328, %329 : vector<8x128xf32>
    %331 = arith.negf %330 : vector<8x128xf32>
    %332 = math.exp %331 : vector<8x128xf32>
    %cst_137 = arith.constant 1.000000e+00 : f32
    %333 = vector.broadcast %cst_137 : f32 to vector<8x128xf32>
    %334 = arith.addf %333, %332 : vector<8x128xf32>
    %335 = arith.divf %333, %334 : vector<8x128xf32>
    %336 = vector.extract_strided_slice %325 {offsets = [0, 128], sizes = [8, 128], strides = [1, 1]} : vector<8x384xf32> to vector<8x128xf32>
    %337 = vector.extract_strided_slice %327 {offsets = [0, 128], sizes = [8, 128], strides = [1, 1]} : vector<8x384xf32> to vector<8x128xf32>
    %338 = arith.addf %336, %337 : vector<8x128xf32>
    %339 = arith.negf %338 : vector<8x128xf32>
    %340 = math.exp %339 : vector<8x128xf32>
    %cst_138 = arith.constant 1.000000e+00 : f32
    %341 = vector.broadcast %cst_138 : f32 to vector<8x128xf32>
    %342 = arith.addf %341, %340 : vector<8x128xf32>
    %343 = arith.divf %341, %342 : vector<8x128xf32>
    %344 = vector.extract_strided_slice %325 {offsets = [0, 256], sizes = [8, 128], strides = [1, 1]} : vector<8x384xf32> to vector<8x128xf32>
    %345 = vector.extract_strided_slice %327 {offsets = [0, 256], sizes = [8, 128], strides = [1, 1]} : vector<8x384xf32> to vector<8x128xf32>
    %c0_139 = arith.constant 0 : index
    %c0_140 = arith.constant 0 : index
    %346 = vector.load %arg4[%c0_139, %c0_140] : memref<1x128xf32, #tpu.memory_space<vmem>>, vector<1x128xf32>
    %347 = vector.broadcast %346 : vector<1x128xf32> to vector<8x128xf32>
    %348 = arith.addf %345, %347 : vector<8x128xf32>
    %349 = arith.mulf %335, %348 : vector<8x128xf32>
    %350 = arith.addf %344, %349 : vector<8x128xf32>
    %351 = math.tanh %350 : vector<8x128xf32>
    %cst_141 = arith.constant 1.000000e+00 : f32
    %352 = vector.broadcast %cst_141 : f32 to vector<8x128xf32>
    %353 = arith.subf %352, %343 : vector<8x128xf32>
    %354 = arith.mulf %353, %351 : vector<8x128xf32>
    %355 = arith.mulf %343, %322 : vector<8x128xf32>
    %356 = arith.addf %354, %355 : vector<8x128xf32>
    %c0_142 = arith.constant 0 : index
    %c0_143 = arith.constant 0 : index
    %357 = vector.load %arg6[%c0_142, %c0_143] : memref<8x128xf32, #tpu.memory_space<vmem>>, vector<8x128xf32>
    tpu.vector_store %arg6[%c0_142, %c0_143], %356 {strides = array<i32>} : memref<8x128xf32, #tpu.memory_space<vmem>>, vector<8x128xf32>,
    %358 = arith.index_cast %c8_i32 : i32 to index
    %c0_144 = arith.constant 0 : index
    %c0_145 = arith.constant 0 : index
    %359 = vector.load %arg5[%358, %c0_144, %c0_145] : memref<32x8x128xf32, #tpu.memory_space<vmem>>, vector<1x8x128xf32>
    %360 = vector.shape_cast %359 : vector<1x8x128xf32> to vector<8x128xf32>
    %361 = vector.shape_cast %356 : vector<8x128xf32> to vector<1x8x128xf32>
    tpu.vector_store %arg5[%358, %c0_144, %c0_145], %361 {strides = array<i32>} : memref<32x8x128xf32, #tpu.memory_space<vmem>>, vector<1x8x128xf32>,
    %c9_i32 = arith.constant 9 : i32
    %c0_146 = arith.constant 0 : index
    %c0_147 = arith.constant 0 : index
    %362 = vector.load %arg6[%c0_146, %c0_147] : memref<8x128xf32, #tpu.memory_space<vmem>>, vector<8x128xf32>
    %363 = arith.index_cast %c9_i32 : i32 to index
    %c0_148 = arith.constant 0 : index
    %c0_149 = arith.constant 0 : index
    %364 = vector.load %arg1[%363, %c0_148, %c0_149] : memref<32x8x384xf32, #tpu.memory_space<vmem>>, vector<1x8x384xf32>
    %365 = vector.shape_cast %364 : vector<1x8x384xf32> to vector<8x384xf32>
    %c0_150 = arith.constant 0 : index
    %c0_151 = arith.constant 0 : index
    %366 = vector.load %arg3[%c0_150, %c0_151] : memref<128x384xf32, #tpu.memory_space<vmem>>, vector<128x384xf32>
    %cst_152 = arith.constant dense<0.000000e+00> : vector<8x384xf32>
    %367 = tpu.matmul %362, %366, %cst_152 {dimension_numbers = #tpu.dot_dimension_numbers<[1], [0], [0], [1], [0, 0, 1, 1], [], []>} : vector<8x128xf32>, vector<128x384xf32>, vector<8x384xf32> -> vector<8x384xf32>
    %368 = vector.extract_strided_slice %365 {offsets = [0, 0], sizes = [8, 128], strides = [1, 1]} : vector<8x384xf32> to vector<8x128xf32>
    %369 = vector.extract_strided_slice %367 {offsets = [0, 0], sizes = [8, 128], strides = [1, 1]} : vector<8x384xf32> to vector<8x128xf32>
    %370 = arith.addf %368, %369 : vector<8x128xf32>
    %371 = arith.negf %370 : vector<8x128xf32>
    %372 = math.exp %371 : vector<8x128xf32>
    %cst_153 = arith.constant 1.000000e+00 : f32
    %373 = vector.broadcast %cst_153 : f32 to vector<8x128xf32>
    %374 = arith.addf %373, %372 : vector<8x128xf32>
    %375 = arith.divf %373, %374 : vector<8x128xf32>
    %376 = vector.extract_strided_slice %365 {offsets = [0, 128], sizes = [8, 128], strides = [1, 1]} : vector<8x384xf32> to vector<8x128xf32>
    %377 = vector.extract_strided_slice %367 {offsets = [0, 128], sizes = [8, 128], strides = [1, 1]} : vector<8x384xf32> to vector<8x128xf32>
    %378 = arith.addf %376, %377 : vector<8x128xf32>
    %379 = arith.negf %378 : vector<8x128xf32>
    %380 = math.exp %379 : vector<8x128xf32>
    %cst_154 = arith.constant 1.000000e+00 : f32
    %381 = vector.broadcast %cst_154 : f32 to vector<8x128xf32>
    %382 = arith.addf %381, %380 : vector<8x128xf32>
    %383 = arith.divf %381, %382 : vector<8x128xf32>
    %384 = vector.extract_strided_slice %365 {offsets = [0, 256], sizes = [8, 128], strides = [1, 1]} : vector<8x384xf32> to vector<8x128xf32>
    %385 = vector.extract_strided_slice %367 {offsets = [0, 256], sizes = [8, 128], strides = [1, 1]} : vector<8x384xf32> to vector<8x128xf32>
    %c0_155 = arith.constant 0 : index
    %c0_156 = arith.constant 0 : index
    %386 = vector.load %arg4[%c0_155, %c0_156] : memref<1x128xf32, #tpu.memory_space<vmem>>, vector<1x128xf32>
    %387 = vector.broadcast %386 : vector<1x128xf32> to vector<8x128xf32>
    %388 = arith.addf %385, %387 : vector<8x128xf32>
    %389 = arith.mulf %375, %388 : vector<8x128xf32>
    %390 = arith.addf %384, %389 : vector<8x128xf32>
    %391 = math.tanh %390 : vector<8x128xf32>
    %cst_157 = arith.constant 1.000000e+00 : f32
    %392 = vector.broadcast %cst_157 : f32 to vector<8x128xf32>
    %393 = arith.subf %392, %383 : vector<8x128xf32>
    %394 = arith.mulf %393, %391 : vector<8x128xf32>
    %395 = arith.mulf %383, %362 : vector<8x128xf32>
    %396 = arith.addf %394, %395 : vector<8x128xf32>
    %c0_158 = arith.constant 0 : index
    %c0_159 = arith.constant 0 : index
    %397 = vector.load %arg6[%c0_158, %c0_159] : memref<8x128xf32, #tpu.memory_space<vmem>>, vector<8x128xf32>
    tpu.vector_store %arg6[%c0_158, %c0_159], %396 {strides = array<i32>} : memref<8x128xf32, #tpu.memory_space<vmem>>, vector<8x128xf32>,
    %398 = arith.index_cast %c9_i32 : i32 to index
    %c0_160 = arith.constant 0 : index
    %c0_161 = arith.constant 0 : index
    %399 = vector.load %arg5[%398, %c0_160, %c0_161] : memref<32x8x128xf32, #tpu.memory_space<vmem>>, vector<1x8x128xf32>
    %400 = vector.shape_cast %399 : vector<1x8x128xf32> to vector<8x128xf32>
    %401 = vector.shape_cast %396 : vector<8x128xf32> to vector<1x8x128xf32>
    tpu.vector_store %arg5[%398, %c0_160, %c0_161], %401 {strides = array<i32>} : memref<32x8x128xf32, #tpu.memory_space<vmem>>, vector<1x8x128xf32>,
    %c10_i32 = arith.constant 10 : i32
    %c0_162 = arith.constant 0 : index
    %c0_163 = arith.constant 0 : index
    %402 = vector.load %arg6[%c0_162, %c0_163] : memref<8x128xf32, #tpu.memory_space<vmem>>, vector<8x128xf32>
    %403 = arith.index_cast %c10_i32 : i32 to index
    %c0_164 = arith.constant 0 : index
    %c0_165 = arith.constant 0 : index
    %404 = vector.load %arg1[%403, %c0_164, %c0_165] : memref<32x8x384xf32, #tpu.memory_space<vmem>>, vector<1x8x384xf32>
    %405 = vector.shape_cast %404 : vector<1x8x384xf32> to vector<8x384xf32>
    %c0_166 = arith.constant 0 : index
    %c0_167 = arith.constant 0 : index
    %406 = vector.load %arg3[%c0_166, %c0_167] : memref<128x384xf32, #tpu.memory_space<vmem>>, vector<128x384xf32>
    %cst_168 = arith.constant dense<0.000000e+00> : vector<8x384xf32>
    %407 = tpu.matmul %402, %406, %cst_168 {dimension_numbers = #tpu.dot_dimension_numbers<[1], [0], [0], [1], [0, 0, 1, 1], [], []>} : vector<8x128xf32>, vector<128x384xf32>, vector<8x384xf32> -> vector<8x384xf32>
    %408 = vector.extract_strided_slice %405 {offsets = [0, 0], sizes = [8, 128], strides = [1, 1]} : vector<8x384xf32> to vector<8x128xf32>
    %409 = vector.extract_strided_slice %407 {offsets = [0, 0], sizes = [8, 128], strides = [1, 1]} : vector<8x384xf32> to vector<8x128xf32>
    %410 = arith.addf %408, %409 : vector<8x128xf32>
    %411 = arith.negf %410 : vector<8x128xf32>
    %412 = math.exp %411 : vector<8x128xf32>
    %cst_169 = arith.constant 1.000000e+00 : f32
    %413 = vector.broadcast %cst_169 : f32 to vector<8x128xf32>
    %414 = arith.addf %413, %412 : vector<8x128xf32>
    %415 = arith.divf %413, %414 : vector<8x128xf32>
    %416 = vector.extract_strided_slice %405 {offsets = [0, 128], sizes = [8, 128], strides = [1, 1]} : vector<8x384xf32> to vector<8x128xf32>
    %417 = vector.extract_strided_slice %407 {offsets = [0, 128], sizes = [8, 128], strides = [1, 1]} : vector<8x384xf32> to vector<8x128xf32>
    %418 = arith.addf %416, %417 : vector<8x128xf32>
    %419 = arith.negf %418 : vector<8x128xf32>
    %420 = math.exp %419 : vector<8x128xf32>
    %cst_170 = arith.constant 1.000000e+00 : f32
    %421 = vector.broadcast %cst_170 : f32 to vector<8x128xf32>
    %422 = arith.addf %421, %420 : vector<8x128xf32>
    %423 = arith.divf %421, %422 : vector<8x128xf32>
    %424 = vector.extract_strided_slice %405 {offsets = [0, 256], sizes = [8, 128], strides = [1, 1]} : vector<8x384xf32> to vector<8x128xf32>
    %425 = vector.extract_strided_slice %407 {offsets = [0, 256], sizes = [8, 128], strides = [1, 1]} : vector<8x384xf32> to vector<8x128xf32>
    %c0_171 = arith.constant 0 : index
    %c0_172 = arith.constant 0 : index
    %426 = vector.load %arg4[%c0_171, %c0_172] : memref<1x128xf32, #tpu.memory_space<vmem>>, vector<1x128xf32>
    %427 = vector.broadcast %426 : vector<1x128xf32> to vector<8x128xf32>
    %428 = arith.addf %425, %427 : vector<8x128xf32>
    %429 = arith.mulf %415, %428 : vector<8x128xf32>
    %430 = arith.addf %424, %429 : vector<8x128xf32>
    %431 = math.tanh %430 : vector<8x128xf32>
    %cst_173 = arith.constant 1.000000e+00 : f32
    %432 = vector.broadcast %cst_173 : f32 to vector<8x128xf32>
    %433 = arith.subf %432, %423 : vector<8x128xf32>
    %434 = arith.mulf %433, %431 : vector<8x128xf32>
    %435 = arith.mulf %423, %402 : vector<8x128xf32>
    %436 = arith.addf %434, %435 : vector<8x128xf32>
    %c0_174 = arith.constant 0 : index
    %c0_175 = arith.constant 0 : index
    %437 = vector.load %arg6[%c0_174, %c0_175] : memref<8x128xf32, #tpu.memory_space<vmem>>, vector<8x128xf32>
    tpu.vector_store %arg6[%c0_174, %c0_175], %436 {strides = array<i32>} : memref<8x128xf32, #tpu.memory_space<vmem>>, vector<8x128xf32>,
    %438 = arith.index_cast %c10_i32 : i32 to index
    %c0_176 = arith.constant 0 : index
    %c0_177 = arith.constant 0 : index
    %439 = vector.load %arg5[%438, %c0_176, %c0_177] : memref<32x8x128xf32, #tpu.memory_space<vmem>>, vector<1x8x128xf32>
    %440 = vector.shape_cast %439 : vector<1x8x128xf32> to vector<8x128xf32>
    %441 = vector.shape_cast %436 : vector<8x128xf32> to vector<1x8x128xf32>
    tpu.vector_store %arg5[%438, %c0_176, %c0_177], %441 {strides = array<i32>} : memref<32x8x128xf32, #tpu.memory_space<vmem>>, vector<1x8x128xf32>,
    %c11_i32 = arith.constant 11 : i32
    %c0_178 = arith.constant 0 : index
    %c0_179 = arith.constant 0 : index
    %442 = vector.load %arg6[%c0_178, %c0_179] : memref<8x128xf32, #tpu.memory_space<vmem>>, vector<8x128xf32>
    %443 = arith.index_cast %c11_i32 : i32 to index
    %c0_180 = arith.constant 0 : index
    %c0_181 = arith.constant 0 : index
    %444 = vector.load %arg1[%443, %c0_180, %c0_181] : memref<32x8x384xf32, #tpu.memory_space<vmem>>, vector<1x8x384xf32>
    %445 = vector.shape_cast %444 : vector<1x8x384xf32> to vector<8x384xf32>
    %c0_182 = arith.constant 0 : index
    %c0_183 = arith.constant 0 : index
    %446 = vector.load %arg3[%c0_182, %c0_183] : memref<128x384xf32, #tpu.memory_space<vmem>>, vector<128x384xf32>
    %cst_184 = arith.constant dense<0.000000e+00> : vector<8x384xf32>
    %447 = tpu.matmul %442, %446, %cst_184 {dimension_numbers = #tpu.dot_dimension_numbers<[1], [0], [0], [1], [0, 0, 1, 1], [], []>} : vector<8x128xf32>, vector<128x384xf32>, vector<8x384xf32> -> vector<8x384xf32>
    %448 = vector.extract_strided_slice %445 {offsets = [0, 0], sizes = [8, 128], strides = [1, 1]} : vector<8x384xf32> to vector<8x128xf32>
    %449 = vector.extract_strided_slice %447 {offsets = [0, 0], sizes = [8, 128], strides = [1, 1]} : vector<8x384xf32> to vector<8x128xf32>
    %450 = arith.addf %448, %449 : vector<8x128xf32>
    %451 = arith.negf %450 : vector<8x128xf32>
    %452 = math.exp %451 : vector<8x128xf32>
    %cst_185 = arith.constant 1.000000e+00 : f32
    %453 = vector.broadcast %cst_185 : f32 to vector<8x128xf32>
    %454 = arith.addf %453, %452 : vector<8x128xf32>
    %455 = arith.divf %453, %454 : vector<8x128xf32>
    %456 = vector.extract_strided_slice %445 {offsets = [0, 128], sizes = [8, 128], strides = [1, 1]} : vector<8x384xf32> to vector<8x128xf32>
    %457 = vector.extract_strided_slice %447 {offsets = [0, 128], sizes = [8, 128], strides = [1, 1]} : vector<8x384xf32> to vector<8x128xf32>
    %458 = arith.addf %456, %457 : vector<8x128xf32>
    %459 = arith.negf %458 : vector<8x128xf32>
    %460 = math.exp %459 : vector<8x128xf32>
    %cst_186 = arith.constant 1.000000e+00 : f32
    %461 = vector.broadcast %cst_186 : f32 to vector<8x128xf32>
    %462 = arith.addf %461, %460 : vector<8x128xf32>
    %463 = arith.divf %461, %462 : vector<8x128xf32>
    %464 = vector.extract_strided_slice %445 {offsets = [0, 256], sizes = [8, 128], strides = [1, 1]} : vector<8x384xf32> to vector<8x128xf32>
    %465 = vector.extract_strided_slice %447 {offsets = [0, 256], sizes = [8, 128], strides = [1, 1]} : vector<8x384xf32> to vector<8x128xf32>
    %c0_187 = arith.constant 0 : index
    %c0_188 = arith.constant 0 : index
    %466 = vector.load %arg4[%c0_187, %c0_188] : memref<1x128xf32, #tpu.memory_space<vmem>>, vector<1x128xf32>
    %467 = vector.broadcast %466 : vector<1x128xf32> to vector<8x128xf32>
    %468 = arith.addf %465, %467 : vector<8x128xf32>
    %469 = arith.mulf %455, %468 : vector<8x128xf32>
    %470 = arith.addf %464, %469 : vector<8x128xf32>
    %471 = math.tanh %470 : vector<8x128xf32>
    %cst_189 = arith.constant 1.000000e+00 : f32
    %472 = vector.broadcast %cst_189 : f32 to vector<8x128xf32>
    %473 = arith.subf %472, %463 : vector<8x128xf32>
    %474 = arith.mulf %473, %471 : vector<8x128xf32>
    %475 = arith.mulf %463, %442 : vector<8x128xf32>
    %476 = arith.addf %474, %475 : vector<8x128xf32>
    %c0_190 = arith.constant 0 : index
    %c0_191 = arith.constant 0 : index
    %477 = vector.load %arg6[%c0_190, %c0_191] : memref<8x128xf32, #tpu.memory_space<vmem>>, vector<8x128xf32>
    tpu.vector_store %arg6[%c0_190, %c0_191], %476 {strides = array<i32>} : memref<8x128xf32, #tpu.memory_space<vmem>>, vector<8x128xf32>,
    %478 = arith.index_cast %c11_i32 : i32 to index
    %c0_192 = arith.constant 0 : index
    %c0_193 = arith.constant 0 : index
    %479 = vector.load %arg5[%478, %c0_192, %c0_193] : memref<32x8x128xf32, #tpu.memory_space<vmem>>, vector<1x8x128xf32>
    %480 = vector.shape_cast %479 : vector<1x8x128xf32> to vector<8x128xf32>
    %481 = vector.shape_cast %476 : vector<8x128xf32> to vector<1x8x128xf32>
    tpu.vector_store %arg5[%478, %c0_192, %c0_193], %481 {strides = array<i32>} : memref<32x8x128xf32, #tpu.memory_space<vmem>>, vector<1x8x128xf32>,
    %c12_i32 = arith.constant 12 : i32
    %c0_194 = arith.constant 0 : index
    %c0_195 = arith.constant 0 : index
    %482 = vector.load %arg6[%c0_194, %c0_195] : memref<8x128xf32, #tpu.memory_space<vmem>>, vector<8x128xf32>
    %483 = arith.index_cast %c12_i32 : i32 to index
    %c0_196 = arith.constant 0 : index
    %c0_197 = arith.constant 0 : index
    %484 = vector.load %arg1[%483, %c0_196, %c0_197] : memref<32x8x384xf32, #tpu.memory_space<vmem>>, vector<1x8x384xf32>
    %485 = vector.shape_cast %484 : vector<1x8x384xf32> to vector<8x384xf32>
    %c0_198 = arith.constant 0 : index
    %c0_199 = arith.constant 0 : index
    %486 = vector.load %arg3[%c0_198, %c0_199] : memref<128x384xf32, #tpu.memory_space<vmem>>, vector<128x384xf32>
    %cst_200 = arith.constant dense<0.000000e+00> : vector<8x384xf32>
    %487 = tpu.matmul %482, %486, %cst_200 {dimension_numbers = #tpu.dot_dimension_numbers<[1], [0], [0], [1], [0, 0, 1, 1], [], []>} : vector<8x128xf32>, vector<128x384xf32>, vector<8x384xf32> -> vector<8x384xf32>
    %488 = vector.extract_strided_slice %485 {offsets = [0, 0], sizes = [8, 128], strides = [1, 1]} : vector<8x384xf32> to vector<8x128xf32>
    %489 = vector.extract_strided_slice %487 {offsets = [0, 0], sizes = [8, 128], strides = [1, 1]} : vector<8x384xf32> to vector<8x128xf32>
    %490 = arith.addf %488, %489 : vector<8x128xf32>
    %491 = arith.negf %490 : vector<8x128xf32>
    %492 = math.exp %491 : vector<8x128xf32>
    %cst_201 = arith.constant 1.000000e+00 : f32
    %493 = vector.broadcast %cst_201 : f32 to vector<8x128xf32>
    %494 = arith.addf %493, %492 : vector<8x128xf32>
    %495 = arith.divf %493, %494 : vector<8x128xf32>
    %496 = vector.extract_strided_slice %485 {offsets = [0, 128], sizes = [8, 128], strides = [1, 1]} : vector<8x384xf32> to vector<8x128xf32>
    %497 = vector.extract_strided_slice %487 {offsets = [0, 128], sizes = [8, 128], strides = [1, 1]} : vector<8x384xf32> to vector<8x128xf32>
    %498 = arith.addf %496, %497 : vector<8x128xf32>
    %499 = arith.negf %498 : vector<8x128xf32>
    %500 = math.exp %499 : vector<8x128xf32>
    %cst_202 = arith.constant 1.000000e+00 : f32
    %501 = vector.broadcast %cst_202 : f32 to vector<8x128xf32>
    %502 = arith.addf %501, %500 : vector<8x128xf32>
    %503 = arith.divf %501, %502 : vector<8x128xf32>
    %504 = vector.extract_strided_slice %485 {offsets = [0, 256], sizes = [8, 128], strides = [1, 1]} : vector<8x384xf32> to vector<8x128xf32>
    %505 = vector.extract_strided_slice %487 {offsets = [0, 256], sizes = [8, 128], strides = [1, 1]} : vector<8x384xf32> to vector<8x128xf32>
    %c0_203 = arith.constant 0 : index
    %c0_204 = arith.constant 0 : index
    %506 = vector.load %arg4[%c0_203, %c0_204] : memref<1x128xf32, #tpu.memory_space<vmem>>, vector<1x128xf32>
    %507 = vector.broadcast %506 : vector<1x128xf32> to vector<8x128xf32>
    %508 = arith.addf %505, %507 : vector<8x128xf32>
    %509 = arith.mulf %495, %508 : vector<8x128xf32>
    %510 = arith.addf %504, %509 : vector<8x128xf32>
    %511 = math.tanh %510 : vector<8x128xf32>
    %cst_205 = arith.constant 1.000000e+00 : f32
    %512 = vector.broadcast %cst_205 : f32 to vector<8x128xf32>
    %513 = arith.subf %512, %503 : vector<8x128xf32>
    %514 = arith.mulf %513, %511 : vector<8x128xf32>
    %515 = arith.mulf %503, %482 : vector<8x128xf32>
    %516 = arith.addf %514, %515 : vector<8x128xf32>
    %c0_206 = arith.constant 0 : index
    %c0_207 = arith.constant 0 : index
    %517 = vector.load %arg6[%c0_206, %c0_207] : memref<8x128xf32, #tpu.memory_space<vmem>>, vector<8x128xf32>
    tpu.vector_store %arg6[%c0_206, %c0_207], %516 {strides = array<i32>} : memref<8x128xf32, #tpu.memory_space<vmem>>, vector<8x128xf32>,
    %518 = arith.index_cast %c12_i32 : i32 to index
    %c0_208 = arith.constant 0 : index
    %c0_209 = arith.constant 0 : index
    %519 = vector.load %arg5[%518, %c0_208, %c0_209] : memref<32x8x128xf32, #tpu.memory_space<vmem>>, vector<1x8x128xf32>
    %520 = vector.shape_cast %519 : vector<1x8x128xf32> to vector<8x128xf32>
    %521 = vector.shape_cast %516 : vector<8x128xf32> to vector<1x8x128xf32>
    tpu.vector_store %arg5[%518, %c0_208, %c0_209], %521 {strides = array<i32>} : memref<32x8x128xf32, #tpu.memory_space<vmem>>, vector<1x8x128xf32>,
    %c13_i32 = arith.constant 13 : i32
    %c0_210 = arith.constant 0 : index
    %c0_211 = arith.constant 0 : index
    %522 = vector.load %arg6[%c0_210, %c0_211] : memref<8x128xf32, #tpu.memory_space<vmem>>, vector<8x128xf32>
    %523 = arith.index_cast %c13_i32 : i32 to index
    %c0_212 = arith.constant 0 : index
    %c0_213 = arith.constant 0 : index
    %524 = vector.load %arg1[%523, %c0_212, %c0_213] : memref<32x8x384xf32, #tpu.memory_space<vmem>>, vector<1x8x384xf32>
    %525 = vector.shape_cast %524 : vector<1x8x384xf32> to vector<8x384xf32>
    %c0_214 = arith.constant 0 : index
    %c0_215 = arith.constant 0 : index
    %526 = vector.load %arg3[%c0_214, %c0_215] : memref<128x384xf32, #tpu.memory_space<vmem>>, vector<128x384xf32>
    %cst_216 = arith.constant dense<0.000000e+00> : vector<8x384xf32>
    %527 = tpu.matmul %522, %526, %cst_216 {dimension_numbers = #tpu.dot_dimension_numbers<[1], [0], [0], [1], [0, 0, 1, 1], [], []>} : vector<8x128xf32>, vector<128x384xf32>, vector<8x384xf32> -> vector<8x384xf32>
    %528 = vector.extract_strided_slice %525 {offsets = [0, 0], sizes = [8, 128], strides = [1, 1]} : vector<8x384xf32> to vector<8x128xf32>
    %529 = vector.extract_strided_slice %527 {offsets = [0, 0], sizes = [8, 128], strides = [1, 1]} : vector<8x384xf32> to vector<8x128xf32>
    %530 = arith.addf %528, %529 : vector<8x128xf32>
    %531 = arith.negf %530 : vector<8x128xf32>
    %532 = math.exp %531 : vector<8x128xf32>
    %cst_217 = arith.constant 1.000000e+00 : f32
    %533 = vector.broadcast %cst_217 : f32 to vector<8x128xf32>
    %534 = arith.addf %533, %532 : vector<8x128xf32>
    %535 = arith.divf %533, %534 : vector<8x128xf32>
    %536 = vector.extract_strided_slice %525 {offsets = [0, 128], sizes = [8, 128], strides = [1, 1]} : vector<8x384xf32> to vector<8x128xf32>
    %537 = vector.extract_strided_slice %527 {offsets = [0, 128], sizes = [8, 128], strides = [1, 1]} : vector<8x384xf32> to vector<8x128xf32>
    %538 = arith.addf %536, %537 : vector<8x128xf32>
    %539 = arith.negf %538 : vector<8x128xf32>
    %540 = math.exp %539 : vector<8x128xf32>
    %cst_218 = arith.constant 1.000000e+00 : f32
    %541 = vector.broadcast %cst_218 : f32 to vector<8x128xf32>
    %542 = arith.addf %541, %540 : vector<8x128xf32>
    %543 = arith.divf %541, %542 : vector<8x128xf32>
    %544 = vector.extract_strided_slice %525 {offsets = [0, 256], sizes = [8, 128], strides = [1, 1]} : vector<8x384xf32> to vector<8x128xf32>
    %545 = vector.extract_strided_slice %527 {offsets = [0, 256], sizes = [8, 128], strides = [1, 1]} : vector<8x384xf32> to vector<8x128xf32>
    %c0_219 = arith.constant 0 : index
    %c0_220 = arith.constant 0 : index
    %546 = vector.load %arg4[%c0_219, %c0_220] : memref<1x128xf32, #tpu.memory_space<vmem>>, vector<1x128xf32>
    %547 = vector.broadcast %546 : vector<1x128xf32> to vector<8x128xf32>
    %548 = arith.addf %545, %547 : vector<8x128xf32>
    %549 = arith.mulf %535, %548 : vector<8x128xf32>
    %550 = arith.addf %544, %549 : vector<8x128xf32>
    %551 = math.tanh %550 : vector<8x128xf32>
    %cst_221 = arith.constant 1.000000e+00 : f32
    %552 = vector.broadcast %cst_221 : f32 to vector<8x128xf32>
    %553 = arith.subf %552, %543 : vector<8x128xf32>
    %554 = arith.mulf %553, %551 : vector<8x128xf32>
    %555 = arith.mulf %543, %522 : vector<8x128xf32>
    %556 = arith.addf %554, %555 : vector<8x128xf32>
    %c0_222 = arith.constant 0 : index
    %c0_223 = arith.constant 0 : index
    %557 = vector.load %arg6[%c0_222, %c0_223] : memref<8x128xf32, #tpu.memory_space<vmem>>, vector<8x128xf32>
    tpu.vector_store %arg6[%c0_222, %c0_223], %556 {strides = array<i32>} : memref<8x128xf32, #tpu.memory_space<vmem>>, vector<8x128xf32>,
    %558 = arith.index_cast %c13_i32 : i32 to index
    %c0_224 = arith.constant 0 : index
    %c0_225 = arith.constant 0 : index
    %559 = vector.load %arg5[%558, %c0_224, %c0_225] : memref<32x8x128xf32, #tpu.memory_space<vmem>>, vector<1x8x128xf32>
    %560 = vector.shape_cast %559 : vector<1x8x128xf32> to vector<8x128xf32>
    %561 = vector.shape_cast %556 : vector<8x128xf32> to vector<1x8x128xf32>
    tpu.vector_store %arg5[%558, %c0_224, %c0_225], %561 {strides = array<i32>} : memref<32x8x128xf32, #tpu.memory_space<vmem>>, vector<1x8x128xf32>,
    %c14_i32 = arith.constant 14 : i32
    %c0_226 = arith.constant 0 : index
    %c0_227 = arith.constant 0 : index
    %562 = vector.load %arg6[%c0_226, %c0_227] : memref<8x128xf32, #tpu.memory_space<vmem>>, vector<8x128xf32>
    %563 = arith.index_cast %c14_i32 : i32 to index
    %c0_228 = arith.constant 0 : index
    %c0_229 = arith.constant 0 : index
    %564 = vector.load %arg1[%563, %c0_228, %c0_229] : memref<32x8x384xf32, #tpu.memory_space<vmem>>, vector<1x8x384xf32>
    %565 = vector.shape_cast %564 : vector<1x8x384xf32> to vector<8x384xf32>
    %c0_230 = arith.constant 0 : index
    %c0_231 = arith.constant 0 : index
    %566 = vector.load %arg3[%c0_230, %c0_231] : memref<128x384xf32, #tpu.memory_space<vmem>>, vector<128x384xf32>
    %cst_232 = arith.constant dense<0.000000e+00> : vector<8x384xf32>
    %567 = tpu.matmul %562, %566, %cst_232 {dimension_numbers = #tpu.dot_dimension_numbers<[1], [0], [0], [1], [0, 0, 1, 1], [], []>} : vector<8x128xf32>, vector<128x384xf32>, vector<8x384xf32> -> vector<8x384xf32>
    %568 = vector.extract_strided_slice %565 {offsets = [0, 0], sizes = [8, 128], strides = [1, 1]} : vector<8x384xf32> to vector<8x128xf32>
    %569 = vector.extract_strided_slice %567 {offsets = [0, 0], sizes = [8, 128], strides = [1, 1]} : vector<8x384xf32> to vector<8x128xf32>
    %570 = arith.addf %568, %569 : vector<8x128xf32>
    %571 = arith.negf %570 : vector<8x128xf32>
    %572 = math.exp %571 : vector<8x128xf32>
    %cst_233 = arith.constant 1.000000e+00 : f32
    %573 = vector.broadcast %cst_233 : f32 to vector<8x128xf32>
    %574 = arith.addf %573, %572 : vector<8x128xf32>
    %575 = arith.divf %573, %574 : vector<8x128xf32>
    %576 = vector.extract_strided_slice %565 {offsets = [0, 128], sizes = [8, 128], strides = [1, 1]} : vector<8x384xf32> to vector<8x128xf32>
    %577 = vector.extract_strided_slice %567 {offsets = [0, 128], sizes = [8, 128], strides = [1, 1]} : vector<8x384xf32> to vector<8x128xf32>
    %578 = arith.addf %576, %577 : vector<8x128xf32>
    %579 = arith.negf %578 : vector<8x128xf32>
    %580 = math.exp %579 : vector<8x128xf32>
    %cst_234 = arith.constant 1.000000e+00 : f32
    %581 = vector.broadcast %cst_234 : f32 to vector<8x128xf32>
    %582 = arith.addf %581, %580 : vector<8x128xf32>
    %583 = arith.divf %581, %582 : vector<8x128xf32>
    %584 = vector.extract_strided_slice %565 {offsets = [0, 256], sizes = [8, 128], strides = [1, 1]} : vector<8x384xf32> to vector<8x128xf32>
    %585 = vector.extract_strided_slice %567 {offsets = [0, 256], sizes = [8, 128], strides = [1, 1]} : vector<8x384xf32> to vector<8x128xf32>
    %c0_235 = arith.constant 0 : index
    %c0_236 = arith.constant 0 : index
    %586 = vector.load %arg4[%c0_235, %c0_236] : memref<1x128xf32, #tpu.memory_space<vmem>>, vector<1x128xf32>
    %587 = vector.broadcast %586 : vector<1x128xf32> to vector<8x128xf32>
    %588 = arith.addf %585, %587 : vector<8x128xf32>
    %589 = arith.mulf %575, %588 : vector<8x128xf32>
    %590 = arith.addf %584, %589 : vector<8x128xf32>
    %591 = math.tanh %590 : vector<8x128xf32>
    %cst_237 = arith.constant 1.000000e+00 : f32
    %592 = vector.broadcast %cst_237 : f32 to vector<8x128xf32>
    %593 = arith.subf %592, %583 : vector<8x128xf32>
    %594 = arith.mulf %593, %591 : vector<8x128xf32>
    %595 = arith.mulf %583, %562 : vector<8x128xf32>
    %596 = arith.addf %594, %595 : vector<8x128xf32>
    %c0_238 = arith.constant 0 : index
    %c0_239 = arith.constant 0 : index
    %597 = vector.load %arg6[%c0_238, %c0_239] : memref<8x128xf32, #tpu.memory_space<vmem>>, vector<8x128xf32>
    tpu.vector_store %arg6[%c0_238, %c0_239], %596 {strides = array<i32>} : memref<8x128xf32, #tpu.memory_space<vmem>>, vector<8x128xf32>,
    %598 = arith.index_cast %c14_i32 : i32 to index
    %c0_240 = arith.constant 0 : index
    %c0_241 = arith.constant 0 : index
    %599 = vector.load %arg5[%598, %c0_240, %c0_241] : memref<32x8x128xf32, #tpu.memory_space<vmem>>, vector<1x8x128xf32>
    %600 = vector.shape_cast %599 : vector<1x8x128xf32> to vector<8x128xf32>
    %601 = vector.shape_cast %596 : vector<8x128xf32> to vector<1x8x128xf32>
    tpu.vector_store %arg5[%598, %c0_240, %c0_241], %601 {strides = array<i32>} : memref<32x8x128xf32, #tpu.memory_space<vmem>>, vector<1x8x128xf32>,
    %c15_i32 = arith.constant 15 : i32
    %c0_242 = arith.constant 0 : index
    %c0_243 = arith.constant 0 : index
    %602 = vector.load %arg6[%c0_242, %c0_243] : memref<8x128xf32, #tpu.memory_space<vmem>>, vector<8x128xf32>
    %603 = arith.index_cast %c15_i32 : i32 to index
    %c0_244 = arith.constant 0 : index
    %c0_245 = arith.constant 0 : index
    %604 = vector.load %arg1[%603, %c0_244, %c0_245] : memref<32x8x384xf32, #tpu.memory_space<vmem>>, vector<1x8x384xf32>
    %605 = vector.shape_cast %604 : vector<1x8x384xf32> to vector<8x384xf32>
    %c0_246 = arith.constant 0 : index
    %c0_247 = arith.constant 0 : index
    %606 = vector.load %arg3[%c0_246, %c0_247] : memref<128x384xf32, #tpu.memory_space<vmem>>, vector<128x384xf32>
    %cst_248 = arith.constant dense<0.000000e+00> : vector<8x384xf32>
    %607 = tpu.matmul %602, %606, %cst_248 {dimension_numbers = #tpu.dot_dimension_numbers<[1], [0], [0], [1], [0, 0, 1, 1], [], []>} : vector<8x128xf32>, vector<128x384xf32>, vector<8x384xf32> -> vector<8x384xf32>
    %608 = vector.extract_strided_slice %605 {offsets = [0, 0], sizes = [8, 128], strides = [1, 1]} : vector<8x384xf32> to vector<8x128xf32>
    %609 = vector.extract_strided_slice %607 {offsets = [0, 0], sizes = [8, 128], strides = [1, 1]} : vector<8x384xf32> to vector<8x128xf32>
    %610 = arith.addf %608, %609 : vector<8x128xf32>
    %611 = arith.negf %610 : vector<8x128xf32>
    %612 = math.exp %611 : vector<8x128xf32>
    %cst_249 = arith.constant 1.000000e+00 : f32
    %613 = vector.broadcast %cst_249 : f32 to vector<8x128xf32>
    %614 = arith.addf %613, %612 : vector<8x128xf32>
    %615 = arith.divf %613, %614 : vector<8x128xf32>
    %616 = vector.extract_strided_slice %605 {offsets = [0, 128], sizes = [8, 128], strides = [1, 1]} : vector<8x384xf32> to vector<8x128xf32>
    %617 = vector.extract_strided_slice %607 {offsets = [0, 128], sizes = [8, 128], strides = [1, 1]} : vector<8x384xf32> to vector<8x128xf32>
    %618 = arith.addf %616, %617 : vector<8x128xf32>
    %619 = arith.negf %618 : vector<8x128xf32>
    %620 = math.exp %619 : vector<8x128xf32>
    %cst_250 = arith.constant 1.000000e+00 : f32
    %621 = vector.broadcast %cst_250 : f32 to vector<8x128xf32>
    %622 = arith.addf %621, %620 : vector<8x128xf32>
    %623 = arith.divf %621, %622 : vector<8x128xf32>
    %624 = vector.extract_strided_slice %605 {offsets = [0, 256], sizes = [8, 128], strides = [1, 1]} : vector<8x384xf32> to vector<8x128xf32>
    %625 = vector.extract_strided_slice %607 {offsets = [0, 256], sizes = [8, 128], strides = [1, 1]} : vector<8x384xf32> to vector<8x128xf32>
    %c0_251 = arith.constant 0 : index
    %c0_252 = arith.constant 0 : index
    %626 = vector.load %arg4[%c0_251, %c0_252] : memref<1x128xf32, #tpu.memory_space<vmem>>, vector<1x128xf32>
    %627 = vector.broadcast %626 : vector<1x128xf32> to vector<8x128xf32>
    %628 = arith.addf %625, %627 : vector<8x128xf32>
    %629 = arith.mulf %615, %628 : vector<8x128xf32>
    %630 = arith.addf %624, %629 : vector<8x128xf32>
    %631 = math.tanh %630 : vector<8x128xf32>
    %cst_253 = arith.constant 1.000000e+00 : f32
    %632 = vector.broadcast %cst_253 : f32 to vector<8x128xf32>
    %633 = arith.subf %632, %623 : vector<8x128xf32>
    %634 = arith.mulf %633, %631 : vector<8x128xf32>
    %635 = arith.mulf %623, %602 : vector<8x128xf32>
    %636 = arith.addf %634, %635 : vector<8x128xf32>
    %c0_254 = arith.constant 0 : index
    %c0_255 = arith.constant 0 : index
    %637 = vector.load %arg6[%c0_254, %c0_255] : memref<8x128xf32, #tpu.memory_space<vmem>>, vector<8x128xf32>
    tpu.vector_store %arg6[%c0_254, %c0_255], %636 {strides = array<i32>} : memref<8x128xf32, #tpu.memory_space<vmem>>, vector<8x128xf32>,
    %638 = arith.index_cast %c15_i32 : i32 to index
    %c0_256 = arith.constant 0 : index
    %c0_257 = arith.constant 0 : index
    %639 = vector.load %arg5[%638, %c0_256, %c0_257] : memref<32x8x128xf32, #tpu.memory_space<vmem>>, vector<1x8x128xf32>
    %640 = vector.shape_cast %639 : vector<1x8x128xf32> to vector<8x128xf32>
    %641 = vector.shape_cast %636 : vector<8x128xf32> to vector<1x8x128xf32>
    tpu.vector_store %arg5[%638, %c0_256, %c0_257], %641 {strides = array<i32>} : memref<32x8x128xf32, #tpu.memory_space<vmem>>, vector<1x8x128xf32>,
    %c16_i32 = arith.constant 16 : i32
    %c0_258 = arith.constant 0 : index
    %c0_259 = arith.constant 0 : index
    %642 = vector.load %arg6[%c0_258, %c0_259] : memref<8x128xf32, #tpu.memory_space<vmem>>, vector<8x128xf32>
    %643 = arith.index_cast %c16_i32 : i32 to index
    %c0_260 = arith.constant 0 : index
    %c0_261 = arith.constant 0 : index
    %644 = vector.load %arg1[%643, %c0_260, %c0_261] : memref<32x8x384xf32, #tpu.memory_space<vmem>>, vector<1x8x384xf32>
    %645 = vector.shape_cast %644 : vector<1x8x384xf32> to vector<8x384xf32>
    %c0_262 = arith.constant 0 : index
    %c0_263 = arith.constant 0 : index
    %646 = vector.load %arg3[%c0_262, %c0_263] : memref<128x384xf32, #tpu.memory_space<vmem>>, vector<128x384xf32>
    %cst_264 = arith.constant dense<0.000000e+00> : vector<8x384xf32>
    %647 = tpu.matmul %642, %646, %cst_264 {dimension_numbers = #tpu.dot_dimension_numbers<[1], [0], [0], [1], [0, 0, 1, 1], [], []>} : vector<8x128xf32>, vector<128x384xf32>, vector<8x384xf32> -> vector<8x384xf32>
    %648 = vector.extract_strided_slice %645 {offsets = [0, 0], sizes = [8, 128], strides = [1, 1]} : vector<8x384xf32> to vector<8x128xf32>
    %649 = vector.extract_strided_slice %647 {offsets = [0, 0], sizes = [8, 128], strides = [1, 1]} : vector<8x384xf32> to vector<8x128xf32>
    %650 = arith.addf %648, %649 : vector<8x128xf32>
    %651 = arith.negf %650 : vector<8x128xf32>
    %652 = math.exp %651 : vector<8x128xf32>
    %cst_265 = arith.constant 1.000000e+00 : f32
    %653 = vector.broadcast %cst_265 : f32 to vector<8x128xf32>
    %654 = arith.addf %653, %652 : vector<8x128xf32>
    %655 = arith.divf %653, %654 : vector<8x128xf32>
    %656 = vector.extract_strided_slice %645 {offsets = [0, 128], sizes = [8, 128], strides = [1, 1]} : vector<8x384xf32> to vector<8x128xf32>
    %657 = vector.extract_strided_slice %647 {offsets = [0, 128], sizes = [8, 128], strides = [1, 1]} : vector<8x384xf32> to vector<8x128xf32>
    %658 = arith.addf %656, %657 : vector<8x128xf32>
    %659 = arith.negf %658 : vector<8x128xf32>
    %660 = math.exp %659 : vector<8x128xf32>
    %cst_266 = arith.constant 1.000000e+00 : f32
    %661 = vector.broadcast %cst_266 : f32 to vector<8x128xf32>
    %662 = arith.addf %661, %660 : vector<8x128xf32>
    %663 = arith.divf %661, %662 : vector<8x128xf32>
    %664 = vector.extract_strided_slice %645 {offsets = [0, 256], sizes = [8, 128], strides = [1, 1]} : vector<8x384xf32> to vector<8x128xf32>
    %665 = vector.extract_strided_slice %647 {offsets = [0, 256], sizes = [8, 128], strides = [1, 1]} : vector<8x384xf32> to vector<8x128xf32>
    %c0_267 = arith.constant 0 : index
    %c0_268 = arith.constant 0 : index
    %666 = vector.load %arg4[%c0_267, %c0_268] : memref<1x128xf32, #tpu.memory_space<vmem>>, vector<1x128xf32>
    %667 = vector.broadcast %666 : vector<1x128xf32> to vector<8x128xf32>
    %668 = arith.addf %665, %667 : vector<8x128xf32>
    %669 = arith.mulf %655, %668 : vector<8x128xf32>
    %670 = arith.addf %664, %669 : vector<8x128xf32>
    %671 = math.tanh %670 : vector<8x128xf32>
    %cst_269 = arith.constant 1.000000e+00 : f32
    %672 = vector.broadcast %cst_269 : f32 to vector<8x128xf32>
    %673 = arith.subf %672, %663 : vector<8x128xf32>
    %674 = arith.mulf %673, %671 : vector<8x128xf32>
    %675 = arith.mulf %663, %642 : vector<8x128xf32>
    %676 = arith.addf %674, %675 : vector<8x128xf32>
    %c0_270 = arith.constant 0 : index
    %c0_271 = arith.constant 0 : index
    %677 = vector.load %arg6[%c0_270, %c0_271] : memref<8x128xf32, #tpu.memory_space<vmem>>, vector<8x128xf32>
    tpu.vector_store %arg6[%c0_270, %c0_271], %676 {strides = array<i32>} : memref<8x128xf32, #tpu.memory_space<vmem>>, vector<8x128xf32>,
    %678 = arith.index_cast %c16_i32 : i32 to index
    %c0_272 = arith.constant 0 : index
    %c0_273 = arith.constant 0 : index
    %679 = vector.load %arg5[%678, %c0_272, %c0_273] : memref<32x8x128xf32, #tpu.memory_space<vmem>>, vector<1x8x128xf32>
    %680 = vector.shape_cast %679 : vector<1x8x128xf32> to vector<8x128xf32>
    %681 = vector.shape_cast %676 : vector<8x128xf32> to vector<1x8x128xf32>
    tpu.vector_store %arg5[%678, %c0_272, %c0_273], %681 {strides = array<i32>} : memref<32x8x128xf32, #tpu.memory_space<vmem>>, vector<1x8x128xf32>,
    %c17_i32 = arith.constant 17 : i32
    %c0_274 = arith.constant 0 : index
    %c0_275 = arith.constant 0 : index
    %682 = vector.load %arg6[%c0_274, %c0_275] : memref<8x128xf32, #tpu.memory_space<vmem>>, vector<8x128xf32>
    %683 = arith.index_cast %c17_i32 : i32 to index
    %c0_276 = arith.constant 0 : index
    %c0_277 = arith.constant 0 : index
    %684 = vector.load %arg1[%683, %c0_276, %c0_277] : memref<32x8x384xf32, #tpu.memory_space<vmem>>, vector<1x8x384xf32>
    %685 = vector.shape_cast %684 : vector<1x8x384xf32> to vector<8x384xf32>
    %c0_278 = arith.constant 0 : index
    %c0_279 = arith.constant 0 : index
    %686 = vector.load %arg3[%c0_278, %c0_279] : memref<128x384xf32, #tpu.memory_space<vmem>>, vector<128x384xf32>
    %cst_280 = arith.constant dense<0.000000e+00> : vector<8x384xf32>
    %687 = tpu.matmul %682, %686, %cst_280 {dimension_numbers = #tpu.dot_dimension_numbers<[1], [0], [0], [1], [0, 0, 1, 1], [], []>} : vector<8x128xf32>, vector<128x384xf32>, vector<8x384xf32> -> vector<8x384xf32>
    %688 = vector.extract_strided_slice %685 {offsets = [0, 0], sizes = [8, 128], strides = [1, 1]} : vector<8x384xf32> to vector<8x128xf32>
    %689 = vector.extract_strided_slice %687 {offsets = [0, 0], sizes = [8, 128], strides = [1, 1]} : vector<8x384xf32> to vector<8x128xf32>
    %690 = arith.addf %688, %689 : vector<8x128xf32>
    %691 = arith.negf %690 : vector<8x128xf32>
    %692 = math.exp %691 : vector<8x128xf32>
    %cst_281 = arith.constant 1.000000e+00 : f32
    %693 = vector.broadcast %cst_281 : f32 to vector<8x128xf32>
    %694 = arith.addf %693, %692 : vector<8x128xf32>
    %695 = arith.divf %693, %694 : vector<8x128xf32>
    %696 = vector.extract_strided_slice %685 {offsets = [0, 128], sizes = [8, 128], strides = [1, 1]} : vector<8x384xf32> to vector<8x128xf32>
    %697 = vector.extract_strided_slice %687 {offsets = [0, 128], sizes = [8, 128], strides = [1, 1]} : vector<8x384xf32> to vector<8x128xf32>
    %698 = arith.addf %696, %697 : vector<8x128xf32>
    %699 = arith.negf %698 : vector<8x128xf32>
    %700 = math.exp %699 : vector<8x128xf32>
    %cst_282 = arith.constant 1.000000e+00 : f32
    %701 = vector.broadcast %cst_282 : f32 to vector<8x128xf32>
    %702 = arith.addf %701, %700 : vector<8x128xf32>
    %703 = arith.divf %701, %702 : vector<8x128xf32>
    %704 = vector.extract_strided_slice %685 {offsets = [0, 256], sizes = [8, 128], strides = [1, 1]} : vector<8x384xf32> to vector<8x128xf32>
    %705 = vector.extract_strided_slice %687 {offsets = [0, 256], sizes = [8, 128], strides = [1, 1]} : vector<8x384xf32> to vector<8x128xf32>
    %c0_283 = arith.constant 0 : index
    %c0_284 = arith.constant 0 : index
    %706 = vector.load %arg4[%c0_283, %c0_284] : memref<1x128xf32, #tpu.memory_space<vmem>>, vector<1x128xf32>
    %707 = vector.broadcast %706 : vector<1x128xf32> to vector<8x128xf32>
    %708 = arith.addf %705, %707 : vector<8x128xf32>
    %709 = arith.mulf %695, %708 : vector<8x128xf32>
    %710 = arith.addf %704, %709 : vector<8x128xf32>
    %711 = math.tanh %710 : vector<8x128xf32>
    %cst_285 = arith.constant 1.000000e+00 : f32
    %712 = vector.broadcast %cst_285 : f32 to vector<8x128xf32>
    %713 = arith.subf %712, %703 : vector<8x128xf32>
    %714 = arith.mulf %713, %711 : vector<8x128xf32>
    %715 = arith.mulf %703, %682 : vector<8x128xf32>
    %716 = arith.addf %714, %715 : vector<8x128xf32>
    %c0_286 = arith.constant 0 : index
    %c0_287 = arith.constant 0 : index
    %717 = vector.load %arg6[%c0_286, %c0_287] : memref<8x128xf32, #tpu.memory_space<vmem>>, vector<8x128xf32>
    tpu.vector_store %arg6[%c0_286, %c0_287], %716 {strides = array<i32>} : memref<8x128xf32, #tpu.memory_space<vmem>>, vector<8x128xf32>,
    %718 = arith.index_cast %c17_i32 : i32 to index
    %c0_288 = arith.constant 0 : index
    %c0_289 = arith.constant 0 : index
    %719 = vector.load %arg5[%718, %c0_288, %c0_289] : memref<32x8x128xf32, #tpu.memory_space<vmem>>, vector<1x8x128xf32>
    %720 = vector.shape_cast %719 : vector<1x8x128xf32> to vector<8x128xf32>
    %721 = vector.shape_cast %716 : vector<8x128xf32> to vector<1x8x128xf32>
    tpu.vector_store %arg5[%718, %c0_288, %c0_289], %721 {strides = array<i32>} : memref<32x8x128xf32, #tpu.memory_space<vmem>>, vector<1x8x128xf32>,
    %c18_i32 = arith.constant 18 : i32
    %c0_290 = arith.constant 0 : index
    %c0_291 = arith.constant 0 : index
    %722 = vector.load %arg6[%c0_290, %c0_291] : memref<8x128xf32, #tpu.memory_space<vmem>>, vector<8x128xf32>
    %723 = arith.index_cast %c18_i32 : i32 to index
    %c0_292 = arith.constant 0 : index
    %c0_293 = arith.constant 0 : index
    %724 = vector.load %arg1[%723, %c0_292, %c0_293] : memref<32x8x384xf32, #tpu.memory_space<vmem>>, vector<1x8x384xf32>
    %725 = vector.shape_cast %724 : vector<1x8x384xf32> to vector<8x384xf32>
    %c0_294 = arith.constant 0 : index
    %c0_295 = arith.constant 0 : index
    %726 = vector.load %arg3[%c0_294, %c0_295] : memref<128x384xf32, #tpu.memory_space<vmem>>, vector<128x384xf32>
    %cst_296 = arith.constant dense<0.000000e+00> : vector<8x384xf32>
    %727 = tpu.matmul %722, %726, %cst_296 {dimension_numbers = #tpu.dot_dimension_numbers<[1], [0], [0], [1], [0, 0, 1, 1], [], []>} : vector<8x128xf32>, vector<128x384xf32>, vector<8x384xf32> -> vector<8x384xf32>
    %728 = vector.extract_strided_slice %725 {offsets = [0, 0], sizes = [8, 128], strides = [1, 1]} : vector<8x384xf32> to vector<8x128xf32>
    %729 = vector.extract_strided_slice %727 {offsets = [0, 0], sizes = [8, 128], strides = [1, 1]} : vector<8x384xf32> to vector<8x128xf32>
    %730 = arith.addf %728, %729 : vector<8x128xf32>
    %731 = arith.negf %730 : vector<8x128xf32>
    %732 = math.exp %731 : vector<8x128xf32>
    %cst_297 = arith.constant 1.000000e+00 : f32
    %733 = vector.broadcast %cst_297 : f32 to vector<8x128xf32>
    %734 = arith.addf %733, %732 : vector<8x128xf32>
    %735 = arith.divf %733, %734 : vector<8x128xf32>
    %736 = vector.extract_strided_slice %725 {offsets = [0, 128], sizes = [8, 128], strides = [1, 1]} : vector<8x384xf32> to vector<8x128xf32>
    %737 = vector.extract_strided_slice %727 {offsets = [0, 128], sizes = [8, 128], strides = [1, 1]} : vector<8x384xf32> to vector<8x128xf32>
    %738 = arith.addf %736, %737 : vector<8x128xf32>
    %739 = arith.negf %738 : vector<8x128xf32>
    %740 = math.exp %739 : vector<8x128xf32>
    %cst_298 = arith.constant 1.000000e+00 : f32
    %741 = vector.broadcast %cst_298 : f32 to vector<8x128xf32>
    %742 = arith.addf %741, %740 : vector<8x128xf32>
    %743 = arith.divf %741, %742 : vector<8x128xf32>
    %744 = vector.extract_strided_slice %725 {offsets = [0, 256], sizes = [8, 128], strides = [1, 1]} : vector<8x384xf32> to vector<8x128xf32>
    %745 = vector.extract_strided_slice %727 {offsets = [0, 256], sizes = [8, 128], strides = [1, 1]} : vector<8x384xf32> to vector<8x128xf32>
    %c0_299 = arith.constant 0 : index
    %c0_300 = arith.constant 0 : index
    %746 = vector.load %arg4[%c0_299, %c0_300] : memref<1x128xf32, #tpu.memory_space<vmem>>, vector<1x128xf32>
    %747 = vector.broadcast %746 : vector<1x128xf32> to vector<8x128xf32>
    %748 = arith.addf %745, %747 : vector<8x128xf32>
    %749 = arith.mulf %735, %748 : vector<8x128xf32>
    %750 = arith.addf %744, %749 : vector<8x128xf32>
    %751 = math.tanh %750 : vector<8x128xf32>
    %cst_301 = arith.constant 1.000000e+00 : f32
    %752 = vector.broadcast %cst_301 : f32 to vector<8x128xf32>
    %753 = arith.subf %752, %743 : vector<8x128xf32>
    %754 = arith.mulf %753, %751 : vector<8x128xf32>
    %755 = arith.mulf %743, %722 : vector<8x128xf32>
    %756 = arith.addf %754, %755 : vector<8x128xf32>
    %c0_302 = arith.constant 0 : index
    %c0_303 = arith.constant 0 : index
    %757 = vector.load %arg6[%c0_302, %c0_303] : memref<8x128xf32, #tpu.memory_space<vmem>>, vector<8x128xf32>
    tpu.vector_store %arg6[%c0_302, %c0_303], %756 {strides = array<i32>} : memref<8x128xf32, #tpu.memory_space<vmem>>, vector<8x128xf32>,
    %758 = arith.index_cast %c18_i32 : i32 to index
    %c0_304 = arith.constant 0 : index
    %c0_305 = arith.constant 0 : index
    %759 = vector.load %arg5[%758, %c0_304, %c0_305] : memref<32x8x128xf32, #tpu.memory_space<vmem>>, vector<1x8x128xf32>
    %760 = vector.shape_cast %759 : vector<1x8x128xf32> to vector<8x128xf32>
    %761 = vector.shape_cast %756 : vector<8x128xf32> to vector<1x8x128xf32>
    tpu.vector_store %arg5[%758, %c0_304, %c0_305], %761 {strides = array<i32>} : memref<32x8x128xf32, #tpu.memory_space<vmem>>, vector<1x8x128xf32>,
    %c19_i32 = arith.constant 19 : i32
    %c0_306 = arith.constant 0 : index
    %c0_307 = arith.constant 0 : index
    %762 = vector.load %arg6[%c0_306, %c0_307] : memref<8x128xf32, #tpu.memory_space<vmem>>, vector<8x128xf32>
    %763 = arith.index_cast %c19_i32 : i32 to index
    %c0_308 = arith.constant 0 : index
    %c0_309 = arith.constant 0 : index
    %764 = vector.load %arg1[%763, %c0_308, %c0_309] : memref<32x8x384xf32, #tpu.memory_space<vmem>>, vector<1x8x384xf32>
    %765 = vector.shape_cast %764 : vector<1x8x384xf32> to vector<8x384xf32>
    %c0_310 = arith.constant 0 : index
    %c0_311 = arith.constant 0 : index
    %766 = vector.load %arg3[%c0_310, %c0_311] : memref<128x384xf32, #tpu.memory_space<vmem>>, vector<128x384xf32>
    %cst_312 = arith.constant dense<0.000000e+00> : vector<8x384xf32>
    %767 = tpu.matmul %762, %766, %cst_312 {dimension_numbers = #tpu.dot_dimension_numbers<[1], [0], [0], [1], [0, 0, 1, 1], [], []>} : vector<8x128xf32>, vector<128x384xf32>, vector<8x384xf32> -> vector<8x384xf32>
    %768 = vector.extract_strided_slice %765 {offsets = [0, 0], sizes = [8, 128], strides = [1, 1]} : vector<8x384xf32> to vector<8x128xf32>
    %769 = vector.extract_strided_slice %767 {offsets = [0, 0], sizes = [8, 128], strides = [1, 1]} : vector<8x384xf32> to vector<8x128xf32>
    %770 = arith.addf %768, %769 : vector<8x128xf32>
    %771 = arith.negf %770 : vector<8x128xf32>
    %772 = math.exp %771 : vector<8x128xf32>
    %cst_313 = arith.constant 1.000000e+00 : f32
    %773 = vector.broadcast %cst_313 : f32 to vector<8x128xf32>
    %774 = arith.addf %773, %772 : vector<8x128xf32>
    %775 = arith.divf %773, %774 : vector<8x128xf32>
    %776 = vector.extract_strided_slice %765 {offsets = [0, 128], sizes = [8, 128], strides = [1, 1]} : vector<8x384xf32> to vector<8x128xf32>
    %777 = vector.extract_strided_slice %767 {offsets = [0, 128], sizes = [8, 128], strides = [1, 1]} : vector<8x384xf32> to vector<8x128xf32>
    %778 = arith.addf %776, %777 : vector<8x128xf32>
    %779 = arith.negf %778 : vector<8x128xf32>
    %780 = math.exp %779 : vector<8x128xf32>
    %cst_314 = arith.constant 1.000000e+00 : f32
    %781 = vector.broadcast %cst_314 : f32 to vector<8x128xf32>
    %782 = arith.addf %781, %780 : vector<8x128xf32>
    %783 = arith.divf %781, %782 : vector<8x128xf32>
    %784 = vector.extract_strided_slice %765 {offsets = [0, 256], sizes = [8, 128], strides = [1, 1]} : vector<8x384xf32> to vector<8x128xf32>
    %785 = vector.extract_strided_slice %767 {offsets = [0, 256], sizes = [8, 128], strides = [1, 1]} : vector<8x384xf32> to vector<8x128xf32>
    %c0_315 = arith.constant 0 : index
    %c0_316 = arith.constant 0 : index
    %786 = vector.load %arg4[%c0_315, %c0_316] : memref<1x128xf32, #tpu.memory_space<vmem>>, vector<1x128xf32>
    %787 = vector.broadcast %786 : vector<1x128xf32> to vector<8x128xf32>
    %788 = arith.addf %785, %787 : vector<8x128xf32>
    %789 = arith.mulf %775, %788 : vector<8x128xf32>
    %790 = arith.addf %784, %789 : vector<8x128xf32>
    %791 = math.tanh %790 : vector<8x128xf32>
    %cst_317 = arith.constant 1.000000e+00 : f32
    %792 = vector.broadcast %cst_317 : f32 to vector<8x128xf32>
    %793 = arith.subf %792, %783 : vector<8x128xf32>
    %794 = arith.mulf %793, %791 : vector<8x128xf32>
    %795 = arith.mulf %783, %762 : vector<8x128xf32>
    %796 = arith.addf %794, %795 : vector<8x128xf32>
    %c0_318 = arith.constant 0 : index
    %c0_319 = arith.constant 0 : index
    %797 = vector.load %arg6[%c0_318, %c0_319] : memref<8x128xf32, #tpu.memory_space<vmem>>, vector<8x128xf32>
    tpu.vector_store %arg6[%c0_318, %c0_319], %796 {strides = array<i32>} : memref<8x128xf32, #tpu.memory_space<vmem>>, vector<8x128xf32>,
    %798 = arith.index_cast %c19_i32 : i32 to index
    %c0_320 = arith.constant 0 : index
    %c0_321 = arith.constant 0 : index
    %799 = vector.load %arg5[%798, %c0_320, %c0_321] : memref<32x8x128xf32, #tpu.memory_space<vmem>>, vector<1x8x128xf32>
    %800 = vector.shape_cast %799 : vector<1x8x128xf32> to vector<8x128xf32>
    %801 = vector.shape_cast %796 : vector<8x128xf32> to vector<1x8x128xf32>
    tpu.vector_store %arg5[%798, %c0_320, %c0_321], %801 {strides = array<i32>} : memref<32x8x128xf32, #tpu.memory_space<vmem>>, vector<1x8x128xf32>,
    %c20_i32 = arith.constant 20 : i32
    %c0_322 = arith.constant 0 : index
    %c0_323 = arith.constant 0 : index
    %802 = vector.load %arg6[%c0_322, %c0_323] : memref<8x128xf32, #tpu.memory_space<vmem>>, vector<8x128xf32>
    %803 = arith.index_cast %c20_i32 : i32 to index
    %c0_324 = arith.constant 0 : index
    %c0_325 = arith.constant 0 : index
    %804 = vector.load %arg1[%803, %c0_324, %c0_325] : memref<32x8x384xf32, #tpu.memory_space<vmem>>, vector<1x8x384xf32>
    %805 = vector.shape_cast %804 : vector<1x8x384xf32> to vector<8x384xf32>
    %c0_326 = arith.constant 0 : index
    %c0_327 = arith.constant 0 : index
    %806 = vector.load %arg3[%c0_326, %c0_327] : memref<128x384xf32, #tpu.memory_space<vmem>>, vector<128x384xf32>
    %cst_328 = arith.constant dense<0.000000e+00> : vector<8x384xf32>
    %807 = tpu.matmul %802, %806, %cst_328 {dimension_numbers = #tpu.dot_dimension_numbers<[1], [0], [0], [1], [0, 0, 1, 1], [], []>} : vector<8x128xf32>, vector<128x384xf32>, vector<8x384xf32> -> vector<8x384xf32>
    %808 = vector.extract_strided_slice %805 {offsets = [0, 0], sizes = [8, 128], strides = [1, 1]} : vector<8x384xf32> to vector<8x128xf32>
    %809 = vector.extract_strided_slice %807 {offsets = [0, 0], sizes = [8, 128], strides = [1, 1]} : vector<8x384xf32> to vector<8x128xf32>
    %810 = arith.addf %808, %809 : vector<8x128xf32>
    %811 = arith.negf %810 : vector<8x128xf32>
    %812 = math.exp %811 : vector<8x128xf32>
    %cst_329 = arith.constant 1.000000e+00 : f32
    %813 = vector.broadcast %cst_329 : f32 to vector<8x128xf32>
    %814 = arith.addf %813, %812 : vector<8x128xf32>
    %815 = arith.divf %813, %814 : vector<8x128xf32>
    %816 = vector.extract_strided_slice %805 {offsets = [0, 128], sizes = [8, 128], strides = [1, 1]} : vector<8x384xf32> to vector<8x128xf32>
    %817 = vector.extract_strided_slice %807 {offsets = [0, 128], sizes = [8, 128], strides = [1, 1]} : vector<8x384xf32> to vector<8x128xf32>
    %818 = arith.addf %816, %817 : vector<8x128xf32>
    %819 = arith.negf %818 : vector<8x128xf32>
    %820 = math.exp %819 : vector<8x128xf32>
    %cst_330 = arith.constant 1.000000e+00 : f32
    %821 = vector.broadcast %cst_330 : f32 to vector<8x128xf32>
    %822 = arith.addf %821, %820 : vector<8x128xf32>
    %823 = arith.divf %821, %822 : vector<8x128xf32>
    %824 = vector.extract_strided_slice %805 {offsets = [0, 256], sizes = [8, 128], strides = [1, 1]} : vector<8x384xf32> to vector<8x128xf32>
    %825 = vector.extract_strided_slice %807 {offsets = [0, 256], sizes = [8, 128], strides = [1, 1]} : vector<8x384xf32> to vector<8x128xf32>
    %c0_331 = arith.constant 0 : index
    %c0_332 = arith.constant 0 : index
    %826 = vector.load %arg4[%c0_331, %c0_332] : memref<1x128xf32, #tpu.memory_space<vmem>>, vector<1x128xf32>
    %827 = vector.broadcast %826 : vector<1x128xf32> to vector<8x128xf32>
    %828 = arith.addf %825, %827 : vector<8x128xf32>
    %829 = arith.mulf %815, %828 : vector<8x128xf32>
    %830 = arith.addf %824, %829 : vector<8x128xf32>
    %831 = math.tanh %830 : vector<8x128xf32>
    %cst_333 = arith.constant 1.000000e+00 : f32
    %832 = vector.broadcast %cst_333 : f32 to vector<8x128xf32>
    %833 = arith.subf %832, %823 : vector<8x128xf32>
    %834 = arith.mulf %833, %831 : vector<8x128xf32>
    %835 = arith.mulf %823, %802 : vector<8x128xf32>
    %836 = arith.addf %834, %835 : vector<8x128xf32>
    %c0_334 = arith.constant 0 : index
    %c0_335 = arith.constant 0 : index
    %837 = vector.load %arg6[%c0_334, %c0_335] : memref<8x128xf32, #tpu.memory_space<vmem>>, vector<8x128xf32>
    tpu.vector_store %arg6[%c0_334, %c0_335], %836 {strides = array<i32>} : memref<8x128xf32, #tpu.memory_space<vmem>>, vector<8x128xf32>,
    %838 = arith.index_cast %c20_i32 : i32 to index
    %c0_336 = arith.constant 0 : index
    %c0_337 = arith.constant 0 : index
    %839 = vector.load %arg5[%838, %c0_336, %c0_337] : memref<32x8x128xf32, #tpu.memory_space<vmem>>, vector<1x8x128xf32>
    %840 = vector.shape_cast %839 : vector<1x8x128xf32> to vector<8x128xf32>
    %841 = vector.shape_cast %836 : vector<8x128xf32> to vector<1x8x128xf32>
    tpu.vector_store %arg5[%838, %c0_336, %c0_337], %841 {strides = array<i32>} : memref<32x8x128xf32, #tpu.memory_space<vmem>>, vector<1x8x128xf32>,
    %c21_i32 = arith.constant 21 : i32
    %c0_338 = arith.constant 0 : index
    %c0_339 = arith.constant 0 : index
    %842 = vector.load %arg6[%c0_338, %c0_339] : memref<8x128xf32, #tpu.memory_space<vmem>>, vector<8x128xf32>
    %843 = arith.index_cast %c21_i32 : i32 to index
    %c0_340 = arith.constant 0 : index
    %c0_341 = arith.constant 0 : index
    %844 = vector.load %arg1[%843, %c0_340, %c0_341] : memref<32x8x384xf32, #tpu.memory_space<vmem>>, vector<1x8x384xf32>
    %845 = vector.shape_cast %844 : vector<1x8x384xf32> to vector<8x384xf32>
    %c0_342 = arith.constant 0 : index
    %c0_343 = arith.constant 0 : index
    %846 = vector.load %arg3[%c0_342, %c0_343] : memref<128x384xf32, #tpu.memory_space<vmem>>, vector<128x384xf32>
    %cst_344 = arith.constant dense<0.000000e+00> : vector<8x384xf32>
    %847 = tpu.matmul %842, %846, %cst_344 {dimension_numbers = #tpu.dot_dimension_numbers<[1], [0], [0], [1], [0, 0, 1, 1], [], []>} : vector<8x128xf32>, vector<128x384xf32>, vector<8x384xf32> -> vector<8x384xf32>
    %848 = vector.extract_strided_slice %845 {offsets = [0, 0], sizes = [8, 128], strides = [1, 1]} : vector<8x384xf32> to vector<8x128xf32>
    %849 = vector.extract_strided_slice %847 {offsets = [0, 0], sizes = [8, 128], strides = [1, 1]} : vector<8x384xf32> to vector<8x128xf32>
    %850 = arith.addf %848, %849 : vector<8x128xf32>
    %851 = arith.negf %850 : vector<8x128xf32>
    %852 = math.exp %851 : vector<8x128xf32>
    %cst_345 = arith.constant 1.000000e+00 : f32
    %853 = vector.broadcast %cst_345 : f32 to vector<8x128xf32>
    %854 = arith.addf %853, %852 : vector<8x128xf32>
    %855 = arith.divf %853, %854 : vector<8x128xf32>
    %856 = vector.extract_strided_slice %845 {offsets = [0, 128], sizes = [8, 128], strides = [1, 1]} : vector<8x384xf32> to vector<8x128xf32>
    %857 = vector.extract_strided_slice %847 {offsets = [0, 128], sizes = [8, 128], strides = [1, 1]} : vector<8x384xf32> to vector<8x128xf32>
    %858 = arith.addf %856, %857 : vector<8x128xf32>
    %859 = arith.negf %858 : vector<8x128xf32>
    %860 = math.exp %859 : vector<8x128xf32>
    %cst_346 = arith.constant 1.000000e+00 : f32
    %861 = vector.broadcast %cst_346 : f32 to vector<8x128xf32>
    %862 = arith.addf %861, %860 : vector<8x128xf32>
    %863 = arith.divf %861, %862 : vector<8x128xf32>
    %864 = vector.extract_strided_slice %845 {offsets = [0, 256], sizes = [8, 128], strides = [1, 1]} : vector<8x384xf32> to vector<8x128xf32>
    %865 = vector.extract_strided_slice %847 {offsets = [0, 256], sizes = [8, 128], strides = [1, 1]} : vector<8x384xf32> to vector<8x128xf32>
    %c0_347 = arith.constant 0 : index
    %c0_348 = arith.constant 0 : index
    %866 = vector.load %arg4[%c0_347, %c0_348] : memref<1x128xf32, #tpu.memory_space<vmem>>, vector<1x128xf32>
    %867 = vector.broadcast %866 : vector<1x128xf32> to vector<8x128xf32>
    %868 = arith.addf %865, %867 : vector<8x128xf32>
    %869 = arith.mulf %855, %868 : vector<8x128xf32>
    %870 = arith.addf %864, %869 : vector<8x128xf32>
    %871 = math.tanh %870 : vector<8x128xf32>
    %cst_349 = arith.constant 1.000000e+00 : f32
    %872 = vector.broadcast %cst_349 : f32 to vector<8x128xf32>
    %873 = arith.subf %872, %863 : vector<8x128xf32>
    %874 = arith.mulf %873, %871 : vector<8x128xf32>
    %875 = arith.mulf %863, %842 : vector<8x128xf32>
    %876 = arith.addf %874, %875 : vector<8x128xf32>
    %c0_350 = arith.constant 0 : index
    %c0_351 = arith.constant 0 : index
    %877 = vector.load %arg6[%c0_350, %c0_351] : memref<8x128xf32, #tpu.memory_space<vmem>>, vector<8x128xf32>
    tpu.vector_store %arg6[%c0_350, %c0_351], %876 {strides = array<i32>} : memref<8x128xf32, #tpu.memory_space<vmem>>, vector<8x128xf32>,
    %878 = arith.index_cast %c21_i32 : i32 to index
    %c0_352 = arith.constant 0 : index
    %c0_353 = arith.constant 0 : index
    %879 = vector.load %arg5[%878, %c0_352, %c0_353] : memref<32x8x128xf32, #tpu.memory_space<vmem>>, vector<1x8x128xf32>
    %880 = vector.shape_cast %879 : vector<1x8x128xf32> to vector<8x128xf32>
    %881 = vector.shape_cast %876 : vector<8x128xf32> to vector<1x8x128xf32>
    tpu.vector_store %arg5[%878, %c0_352, %c0_353], %881 {strides = array<i32>} : memref<32x8x128xf32, #tpu.memory_space<vmem>>, vector<1x8x128xf32>,
    %c22_i32 = arith.constant 22 : i32
    %c0_354 = arith.constant 0 : index
    %c0_355 = arith.constant 0 : index
    %882 = vector.load %arg6[%c0_354, %c0_355] : memref<8x128xf32, #tpu.memory_space<vmem>>, vector<8x128xf32>
    %883 = arith.index_cast %c22_i32 : i32 to index
    %c0_356 = arith.constant 0 : index
    %c0_357 = arith.constant 0 : index
    %884 = vector.load %arg1[%883, %c0_356, %c0_357] : memref<32x8x384xf32, #tpu.memory_space<vmem>>, vector<1x8x384xf32>
    %885 = vector.shape_cast %884 : vector<1x8x384xf32> to vector<8x384xf32>
    %c0_358 = arith.constant 0 : index
    %c0_359 = arith.constant 0 : index
    %886 = vector.load %arg3[%c0_358, %c0_359] : memref<128x384xf32, #tpu.memory_space<vmem>>, vector<128x384xf32>
    %cst_360 = arith.constant dense<0.000000e+00> : vector<8x384xf32>
    %887 = tpu.matmul %882, %886, %cst_360 {dimension_numbers = #tpu.dot_dimension_numbers<[1], [0], [0], [1], [0, 0, 1, 1], [], []>} : vector<8x128xf32>, vector<128x384xf32>, vector<8x384xf32> -> vector<8x384xf32>
    %888 = vector.extract_strided_slice %885 {offsets = [0, 0], sizes = [8, 128], strides = [1, 1]} : vector<8x384xf32> to vector<8x128xf32>
    %889 = vector.extract_strided_slice %887 {offsets = [0, 0], sizes = [8, 128], strides = [1, 1]} : vector<8x384xf32> to vector<8x128xf32>
    %890 = arith.addf %888, %889 : vector<8x128xf32>
    %891 = arith.negf %890 : vector<8x128xf32>
    %892 = math.exp %891 : vector<8x128xf32>
    %cst_361 = arith.constant 1.000000e+00 : f32
    %893 = vector.broadcast %cst_361 : f32 to vector<8x128xf32>
    %894 = arith.addf %893, %892 : vector<8x128xf32>
    %895 = arith.divf %893, %894 : vector<8x128xf32>
    %896 = vector.extract_strided_slice %885 {offsets = [0, 128], sizes = [8, 128], strides = [1, 1]} : vector<8x384xf32> to vector<8x128xf32>
    %897 = vector.extract_strided_slice %887 {offsets = [0, 128], sizes = [8, 128], strides = [1, 1]} : vector<8x384xf32> to vector<8x128xf32>
    %898 = arith.addf %896, %897 : vector<8x128xf32>
    %899 = arith.negf %898 : vector<8x128xf32>
    %900 = math.exp %899 : vector<8x128xf32>
    %cst_362 = arith.constant 1.000000e+00 : f32
    %901 = vector.broadcast %cst_362 : f32 to vector<8x128xf32>
    %902 = arith.addf %901, %900 : vector<8x128xf32>
    %903 = arith.divf %901, %902 : vector<8x128xf32>
    %904 = vector.extract_strided_slice %885 {offsets = [0, 256], sizes = [8, 128], strides = [1, 1]} : vector<8x384xf32> to vector<8x128xf32>
    %905 = vector.extract_strided_slice %887 {offsets = [0, 256], sizes = [8, 128], strides = [1, 1]} : vector<8x384xf32> to vector<8x128xf32>
    %c0_363 = arith.constant 0 : index
    %c0_364 = arith.constant 0 : index
    %906 = vector.load %arg4[%c0_363, %c0_364] : memref<1x128xf32, #tpu.memory_space<vmem>>, vector<1x128xf32>
    %907 = vector.broadcast %906 : vector<1x128xf32> to vector<8x128xf32>
    %908 = arith.addf %905, %907 : vector<8x128xf32>
    %909 = arith.mulf %895, %908 : vector<8x128xf32>
    %910 = arith.addf %904, %909 : vector<8x128xf32>
    %911 = math.tanh %910 : vector<8x128xf32>
    %cst_365 = arith.constant 1.000000e+00 : f32
    %912 = vector.broadcast %cst_365 : f32 to vector<8x128xf32>
    %913 = arith.subf %912, %903 : vector<8x128xf32>
    %914 = arith.mulf %913, %911 : vector<8x128xf32>
    %915 = arith.mulf %903, %882 : vector<8x128xf32>
    %916 = arith.addf %914, %915 : vector<8x128xf32>
    %c0_366 = arith.constant 0 : index
    %c0_367 = arith.constant 0 : index
    %917 = vector.load %arg6[%c0_366, %c0_367] : memref<8x128xf32, #tpu.memory_space<vmem>>, vector<8x128xf32>
    tpu.vector_store %arg6[%c0_366, %c0_367], %916 {strides = array<i32>} : memref<8x128xf32, #tpu.memory_space<vmem>>, vector<8x128xf32>,
    %918 = arith.index_cast %c22_i32 : i32 to index
    %c0_368 = arith.constant 0 : index
    %c0_369 = arith.constant 0 : index
    %919 = vector.load %arg5[%918, %c0_368, %c0_369] : memref<32x8x128xf32, #tpu.memory_space<vmem>>, vector<1x8x128xf32>
    %920 = vector.shape_cast %919 : vector<1x8x128xf32> to vector<8x128xf32>
    %921 = vector.shape_cast %916 : vector<8x128xf32> to vector<1x8x128xf32>
    tpu.vector_store %arg5[%918, %c0_368, %c0_369], %921 {strides = array<i32>} : memref<32x8x128xf32, #tpu.memory_space<vmem>>, vector<1x8x128xf32>,
    %c23_i32 = arith.constant 23 : i32
    %c0_370 = arith.constant 0 : index
    %c0_371 = arith.constant 0 : index
    %922 = vector.load %arg6[%c0_370, %c0_371] : memref<8x128xf32, #tpu.memory_space<vmem>>, vector<8x128xf32>
    %923 = arith.index_cast %c23_i32 : i32 to index
    %c0_372 = arith.constant 0 : index
    %c0_373 = arith.constant 0 : index
    %924 = vector.load %arg1[%923, %c0_372, %c0_373] : memref<32x8x384xf32, #tpu.memory_space<vmem>>, vector<1x8x384xf32>
    %925 = vector.shape_cast %924 : vector<1x8x384xf32> to vector<8x384xf32>
    %c0_374 = arith.constant 0 : index
    %c0_375 = arith.constant 0 : index
    %926 = vector.load %arg3[%c0_374, %c0_375] : memref<128x384xf32, #tpu.memory_space<vmem>>, vector<128x384xf32>
    %cst_376 = arith.constant dense<0.000000e+00> : vector<8x384xf32>
    %927 = tpu.matmul %922, %926, %cst_376 {dimension_numbers = #tpu.dot_dimension_numbers<[1], [0], [0], [1], [0, 0, 1, 1], [], []>} : vector<8x128xf32>, vector<128x384xf32>, vector<8x384xf32> -> vector<8x384xf32>
    %928 = vector.extract_strided_slice %925 {offsets = [0, 0], sizes = [8, 128], strides = [1, 1]} : vector<8x384xf32> to vector<8x128xf32>
    %929 = vector.extract_strided_slice %927 {offsets = [0, 0], sizes = [8, 128], strides = [1, 1]} : vector<8x384xf32> to vector<8x128xf32>
    %930 = arith.addf %928, %929 : vector<8x128xf32>
    %931 = arith.negf %930 : vector<8x128xf32>
    %932 = math.exp %931 : vector<8x128xf32>
    %cst_377 = arith.constant 1.000000e+00 : f32
    %933 = vector.broadcast %cst_377 : f32 to vector<8x128xf32>
    %934 = arith.addf %933, %932 : vector<8x128xf32>
    %935 = arith.divf %933, %934 : vector<8x128xf32>
    %936 = vector.extract_strided_slice %925 {offsets = [0, 128], sizes = [8, 128], strides = [1, 1]} : vector<8x384xf32> to vector<8x128xf32>
    %937 = vector.extract_strided_slice %927 {offsets = [0, 128], sizes = [8, 128], strides = [1, 1]} : vector<8x384xf32> to vector<8x128xf32>
    %938 = arith.addf %936, %937 : vector<8x128xf32>
    %939 = arith.negf %938 : vector<8x128xf32>
    %940 = math.exp %939 : vector<8x128xf32>
    %cst_378 = arith.constant 1.000000e+00 : f32
    %941 = vector.broadcast %cst_378 : f32 to vector<8x128xf32>
    %942 = arith.addf %941, %940 : vector<8x128xf32>
    %943 = arith.divf %941, %942 : vector<8x128xf32>
    %944 = vector.extract_strided_slice %925 {offsets = [0, 256], sizes = [8, 128], strides = [1, 1]} : vector<8x384xf32> to vector<8x128xf32>
    %945 = vector.extract_strided_slice %927 {offsets = [0, 256], sizes = [8, 128], strides = [1, 1]} : vector<8x384xf32> to vector<8x128xf32>
    %c0_379 = arith.constant 0 : index
    %c0_380 = arith.constant 0 : index
    %946 = vector.load %arg4[%c0_379, %c0_380] : memref<1x128xf32, #tpu.memory_space<vmem>>, vector<1x128xf32>
    %947 = vector.broadcast %946 : vector<1x128xf32> to vector<8x128xf32>
    %948 = arith.addf %945, %947 : vector<8x128xf32>
    %949 = arith.mulf %935, %948 : vector<8x128xf32>
    %950 = arith.addf %944, %949 : vector<8x128xf32>
    %951 = math.tanh %950 : vector<8x128xf32>
    %cst_381 = arith.constant 1.000000e+00 : f32
    %952 = vector.broadcast %cst_381 : f32 to vector<8x128xf32>
    %953 = arith.subf %952, %943 : vector<8x128xf32>
    %954 = arith.mulf %953, %951 : vector<8x128xf32>
    %955 = arith.mulf %943, %922 : vector<8x128xf32>
    %956 = arith.addf %954, %955 : vector<8x128xf32>
    %c0_382 = arith.constant 0 : index
    %c0_383 = arith.constant 0 : index
    %957 = vector.load %arg6[%c0_382, %c0_383] : memref<8x128xf32, #tpu.memory_space<vmem>>, vector<8x128xf32>
    tpu.vector_store %arg6[%c0_382, %c0_383], %956 {strides = array<i32>} : memref<8x128xf32, #tpu.memory_space<vmem>>, vector<8x128xf32>,
    %958 = arith.index_cast %c23_i32 : i32 to index
    %c0_384 = arith.constant 0 : index
    %c0_385 = arith.constant 0 : index
    %959 = vector.load %arg5[%958, %c0_384, %c0_385] : memref<32x8x128xf32, #tpu.memory_space<vmem>>, vector<1x8x128xf32>
    %960 = vector.shape_cast %959 : vector<1x8x128xf32> to vector<8x128xf32>
    %961 = vector.shape_cast %956 : vector<8x128xf32> to vector<1x8x128xf32>
    tpu.vector_store %arg5[%958, %c0_384, %c0_385], %961 {strides = array<i32>} : memref<32x8x128xf32, #tpu.memory_space<vmem>>, vector<1x8x128xf32>,
    %c24_i32 = arith.constant 24 : i32
    %c0_386 = arith.constant 0 : index
    %c0_387 = arith.constant 0 : index
    %962 = vector.load %arg6[%c0_386, %c0_387] : memref<8x128xf32, #tpu.memory_space<vmem>>, vector<8x128xf32>
    %963 = arith.index_cast %c24_i32 : i32 to index
    %c0_388 = arith.constant 0 : index
    %c0_389 = arith.constant 0 : index
    %964 = vector.load %arg1[%963, %c0_388, %c0_389] : memref<32x8x384xf32, #tpu.memory_space<vmem>>, vector<1x8x384xf32>
    %965 = vector.shape_cast %964 : vector<1x8x384xf32> to vector<8x384xf32>
    %c0_390 = arith.constant 0 : index
    %c0_391 = arith.constant 0 : index
    %966 = vector.load %arg3[%c0_390, %c0_391] : memref<128x384xf32, #tpu.memory_space<vmem>>, vector<128x384xf32>
    %cst_392 = arith.constant dense<0.000000e+00> : vector<8x384xf32>
    %967 = tpu.matmul %962, %966, %cst_392 {dimension_numbers = #tpu.dot_dimension_numbers<[1], [0], [0], [1], [0, 0, 1, 1], [], []>} : vector<8x128xf32>, vector<128x384xf32>, vector<8x384xf32> -> vector<8x384xf32>
    %968 = vector.extract_strided_slice %965 {offsets = [0, 0], sizes = [8, 128], strides = [1, 1]} : vector<8x384xf32> to vector<8x128xf32>
    %969 = vector.extract_strided_slice %967 {offsets = [0, 0], sizes = [8, 128], strides = [1, 1]} : vector<8x384xf32> to vector<8x128xf32>
    %970 = arith.addf %968, %969 : vector<8x128xf32>
    %971 = arith.negf %970 : vector<8x128xf32>
    %972 = math.exp %971 : vector<8x128xf32>
    %cst_393 = arith.constant 1.000000e+00 : f32
    %973 = vector.broadcast %cst_393 : f32 to vector<8x128xf32>
    %974 = arith.addf %973, %972 : vector<8x128xf32>
    %975 = arith.divf %973, %974 : vector<8x128xf32>
    %976 = vector.extract_strided_slice %965 {offsets = [0, 128], sizes = [8, 128], strides = [1, 1]} : vector<8x384xf32> to vector<8x128xf32>
    %977 = vector.extract_strided_slice %967 {offsets = [0, 128], sizes = [8, 128], strides = [1, 1]} : vector<8x384xf32> to vector<8x128xf32>
    %978 = arith.addf %976, %977 : vector<8x128xf32>
    %979 = arith.negf %978 : vector<8x128xf32>
    %980 = math.exp %979 : vector<8x128xf32>
    %cst_394 = arith.constant 1.000000e+00 : f32
    %981 = vector.broadcast %cst_394 : f32 to vector<8x128xf32>
    %982 = arith.addf %981, %980 : vector<8x128xf32>
    %983 = arith.divf %981, %982 : vector<8x128xf32>
    %984 = vector.extract_strided_slice %965 {offsets = [0, 256], sizes = [8, 128], strides = [1, 1]} : vector<8x384xf32> to vector<8x128xf32>
    %985 = vector.extract_strided_slice %967 {offsets = [0, 256], sizes = [8, 128], strides = [1, 1]} : vector<8x384xf32> to vector<8x128xf32>
    %c0_395 = arith.constant 0 : index
    %c0_396 = arith.constant 0 : index
    %986 = vector.load %arg4[%c0_395, %c0_396] : memref<1x128xf32, #tpu.memory_space<vmem>>, vector<1x128xf32>
    %987 = vector.broadcast %986 : vector<1x128xf32> to vector<8x128xf32>
    %988 = arith.addf %985, %987 : vector<8x128xf32>
    %989 = arith.mulf %975, %988 : vector<8x128xf32>
    %990 = arith.addf %984, %989 : vector<8x128xf32>
    %991 = math.tanh %990 : vector<8x128xf32>
    %cst_397 = arith.constant 1.000000e+00 : f32
    %992 = vector.broadcast %cst_397 : f32 to vector<8x128xf32>
    %993 = arith.subf %992, %983 : vector<8x128xf32>
    %994 = arith.mulf %993, %991 : vector<8x128xf32>
    %995 = arith.mulf %983, %962 : vector<8x128xf32>
    %996 = arith.addf %994, %995 : vector<8x128xf32>
    %c0_398 = arith.constant 0 : index
    %c0_399 = arith.constant 0 : index
    %997 = vector.load %arg6[%c0_398, %c0_399] : memref<8x128xf32, #tpu.memory_space<vmem>>, vector<8x128xf32>
    tpu.vector_store %arg6[%c0_398, %c0_399], %996 {strides = array<i32>} : memref<8x128xf32, #tpu.memory_space<vmem>>, vector<8x128xf32>,
    %998 = arith.index_cast %c24_i32 : i32 to index
    %c0_400 = arith.constant 0 : index
    %c0_401 = arith.constant 0 : index
    %999 = vector.load %arg5[%998, %c0_400, %c0_401] : memref<32x8x128xf32, #tpu.memory_space<vmem>>, vector<1x8x128xf32>
    %1000 = vector.shape_cast %999 : vector<1x8x128xf32> to vector<8x128xf32>
    %1001 = vector.shape_cast %996 : vector<8x128xf32> to vector<1x8x128xf32>
    tpu.vector_store %arg5[%998, %c0_400, %c0_401], %1001 {strides = array<i32>} : memref<32x8x128xf32, #tpu.memory_space<vmem>>, vector<1x8x128xf32>,
    %c25_i32 = arith.constant 25 : i32
    %c0_402 = arith.constant 0 : index
    %c0_403 = arith.constant 0 : index
    %1002 = vector.load %arg6[%c0_402, %c0_403] : memref<8x128xf32, #tpu.memory_space<vmem>>, vector<8x128xf32>
    %1003 = arith.index_cast %c25_i32 : i32 to index
    %c0_404 = arith.constant 0 : index
    %c0_405 = arith.constant 0 : index
    %1004 = vector.load %arg1[%1003, %c0_404, %c0_405] : memref<32x8x384xf32, #tpu.memory_space<vmem>>, vector<1x8x384xf32>
    %1005 = vector.shape_cast %1004 : vector<1x8x384xf32> to vector<8x384xf32>
    %c0_406 = arith.constant 0 : index
    %c0_407 = arith.constant 0 : index
    %1006 = vector.load %arg3[%c0_406, %c0_407] : memref<128x384xf32, #tpu.memory_space<vmem>>, vector<128x384xf32>
    %cst_408 = arith.constant dense<0.000000e+00> : vector<8x384xf32>
    %1007 = tpu.matmul %1002, %1006, %cst_408 {dimension_numbers = #tpu.dot_dimension_numbers<[1], [0], [0], [1], [0, 0, 1, 1], [], []>} : vector<8x128xf32>, vector<128x384xf32>, vector<8x384xf32> -> vector<8x384xf32>
    %1008 = vector.extract_strided_slice %1005 {offsets = [0, 0], sizes = [8, 128], strides = [1, 1]} : vector<8x384xf32> to vector<8x128xf32>
    %1009 = vector.extract_strided_slice %1007 {offsets = [0, 0], sizes = [8, 128], strides = [1, 1]} : vector<8x384xf32> to vector<8x128xf32>
    %1010 = arith.addf %1008, %1009 : vector<8x128xf32>
    %1011 = arith.negf %1010 : vector<8x128xf32>
    %1012 = math.exp %1011 : vector<8x128xf32>
    %cst_409 = arith.constant 1.000000e+00 : f32
    %1013 = vector.broadcast %cst_409 : f32 to vector<8x128xf32>
    %1014 = arith.addf %1013, %1012 : vector<8x128xf32>
    %1015 = arith.divf %1013, %1014 : vector<8x128xf32>
    %1016 = vector.extract_strided_slice %1005 {offsets = [0, 128], sizes = [8, 128], strides = [1, 1]} : vector<8x384xf32> to vector<8x128xf32>
    %1017 = vector.extract_strided_slice %1007 {offsets = [0, 128], sizes = [8, 128], strides = [1, 1]} : vector<8x384xf32> to vector<8x128xf32>
    %1018 = arith.addf %1016, %1017 : vector<8x128xf32>
    %1019 = arith.negf %1018 : vector<8x128xf32>
    %1020 = math.exp %1019 : vector<8x128xf32>
    %cst_410 = arith.constant 1.000000e+00 : f32
    %1021 = vector.broadcast %cst_410 : f32 to vector<8x128xf32>
    %1022 = arith.addf %1021, %1020 : vector<8x128xf32>
    %1023 = arith.divf %1021, %1022 : vector<8x128xf32>
    %1024 = vector.extract_strided_slice %1005 {offsets = [0, 256], sizes = [8, 128], strides = [1, 1]} : vector<8x384xf32> to vector<8x128xf32>
    %1025 = vector.extract_strided_slice %1007 {offsets = [0, 256], sizes = [8, 128], strides = [1, 1]} : vector<8x384xf32> to vector<8x128xf32>
    %c0_411 = arith.constant 0 : index
    %c0_412 = arith.constant 0 : index
    %1026 = vector.load %arg4[%c0_411, %c0_412] : memref<1x128xf32, #tpu.memory_space<vmem>>, vector<1x128xf32>
    %1027 = vector.broadcast %1026 : vector<1x128xf32> to vector<8x128xf32>
    %1028 = arith.addf %1025, %1027 : vector<8x128xf32>
    %1029 = arith.mulf %1015, %1028 : vector<8x128xf32>
    %1030 = arith.addf %1024, %1029 : vector<8x128xf32>
    %1031 = math.tanh %1030 : vector<8x128xf32>
    %cst_413 = arith.constant 1.000000e+00 : f32
    %1032 = vector.broadcast %cst_413 : f32 to vector<8x128xf32>
    %1033 = arith.subf %1032, %1023 : vector<8x128xf32>
    %1034 = arith.mulf %1033, %1031 : vector<8x128xf32>
    %1035 = arith.mulf %1023, %1002 : vector<8x128xf32>
    %1036 = arith.addf %1034, %1035 : vector<8x128xf32>
    %c0_414 = arith.constant 0 : index
    %c0_415 = arith.constant 0 : index
    %1037 = vector.load %arg6[%c0_414, %c0_415] : memref<8x128xf32, #tpu.memory_space<vmem>>, vector<8x128xf32>
    tpu.vector_store %arg6[%c0_414, %c0_415], %1036 {strides = array<i32>} : memref<8x128xf32, #tpu.memory_space<vmem>>, vector<8x128xf32>,
    %1038 = arith.index_cast %c25_i32 : i32 to index
    %c0_416 = arith.constant 0 : index
    %c0_417 = arith.constant 0 : index
    %1039 = vector.load %arg5[%1038, %c0_416, %c0_417] : memref<32x8x128xf32, #tpu.memory_space<vmem>>, vector<1x8x128xf32>
    %1040 = vector.shape_cast %1039 : vector<1x8x128xf32> to vector<8x128xf32>
    %1041 = vector.shape_cast %1036 : vector<8x128xf32> to vector<1x8x128xf32>
    tpu.vector_store %arg5[%1038, %c0_416, %c0_417], %1041 {strides = array<i32>} : memref<32x8x128xf32, #tpu.memory_space<vmem>>, vector<1x8x128xf32>,
    %c26_i32 = arith.constant 26 : i32
    %c0_418 = arith.constant 0 : index
    %c0_419 = arith.constant 0 : index
    %1042 = vector.load %arg6[%c0_418, %c0_419] : memref<8x128xf32, #tpu.memory_space<vmem>>, vector<8x128xf32>
    %1043 = arith.index_cast %c26_i32 : i32 to index
    %c0_420 = arith.constant 0 : index
    %c0_421 = arith.constant 0 : index
    %1044 = vector.load %arg1[%1043, %c0_420, %c0_421] : memref<32x8x384xf32, #tpu.memory_space<vmem>>, vector<1x8x384xf32>
    %1045 = vector.shape_cast %1044 : vector<1x8x384xf32> to vector<8x384xf32>
    %c0_422 = arith.constant 0 : index
    %c0_423 = arith.constant 0 : index
    %1046 = vector.load %arg3[%c0_422, %c0_423] : memref<128x384xf32, #tpu.memory_space<vmem>>, vector<128x384xf32>
    %cst_424 = arith.constant dense<0.000000e+00> : vector<8x384xf32>
    %1047 = tpu.matmul %1042, %1046, %cst_424 {dimension_numbers = #tpu.dot_dimension_numbers<[1], [0], [0], [1], [0, 0, 1, 1], [], []>} : vector<8x128xf32>, vector<128x384xf32>, vector<8x384xf32> -> vector<8x384xf32>
    %1048 = vector.extract_strided_slice %1045 {offsets = [0, 0], sizes = [8, 128], strides = [1, 1]} : vector<8x384xf32> to vector<8x128xf32>
    %1049 = vector.extract_strided_slice %1047 {offsets = [0, 0], sizes = [8, 128], strides = [1, 1]} : vector<8x384xf32> to vector<8x128xf32>
    %1050 = arith.addf %1048, %1049 : vector<8x128xf32>
    %1051 = arith.negf %1050 : vector<8x128xf32>
    %1052 = math.exp %1051 : vector<8x128xf32>
    %cst_425 = arith.constant 1.000000e+00 : f32
    %1053 = vector.broadcast %cst_425 : f32 to vector<8x128xf32>
    %1054 = arith.addf %1053, %1052 : vector<8x128xf32>
    %1055 = arith.divf %1053, %1054 : vector<8x128xf32>
    %1056 = vector.extract_strided_slice %1045 {offsets = [0, 128], sizes = [8, 128], strides = [1, 1]} : vector<8x384xf32> to vector<8x128xf32>
    %1057 = vector.extract_strided_slice %1047 {offsets = [0, 128], sizes = [8, 128], strides = [1, 1]} : vector<8x384xf32> to vector<8x128xf32>
    %1058 = arith.addf %1056, %1057 : vector<8x128xf32>
    %1059 = arith.negf %1058 : vector<8x128xf32>
    %1060 = math.exp %1059 : vector<8x128xf32>
    %cst_426 = arith.constant 1.000000e+00 : f32
    %1061 = vector.broadcast %cst_426 : f32 to vector<8x128xf32>
    %1062 = arith.addf %1061, %1060 : vector<8x128xf32>
    %1063 = arith.divf %1061, %1062 : vector<8x128xf32>
    %1064 = vector.extract_strided_slice %1045 {offsets = [0, 256], sizes = [8, 128], strides = [1, 1]} : vector<8x384xf32> to vector<8x128xf32>
    %1065 = vector.extract_strided_slice %1047 {offsets = [0, 256], sizes = [8, 128], strides = [1, 1]} : vector<8x384xf32> to vector<8x128xf32>
    %c0_427 = arith.constant 0 : index
    %c0_428 = arith.constant 0 : index
    %1066 = vector.load %arg4[%c0_427, %c0_428] : memref<1x128xf32, #tpu.memory_space<vmem>>, vector<1x128xf32>
    %1067 = vector.broadcast %1066 : vector<1x128xf32> to vector<8x128xf32>
    %1068 = arith.addf %1065, %1067 : vector<8x128xf32>
    %1069 = arith.mulf %1055, %1068 : vector<8x128xf32>
    %1070 = arith.addf %1064, %1069 : vector<8x128xf32>
    %1071 = math.tanh %1070 : vector<8x128xf32>
    %cst_429 = arith.constant 1.000000e+00 : f32
    %1072 = vector.broadcast %cst_429 : f32 to vector<8x128xf32>
    %1073 = arith.subf %1072, %1063 : vector<8x128xf32>
    %1074 = arith.mulf %1073, %1071 : vector<8x128xf32>
    %1075 = arith.mulf %1063, %1042 : vector<8x128xf32>
    %1076 = arith.addf %1074, %1075 : vector<8x128xf32>
    %c0_430 = arith.constant 0 : index
    %c0_431 = arith.constant 0 : index
    %1077 = vector.load %arg6[%c0_430, %c0_431] : memref<8x128xf32, #tpu.memory_space<vmem>>, vector<8x128xf32>
    tpu.vector_store %arg6[%c0_430, %c0_431], %1076 {strides = array<i32>} : memref<8x128xf32, #tpu.memory_space<vmem>>, vector<8x128xf32>,
    %1078 = arith.index_cast %c26_i32 : i32 to index
    %c0_432 = arith.constant 0 : index
    %c0_433 = arith.constant 0 : index
    %1079 = vector.load %arg5[%1078, %c0_432, %c0_433] : memref<32x8x128xf32, #tpu.memory_space<vmem>>, vector<1x8x128xf32>
    %1080 = vector.shape_cast %1079 : vector<1x8x128xf32> to vector<8x128xf32>
    %1081 = vector.shape_cast %1076 : vector<8x128xf32> to vector<1x8x128xf32>
    tpu.vector_store %arg5[%1078, %c0_432, %c0_433], %1081 {strides = array<i32>} : memref<32x8x128xf32, #tpu.memory_space<vmem>>, vector<1x8x128xf32>,
    %c27_i32 = arith.constant 27 : i32
    %c0_434 = arith.constant 0 : index
    %c0_435 = arith.constant 0 : index
    %1082 = vector.load %arg6[%c0_434, %c0_435] : memref<8x128xf32, #tpu.memory_space<vmem>>, vector<8x128xf32>
    %1083 = arith.index_cast %c27_i32 : i32 to index
    %c0_436 = arith.constant 0 : index
    %c0_437 = arith.constant 0 : index
    %1084 = vector.load %arg1[%1083, %c0_436, %c0_437] : memref<32x8x384xf32, #tpu.memory_space<vmem>>, vector<1x8x384xf32>
    %1085 = vector.shape_cast %1084 : vector<1x8x384xf32> to vector<8x384xf32>
    %c0_438 = arith.constant 0 : index
    %c0_439 = arith.constant 0 : index
    %1086 = vector.load %arg3[%c0_438, %c0_439] : memref<128x384xf32, #tpu.memory_space<vmem>>, vector<128x384xf32>
    %cst_440 = arith.constant dense<0.000000e+00> : vector<8x384xf32>
    %1087 = tpu.matmul %1082, %1086, %cst_440 {dimension_numbers = #tpu.dot_dimension_numbers<[1], [0], [0], [1], [0, 0, 1, 1], [], []>} : vector<8x128xf32>, vector<128x384xf32>, vector<8x384xf32> -> vector<8x384xf32>
    %1088 = vector.extract_strided_slice %1085 {offsets = [0, 0], sizes = [8, 128], strides = [1, 1]} : vector<8x384xf32> to vector<8x128xf32>
    %1089 = vector.extract_strided_slice %1087 {offsets = [0, 0], sizes = [8, 128], strides = [1, 1]} : vector<8x384xf32> to vector<8x128xf32>
    %1090 = arith.addf %1088, %1089 : vector<8x128xf32>
    %1091 = arith.negf %1090 : vector<8x128xf32>
    %1092 = math.exp %1091 : vector<8x128xf32>
    %cst_441 = arith.constant 1.000000e+00 : f32
    %1093 = vector.broadcast %cst_441 : f32 to vector<8x128xf32>
    %1094 = arith.addf %1093, %1092 : vector<8x128xf32>
    %1095 = arith.divf %1093, %1094 : vector<8x128xf32>
    %1096 = vector.extract_strided_slice %1085 {offsets = [0, 128], sizes = [8, 128], strides = [1, 1]} : vector<8x384xf32> to vector<8x128xf32>
    %1097 = vector.extract_strided_slice %1087 {offsets = [0, 128], sizes = [8, 128], strides = [1, 1]} : vector<8x384xf32> to vector<8x128xf32>
    %1098 = arith.addf %1096, %1097 : vector<8x128xf32>
    %1099 = arith.negf %1098 : vector<8x128xf32>
    %1100 = math.exp %1099 : vector<8x128xf32>
    %cst_442 = arith.constant 1.000000e+00 : f32
    %1101 = vector.broadcast %cst_442 : f32 to vector<8x128xf32>
    %1102 = arith.addf %1101, %1100 : vector<8x128xf32>
    %1103 = arith.divf %1101, %1102 : vector<8x128xf32>
    %1104 = vector.extract_strided_slice %1085 {offsets = [0, 256], sizes = [8, 128], strides = [1, 1]} : vector<8x384xf32> to vector<8x128xf32>
    %1105 = vector.extract_strided_slice %1087 {offsets = [0, 256], sizes = [8, 128], strides = [1, 1]} : vector<8x384xf32> to vector<8x128xf32>
    %c0_443 = arith.constant 0 : index
    %c0_444 = arith.constant 0 : index
    %1106 = vector.load %arg4[%c0_443, %c0_444] : memref<1x128xf32, #tpu.memory_space<vmem>>, vector<1x128xf32>
    %1107 = vector.broadcast %1106 : vector<1x128xf32> to vector<8x128xf32>
    %1108 = arith.addf %1105, %1107 : vector<8x128xf32>
    %1109 = arith.mulf %1095, %1108 : vector<8x128xf32>
    %1110 = arith.addf %1104, %1109 : vector<8x128xf32>
    %1111 = math.tanh %1110 : vector<8x128xf32>
    %cst_445 = arith.constant 1.000000e+00 : f32
    %1112 = vector.broadcast %cst_445 : f32 to vector<8x128xf32>
    %1113 = arith.subf %1112, %1103 : vector<8x128xf32>
    %1114 = arith.mulf %1113, %1111 : vector<8x128xf32>
    %1115 = arith.mulf %1103, %1082 : vector<8x128xf32>
    %1116 = arith.addf %1114, %1115 : vector<8x128xf32>
    %c0_446 = arith.constant 0 : index
    %c0_447 = arith.constant 0 : index
    %1117 = vector.load %arg6[%c0_446, %c0_447] : memref<8x128xf32, #tpu.memory_space<vmem>>, vector<8x128xf32>
    tpu.vector_store %arg6[%c0_446, %c0_447], %1116 {strides = array<i32>} : memref<8x128xf32, #tpu.memory_space<vmem>>, vector<8x128xf32>,
    %1118 = arith.index_cast %c27_i32 : i32 to index
    %c0_448 = arith.constant 0 : index
    %c0_449 = arith.constant 0 : index
    %1119 = vector.load %arg5[%1118, %c0_448, %c0_449] : memref<32x8x128xf32, #tpu.memory_space<vmem>>, vector<1x8x128xf32>
    %1120 = vector.shape_cast %1119 : vector<1x8x128xf32> to vector<8x128xf32>
    %1121 = vector.shape_cast %1116 : vector<8x128xf32> to vector<1x8x128xf32>
    tpu.vector_store %arg5[%1118, %c0_448, %c0_449], %1121 {strides = array<i32>} : memref<32x8x128xf32, #tpu.memory_space<vmem>>, vector<1x8x128xf32>,
    %c28_i32 = arith.constant 28 : i32
    %c0_450 = arith.constant 0 : index
    %c0_451 = arith.constant 0 : index
    %1122 = vector.load %arg6[%c0_450, %c0_451] : memref<8x128xf32, #tpu.memory_space<vmem>>, vector<8x128xf32>
    %1123 = arith.index_cast %c28_i32 : i32 to index
    %c0_452 = arith.constant 0 : index
    %c0_453 = arith.constant 0 : index
    %1124 = vector.load %arg1[%1123, %c0_452, %c0_453] : memref<32x8x384xf32, #tpu.memory_space<vmem>>, vector<1x8x384xf32>
    %1125 = vector.shape_cast %1124 : vector<1x8x384xf32> to vector<8x384xf32>
    %c0_454 = arith.constant 0 : index
    %c0_455 = arith.constant 0 : index
    %1126 = vector.load %arg3[%c0_454, %c0_455] : memref<128x384xf32, #tpu.memory_space<vmem>>, vector<128x384xf32>
    %cst_456 = arith.constant dense<0.000000e+00> : vector<8x384xf32>
    %1127 = tpu.matmul %1122, %1126, %cst_456 {dimension_numbers = #tpu.dot_dimension_numbers<[1], [0], [0], [1], [0, 0, 1, 1], [], []>} : vector<8x128xf32>, vector<128x384xf32>, vector<8x384xf32> -> vector<8x384xf32>
    %1128 = vector.extract_strided_slice %1125 {offsets = [0, 0], sizes = [8, 128], strides = [1, 1]} : vector<8x384xf32> to vector<8x128xf32>
    %1129 = vector.extract_strided_slice %1127 {offsets = [0, 0], sizes = [8, 128], strides = [1, 1]} : vector<8x384xf32> to vector<8x128xf32>
    %1130 = arith.addf %1128, %1129 : vector<8x128xf32>
    %1131 = arith.negf %1130 : vector<8x128xf32>
    %1132 = math.exp %1131 : vector<8x128xf32>
    %cst_457 = arith.constant 1.000000e+00 : f32
    %1133 = vector.broadcast %cst_457 : f32 to vector<8x128xf32>
    %1134 = arith.addf %1133, %1132 : vector<8x128xf32>
    %1135 = arith.divf %1133, %1134 : vector<8x128xf32>
    %1136 = vector.extract_strided_slice %1125 {offsets = [0, 128], sizes = [8, 128], strides = [1, 1]} : vector<8x384xf32> to vector<8x128xf32>
    %1137 = vector.extract_strided_slice %1127 {offsets = [0, 128], sizes = [8, 128], strides = [1, 1]} : vector<8x384xf32> to vector<8x128xf32>
    %1138 = arith.addf %1136, %1137 : vector<8x128xf32>
    %1139 = arith.negf %1138 : vector<8x128xf32>
    %1140 = math.exp %1139 : vector<8x128xf32>
    %cst_458 = arith.constant 1.000000e+00 : f32
    %1141 = vector.broadcast %cst_458 : f32 to vector<8x128xf32>
    %1142 = arith.addf %1141, %1140 : vector<8x128xf32>
    %1143 = arith.divf %1141, %1142 : vector<8x128xf32>
    %1144 = vector.extract_strided_slice %1125 {offsets = [0, 256], sizes = [8, 128], strides = [1, 1]} : vector<8x384xf32> to vector<8x128xf32>
    %1145 = vector.extract_strided_slice %1127 {offsets = [0, 256], sizes = [8, 128], strides = [1, 1]} : vector<8x384xf32> to vector<8x128xf32>
    %c0_459 = arith.constant 0 : index
    %c0_460 = arith.constant 0 : index
    %1146 = vector.load %arg4[%c0_459, %c0_460] : memref<1x128xf32, #tpu.memory_space<vmem>>, vector<1x128xf32>
    %1147 = vector.broadcast %1146 : vector<1x128xf32> to vector<8x128xf32>
    %1148 = arith.addf %1145, %1147 : vector<8x128xf32>
    %1149 = arith.mulf %1135, %1148 : vector<8x128xf32>
    %1150 = arith.addf %1144, %1149 : vector<8x128xf32>
    %1151 = math.tanh %1150 : vector<8x128xf32>
    %cst_461 = arith.constant 1.000000e+00 : f32
    %1152 = vector.broadcast %cst_461 : f32 to vector<8x128xf32>
    %1153 = arith.subf %1152, %1143 : vector<8x128xf32>
    %1154 = arith.mulf %1153, %1151 : vector<8x128xf32>
    %1155 = arith.mulf %1143, %1122 : vector<8x128xf32>
    %1156 = arith.addf %1154, %1155 : vector<8x128xf32>
    %c0_462 = arith.constant 0 : index
    %c0_463 = arith.constant 0 : index
    %1157 = vector.load %arg6[%c0_462, %c0_463] : memref<8x128xf32, #tpu.memory_space<vmem>>, vector<8x128xf32>
    tpu.vector_store %arg6[%c0_462, %c0_463], %1156 {strides = array<i32>} : memref<8x128xf32, #tpu.memory_space<vmem>>, vector<8x128xf32>,
    %1158 = arith.index_cast %c28_i32 : i32 to index
    %c0_464 = arith.constant 0 : index
    %c0_465 = arith.constant 0 : index
    %1159 = vector.load %arg5[%1158, %c0_464, %c0_465] : memref<32x8x128xf32, #tpu.memory_space<vmem>>, vector<1x8x128xf32>
    %1160 = vector.shape_cast %1159 : vector<1x8x128xf32> to vector<8x128xf32>
    %1161 = vector.shape_cast %1156 : vector<8x128xf32> to vector<1x8x128xf32>
    tpu.vector_store %arg5[%1158, %c0_464, %c0_465], %1161 {strides = array<i32>} : memref<32x8x128xf32, #tpu.memory_space<vmem>>, vector<1x8x128xf32>,
    %c29_i32 = arith.constant 29 : i32
    %c0_466 = arith.constant 0 : index
    %c0_467 = arith.constant 0 : index
    %1162 = vector.load %arg6[%c0_466, %c0_467] : memref<8x128xf32, #tpu.memory_space<vmem>>, vector<8x128xf32>
    %1163 = arith.index_cast %c29_i32 : i32 to index
    %c0_468 = arith.constant 0 : index
    %c0_469 = arith.constant 0 : index
    %1164 = vector.load %arg1[%1163, %c0_468, %c0_469] : memref<32x8x384xf32, #tpu.memory_space<vmem>>, vector<1x8x384xf32>
    %1165 = vector.shape_cast %1164 : vector<1x8x384xf32> to vector<8x384xf32>
    %c0_470 = arith.constant 0 : index
    %c0_471 = arith.constant 0 : index
    %1166 = vector.load %arg3[%c0_470, %c0_471] : memref<128x384xf32, #tpu.memory_space<vmem>>, vector<128x384xf32>
    %cst_472 = arith.constant dense<0.000000e+00> : vector<8x384xf32>
    %1167 = tpu.matmul %1162, %1166, %cst_472 {dimension_numbers = #tpu.dot_dimension_numbers<[1], [0], [0], [1], [0, 0, 1, 1], [], []>} : vector<8x128xf32>, vector<128x384xf32>, vector<8x384xf32> -> vector<8x384xf32>
    %1168 = vector.extract_strided_slice %1165 {offsets = [0, 0], sizes = [8, 128], strides = [1, 1]} : vector<8x384xf32> to vector<8x128xf32>
    %1169 = vector.extract_strided_slice %1167 {offsets = [0, 0], sizes = [8, 128], strides = [1, 1]} : vector<8x384xf32> to vector<8x128xf32>
    %1170 = arith.addf %1168, %1169 : vector<8x128xf32>
    %1171 = arith.negf %1170 : vector<8x128xf32>
    %1172 = math.exp %1171 : vector<8x128xf32>
    %cst_473 = arith.constant 1.000000e+00 : f32
    %1173 = vector.broadcast %cst_473 : f32 to vector<8x128xf32>
    %1174 = arith.addf %1173, %1172 : vector<8x128xf32>
    %1175 = arith.divf %1173, %1174 : vector<8x128xf32>
    %1176 = vector.extract_strided_slice %1165 {offsets = [0, 128], sizes = [8, 128], strides = [1, 1]} : vector<8x384xf32> to vector<8x128xf32>
    %1177 = vector.extract_strided_slice %1167 {offsets = [0, 128], sizes = [8, 128], strides = [1, 1]} : vector<8x384xf32> to vector<8x128xf32>
    %1178 = arith.addf %1176, %1177 : vector<8x128xf32>
    %1179 = arith.negf %1178 : vector<8x128xf32>
    %1180 = math.exp %1179 : vector<8x128xf32>
    %cst_474 = arith.constant 1.000000e+00 : f32
    %1181 = vector.broadcast %cst_474 : f32 to vector<8x128xf32>
    %1182 = arith.addf %1181, %1180 : vector<8x128xf32>
    %1183 = arith.divf %1181, %1182 : vector<8x128xf32>
    %1184 = vector.extract_strided_slice %1165 {offsets = [0, 256], sizes = [8, 128], strides = [1, 1]} : vector<8x384xf32> to vector<8x128xf32>
    %1185 = vector.extract_strided_slice %1167 {offsets = [0, 256], sizes = [8, 128], strides = [1, 1]} : vector<8x384xf32> to vector<8x128xf32>
    %c0_475 = arith.constant 0 : index
    %c0_476 = arith.constant 0 : index
    %1186 = vector.load %arg4[%c0_475, %c0_476] : memref<1x128xf32, #tpu.memory_space<vmem>>, vector<1x128xf32>
    %1187 = vector.broadcast %1186 : vector<1x128xf32> to vector<8x128xf32>
    %1188 = arith.addf %1185, %1187 : vector<8x128xf32>
    %1189 = arith.mulf %1175, %1188 : vector<8x128xf32>
    %1190 = arith.addf %1184, %1189 : vector<8x128xf32>
    %1191 = math.tanh %1190 : vector<8x128xf32>
    %cst_477 = arith.constant 1.000000e+00 : f32
    %1192 = vector.broadcast %cst_477 : f32 to vector<8x128xf32>
    %1193 = arith.subf %1192, %1183 : vector<8x128xf32>
    %1194 = arith.mulf %1193, %1191 : vector<8x128xf32>
    %1195 = arith.mulf %1183, %1162 : vector<8x128xf32>
    %1196 = arith.addf %1194, %1195 : vector<8x128xf32>
    %c0_478 = arith.constant 0 : index
    %c0_479 = arith.constant 0 : index
    %1197 = vector.load %arg6[%c0_478, %c0_479] : memref<8x128xf32, #tpu.memory_space<vmem>>, vector<8x128xf32>
    tpu.vector_store %arg6[%c0_478, %c0_479], %1196 {strides = array<i32>} : memref<8x128xf32, #tpu.memory_space<vmem>>, vector<8x128xf32>,
    %1198 = arith.index_cast %c29_i32 : i32 to index
    %c0_480 = arith.constant 0 : index
    %c0_481 = arith.constant 0 : index
    %1199 = vector.load %arg5[%1198, %c0_480, %c0_481] : memref<32x8x128xf32, #tpu.memory_space<vmem>>, vector<1x8x128xf32>
    %1200 = vector.shape_cast %1199 : vector<1x8x128xf32> to vector<8x128xf32>
    %1201 = vector.shape_cast %1196 : vector<8x128xf32> to vector<1x8x128xf32>
    tpu.vector_store %arg5[%1198, %c0_480, %c0_481], %1201 {strides = array<i32>} : memref<32x8x128xf32, #tpu.memory_space<vmem>>, vector<1x8x128xf32>,
    %c30_i32 = arith.constant 30 : i32
    %c0_482 = arith.constant 0 : index
    %c0_483 = arith.constant 0 : index
    %1202 = vector.load %arg6[%c0_482, %c0_483] : memref<8x128xf32, #tpu.memory_space<vmem>>, vector<8x128xf32>
    %1203 = arith.index_cast %c30_i32 : i32 to index
    %c0_484 = arith.constant 0 : index
    %c0_485 = arith.constant 0 : index
    %1204 = vector.load %arg1[%1203, %c0_484, %c0_485] : memref<32x8x384xf32, #tpu.memory_space<vmem>>, vector<1x8x384xf32>
    %1205 = vector.shape_cast %1204 : vector<1x8x384xf32> to vector<8x384xf32>
    %c0_486 = arith.constant 0 : index
    %c0_487 = arith.constant 0 : index
    %1206 = vector.load %arg3[%c0_486, %c0_487] : memref<128x384xf32, #tpu.memory_space<vmem>>, vector<128x384xf32>
    %cst_488 = arith.constant dense<0.000000e+00> : vector<8x384xf32>
    %1207 = tpu.matmul %1202, %1206, %cst_488 {dimension_numbers = #tpu.dot_dimension_numbers<[1], [0], [0], [1], [0, 0, 1, 1], [], []>} : vector<8x128xf32>, vector<128x384xf32>, vector<8x384xf32> -> vector<8x384xf32>
    %1208 = vector.extract_strided_slice %1205 {offsets = [0, 0], sizes = [8, 128], strides = [1, 1]} : vector<8x384xf32> to vector<8x128xf32>
    %1209 = vector.extract_strided_slice %1207 {offsets = [0, 0], sizes = [8, 128], strides = [1, 1]} : vector<8x384xf32> to vector<8x128xf32>
    %1210 = arith.addf %1208, %1209 : vector<8x128xf32>
    %1211 = arith.negf %1210 : vector<8x128xf32>
    %1212 = math.exp %1211 : vector<8x128xf32>
    %cst_489 = arith.constant 1.000000e+00 : f32
    %1213 = vector.broadcast %cst_489 : f32 to vector<8x128xf32>
    %1214 = arith.addf %1213, %1212 : vector<8x128xf32>
    %1215 = arith.divf %1213, %1214 : vector<8x128xf32>
    %1216 = vector.extract_strided_slice %1205 {offsets = [0, 128], sizes = [8, 128], strides = [1, 1]} : vector<8x384xf32> to vector<8x128xf32>
    %1217 = vector.extract_strided_slice %1207 {offsets = [0, 128], sizes = [8, 128], strides = [1, 1]} : vector<8x384xf32> to vector<8x128xf32>
    %1218 = arith.addf %1216, %1217 : vector<8x128xf32>
    %1219 = arith.negf %1218 : vector<8x128xf32>
    %1220 = math.exp %1219 : vector<8x128xf32>
    %cst_490 = arith.constant 1.000000e+00 : f32
    %1221 = vector.broadcast %cst_490 : f32 to vector<8x128xf32>
    %1222 = arith.addf %1221, %1220 : vector<8x128xf32>
    %1223 = arith.divf %1221, %1222 : vector<8x128xf32>
    %1224 = vector.extract_strided_slice %1205 {offsets = [0, 256], sizes = [8, 128], strides = [1, 1]} : vector<8x384xf32> to vector<8x128xf32>
    %1225 = vector.extract_strided_slice %1207 {offsets = [0, 256], sizes = [8, 128], strides = [1, 1]} : vector<8x384xf32> to vector<8x128xf32>
    %c0_491 = arith.constant 0 : index
    %c0_492 = arith.constant 0 : index
    %1226 = vector.load %arg4[%c0_491, %c0_492] : memref<1x128xf32, #tpu.memory_space<vmem>>, vector<1x128xf32>
    %1227 = vector.broadcast %1226 : vector<1x128xf32> to vector<8x128xf32>
    %1228 = arith.addf %1225, %1227 : vector<8x128xf32>
    %1229 = arith.mulf %1215, %1228 : vector<8x128xf32>
    %1230 = arith.addf %1224, %1229 : vector<8x128xf32>
    %1231 = math.tanh %1230 : vector<8x128xf32>
    %cst_493 = arith.constant 1.000000e+00 : f32
    %1232 = vector.broadcast %cst_493 : f32 to vector<8x128xf32>
    %1233 = arith.subf %1232, %1223 : vector<8x128xf32>
    %1234 = arith.mulf %1233, %1231 : vector<8x128xf32>
    %1235 = arith.mulf %1223, %1202 : vector<8x128xf32>
    %1236 = arith.addf %1234, %1235 : vector<8x128xf32>
    %c0_494 = arith.constant 0 : index
    %c0_495 = arith.constant 0 : index
    %1237 = vector.load %arg6[%c0_494, %c0_495] : memref<8x128xf32, #tpu.memory_space<vmem>>, vector<8x128xf32>
    tpu.vector_store %arg6[%c0_494, %c0_495], %1236 {strides = array<i32>} : memref<8x128xf32, #tpu.memory_space<vmem>>, vector<8x128xf32>,
    %1238 = arith.index_cast %c30_i32 : i32 to index
    %c0_496 = arith.constant 0 : index
    %c0_497 = arith.constant 0 : index
    %1239 = vector.load %arg5[%1238, %c0_496, %c0_497] : memref<32x8x128xf32, #tpu.memory_space<vmem>>, vector<1x8x128xf32>
    %1240 = vector.shape_cast %1239 : vector<1x8x128xf32> to vector<8x128xf32>
    %1241 = vector.shape_cast %1236 : vector<8x128xf32> to vector<1x8x128xf32>
    tpu.vector_store %arg5[%1238, %c0_496, %c0_497], %1241 {strides = array<i32>} : memref<32x8x128xf32, #tpu.memory_space<vmem>>, vector<1x8x128xf32>,
    %c31_i32 = arith.constant 31 : i32
    %c0_498 = arith.constant 0 : index
    %c0_499 = arith.constant 0 : index
    %1242 = vector.load %arg6[%c0_498, %c0_499] : memref<8x128xf32, #tpu.memory_space<vmem>>, vector<8x128xf32>
    %1243 = arith.index_cast %c31_i32 : i32 to index
    %c0_500 = arith.constant 0 : index
    %c0_501 = arith.constant 0 : index
    %1244 = vector.load %arg1[%1243, %c0_500, %c0_501] : memref<32x8x384xf32, #tpu.memory_space<vmem>>, vector<1x8x384xf32>
    %1245 = vector.shape_cast %1244 : vector<1x8x384xf32> to vector<8x384xf32>
    %c0_502 = arith.constant 0 : index
    %c0_503 = arith.constant 0 : index
    %1246 = vector.load %arg3[%c0_502, %c0_503] : memref<128x384xf32, #tpu.memory_space<vmem>>, vector<128x384xf32>
    %cst_504 = arith.constant dense<0.000000e+00> : vector<8x384xf32>
    %1247 = tpu.matmul %1242, %1246, %cst_504 {dimension_numbers = #tpu.dot_dimension_numbers<[1], [0], [0], [1], [0, 0, 1, 1], [], []>} : vector<8x128xf32>, vector<128x384xf32>, vector<8x384xf32> -> vector<8x384xf32>
    %1248 = vector.extract_strided_slice %1245 {offsets = [0, 0], sizes = [8, 128], strides = [1, 1]} : vector<8x384xf32> to vector<8x128xf32>
    %1249 = vector.extract_strided_slice %1247 {offsets = [0, 0], sizes = [8, 128], strides = [1, 1]} : vector<8x384xf32> to vector<8x128xf32>
    %1250 = arith.addf %1248, %1249 : vector<8x128xf32>
    %1251 = arith.negf %1250 : vector<8x128xf32>
    %1252 = math.exp %1251 : vector<8x128xf32>
    %cst_505 = arith.constant 1.000000e+00 : f32
    %1253 = vector.broadcast %cst_505 : f32 to vector<8x128xf32>
    %1254 = arith.addf %1253, %1252 : vector<8x128xf32>
    %1255 = arith.divf %1253, %1254 : vector<8x128xf32>
    %1256 = vector.extract_strided_slice %1245 {offsets = [0, 128], sizes = [8, 128], strides = [1, 1]} : vector<8x384xf32> to vector<8x128xf32>
    %1257 = vector.extract_strided_slice %1247 {offsets = [0, 128], sizes = [8, 128], strides = [1, 1]} : vector<8x384xf32> to vector<8x128xf32>
    %1258 = arith.addf %1256, %1257 : vector<8x128xf32>
    %1259 = arith.negf %1258 : vector<8x128xf32>
    %1260 = math.exp %1259 : vector<8x128xf32>
    %cst_506 = arith.constant 1.000000e+00 : f32
    %1261 = vector.broadcast %cst_506 : f32 to vector<8x128xf32>
    %1262 = arith.addf %1261, %1260 : vector<8x128xf32>
    %1263 = arith.divf %1261, %1262 : vector<8x128xf32>
    %1264 = vector.extract_strided_slice %1245 {offsets = [0, 256], sizes = [8, 128], strides = [1, 1]} : vector<8x384xf32> to vector<8x128xf32>
    %1265 = vector.extract_strided_slice %1247 {offsets = [0, 256], sizes = [8, 128], strides = [1, 1]} : vector<8x384xf32> to vector<8x128xf32>
    %c0_507 = arith.constant 0 : index
    %c0_508 = arith.constant 0 : index
    %1266 = vector.load %arg4[%c0_507, %c0_508] : memref<1x128xf32, #tpu.memory_space<vmem>>, vector<1x128xf32>
    %1267 = vector.broadcast %1266 : vector<1x128xf32> to vector<8x128xf32>
    %1268 = arith.addf %1265, %1267 : vector<8x128xf32>
    %1269 = arith.mulf %1255, %1268 : vector<8x128xf32>
    %1270 = arith.addf %1264, %1269 : vector<8x128xf32>
    %1271 = math.tanh %1270 : vector<8x128xf32>
    %cst_509 = arith.constant 1.000000e+00 : f32
    %1272 = vector.broadcast %cst_509 : f32 to vector<8x128xf32>
    %1273 = arith.subf %1272, %1263 : vector<8x128xf32>
    %1274 = arith.mulf %1273, %1271 : vector<8x128xf32>
    %1275 = arith.mulf %1263, %1242 : vector<8x128xf32>
    %1276 = arith.addf %1274, %1275 : vector<8x128xf32>
    %c0_510 = arith.constant 0 : index
    %c0_511 = arith.constant 0 : index
    %1277 = vector.load %arg6[%c0_510, %c0_511] : memref<8x128xf32, #tpu.memory_space<vmem>>, vector<8x128xf32>
    tpu.vector_store %arg6[%c0_510, %c0_511], %1276 {strides = array<i32>} : memref<8x128xf32, #tpu.memory_space<vmem>>, vector<8x128xf32>,
    %1278 = arith.index_cast %c31_i32 : i32 to index
    %c0_512 = arith.constant 0 : index
    %c0_513 = arith.constant 0 : index
    %1279 = vector.load %arg5[%1278, %c0_512, %c0_513] : memref<32x8x128xf32, #tpu.memory_space<vmem>>, vector<1x8x128xf32>
    %1280 = vector.shape_cast %1279 : vector<1x8x128xf32> to vector<8x128xf32>
    %1281 = vector.shape_cast %1276 : vector<8x128xf32> to vector<1x8x128xf32>
    tpu.vector_store %arg5[%1278, %c0_512, %c0_513], %1281 {strides = array<i32>} : memref<32x8x128xf32, #tpu.memory_space<vmem>>, vector<1x8x128xf32>,
    %c32_i32 = arith.constant 32 : i32
    return
  }
  func.func @transform_0(%arg0: i32) -> (i32, i32, i32) {
    %c0_i32 = arith.constant 0 : i32
    %c0_i32_0 = arith.constant 0 : i32
    %c0_i32_1 = arith.constant 0 : i32
    return %c0_i32, %arg0, %c0_i32_0 : i32, i32, i32
  }
  func.func @transform_1(%arg0: i32) -> (i32, i32) {
    %c0_i32 = arith.constant 0 : i32
    %c0_i32_0 = arith.constant 0 : i32
    return %arg0, %c0_i32 : i32, i32
  }
  func.func @transform_2(%arg0: i32) -> (i32, i32) {
    %c0_i32 = arith.constant 0 : i32
    %c0_i32_0 = arith.constant 0 : i32
    %c0_i32_1 = arith.constant 0 : i32
    return %c0_i32, %c0_i32_0 : i32, i32
  }
  func.func @transform_3(%arg0: i32) -> (i32, i32) {
    %c0_i32 = arith.constant 0 : i32
    %c0_i32_0 = arith.constant 0 : i32
    %c0_i32_1 = arith.constant 0 : i32
    return %c0_i32, %c0_i32_0 : i32, i32
  }
  func.func @transform_4(%arg0: i32) -> (i32, i32, i32) {
    %c0_i32 = arith.constant 0 : i32
    %c0_i32_0 = arith.constant 0 : i32
    %c0_i32_1 = arith.constant 0 : i32
    return %c0_i32, %arg0, %c0_i32_0 : i32, i32, i32
  }
}

</mosaic_0001>

<bundles_post_ra>
// kernel: decoder_rnn_forward.3
= control target key start
LH: loop header
LB: loop body
LE: loop exit
PB: predicated region body
PF: predicated region fallthrough
CT: control target
= control target key end

     0   :  { %s3650_s0 = inlined_call_operand.vmem [shape: s32[8], index: 0, kind: input, shape index: {}]   ;;  %s3651_s1 = inlined_call_operand.vmem [shape: f32[8,32,128], index: 1, kind: input, shape index: {}]   ;;  %s3652_s2 = inlined_call_operand.vmem [shape: f32[8,16,128], index: 2, kind: input, shape index: {}]   ;;  %s3653_s3 = inlined_call_operand.vmem [shape: f32[128,128], index: 3, kind: input, shape index: {}]   ;;  %s3654_s4 = inlined_call_operand.vmem [shape: f32[128,128], index: 4, kind: input, shape index: {}]   ;;  %s3655_s5 = inlined_call_operand.vmem [shape: f32[1,128], index: 5, kind: input, shape index: {}]   ;;  %s3656_s6 = inlined_call_operand.vmem [shape: f32[128,256], index: 6, kind: input, shape index: {}]   ;;  %s3657_s7 = inlined_call_operand.vmem [shape: f32[1,256], index: 7, kind: input, shape index: {}]   ;;  %s3658_s8 = inlined_call_operand.vmem [shape: f32[8,32,256], index: 8, kind: output, shape index: {}]  }
   0x1   :  { %3664 = sst [smem:[#allocation15_spill]] %s3656_s6  ;;  %s13_s29 = sshll.u32 %s3650_s0, 4  ;;  %s14_s29 = int_to_ptr.vmem [resolvable:$true] %s13_s29 }
   0x2   :  { %s2915_s30 = scalar_lea.vmem %s14_s29, 16  ;;  %p2920_p1 = scmp.lt.s32.totalorder %s14_s29, %s14_s29 }
   0x3   :  { %p2916_p0 = scmp.ne.s32.totalorder %s14_s29, %s2915_s30  ;;  %p2921_p2 = scmp.lt.s32.totalorder %s2915_s30, %s2915_s30 }
   0x5   :  { %p2922_p3 = por %p2921_p2, %p2920_p1 }
   0x7   :  { %p2923_p4 = pnand %p2922_p3, %p2916_p0 }
   0x9   :  { %2926 = shalt.err (!%p2923_p4)  }
   0xa   :  { %s3001_s9 = smov [#allocation5]  }
   0xb   :  { %16 = dma.vmem_to_smem %s14_s29, 16, %s3001_s9, [#allocation4] }
   0xc   :  { %2963 = dma.done.wait [#allocation4], 16 }
   0xd   :  { %2964 = vsyncadd [#allocation4], 4294967280 }
   0xe   :  { %18 = sfence }
   0xf   :  { %s3050_s10 = smov 0   ;;  %s3052_s11 = smov 0  }
  0x10   :  { %s3054_s12 = smov 0   ;;  %s3056_s0 = smov 0  }
  0x11   :  { %s3058_s13 = smov 0   ;;  %s3060_s14 = smov 0  }
  0x12   :  { %s3062_s15 = smov 0   ;;  %s3064_s16 = smov 0  }
  0x13   :  { %s3066_s17 = smov 0  }
  0x14 LB: > { %3665 = sst [smem:[#allocation9_spill]] %s2979_s0  ;;  %s2260_s18 = sadd.s32 4294967295, %s2999_s17   ;;  %s2999_s17 = sphi %s3066_s17, %s24_s17   ;;  %s2995_s16 = sphi %s3064_s16, %s3684_s16   ;;  %s2991_s15 = sphi %s3062_s15, %s3683_s15   ;;  %s2987_s14 = sphi %s3060_s14, %s3682_s14   ;;  %s2983_s13 = sphi %s3058_s13, %s3681_s13   ;;  %s2979_s0 = sphi %s3056_s0, %s3680_s0   ;;  %s2975_s12 = sphi %s3054_s12, %s3679_s12   ;;  %s2971_s11 = sphi %s3052_s11, %s3686_s11   ;;  %s2967_s10 = sphi %s3050_s10, %s3685_s10  }
  0x15   : > { %3666 = sst [smem:[#allocation10_spill]] %s2991_s15  ;;  %s33_s19 = sadd.s32 1, %s2991_s15 }
  0x16   : > { %3667 = sst [smem:[#allocation11_spill]] %s2995_s16  ;;  %p34_p5 = scmp.ge.s32.totalorder %s33_s19, 2 }
  0x17   : > { %s36_s20 = sadd.s32 1, %s2995_s16  ;;  %s158_s21 = sadd.s32 1, %s2979_s0 }
  0x18   : > { %p165_p6 = scmp.ne.s32.totalorder %s2979_s0, %s2975_s12  ;;  %s3688_s19 = smov (%p34_p5, %s33_s19), 0 }
  0x19   : > { %3668 = sst [smem:[#allocation12_spill]] %s3688_s19  ;;  %s3690_s20 = smov (!%p34_p5, %s36_s20), %s2995_s16 }
  0x1a   : > { %s155_s22 = ssub.s32 %s2991_s15, %s3688_s19  ;;  %p166_p7 = scmp.eq.s32.totalorder %s2999_s17, 0 }
  0x1b   : > { %p38_p8 = scmp.ge.s32.totalorder %s3690_s20, 2  ;;  %p156_p9 = scmp.eq.s32.totalorder %s155_s22, 0 }
  0x1c   : > { %p167_p10 = por %p166_p7, %p165_p6  ;;  %s212_s23 = sadd.s32 1, %s2971_s11 }
  0x1d   : > { %s3692_s20 = smov (%p38_p8, %s3690_s20), 0  ;;  %p222_p11 = scmp.ne.s32.totalorder %s2971_s11, %s2967_s10 }
  0x1e   : > { %3669 = sst [smem:[#allocation13_spill]] %s3692_s20  ;;  %s207_s25 = ssub.s32 %s2995_s16, %s3692_s20 }
  0x1f   : > { %s3111_s24 = scalar_select %p156_p9, %s2979_s0, %s158_s21  }
  0x20   : > { %s209_s26 = sor.u32 %s207_s25, %s155_s22  ;;  %p223_p12 = scmp.eq.s32.totalorder %s2260_s18, 3 }
  0x21   : > { %3670 = sst [smem:[#allocation14_spill]] %s3111_s24  ;;  %p210_p13 = scmp.eq.s32.totalorder %s209_s26, 0 }
  0x22   : > { %p3117_p0 = por %p223_p12, %p222_p11  ;;  %p2263_p1 = scmp.ge.s32.totalorder %s2999_s17, 4 }
  0x23   : > { %s3122_s28 = scalar_select %p210_p13, %s2971_s11, %s212_s23  }
  0x24   : > { %254 = sbr.rel (%p2263_p1) target bundleno = 59 (0x3b), region = 28 }
  0x29   : > { %277 = sbr.rel (!%p167_p10) target bundleno = 59 (0x3b), region = 40  ;;  %s279_s29 = sand.u32 (%p167_p10), 1, %s2979_s0  }
  0x2a   : > { %s2265_s30 = sshll.u32 (%p167_p10), %s2991_s15, 3  ;;  %s2264_s9 = sshll.u32 (%p167_p10), %s279_s29, 7 }
  0x2b   : > { %s3672_s6 = sld [smem:[#allocation15_spill]] (%p167_p10)  ;;  %s281_s22 = scalar_lea.vmem (%p167_p10), [#allocation6], %s2264_s9 }
  0x31   : > { %s3130_s18 = scalar_lea.vmem %s3672_s6, %s2265_s30 }
  0x32   : > { %v342_v0 = vld [vmem:[%s3130_s18] sm:$0xff]  ;;  %v344_v1 = vld [vmem:[%s3130_s18 + $0x10] sm:$0xff] }
  0x33   : > { %v346_v2 = vld [vmem:[%s3130_s18 + $0x20] sm:$0xff]  ;;  %343 = vst [vmem:[%s281_s22] sm:$0xff] %v342_v0  ;;  %345 = vst [vmem:[%s281_s22 + $0x8] sm:$0xff] %v344_v1  ;;  %v348_v3 = vld [vmem:[%s3130_s18 + $0x30] sm:$0xff] }
  0x34   : > { %347 = vst [vmem:[%s281_s22 + $0x10] sm:$0xff] %v346_v2  ;;  %v350_v4 = vld [vmem:[%s3130_s18 + $0x40] sm:$0xff]  ;;  %v352_v5 = vld [vmem:[%s3130_s18 + $0x50] sm:$0xff]  ;;  %349 = vst [vmem:[%s281_s22 + $0x18] sm:$0xff] %v348_v3 }
  0x35   : > { %351 = vst [vmem:[%s281_s22 + $0x20] sm:$0xff] %v350_v4  ;;  %353 = vst [vmem:[%s281_s22 + $0x28] sm:$0xff] %v352_v5  ;;  %v354_v6 = vld [vmem:[%s3130_s18 + $0x60] sm:$0xff]  ;;  %v356_v7 = vld [vmem:[%s3130_s18 + $0x70] sm:$0xff] }
  0x36   : > { %v358_v8 = vld [vmem:[%s3130_s18 + $0x80] sm:$0xff]  ;;  %355 = vst [vmem:[%s281_s22 + $0x30] sm:$0xff] %v354_v6  ;;  %357 = vst [vmem:[%s281_s22 + $0x38] sm:$0xff] %v356_v7  ;;  %v360_v9 = vld [vmem:[%s3130_s18 + $0x90] sm:$0xff] }
  0x37   : > { %359 = vst [vmem:[%s281_s22 + $0x40] sm:$0xff] %v358_v8  ;;  %v362_v10 = vld [vmem:[%s3130_s18 + $0xa0] sm:$0xff]  ;;  %v364_v11 = vld [vmem:[%s3130_s18 + $0xb0] sm:$0xff]  ;;  %361 = vst [vmem:[%s281_s22 + $0x48] sm:$0xff] %v360_v9 }
  0x38   : > { %363 = vst [vmem:[%s281_s22 + $0x50] sm:$0xff] %v362_v10  ;;  %365 = vst [vmem:[%s281_s22 + $0x58] sm:$0xff] %v364_v11  ;;  %v366_v12 = vld [vmem:[%s3130_s18 + $0xc0] sm:$0xff]  ;;  %v368_v13 = vld [vmem:[%s3130_s18 + $0xd0] sm:$0xff] }
  0x39   : > { %v370_v14 = vld [vmem:[%s3130_s18 + $0xe0] sm:$0xff]  ;;  %367 = vst [vmem:[%s281_s22 + $0x60] sm:$0xff] %v366_v12  ;;  %369 = vst [vmem:[%s281_s22 + $0x68] sm:$0xff] %v368_v13  ;;  %v372_v15 = vld [vmem:[%s3130_s18 + $0xf0] sm:$0xff] }
  0x3a   : > { %371 = vst [vmem:[%s281_s22 + $0x70] sm:$0xff] %v370_v14  ;;  %373 = vst [vmem:[%s281_s22 + $0x78] sm:$0xff] %v372_v15 }
  0x3b PF: > { %p2266_p2 = scmp.ge.s32.totalorder %s2999_s17, 1  ;;  %p384_p3 = scmp.lt.s32.totalorder %s2999_s17, 5 }
  0x3d   : > { %p385_p4 = pnand %p2266_p2, %p384_p3 }
  0x3e   : > { %s391_s20 = sand.u32 (!%p385_p4), 1, %s2975_s12   ;;  %s433_s23 = sand.u32 (!%p385_p4), 1, %s2967_s10  }
  0x3f   : > { %388 = sbr.rel (%p385_p4) target bundleno = 1796 (0x704), region = 82  ;;  %s2267_s25 = sshll.u32 (!%p385_p4), %s391_s20, 7 }
  0x40   : > { %s2268_s26 = sshll.u32 (!%p385_p4), %s433_s23, 7  ;;  %s3153_s29 = sshll.u32 (!%p385_p4), %s2987_s14, 2 }
  0x41   : > { %p450_p5 = scmp.lt.s32.totalorder (!%p385_p4), %s2983_s13, 1  ;;  %p437_p6 = scmp.lt.s32.totalorder (!%p385_p4), %s3153_s29, 7 }
  0x42   : > { %s3175_s24 = scalar_lea.vmem (!%p385_p4), [#allocation6], %s2267_s25  ;;  %s3177_s0 = scalar_lea.vmem (!%p385_p4), [#allocation7], %s2268_s26 }
  0x43   : > { %p2275_p7 = scmp.ne.s32.totalorder (!%p385_p4), %s2983_s13, 0 }
  0x44   : > { %s3158_s30 = scalar_select %p450_p5, %s2983_s13, 1 }
  0x45   : > { %s438_s9 = scalar_select %p437_p6, %s3153_s29, 7 }
  0x46   : > { %s452_s22 = scalar_lea.vmem %s3657_s7, %s3158_s30  ;;  %457 = sbr.rel (%p2275_p7) target bundleno = 1543 (0x607), region = 90 }
  0x47   : > { %s2319_s6 = sshll.u32 %s438_s9, 5  ;;  %s2320_s19 = sshll.u32 %s438_s9, 4 }
  0x48   : > { %s3168_s20 = scalar_lea.vmem %s3651_s1, %s2319_s6  ;;  %s3173_s15 = scalar_lea.vmem %s3652_s2, %s2320_s19 }
  0x49   : > { %s550_s6 = sld [smem:[#allocation5 + %s3153_s29]] (!%p2275_p7)  ;;  %s1044_s19 = sadd.s32 (!%p2275_p7), 2, %s3153_s29 }
  0x4a   : > { %s1045_s25 = sld [smem:[#allocation5 + %s1044_s19]] (!%p2275_p7)  ;;  %s1290_s26 = sadd.s32 (!%p2275_p7), 3, %s3153_s29 }
  0x4b   : > { %v463_v16 = vld [vmem:[%s3173_s15 + $0x8] sm:$0xff]  ;;  %v462_v17 = vld [vmem:[%s3173_s15] sm:$0xff]  ;;  %v3190_v20 = vld [vmem:[%s3168_s20 + $0x10] sm:$0xff]  ;;  %v551_v22 = vlaneseq  ;;  %vm559_vm1 = vcmask 130048   ;;  %s1291_s9 = sld [smem:[#allocation5 + %s1290_s26]] }
  0x4c   : > { %v3183_v18 = vld [vmem:[%s3168_s20] sm:$0xff]  ;;  %2466 = vmatprep.subr.mxu0 %v463_v16  ;;  %2476 = vmatprep.subr.mxu1 %v463_v16  ;;  %v3187_v19 = vld [vmem:[%s3168_s20 + $0x8] sm:$0xff]  ;;  %v3195_v21 = vld [vmem:[%s3168_s20 + $0x18] sm:$0xff] }
  0x4d   : > { %2470 = vmatprep.mubr.f32.mxu0 %v3183_v18  ;;  %2467 = vmatpush3.xpose.msra.mxu0 %v463_v16  ;;  %v3199_v23 = vand.u32 127, %v551_v22  ;;  %v2286_v57 = vld [vmem:[%s3173_s15 + $0x18] sm:$0xff]  ;;  %v2285_v58 = vld [vmem:[%s3173_s15 + $0x10] sm:$0xff]  ;;  %v3213_v59 = vld [vmem:[%s3173_s15 + $0x28] sm:$0xff] }
  0x4e   : > { %2468 = vmatprep.subr.mxu0 %v462_v17  ;;  %2477 = vmatpush3.msra.mxu1 %v463_v16  ;;  %v3220_v8 = vld [vmem:[%s3168_s20 + $0x20] sm:$0xff]  ;;  %v3225_v9 = vld [vmem:[%s3168_s20 + $0x28] sm:$0xff]  ;;  %v3229_v10 = vld [vmem:[%s3168_s20 + $0x30] sm:$0xff] }
  0x4f   : > { %2478 = vmatprep.subr.mxu1 %v462_v17  ;;  %v553_v24 = vstv %s550_s6  ;;  %v3232_v11 = vld [vmem:[%s3173_s15 + $0x20] sm:$0xff]  ;;  %v3238_v12 = vld [vmem:[%s3168_s20 + $0x38] sm:$0xff]  ;;  %v3251_v15 = vld [vmem:[%s3168_s20 + $0x48] sm:$0xff] }
  0x50   : > { %2479 = vmatpush3.msra.mxu1 %v462_v17  ;;  %vm554_vm0 = vcmp.lt.s32.totalorder %v3199_v23, %v553_v24  ;;  %v3242_v13 = vld [vmem:[%s3168_s20 + $0x40] sm:$0xff]  ;;  %v3245_v14 = vld [vmem:[%s3173_s15 + $0x38] sm:$0xff]  ;;  %v3255_v16 = vld [vmem:[%s3168_s20 + $0x50] sm:$0xff] }
  0x51   : > { %2469 = vmatpush3.xpose.msra.mxu0 %v462_v17  ;;  %2486 = vmatprep.subr.mxu1 %v2286_v57  ;;  %v3258_v17 = vld [vmem:[%s3173_s15 + $0x30] sm:$0xff]  ;;  %v3264_v22 = vld [vmem:[%s3168_s20 + $0x58] sm:$0xff]  ;;  %v3268_v24 = vld [vmem:[%s3168_s20 + $0x60] sm:$0xff]  ;;  %s798_s15 = sadd.s32 1, %s3153_s29 }
  0x52   : > { %2496 = vmatprep.subr.mxu0 %v2286_v57  ;;  %s799_s16 = sld [smem:[#allocation5 + %s798_s15]] }
  0x54   : > { %2471 = vmatmul.mubr.f32.vlgmr.msra.gmra.mxu0 %v3187_v19 }
  0x55   : > { %2473 = vmatprep.mubr.f32.mxu0 %v3190_v20  ;;  %2497 = vmatpush3.msra.mxu0 %v2286_v57 }
  0x56   : > { %2498 = vmatprep.subr.mxu0 %v2285_v58 }
  0x57   : > { %2499 = vmatpush3.msra.mxu0 %v2285_v58 }
  0x58   : > { %2474 = vmatmul.mubr.f32.gmra.mxu0 %v3195_v21  ;;  %2516 = vmatprep.subr.mxu0 %v3213_v59 }
 0x114   : > { %v2472_v25 = vpop.f32.mrf.mxu0 }
 0x115   : > { %v556_v30 = vsel %vm554_vm0, %v2472_v25, -inf  ;;  %v3274_v25 = vld [vmem:[%s3168_s20 + $0x68] sm:$0xff] }
 0x116   : > { %v530_v26 = vpop.f32.mrf.mxu0  ;;  %v563_v33 = vsel %vm559_vm1, %v556_v30, -inf }
 0x117   : > { %v555_v27 = vsel %vm554_vm0, %v530_v26, -inf  ;;  %v3277_v26 = vld [vmem:[%s3168_s20 + $0x70] sm:$0xff] }
 0x118   : > { %v2475_v28 = vpop.f32.mrf.mxu0  ;;  %v560_v29 = vsel %vm559_vm1, %v555_v27, -inf }
 0x119   : > { %561 = vmax.xlane.f32.xlu0 %v560_v29  ;;  %v558_v35 = vsel %vm554_vm0, %v2475_v28, -inf }
 0x11a   : > { %v540_v31 = vpop.f32.mrf.mxu0  ;;  %v569_v36 = vsel %vm559_vm1, %v558_v35, -inf }
 0x11b   : > { %v557_v32 = vsel %vm554_vm0, %v540_v31, -inf }
 0x11c   : > { %v566_v34 = vsel %vm559_vm1, %v557_v32, -inf }
 0x11d   : > { %564 = vmax.xlane.f32.xlu0 %v563_v33  ;;  %567 = vmax.xlane.f32.xlu1 %v566_v34 }
 0x121   : > { %570 = vmax.xlane.f32.xlu1 %v569_v36 }
 0x1a2   : > { %v562_v37 = vpop.xlane.xlu0 %561 }
 0x1a3   : > { %v572_v38 = vsub.f32 %v555_v27, %v562_v37  ;;  %v3282_v27 = vld [vmem:[%s3168_s20 + $0x78] sm:$0xff] }
 0x1a5   : > { %v576_v39 = vmul.f32 1.442695, %v572_v38  ;;  %v1046_v38 = vstv %s1045_s25 }
 0x1a6   : > { %v565_v40 = vpop.xlane.xlu0 %564  ;;  %v568_v41 = vpop.xlane.xlu1 %567  ;;  %vm3312_vm3 = vcmp.lt.s32.totalorder %v3199_v23, %v1046_v38 }
 0x1a7   : > { %2819 = vpow2.f32 %v576_v39  ;;  %v573_v42 = vsub.f32 %v556_v30, %v565_v40  ;;  %v574_v43 = vsub.f32 %v557_v32, %v568_v41  ;;  %v800_v30 = vstv %s799_s16 }
 0x1a8   : > { %vm3297_vm2 = vcmp.lt.s32.totalorder %v3199_v23, %v800_v30 }
 0x1a9   : > { %v578_v44 = vmul.f32 1.442695, %v573_v42  ;;  %v580_v45 = vmul.f32 1.442695, %v574_v43 }
 0x1aa   : > { %v571_v46 = vpop.xlane.xlu1 %570 }
 0x1ab   : > { %2821 = vpow2.f32 %v578_v44  ;;  %v575_v47 = vsub.f32 %v558_v35, %v571_v46 }
 0x1ac   : > { %2823 = vpow2.f32 %v580_v45 }
 0x1ad   : > { %v582_v48 = vmul.f32 1.442695, %v575_v47 }
 0x1af   : > { %2825 = vpow2.f32 %v582_v48 }
 0x1b4   : > { %v2820_v49 = vpop.eup %2819 }
 0x1b5   : > { %v584_v50 = vsel %vm559_vm1, %v2820_v49, 0.0 }
 0x1b6   : > { %585 = vadd.xlane.f32.xlu0 %v584_v50 }
 0x1b8   : > { %v2822_v51 = vpop.eup %2821 }
 0x1b9   : > { %v2824_v52 = vpop.eup %2823  ;;  %v587_v53 = vsel %vm559_vm1, %v2822_v51, 0.0 }
 0x1ba   : > { %588 = vadd.xlane.f32.xlu1 %v587_v53  ;;  %v590_v54 = vsel %vm559_vm1, %v2824_v52, 0.0 }
 0x1bb   : > { %591 = vadd.xlane.f32.xlu0 %v590_v54 }
 0x1bc   : > { %v2826_v55 = vpop.eup %2825 }
 0x1bd   : > { %v593_v56 = vsel %vm559_vm1, %v2826_v55, 0.0 }
 0x1be   : > { %594 = vadd.xlane.f32.xlu1 %v593_v56 }
 0x23f   : > { %v586_v60 = vpop.xlane.xlu0 %585 }
 0x240   : > { %2827 = vrcp.f32 %v586_v60 }
 0x243   : > { %v589_v61 = vpop.xlane.xlu1 %588 }
 0x244   : > { %v592_v62 = vpop.xlane.xlu0 %591  ;;  %2829 = vrcp.f32 %v589_v61 }
 0x245   : > { %2831 = vrcp.f32 %v592_v62 }
 0x247   : > { %v595_v63 = vpop.xlane.xlu1 %594 }
 0x248   : > { %2833 = vrcp.f32 %v595_v63 }
 0x24d   : > { %v2828_v0 = vpop.eup %2827 }
 0x24e   : > { %v600_v1 = vmul.f32 %v2828_v0, %v2820_v49 }
 0x250   : > { %2480 = vmatprep.mubr.msk.f32.mxu1 %vm559_vm1, %v600_v1 }
 0x251   : > { %v2830_v2 = vpop.eup %2829 }
 0x252   : > { %v2832_v3 = vpop.eup %2831  ;;  %v601_v4 = vmul.f32 %v2830_v2, %v2822_v51 }
 0x253   : > { %v602_v5 = vmul.f32 %v2832_v3, %v2824_v52  ;;  %v1292_v52 = vstv %s1291_s9 }
 0x254   : > { %2481 = vmatmul.mubr.msk.f32.vlgmr.msra.gmra.mxu1 %vm559_vm1, %v601_v4  ;;  %vm3329_vm4 = vcmp.lt.s32.totalorder %v3199_v23, %v1292_v52 }
 0x255   : > { %v2834_v6 = vpop.eup %2833  ;;  %2487 = vmatpush3.xpose.msra.mxu1 %v2286_v57  ;;  %2483 = vmatprep.mubr.msk.f32.mxu1 %vm559_vm1, %v602_v5 }
 0x256   : > { %2488 = vmatprep.subr.mxu1 %v2285_v58  ;;  %v603_v7 = vmul.f32 %v2834_v6, %v2826_v55 }
 0x258   : > { %2484 = vmatmul.mubr.msk.f32.gmra.mxu1 %vm559_vm1, %v603_v7 }
 0x259   : > { %2489 = vmatpush3.xpose.msra.mxu1 %v2285_v58  ;;  %2490 = vmatprep.mubr.f32.mxu1 %v3220_v8 }
 0x25a   : > { %2506 = vmatprep.subr.mxu1 %v3213_v59 }
 0x25c   : > { %2491 = vmatmul.mubr.f32.vlgmr.msra.gmra.mxu1 %v3225_v9 }
 0x25d   : > { %2507 = vmatpush3.xpose.msra.mxu1 %v3213_v59  ;;  %2493 = vmatprep.mubr.f32.mxu1 %v3229_v10 }
 0x25e   : > { %2508 = vmatprep.subr.mxu1 %v3232_v11 }
 0x260   : > { %2494 = vmatmul.mubr.f32.gmra.mxu1 %v3238_v12 }
 0x261   : > { %2509 = vmatpush3.xpose.msra.mxu1 %v3232_v11  ;;  %2510 = vmatprep.mubr.f32.mxu1 %v3242_v13 }
 0x262   : > { %2526 = vmatprep.subr.mxu1 %v3245_v14 }
 0x264   : > { %2511 = vmatmul.mubr.f32.vlgmr.msra.gmra.mxu1 %v3251_v15 }
 0x265   : > { %2527 = vmatpush3.xpose.msra.mxu1 %v3245_v14  ;;  %2513 = vmatprep.mubr.f32.mxu1 %v3255_v16 }
 0x266   : > { %2528 = vmatprep.subr.mxu1 %v3258_v17 }
 0x268   : > { %2514 = vmatmul.mubr.f32.gmra.mxu1 %v3264_v22 }
 0x269   : > { %2529 = vmatpush3.xpose.msra.mxu1 %v3258_v17  ;;  %2530 = vmatprep.mubr.f32.mxu1 %v3268_v24 }
 0x26c   : > { %2531 = vmatmul.mubr.f32.vlgmr.msra.gmra.mxu1 %v3274_v25 }
 0x26d   : > { %2533 = vmatprep.mubr.f32.mxu1 %v3277_v26 }
 0x270   : > { %2534 = vmatmul.mubr.f32.gmra.mxu1 %v3282_v27 }
 0x271   : > { %2578 = vmatprep.mubr.f32.mxu1 %v3183_v18 }
 0x314   : > { %v3287_v28 = vpop.f32.mrf.mxu1 }
 0x316   : > { %v3290_v29 = vpop.f32.mrf.mxu1 }
 0x318   : > { %v3292_v31 = vpop.f32.mrf.mxu1 }
 0x31a   : > { %v3294_v32 = vpop.f32.mrf.mxu1 }
 0x31c   : > { %v2492_v34 = vpop.f32.mrf.mxu1 }
 0x31d   : > { %v803_v18 = vsel %vm3297_vm2, %v2492_v34, -inf }
 0x31e   : > { %v779_v35 = vpop.f32.mrf.mxu1  ;;  %v809_v36 = vsel %vm559_vm1, %v803_v18, -inf }
 0x31f   : > { %v802_v37 = vsel %vm3297_vm2, %v779_v35, -inf  ;;  %810 = vmax.xlane.f32.xlu1 %v809_v36 }
 0x320   : > { %v2495_v39 = vpop.f32.mrf.mxu1  ;;  %v806_v40 = vsel %vm559_vm1, %v802_v37, -inf }
 0x321   : > { %v805_v41 = vsel %vm3297_vm2, %v2495_v39, -inf  ;;  %807 = vmax.xlane.f32.xlu0 %v806_v40 }
 0x322   : > { %v789_v42 = vpop.f32.mrf.mxu1  ;;  %v815_v43 = vsel %vm559_vm1, %v805_v41, -inf }
 0x323   : > { %v804_v45 = vsel %vm3297_vm2, %v789_v42, -inf  ;;  %816 = vmax.xlane.f32.xlu1 %v815_v43 }
 0x324   : > { %v2512_v46 = vpop.f32.mrf.mxu1  ;;  %v812_v47 = vsel %vm559_vm1, %v804_v45, -inf }
 0x325   : > { %v1049_v48 = vsel %vm3312_vm3, %v2512_v46, -inf  ;;  %813 = vmax.xlane.f32.xlu0 %v812_v47 }
 0x326   : > { %v1025_v49 = vpop.f32.mrf.mxu1  ;;  %v1055_v50 = vsel %vm559_vm1, %v1049_v48, -inf }
 0x327   : > { %v1048_v51 = vsel %vm3312_vm3, %v1025_v49, -inf  ;;  %1056 = vmax.xlane.f32.xlu1 %v1055_v50 }
 0x328   : > { %v2515_v53 = vpop.f32.mrf.mxu1  ;;  %v1052_v54 = vsel %vm559_vm1, %v1048_v51, -inf }
 0x329   : > { %v1051_v55 = vsel %vm3312_vm3, %v2515_v53, -inf  ;;  %1053 = vmax.xlane.f32.xlu0 %v1052_v54 }
 0x32a   : > { %v1035_v56 = vpop.f32.mrf.mxu1  ;;  %v1061_v57 = vsel %vm559_vm1, %v1051_v55, -inf }
 0x32b   : > { %v1050_v60 = vsel %vm3312_vm3, %v1035_v56, -inf  ;;  %1062 = vmax.xlane.f32.xlu1 %v1061_v57 }
 0x32c   : > { %v2532_v61 = vpop.f32.mrf.mxu1  ;;  %v1058_v62 = vsel %vm559_vm1, %v1050_v60, -inf }
 0x32d   : > { %v1295_v63 = vsel %vm3329_vm4, %v2532_v61, -inf  ;;  %1059 = vmax.xlane.f32.xlu0 %v1058_v62 }
 0x32e   : > { %v1271_v0 = vpop.f32.mrf.mxu1  ;;  %v1301_v1 = vsel %vm559_vm1, %v1295_v63, -inf }
 0x32f   : > { %v1294_v23 = vsel %vm3329_vm4, %v1271_v0, -inf  ;;  %1302 = vmax.xlane.f32.xlu1 %v1301_v1 }
 0x330   : > { %v2535_v2 = vpop.f32.mrf.mxu1  ;;  %v1298_v3 = vsel %vm559_vm1, %v1294_v23, -inf }
 0x331   : > { %v1297_v4 = vsel %vm3329_vm4, %v2535_v2, -inf  ;;  %1299 = vmax.xlane.f32.xlu0 %v1298_v3 }
 0x332   : > { %v1281_v5 = vpop.f32.mrf.mxu1  ;;  %v1307_v6 = vsel %vm559_vm1, %v1297_v4, -inf }
 0x333   : > { %v1296_v7 = vsel %vm3329_vm4, %v1281_v5, -inf  ;;  %1308 = vmax.xlane.f32.xlu1 %v1307_v6 }
 0x334   : > { %v1304_v30 = vsel %vm559_vm1, %v1296_v7, -inf }
 0x335   : > { %1305 = vmax.xlane.f32.xlu0 %v1304_v30 }
 0x3a8   : > { %v811_v33 = vpop.xlane.xlu1 %810 }
 0x3a9   : > { %v819_v34 = vsub.f32 %v803_v18, %v811_v33 }
 0x3aa   : > { %v808_v35 = vpop.xlane.xlu0 %807 }
 0x3ab   : > { %v824_v36 = vmul.f32 1.442695, %v819_v34  ;;  %v818_v38 = vsub.f32 %v802_v37, %v808_v35 }
 0x3ac   : > { %v817_v39 = vpop.xlane.xlu1 %816 }
 0x3ad   : > { %2835 = vpow2.f32 %v824_v36  ;;  %v822_v40 = vmul.f32 1.442695, %v818_v38  ;;  %v821_v42 = vsub.f32 %v805_v41, %v817_v39 }
 0x3ae   : > { %v814_v43 = vpop.xlane.xlu0 %813 }
 0x3af   : > { %2837 = vpow2.f32 %v822_v40  ;;  %v828_v44 = vmul.f32 1.442695, %v821_v42  ;;  %v820_v46 = vsub.f32 %v804_v45, %v814_v43 }
 0x3b0   : > { %v1057_v47 = vpop.xlane.xlu1 %1056 }
 0x3b1   : > { %2839 = vpow2.f32 %v828_v44  ;;  %v826_v49 = vmul.f32 1.442695, %v820_v46  ;;  %v1065_v50 = vsub.f32 %v1049_v48, %v1057_v47 }
 0x3b2   : > { %v1054_v52 = vpop.xlane.xlu0 %1053 }
 0x3b3   : > { %2841 = vpow2.f32 %v826_v49  ;;  %v1070_v53 = vmul.f32 1.442695, %v1065_v50  ;;  %v1064_v54 = vsub.f32 %v1048_v51, %v1054_v52 }
 0x3b4   : > { %v1063_v18 = vpop.xlane.xlu1 %1062 }
 0x3b5   : > { %2843 = vpow2.f32 %v1070_v53  ;;  %v1068_v56 = vmul.f32 1.442695, %v1064_v54  ;;  %v1067_v37 = vsub.f32 %v1051_v55, %v1063_v18 }
 0x3b6   : > { %v1060_v57 = vpop.xlane.xlu0 %1059 }
 0x3b7   : > { %2845 = vpow2.f32 %v1068_v56  ;;  %v1074_v58 = vmul.f32 1.442695, %v1067_v37  ;;  %v1066_v41 = vsub.f32 %v1050_v60, %v1060_v57  ;;  %v1506_v37 = vld [vmem:[%s3654_s4 + $0x78] sm:$0xff]  ;;  %v1505_v57 = vld [vmem:[%s3654_s4 + $0x70] sm:$0xff] }
 0x3b8   : > { %v1303_v61 = vpop.xlane.xlu1 %1302  ;;  %2546 = vmatprep.subr.mxu1 %v1506_v37 }
 0x3b9   : > { %2847 = vpow2.f32 %v1074_v58  ;;  %v1072_v62 = vmul.f32 1.442695, %v1066_v41  ;;  %v1311_v45 = vsub.f32 %v1295_v63, %v1303_v61  ;;  %2547 = vmatpush3.msra.mxu1 %v1506_v37  ;;  %v1504_v58 = vld [vmem:[%s3654_s4 + $0x68] sm:$0xff]  ;;  %v1503_v41 = vld [vmem:[%s3654_s4 + $0x60] sm:$0xff]  ;;  %v1502_v61 = vld [vmem:[%s3654_s4 + $0x58] sm:$0xff] }
 0x3ba   : > { %v3348_v0 = vpop.eup %2835  ;;  %v1300_v1 = vpop.xlane.xlu0 %1299  ;;  %2548 = vmatprep.subr.mxu1 %v1505_v57  ;;  %v1481_v37 = vld [vmem:[%s3653_s3 + $0x30] sm:$0xff] }
 0x3bb   : > { %2849 = vpow2.f32 %v1072_v62  ;;  %v1316_v48 = vmul.f32 1.442695, %v1311_v45  ;;  %v1310_v2 = vsub.f32 %v1294_v23, %v1300_v1  ;;  %v833_v51 = vsel %vm559_vm1, %v3348_v0, 0.0  ;;  %2549 = vmatpush3.msra.mxu1 %v1505_v57  ;;  %v1501_v62 = vld [vmem:[%s3654_s4 + $0x50] sm:$0xff]  ;;  %v1500_v45 = vld [vmem:[%s3654_s4 + $0x48] sm:$0xff]  ;;  %v1499_v1 = vld [vmem:[%s3654_s4 + $0x40] sm:$0xff] }
 0x3bc   : > { %v3352_v3 = vpop.eup %2837  ;;  %834 = vadd.xlane.f32.xlu1 %v833_v51  ;;  %v1309_v55 = vpop.xlane.xlu1 %1308  ;;  %2550 = vmatprep.subr.mxu1 %v1504_v58  ;;  %v1496_v51 = vld [vmem:[%s3654_s4 + $0x28] sm:$0xff] }
 0x3bd   : > { %2851 = vpow2.f32 %v1316_v48  ;;  %v1314_v5 = vmul.f32 1.442695, %v1310_v2  ;;  %v1313_v60 = vsub.f32 %v1297_v4, %v1309_v55  ;;  %v830_v6 = vsel %vm559_vm1, %v3352_v3, 0.0  ;;  %2551 = vmatpush3.msra.mxu1 %v1504_v58  ;;  %v1498_v48 = vld [vmem:[%s3654_s4 + $0x38] sm:$0xff]  ;;  %v1497_v2 = vld [vmem:[%s3654_s4 + $0x30] sm:$0xff]  ;;  %v1495_v55 = vld [vmem:[%s3654_s4 + $0x20] sm:$0xff] }
 0x3be   : > { %v3356_v63 = vpop.eup %2839  ;;  %831 = vadd.xlane.f32.xlu0 %v830_v6  ;;  %v1306_v30 = vpop.xlane.xlu0 %1305  ;;  %2552 = vmatprep.subr.mxu1 %v1503_v41  ;;  %v1492_v6 = vld [vmem:[%s3654_s4 + $0x8] sm:$0xff]  ;;  %v1479_v58 = vld [vmem:[%s3653_s3 + $0x20] sm:$0xff] }
 0x3bf   : > { %2853 = vpow2.f32 %v1314_v5  ;;  %v1320_v33 = vmul.f32 1.442695, %v1313_v60  ;;  %v1312_v23 = vsub.f32 %v1296_v7, %v1306_v30  ;;  %v839_v34 = vsel %vm559_vm1, %v3356_v63, 0.0  ;;  %2553 = vmatpush3.msra.mxu1 %v1503_v41  ;;  %v1494_v5 = vld [vmem:[%s3654_s4 + $0x18] sm:$0xff]  ;;  %v1493_v60 = vld [vmem:[%s3654_s4 + $0x10] sm:$0xff]  ;;  %v1491_v30 = vld [vmem:[%s3654_s4] sm:$0xff] }
 0x3c0   : > { %v3360_v35 = vpop.eup %2841  ;;  %840 = vadd.xlane.f32.xlu1 %v839_v34  ;;  %2554 = vmatprep.subr.mxu1 %v1502_v61  ;;  %v1480_v57 = vld [vmem:[%s3653_s3 + $0x28] sm:$0xff]  ;;  %v1478_v41 = vld [vmem:[%s3653_s3 + $0x18] sm:$0xff] }
 0x3c1   : > { %2855 = vpow2.f32 %v1320_v33  ;;  %v1318_v36 = vmul.f32 1.442695, %v1312_v23  ;;  %v836_v4 = vsel %vm559_vm1, %v3360_v35, 0.0  ;;  %2555 = vmatpush3.msra.mxu1 %v1502_v61  ;;  %v1477_v61 = vld [vmem:[%s3653_s3 + $0x10] sm:$0xff] }
 0x3c2   : > { %v3364_v38 = vpop.eup %2843  ;;  %837 = vadd.xlane.f32.xlu0 %v836_v4  ;;  %2556 = vmatprep.subr.mxu1 %v1501_v62 }
 0x3c3   : > { %2857 = vpow2.f32 %v1318_v36  ;;  %v1079_v39 = vsel %vm559_vm1, %v3364_v38, 0.0  ;;  %2557 = vmatpush3.msra.mxu1 %v1501_v62  ;;  %v1476_v62 = vld [vmem:[%s3653_s3 + $0x8] sm:$0xff] }
 0x3c4   : > { %v3368_v40 = vpop.eup %2845  ;;  %1080 = vadd.xlane.f32.xlu1 %v1079_v39  ;;  %2558 = vmatprep.subr.mxu1 %v1500_v45 }
 0x3c5   : > { %v1076_v7 = vsel %vm559_vm1, %v3368_v40, 0.0  ;;  %2559 = vmatpush3.msra.mxu1 %v1500_v45  ;;  %v1475_v45 = vld [vmem:[%s3653_s3] sm:$0xff] }
 0x3c6   : > { %v3372_v42 = vpop.eup %2847  ;;  %1077 = vadd.xlane.f32.xlu0 %v1076_v7  ;;  %2560 = vmatprep.subr.mxu1 %v1499_v1 }
 0x3c7   : > { %v1085_v43 = vsel %vm559_vm1, %v3372_v42, 0.0  ;;  %2561 = vmatpush3.msra.mxu1 %v1499_v1 }
 0x3c8   : > { %v3376_v44 = vpop.eup %2849  ;;  %1086 = vadd.xlane.f32.xlu1 %v1085_v43  ;;  %2562 = vmatprep.subr.mxu1 %v1498_v48 }
 0x3c9   : > { %v1082_v46 = vsel %vm559_vm1, %v3376_v44, 0.0  ;;  %2563 = vmatpush3.msra.mxu1 %v1498_v48 }
 0x3ca   : > { %v3380_v47 = vpop.eup %2851  ;;  %1083 = vadd.xlane.f32.xlu0 %v1082_v46  ;;  %2564 = vmatprep.subr.mxu1 %v1497_v2 }
 0x3cb   : > { %v1325_v49 = vsel %vm559_vm1, %v3380_v47, 0.0  ;;  %2565 = vmatpush3.msra.mxu1 %v1497_v2 }
 0x3cc   : > { %v3384_v50 = vpop.eup %2853  ;;  %1326 = vadd.xlane.f32.xlu1 %v1325_v49  ;;  %2566 = vmatprep.subr.mxu1 %v1496_v51 }
 0x3cd   : > { %v1322_v52 = vsel %vm559_vm1, %v3384_v50, 0.0  ;;  %2567 = vmatpush3.msra.mxu1 %v1496_v51 }
 0x3ce   : > { %v3388_v53 = vpop.eup %2855  ;;  %1323 = vadd.xlane.f32.xlu0 %v1322_v52  ;;  %2568 = vmatprep.subr.mxu1 %v1495_v55  ;;  %v1488_v52 = vld [vmem:[%s3653_s3 + $0x68] sm:$0xff] }
 0x3cf   : > { %v1331_v54 = vsel %vm559_vm1, %v3388_v53, 0.0  ;;  %2569 = vmatpush3.msra.mxu1 %v1495_v55 }
 0x3d0   : > { %v3392_v18 = vpop.eup %2857  ;;  %1332 = vadd.xlane.f32.xlu1 %v1331_v54  ;;  %2570 = vmatprep.subr.mxu1 %v1494_v5  ;;  %v1486_v54 = vld [vmem:[%s3653_s3 + $0x58] sm:$0xff] }
 0x3d1   : > { %v1328_v56 = vsel %vm559_vm1, %v3392_v18, 0.0  ;;  %2571 = vmatpush3.msra.mxu1 %v1494_v5 }
 0x3d2   : > { %1329 = vadd.xlane.f32.xlu0 %v1328_v56  ;;  %2572 = vmatprep.subr.mxu1 %v1493_v60  ;;  %v1482_v56 = vld [vmem:[%s3653_s3 + $0x38] sm:$0xff] }
 0x3d3   : > { %2573 = vmatpush3.msra.mxu1 %v1493_v60 }
 0x3d4   : > { %2574 = vmatprep.subr.mxu1 %v1492_v6 }
 0x3d5   : > { %2575 = vmatpush3.msra.mxu1 %v1492_v6 }
 0x3d6   : > { %2576 = vmatprep.subr.mxu1 %v1491_v30 }
 0x3d7   : > { %2577 = vmatpush3.msra.mxu1 %v1491_v30 }
 0x3d8   : > { %2579 = vmatmul.mubr.f32.vlgmr.msra.gmra.mxu1 %v3187_v19 }
 0x3d9   : > { %2581 = vmatprep.mubr.f32.mxu1 %v3190_v20 }
 0x3dc   : > { %2582 = vmatmul.mubr.f32.gmra.mxu1 %v3195_v21 }
 0x3dd   : > { %2584 = vmatprep.mubr.f32.mxu1 %v3220_v8 }
 0x3e0   : > { %2585 = vmatmul.mubr.f32.gmra.mxu1 %v3225_v9 }
 0x3e1   : > { %2587 = vmatprep.mubr.f32.mxu1 %v3229_v10 }
 0x3e4   : > { %2588 = vmatmul.mubr.f32.gmra.mxu1 %v3238_v12 }
 0x3e5   : > { %2590 = vmatprep.mubr.f32.mxu1 %v3242_v13 }
 0x3e8   : > { %2591 = vmatmul.mubr.f32.gmra.mxu1 %v3251_v15 }
 0x3e9   : > { %2593 = vmatprep.mubr.f32.mxu1 %v3255_v16 }
 0x3ec   : > { %2594 = vmatmul.mubr.f32.gmra.mxu1 %v3264_v22 }
 0x3ed   : > { %2596 = vmatprep.mubr.f32.mxu1 %v3268_v24 }
 0x3f0   : > { %2597 = vmatmul.mubr.f32.gmra.mxu1 %v3274_v25 }
 0x3f1   : > { %2599 = vmatprep.mubr.f32.mxu1 %v3277_v26 }
 0x3f4   : > { %2600 = vmatmul.mubr.f32.gmra.mxu1 %v3282_v27 }
 0x445   : > { %v835_v19 = vpop.xlane.xlu1 %834 }
 0x446   : > { %2859 = vrcp.f32 %v835_v19 }
 0x447   : > { %v832_v20 = vpop.xlane.xlu0 %831 }
 0x448   : > { %2861 = vrcp.f32 %v832_v20 }
 0x449   : > { %v841_v21 = vpop.xlane.xlu1 %840 }
 0x44a   : > { %2863 = vrcp.f32 %v841_v21 }
 0x44b   : > { %v838_v8 = vpop.xlane.xlu0 %837 }
 0x44c   : > { %2865 = vrcp.f32 %v838_v8  ;;  %v3545_v8 = vld [vmem:[%s3655_s5] ss:$0 sm:$0xff] }
 0x44d   : > { %v1081_v9 = vpop.xlane.xlu1 %1080 }
 0x44e   : > { %2867 = vrcp.f32 %v1081_v9 }
 0x44f   : > { %v1078_v10 = vpop.xlane.xlu0 %1077 }
 0x450   : > { %2869 = vrcp.f32 %v1078_v10 }
 0x451   : > { %v1087_v12 = vpop.xlane.xlu1 %1086 }
 0x452   : > { %2871 = vrcp.f32 %v1087_v12 }
 0x453   : > { %v1084_v13 = vpop.xlane.xlu0 %1083  ;;  %v2860_v15 = vpop.eup %2859 }
 0x454   : > { %2873 = vrcp.f32 %v1084_v13  ;;  %v847_v25 = vmul.f32 %v2860_v15, %v3348_v0 }
 0x455   : > { %v2862_v16 = vpop.eup %2861  ;;  %v1327_v22 = vpop.xlane.xlu1 %1326 }
 0x456   : > { %v846_v24 = vmul.f32 %v2862_v16, %v3352_v3  ;;  %2875 = vrcp.f32 %v1327_v22 }
 0x457   : > { %v1324_v26 = vpop.xlane.xlu0 %1323  ;;  %v2864_v27 = vpop.eup %2863 }
 0x458   : > { %2877 = vrcp.f32 %v1324_v26  ;;  %2500 = vmatprep.mubr.msk.f32.mxu0 %vm559_vm1, %v846_v24  ;;  %v849_v0 = vmul.f32 %v2864_v27, %v3356_v63 }
 0x459   : > { %v2866_v33 = vpop.eup %2865  ;;  %v1333_v23 = vpop.xlane.xlu1 %1332  ;;  %2501 = vmatmul.mubr.msk.f32.vlgmr.msra.gmra.mxu0 %vm559_vm1, %v847_v25 }
 0x45a   : > { %2517 = vmatpush3.msra.mxu0 %v3213_v59  ;;  %v848_v34 = vmul.f32 %v2866_v33, %v3360_v35  ;;  %2879 = vrcp.f32 %v1333_v23 }
 0x45b   : > { %v1330_v36 = vpop.xlane.xlu0 %1329  ;;  %2518 = vmatprep.subr.mxu0 %v3232_v11  ;;  %v2868_v3 = vpop.eup %2867 }
 0x45c   : > { %2881 = vrcp.f32 %v1330_v36  ;;  %2503 = vmatprep.mubr.msk.f32.mxu0 %vm559_vm1, %v848_v34  ;;  %2519 = vmatpush3.msra.mxu0 %v3232_v11  ;;  %v1093_v35 = vmul.f32 %v2868_v3, %v3364_v38  ;;  %v1490_v11 = vld [vmem:[%s3653_s3 + $0x78] sm:$0xff] }
 0x45d   : > { %v2870_v4 = vpop.eup %2869  ;;  %2504 = vmatmul.mubr.msk.f32.gmra.mxu0 %vm559_vm1, %v849_v0  ;;  %2536 = vmatprep.subr.mxu0 %v3245_v14 }
 0x45e   : > { %v1092_v59 = vmul.f32 %v2870_v4, %v3368_v40 }
 0x45f   : > { %v2872_v39 = vpop.eup %2871 }
 0x460   : > { %2520 = vmatprep.mubr.msk.f32.mxu0 %vm559_vm1, %v1092_v59  ;;  %v1095_v40 = vmul.f32 %v2872_v39, %v3372_v42  ;;  %v1489_v42 = vld [vmem:[%s3653_s3 + $0x70] sm:$0xff] }
 0x461   : > { %v2874_v7 = vpop.eup %2873  ;;  %2521 = vmatmul.mubr.msk.f32.vlgmr.msra.gmra.mxu0 %vm559_vm1, %v1093_v35 }
 0x462   : > { %2537 = vmatpush3.msra.mxu0 %v3245_v14  ;;  %v1094_v63 = vmul.f32 %v2874_v7, %v3376_v44 }
 0x463   : > { %2538 = vmatprep.subr.mxu0 %v3258_v17  ;;  %v2876_v43 = vpop.eup %2875 }
 0x464   : > { %2523 = vmatprep.mubr.msk.f32.mxu0 %vm559_vm1, %v1094_v63  ;;  %2539 = vmatpush3.msra.mxu0 %v3258_v17  ;;  %v1339_v44 = vmul.f32 %v2876_v43, %v3380_v47 }
 0x465   : > { %v2878_v38 = vpop.eup %2877  ;;  %2524 = vmatmul.mubr.msk.f32.gmra.mxu0 %vm559_vm1, %v1095_v40  ;;  %2602 = vmatprep.subr.mxu0 %v1490_v11 }
 0x466   : > { %v1338_v14 = vmul.f32 %v2878_v38, %v3384_v50  ;;  %v1487_v50 = vld [vmem:[%s3653_s3 + $0x60] sm:$0xff] }
 0x467   : > { %v2880_v46 = vpop.eup %2879 }
 0x468   : > { %2540 = vmatprep.mubr.msk.f32.mxu0 %vm559_vm1, %v1338_v14  ;;  %v1341_v47 = vmul.f32 %v2880_v46, %v3388_v53  ;;  %v1485_v53 = vld [vmem:[%s3653_s3 + $0x50] sm:$0xff] }
 0x469   : > { %v2882_v49 = vpop.eup %2881  ;;  %2541 = vmatmul.mubr.msk.f32.vlgmr.msra.gmra.mxu0 %vm559_vm1, %v1339_v44 }
 0x46a   : > { %2603 = vmatpush3.msra.mxu0 %v1490_v11  ;;  %v1340_v17 = vmul.f32 %v2882_v49, %v3392_v18  ;;  %v1484_v18 = vld [vmem:[%s3653_s3 + $0x48] sm:$0xff] }
 0x46b   : > { %2604 = vmatprep.subr.mxu0 %v1489_v42 }
 0x46c   : > { %2605 = vmatpush3.msra.mxu0 %v1489_v42  ;;  %2543 = vmatprep.mubr.msk.f32.mxu0 %vm559_vm1, %v1340_v17 }
 0x46d   : > { %2606 = vmatprep.subr.mxu0 %v1488_v52  ;;  %2544 = vmatmul.mubr.msk.f32.gmra.mxu0 %vm559_vm1, %v1341_v47 }
 0x46e   : > { %2607 = vmatpush3.msra.mxu0 %v1488_v52  ;;  %2634 = vmatprep.mubr.f32.mxu0 %v3290_v29  ;;  %v1483_v29 = vld [vmem:[%s3653_s3 + $0x40] sm:$0xff] }
 0x46f   : > { %2608 = vmatprep.subr.mxu0 %v1487_v50 }
 0x470   : > { %2609 = vmatpush3.msra.mxu0 %v1487_v50 }
 0x471   : > { %2610 = vmatprep.subr.mxu0 %v1486_v54 }
 0x472   : > { %2611 = vmatpush3.msra.mxu0 %v1486_v54 }
 0x473   : > { %2612 = vmatprep.subr.mxu0 %v1485_v53 }
 0x474   : > { %2613 = vmatpush3.msra.mxu0 %v1485_v53 }
 0x475   : > { %2614 = vmatprep.subr.mxu0 %v1484_v18 }
 0x476   : > { %2615 = vmatpush3.msra.mxu0 %v1484_v18 }
 0x477   : > { %2616 = vmatprep.subr.mxu0 %v1483_v29 }
 0x478   : > { %2617 = vmatpush3.msra.mxu0 %v1483_v29 }
 0x479   : > { %2618 = vmatprep.subr.mxu0 %v1482_v56 }
 0x47a   : > { %2619 = vmatpush3.msra.mxu0 %v1482_v56 }
 0x47b   : > { %2620 = vmatprep.subr.mxu0 %v1481_v37 }
 0x47c   : > { %2621 = vmatpush3.msra.mxu0 %v1481_v37 }
 0x47d   : > { %2622 = vmatprep.subr.mxu0 %v1480_v57 }
 0x47e   : > { %2623 = vmatpush3.msra.mxu0 %v1480_v57 }
 0x47f   : > { %2624 = vmatprep.subr.mxu0 %v1479_v58 }
 0x480   : > { %2625 = vmatpush3.msra.mxu0 %v1479_v58 }
 0x481   : > { %2626 = vmatprep.subr.mxu0 %v1478_v41 }
 0x482   : > { %2627 = vmatpush3.msra.mxu0 %v1478_v41 }
 0x483   : > { %2628 = vmatprep.subr.mxu0 %v1477_v61 }
 0x484   : > { %2629 = vmatpush3.msra.mxu0 %v1477_v61 }
 0x485   : > { %2630 = vmatprep.subr.mxu0 %v1476_v62 }
 0x486   : > { %2631 = vmatpush3.msra.mxu0 %v1476_v62 }
 0x487   : > { %2632 = vmatprep.subr.mxu0 %v1475_v45 }
 0x488   : > { %2633 = vmatpush3.msra.mxu0 %v1475_v45 }
 0x489   : > { %2635 = vmatmul.mubr.f32.vlgmr.msra.gmra.mxu0 %v3287_v28 }
 0x48a   : > { %2637 = vmatprep.mubr.f32.mxu0 %v3294_v32 }
 0x48d   : > { %2638 = vmatmul.mubr.f32.gmra.mxu0 %v3292_v31 }
 0x498   : > { %v2580_v19 = vpop.f32.mrf.mxu1 }
 0x49a   : > { %v1573_v20 = vpop.f32.mrf.mxu1 }
 0x49c   : > { %v2583_v9 = vpop.f32.mrf.mxu1 }
 0x49e   : > { %v1583_v22 = vpop.f32.mrf.mxu1 }
 0x4a0   : > { %v2586_v4 = vpop.f32.mrf.mxu1 }
 0x4a2   : > { %v1593_v59 = vpop.f32.mrf.mxu1 }
 0x4a4   : > { %v2589_v35 = vpop.f32.mrf.mxu1 }
 0x4a6   : > { %v1603_v39 = vpop.f32.mrf.mxu1 }
 0x4a8   : > { %v2592_v7 = vpop.f32.mrf.mxu1 }
 0x4aa   : > { %v1613_v63 = vpop.f32.mrf.mxu1 }
 0x4ac   : > { %v2595_v38 = vpop.f32.mrf.mxu1 }
 0x4ae   : > { %v1623_v52 = vpop.f32.mrf.mxu1 }
 0x4b0   : > { %v2598_v56 = vpop.f32.mrf.mxu1 }
 0x4b2   : > { %v1633_v45 = vpop.f32.mrf.mxu1 }
 0x519   : > { %v2502_v1 = vpop.f32.mrf.mxu0 }
 0x51b   : > { %v928_v48 = vpop.f32.mrf.mxu0 }
 0x51c   : > { %2640 = vmatprep.mubr.f32.mxu0 %v928_v48 }
 0x51d   : > { %v2505_v2 = vpop.f32.mrf.mxu0  ;;  %2641 = vmatmul.mubr.f32.gmra.mxu0 %v2502_v1 }
 0x51f   : > { %v938_v51 = vpop.f32.mrf.mxu0 }
 0x520   : > { %2643 = vmatprep.mubr.f32.mxu0 %v938_v51 }
 0x521   : > { %v2522_v55 = vpop.f32.mrf.mxu0  ;;  %2644 = vmatmul.mubr.f32.gmra.mxu0 %v2505_v2 }
 0x523   : > { %v1174_v5 = vpop.f32.mrf.mxu0 }
 0x524   : > { %2646 = vmatprep.mubr.f32.mxu0 %v1174_v5 }
 0x525   : > { %v2525_v60 = vpop.f32.mrf.mxu0  ;;  %2647 = vmatmul.mubr.f32.gmra.mxu0 %v2522_v55 }
 0x527   : > { %v1184_v6 = vpop.f32.mrf.mxu0 }
 0x528   : > { %2649 = vmatprep.mubr.f32.mxu0 %v1184_v6 }
 0x529   : > { %v2542_v28 = vpop.f32.mrf.mxu0  ;;  %2650 = vmatmul.mubr.f32.gmra.mxu0 %v2525_v60  ;;  %v2601_v60 = vpop.f32.mrf.mxu1 }
 0x52b   : > { %v1420_v32 = vpop.f32.mrf.mxu0 }
 0x52c   : > { %2652 = vmatprep.mubr.f32.mxu0 %v1420_v32 }
 0x52d   : > { %v2545_v31 = vpop.f32.mrf.mxu0  ;;  %2653 = vmatmul.mubr.f32.gmra.mxu0 %v2542_v28 }
 0x52f   : > { %v1430_v30 = vpop.f32.mrf.mxu0 }
 0x530   : > { %2655 = vmatprep.mubr.f32.mxu0 %v1430_v30 }
 0x531   : > { %2656 = vmatmul.mubr.f32.gmra.mxu0 %v2545_v31 }
 0x549   : > { %v2636_v21 = vpop.f32.mrf.mxu0 }
 0x54a   : > { %v1724_v10 = vadd.f32 %v2636_v21, %v2580_v19 }
 0x54b   : > { %v1718_v12 = vpop.f32.mrf.mxu0 }
 0x54c   : > { %v1805_v13 = vadd.f32 %v3545_v8, %v1724_v10  ;;  %v1719_v15 = vadd.f32 %v1718_v12, %v1573_v20 }
 0x54d   : > { %v2639_v16 = vpop.f32.mrf.mxu0 }
 0x54e   : > { %2883 = vtanh.f32 %v1805_v13  ;;  %v1804_v24 = vadd.f32 %v3545_v8, %v1719_v15  ;;  %v1734_v25 = vadd.f32 %v2639_v16, %v2583_v9  ;;  %v1643_v9 = vpop.f32.mrf.mxu1 }
 0x54f   : > { %v1728_v26 = vpop.f32.mrf.mxu0 }
 0x550   : > { %2885 = vtanh.f32 %v1804_v24  ;;  %v1807_v27 = vadd.f32 %v3545_v8, %v1734_v25  ;;  %v1729_v33 = vadd.f32 %v1728_v26, %v1583_v22 }
 0x552   : > { %2887 = vtanh.f32 %v1807_v27  ;;  %v1806_v23 = vadd.f32 %v3545_v8, %v1729_v33 }
 0x554   : > { %2889 = vtanh.f32 %v1806_v23 }
 0x55b   : > { %v2884_v34 = vpop.eup %2883 }
 0x55c   : > { %1837 = vst [vmem:[#allocation3] sm:$0xff] %v2884_v34 }
 0x55d   : > { %v2886_v36 = vpop.eup %2885 }
 0x55e   : > { %1836 = vst [vmem:[#allocation3 + $0x30] sm:$0xff] %v2886_v36 }
 0x55f   : > { %v2888_v0 = vpop.eup %2887 }
 0x560   : > { %1839 = vst [vmem:[#allocation3 + $0x18] sm:$0xff] %v2888_v0 }
 0x561   : > { %v2890_v3 = vpop.eup %2889 }
 0x562   : > { %1838 = vst [vmem:[#allocation3 + $0x58] sm:$0xff] %v2890_v3 }
 0x5dd   : > { %v2642_v11 = vpop.f32.mrf.mxu0 }
 0x5de   : > { %v1744_v40 = vadd.f32 %v2642_v11, %v2586_v4 }
 0x5df   : > { %v1738_v43 = vpop.f32.mrf.mxu0 }
 0x5e0   : > { %v1809_v14 = vadd.f32 %v3545_v8, %v1744_v40  ;;  %v1739_v44 = vadd.f32 %v1738_v43, %v1593_v59 }
 0x5e1   : > { %v2645_v46 = vpop.f32.mrf.mxu0 }
 0x5e2   : > { %2891 = vtanh.f32 %v1809_v14  ;;  %v1808_v42 = vadd.f32 %v3545_v8, %v1739_v44  ;;  %v1754_v49 = vadd.f32 %v2645_v46, %v2589_v35 }
 0x5e3   : > { %v1748_v17 = vpop.f32.mrf.mxu0 }
 0x5e4   : > { %2893 = vtanh.f32 %v1808_v42  ;;  %v1811_v47 = vadd.f32 %v3545_v8, %v1754_v49  ;;  %v1749_v50 = vadd.f32 %v1748_v17, %v1603_v39 }
 0x5e5   : > { %v2648_v54 = vpop.f32.mrf.mxu0 }
 0x5e6   : > { %2895 = vtanh.f32 %v1811_v47  ;;  %v1810_v53 = vadd.f32 %v3545_v8, %v1749_v50  ;;  %v1764_v18 = vadd.f32 %v2648_v54, %v2592_v7 }
 0x5e7   : > { %v1758_v29 = vpop.f32.mrf.mxu0 }
 0x5e8   : > { %2897 = vtanh.f32 %v1810_v53  ;;  %v1813_v37 = vadd.f32 %v3545_v8, %v1764_v18  ;;  %v1759_v57 = vadd.f32 %v1758_v29, %v1613_v63 }
 0x5e9   : > { %v2651_v58 = vpop.f32.mrf.mxu0 }
 0x5ea   : > { %2899 = vtanh.f32 %v1813_v37  ;;  %v1812_v41 = vadd.f32 %v3545_v8, %v1759_v57  ;;  %v1774_v61 = vadd.f32 %v2651_v58, %v2595_v38 }
 0x5eb   : > { %v1768_v62 = vpop.f32.mrf.mxu0 }
 0x5ec   : > { %2901 = vtanh.f32 %v1812_v41  ;;  %v1815_v1 = vadd.f32 %v3545_v8, %v1774_v61  ;;  %v1769_v48 = vadd.f32 %v1768_v62, %v1623_v52 }
 0x5ed   : > { %v2654_v2 = vpop.f32.mrf.mxu0 }
 0x5ee   : > { %2903 = vtanh.f32 %v1815_v1  ;;  %v1814_v51 = vadd.f32 %v3545_v8, %v1769_v48  ;;  %v1784_v55 = vadd.f32 %v2654_v2, %v2598_v56 }
 0x5ef   : > { %v2892_v5 = vpop.eup %2891  ;;  %v1778_v6 = vpop.f32.mrf.mxu0 }
 0x5f0   : > { %1841 = vst [vmem:[#allocation3 + $0x68] sm:$0xff] %v2892_v5  ;;  %2905 = vtanh.f32 %v1814_v51  ;;  %v1817_v28 = vadd.f32 %v3545_v8, %v1784_v55  ;;  %v1779_v32 = vadd.f32 %v1778_v6, %v1633_v45 }
 0x5f1   : > { %v2894_v31 = vpop.eup %2893  ;;  %v2657_v30 = vpop.f32.mrf.mxu0 }
 0x5f2   : > { %1840 = vst [vmem:[#allocation3 + $0x50] sm:$0xff] %v2894_v31  ;;  %2907 = vtanh.f32 %v1817_v28  ;;  %v1816_v19 = vadd.f32 %v3545_v8, %v1779_v32  ;;  %v1794_v20 = vadd.f32 %v2657_v30, %v2601_v60 }
 0x5f3   : > { %v2896_v21 = vpop.eup %2895  ;;  %v1788_v10 = vpop.f32.mrf.mxu0 }
 0x5f4   : > { %1843 = vst [vmem:[#allocation3 + $0x48] sm:$0xff] %v2896_v21  ;;  %2909 = vtanh.f32 %v1816_v19  ;;  %v1819_v12 = vadd.f32 %v3545_v8, %v1794_v20  ;;  %v1789_v13 = vadd.f32 %v1788_v10, %v1643_v9 }
 0x5f5   : > { %v2898_v15 = vpop.eup %2897 }
 0x5f6   : > { %1842 = vst [vmem:[#allocation3 + $0x8] sm:$0xff] %v2898_v15  ;;  %2911 = vtanh.f32 %v1819_v12  ;;  %v1818_v16 = vadd.f32 %v3545_v8, %v1789_v13 }
 0x5f7   : > { %v2900_v22 = vpop.eup %2899 }
 0x5f8   : > { %1845 = vst [vmem:[#allocation3 + $0x20] sm:$0xff] %v2900_v22  ;;  %2913 = vtanh.f32 %v1818_v16 }
 0x5f9   : > { %v2902_v24 = vpop.eup %2901 }
 0x5fa   : > { %1844 = vst [vmem:[#allocation3 + $0x40] sm:$0xff] %v2902_v24 }
 0x5fb   : > { %v2904_v25 = vpop.eup %2903 }
 0x5fc   : > { %1847 = vst [vmem:[#allocation3 + $0x38] sm:$0xff] %v2904_v25 }
 0x5fd   : > { %v2906_v26 = vpop.eup %2905 }
 0x5fe   : > { %1846 = vst [vmem:[#allocation3 + $0x10] sm:$0xff] %v2906_v26 }
 0x5ff   : > { %v2908_v27 = vpop.eup %2907 }
 0x600   : > { %1849 = vst [vmem:[#allocation3 + $0x70] sm:$0xff] %v2908_v27 }
 0x601   : > { %v2910_v33 = vpop.eup %2909 }
 0x602   : > { %1848 = vst [vmem:[#allocation3 + $0x60] sm:$0xff] %v2910_v33 }
 0x603   : > { %v2912_v23 = vpop.eup %2911 }
 0x604   : > { %1851 = vst [vmem:[#allocation3 + $0x28] sm:$0xff] %v2912_v23 }
 0x605   : > { %v2914_v34 = vpop.eup %2913 }
 0x606   : > { %1850 = vst [vmem:[#allocation3 + $0x78] sm:$0xff] %v2914_v34 }
 0x607 PF: > { %v1883_v8 = vld [vmem:[%s3175_s24 + $0x78] sm:$0xff]  ;;  %v1882_v36 = vld [vmem:[%s3175_s24 + $0x70] sm:$0xff]  ;;  %v1881_v0 = vld [vmem:[%s3175_s24 + $0x68] sm:$0xff]  ;;  %s2321_s30 = sshll.u32 (%p3117_p0), %s2987_s14, 5 }
 0x608   : > { %2658 = vmatprep.subr.mxu0 %v1883_v8  ;;  %2714 = vmatprep.subr.mxu1 %v1883_v8  ;;  %v1880_v3 = vld [vmem:[%s3175_s24 + $0x60] sm:$0xff]  ;;  %v1879_v4 = vld [vmem:[%s3175_s24 + $0x58] sm:$0xff]  ;;  %v1878_v59 = vld [vmem:[%s3175_s24 + $0x50] sm:$0xff]  ;;  %s2061_s27 = sadd.s32 (%p3117_p0), %s2983_s13, %s2321_s30 }
 0x609   : > { %2659 = vmatpush3.msra.mxu0 %v1883_v8  ;;  %2730 = vmatpush3.msra.mxu1 %v1883_v8  ;;  %v1877_v35 = vld [vmem:[%s3175_s24 + $0x48] sm:$0xff]  ;;  %v1876_v39 = vld [vmem:[%s3175_s24 + $0x40] sm:$0xff]  ;;  %v1875_v7 = vld [vmem:[%s3175_s24 + $0x38] sm:$0xff] }
 0x60a   : > { %2660 = vmatprep.subr.mxu0 %v1882_v36  ;;  %2715 = vmatprep.subr.mxu1 %v1882_v36  ;;  %v1874_v63 = vld [vmem:[%s3175_s24 + $0x30] sm:$0xff]  ;;  %v1873_v11 = vld [vmem:[%s3175_s24 + $0x28] sm:$0xff]  ;;  %v1872_v40 = vld [vmem:[%s3175_s24 + $0x20] sm:$0xff] }
 0x60b   : > { %2661 = vmatpush3.msra.mxu0 %v1882_v36  ;;  %2731 = vmatpush3.msra.mxu1 %v1882_v36  ;;  %v1871_v43 = vld [vmem:[%s3175_s24 + $0x18] sm:$0xff]  ;;  %v1870_v38 = vld [vmem:[%s3175_s24 + $0x10] sm:$0xff]  ;;  %v1869_v14 = vld [vmem:[%s3175_s24 + $0x8] sm:$0xff] }
 0x60c   : > { %2662 = vmatprep.subr.mxu0 %v1881_v0  ;;  %2716 = vmatprep.subr.mxu1 %v1881_v0  ;;  %v1868_v44 = vld [vmem:[%s3175_s24] sm:$0xff]  ;;  %v1852_v46 = vld [vmem:[#allocation3 + $0x30] sm:$0xff]  ;;  %v1854_v52 = vld [vmem:[#allocation3 + $0x58] sm:$0xff] }
 0x60d   : > { %2663 = vmatpush3.msra.mxu0 %v1881_v0  ;;  %2732 = vmatpush3.msra.mxu1 %v1881_v0  ;;  %v1860_v42 = vld [vmem:[#allocation3 + $0x40] sm:$0xff]  ;;  %v1862_v47 = vld [vmem:[#allocation3 + $0x10] sm:$0xff]  ;;  %v1855_v50 = vld [vmem:[#allocation3 + $0x18] sm:$0xff] }
 0x60e   : > { %2664 = vmatprep.subr.mxu0 %v1880_v3  ;;  %2717 = vmatprep.subr.mxu1 %v1880_v3  ;;  %v1853_v49 = vld [vmem:[#allocation3] sm:$0xff]  ;;  %v1863_v54 = vld [vmem:[#allocation3 + $0x38] sm:$0xff]  ;;  %v1856_v53 = vld [vmem:[#allocation3 + $0x50] sm:$0xff] }
 0x60f   : > { %2665 = vmatpush3.msra.mxu0 %v1880_v3  ;;  %2733 = vmatpush3.msra.mxu1 %v1880_v3  ;;  %v1861_v17 = vld [vmem:[#allocation3 + $0x20] sm:$0xff]  ;;  %v1857_v29 = vld [vmem:[#allocation3 + $0x68] sm:$0xff]  ;;  %v1865_v56 = vld [vmem:[#allocation3 + $0x70] sm:$0xff] }
 0x610   : > { %2666 = vmatprep.subr.mxu0 %v1879_v4  ;;  %2718 = vmatprep.subr.mxu1 %v1879_v4  ;;  %v1864_v18 = vld [vmem:[#allocation3 + $0x60] sm:$0xff]  ;;  %v1858_v37 = vld [vmem:[#allocation3 + $0x8] sm:$0xff]  ;;  %v1866_v57 = vld [vmem:[#allocation3 + $0x78] sm:$0xff] }
 0x611   : > { %2667 = vmatpush3.msra.mxu0 %v1879_v4  ;;  %2734 = vmatpush3.msra.mxu1 %v1879_v4  ;;  %v1859_v58 = vld [vmem:[#allocation3 + $0x48] sm:$0xff]  ;;  %v2312_v61 = vld [vmem:[%s452_s22] ss:$0 sm:$0xff]  ;;  %s2316_s22 = sshll.u32 (%p3117_p0), %s2061_s27, 3 }
 0x612   : > { %2668 = vmatprep.subr.mxu0 %v1878_v59  ;;  %2719 = vmatprep.subr.mxu1 %v1878_v59  ;;  %v1867_v41 = vld [vmem:[#allocation3 + $0x28] sm:$0xff]  ;;  %s2063_s9 = scalar_lea.vmem (%p3117_p0), %s3658_s8, %s2316_s22 }
 0x613   : > { %2669 = vmatpush3.msra.mxu0 %v1878_v59  ;;  %2735 = vmatpush3.msra.mxu1 %v1878_v59 }
 0x614   : > { %2670 = vmatprep.subr.mxu0 %v1877_v35  ;;  %2720 = vmatprep.subr.mxu1 %v1877_v35 }
 0x615   : > { %2671 = vmatpush3.msra.mxu0 %v1877_v35  ;;  %2736 = vmatpush3.msra.mxu1 %v1877_v35 }
 0x616   : > { %2672 = vmatprep.subr.mxu0 %v1876_v39  ;;  %2721 = vmatprep.subr.mxu1 %v1876_v39 }
 0x617   : > { %2673 = vmatpush3.msra.mxu0 %v1876_v39  ;;  %2737 = vmatpush3.msra.mxu1 %v1876_v39 }
 0x618   : > { %2674 = vmatprep.subr.mxu0 %v1875_v7  ;;  %2722 = vmatprep.subr.mxu1 %v1875_v7 }
 0x619   : > { %2675 = vmatpush3.msra.mxu0 %v1875_v7  ;;  %2738 = vmatpush3.msra.mxu1 %v1875_v7 }
 0x61a   : > { %2676 = vmatprep.subr.mxu0 %v1874_v63  ;;  %2723 = vmatprep.subr.mxu1 %v1874_v63 }
 0x61b   : > { %2677 = vmatpush3.msra.mxu0 %v1874_v63  ;;  %2739 = vmatpush3.msra.mxu1 %v1874_v63 }
 0x61c   : > { %2678 = vmatprep.subr.mxu0 %v1873_v11  ;;  %2724 = vmatprep.subr.mxu1 %v1873_v11 }
 0x61d   : > { %2679 = vmatpush3.msra.mxu0 %v1873_v11  ;;  %2740 = vmatpush3.msra.mxu1 %v1873_v11 }
 0x61e   : > { %2680 = vmatprep.subr.mxu0 %v1872_v40  ;;  %2725 = vmatprep.subr.mxu1 %v1872_v40 }
 0x61f   : > { %2681 = vmatpush3.msra.mxu0 %v1872_v40  ;;  %2741 = vmatpush3.msra.mxu1 %v1872_v40 }
 0x620   : > { %2682 = vmatprep.subr.mxu0 %v1871_v43  ;;  %2726 = vmatprep.subr.mxu1 %v1871_v43 }
 0x621   : > { %2683 = vmatpush3.msra.mxu0 %v1871_v43  ;;  %2742 = vmatpush3.msra.mxu1 %v1871_v43 }
 0x622   : > { %2684 = vmatprep.subr.mxu0 %v1870_v38  ;;  %2727 = vmatprep.subr.mxu1 %v1870_v38 }
 0x623   : > { %2685 = vmatpush3.msra.mxu0 %v1870_v38  ;;  %2743 = vmatpush3.msra.mxu1 %v1870_v38 }
 0x624   : > { %2686 = vmatprep.subr.mxu0 %v1869_v14  ;;  %2728 = vmatprep.subr.mxu1 %v1869_v14 }
 0x625   : > { %2687 = vmatpush3.msra.mxu0 %v1869_v14  ;;  %2744 = vmatpush3.msra.mxu1 %v1869_v14 }
 0x626   : > { %2688 = vmatprep.subr.mxu0 %v1868_v44  ;;  %2729 = vmatprep.subr.mxu1 %v1868_v44 }
 0x627   : > { %2689 = vmatpush3.msra.mxu0 %v1868_v44  ;;  %2745 = vmatpush3.msra.mxu1 %v1868_v44 }
 0x628   : > { %2690 = vmatprep.mubr.f32.mxu0 %v1852_v46  ;;  %2702 = vmatprep.mubr.f32.mxu1 %v1860_v42 }
 0x629   : > { %2691 = vmatmul.mubr.f32.vlgmr.msra.gmra.mxu0 %v1853_v49  ;;  %2703 = vmatmul.mubr.f32.vlgmr.msra.gmra.mxu1 %v1861_v17 }
 0x62a   : > { %2693 = vmatprep.mubr.f32.mxu0 %v1854_v52  ;;  %2705 = vmatprep.mubr.f32.mxu1 %v1862_v47 }
 0x62d   : > { %2694 = vmatmul.mubr.f32.gmra.mxu0 %v1855_v50  ;;  %2706 = vmatmul.mubr.f32.gmra.mxu1 %v1863_v54 }
 0x62e   : > { %2696 = vmatprep.mubr.f32.mxu0 %v1856_v53  ;;  %2708 = vmatprep.mubr.f32.mxu1 %v1864_v18 }
 0x631   : > { %2697 = vmatmul.mubr.f32.gmra.mxu0 %v1857_v29  ;;  %2709 = vmatmul.mubr.f32.gmra.mxu1 %v1865_v56 }
 0x632   : > { %2699 = vmatprep.mubr.f32.mxu0 %v1858_v37  ;;  %2711 = vmatprep.mubr.f32.mxu1 %v1866_v57 }
 0x635   : > { %2700 = vmatmul.mubr.f32.gmra.mxu0 %v1859_v58  ;;  %2712 = vmatmul.mubr.f32.gmra.mxu1 %v1867_v41 }
 0x6e9   : > { %v2692_v62 = vpop.f32.mrf.mxu0  ;;  %v2704_v45 = vpop.f32.mrf.mxu1 }
 0x6ea   : > { %v1963_v1 = vadd.f32 %v2692_v62, %v2312_v61  ;;  %v2003_v48 = vadd.f32 %v2704_v45, %v2312_v61 }
 0x6eb   : > { %v1957_v2 = vpop.f32.mrf.mxu0  ;;  %v1997_v51 = vpop.f32.mrf.mxu1 }
 0x6ec   : > { %2037 = vst [vmem:[%s3177_s0 + $0x8] sm:$0xff] %v1963_v1  ;;  %2045 = vst [vmem:[%s3177_s0 + $0x48] sm:$0xff] %v2003_v48  ;;  %v1958_v55 = vadd.f32 %v2312_v61, %v1957_v2  ;;  %v1998_v5 = vadd.f32 %v2312_v61, %v1997_v51 }
 0x6ed   : > { %v2695_v60 = vpop.f32.mrf.mxu0  ;;  %v2707_v6 = vpop.f32.mrf.mxu1 }
 0x6ee   : > { %2036 = vst [vmem:[%s3177_s0] sm:$0xff] %v1958_v55  ;;  %2044 = vst [vmem:[%s3177_s0 + $0x40] sm:$0xff] %v1998_v5  ;;  %v1973_v28 = vadd.f32 %v2695_v60, %v2312_v61  ;;  %v2013_v32 = vadd.f32 %v2707_v6, %v2312_v61 }
 0x6ef   : > { %v1967_v31 = vpop.f32.mrf.mxu0  ;;  %v2007_v30 = vpop.f32.mrf.mxu1 }
 0x6f0   : > { %2039 = vst [vmem:[%s3177_s0 + $0x18] sm:$0xff] %v1973_v28  ;;  %2047 = vst [vmem:[%s3177_s0 + $0x58] sm:$0xff] %v2013_v32  ;;  %v1968_v19 = vadd.f32 %v2312_v61, %v1967_v31  ;;  %v2008_v20 = vadd.f32 %v2312_v61, %v2007_v30 }
 0x6f1   : > { %v2698_v21 = vpop.f32.mrf.mxu0  ;;  %v2710_v9 = vpop.f32.mrf.mxu1 }
 0x6f2   : > { %2038 = vst [vmem:[%s3177_s0 + $0x10] sm:$0xff] %v1968_v19  ;;  %2046 = vst [vmem:[%s3177_s0 + $0x50] sm:$0xff] %v2008_v20  ;;  %v1983_v10 = vadd.f32 %v2698_v21, %v2312_v61  ;;  %v2023_v12 = vadd.f32 %v2710_v9, %v2312_v61 }
 0x6f3   : > { %v1977_v13 = vpop.f32.mrf.mxu0  ;;  %v2017_v15 = vpop.f32.mrf.mxu1  ;;  %v2124_v0 = vld [vmem:[%s3177_s0 + $0x8] sm:$0xff] (%p3117_p0) }
 0x6f4   : > { %2041 = vst [vmem:[%s3177_s0 + $0x28] sm:$0xff] %v1983_v10  ;;  %2049 = vst [vmem:[%s3177_s0 + $0x68] sm:$0xff] %v2023_v12  ;;  %v1978_v16 = vadd.f32 %v2312_v61, %v1977_v13  ;;  %v2018_v22 = vadd.f32 %v2312_v61, %v2017_v15  ;;  %v2140_v11 = vld [vmem:[%s3177_s0 + $0x48] sm:$0xff] (%p3117_p0) }
 0x6f5   : > { %v2701_v24 = vpop.f32.mrf.mxu0  ;;  %v2713_v25 = vpop.f32.mrf.mxu1  ;;  %v2122_v36 = vld [vmem:[%s3177_s0] sm:$0xff] (%p3117_p0)  ;;  %2125 = vst [vmem:[%s2063_s9 + $0x10] sm:$0xff] (%p3117_p0), %v2124_v0  ;;  %2141 = vst [vmem:[%s2063_s9 + $0x90] sm:$0xff] (%p3117_p0), %v2140_v11 }
 0x6f6   : > { %2040 = vst [vmem:[%s3177_s0 + $0x20] sm:$0xff] %v1978_v16  ;;  %2048 = vst [vmem:[%s3177_s0 + $0x60] sm:$0xff] %v2018_v22  ;;  %v1993_v26 = vadd.f32 %v2701_v24, %v2312_v61  ;;  %v2033_v27 = vadd.f32 %v2713_v25, %v2312_v61  ;;  %2058 = sbr.rel (!%p3117_p0) target bundleno = 1796 (0x704), region = 94  ;;  %v2138_v63 = vld [vmem:[%s3177_s0 + $0x40] sm:$0xff] (%p3117_p0) }
 0x6f7   : > { %v1987_v33 = vpop.f32.mrf.mxu0  ;;  %v2027_v23 = vpop.f32.mrf.mxu1  ;;  %v2128_v4 = vld [vmem:[%s3177_s0 + $0x18] sm:$0xff] (%p3117_p0)  ;;  %2123 = vst [vmem:[%s2063_s9] sm:$0xff] (%p3117_p0), %v2122_v36  ;;  %2139 = vst [vmem:[%s2063_s9 + $0x80] sm:$0xff] (%p3117_p0), %v2138_v63 }
 0x6f8   : > { %2043 = vst [vmem:[%s3177_s0 + $0x38] sm:$0xff] %v1993_v26  ;;  %2051 = vst [vmem:[%s3177_s0 + $0x78] sm:$0xff] %v2033_v27  ;;  %v1988_v34 = vadd.f32 %v2312_v61, %v1987_v33  ;;  %v2028_v8 = vadd.f32 %v2312_v61, %v2027_v23  ;;  %v2144_v43 = vld [vmem:[%s3177_s0 + $0x58] sm:$0xff] (%p3117_p0) }
 0x6f9   : > { %v2126_v3 = vld [vmem:[%s3177_s0 + $0x10] sm:$0xff] (%p3117_p0)  ;;  %2129 = vst [vmem:[%s2063_s9 + $0x30] sm:$0xff] (%p3117_p0), %v2128_v4  ;;  %2145 = vst [vmem:[%s2063_s9 + $0xb0] sm:$0xff] (%p3117_p0), %v2144_v43 }
 0x6fa   : > { %2042 = vst [vmem:[%s3177_s0 + $0x30] sm:$0xff] %v1988_v34  ;;  %2050 = vst [vmem:[%s3177_s0 + $0x70] sm:$0xff] %v2028_v8  ;;  %v2142_v40 = vld [vmem:[%s3177_s0 + $0x50] sm:$0xff] (%p3117_p0) }
 0x6fb   : > { %v2132_v35 = vld [vmem:[%s3177_s0 + $0x28] sm:$0xff]  ;;  %2127 = vst [vmem:[%s2063_s9 + $0x20] sm:$0xff] %v2126_v3  ;;  %2143 = vst [vmem:[%s2063_s9 + $0xa0] sm:$0xff] %v2142_v40 }
 0x6fc   : > { %2133 = vst [vmem:[%s2063_s9 + $0x50] sm:$0xff] %v2132_v35  ;;  %v2148_v14 = vld [vmem:[%s3177_s0 + $0x68] sm:$0xff] }
 0x6fd   : > { %v2130_v59 = vld [vmem:[%s3177_s0 + $0x20] sm:$0xff]  ;;  %2149 = vst [vmem:[%s2063_s9 + $0xd0] sm:$0xff] %v2148_v14 }
 0x6fe   : > { %2131 = vst [vmem:[%s2063_s9 + $0x40] sm:$0xff] %v2130_v59  ;;  %v2146_v38 = vld [vmem:[%s3177_s0 + $0x60] sm:$0xff] }
 0x6ff   : > { %v2136_v7 = vld [vmem:[%s3177_s0 + $0x38] sm:$0xff]  ;;  %2147 = vst [vmem:[%s2063_s9 + $0xc0] sm:$0xff] %v2146_v38 }
 0x700   : > { %2137 = vst [vmem:[%s2063_s9 + $0x70] sm:$0xff] %v2136_v7  ;;  %v2152_v46 = vld [vmem:[%s3177_s0 + $0x78] sm:$0xff] }
 0x701   : > { %v2134_v39 = vld [vmem:[%s3177_s0 + $0x30] sm:$0xff]  ;;  %2153 = vst [vmem:[%s2063_s9 + $0xf0] sm:$0xff] %v2152_v46 }
 0x702   : > { %2135 = vst [vmem:[%s2063_s9 + $0x60] sm:$0xff] %v2134_v39  ;;  %v2150_v44 = vld [vmem:[%s3177_s0 + $0x70] sm:$0xff] }
 0x703   : > { %2151 = vst [vmem:[%s2063_s9 + $0xe0] sm:$0xff] %v2150_v44 }
 0x704 PF: > { %s24_s17 = sadd.s32 1, %s2999_s17   ;;  %s3679_s12 = sld [smem:[#allocation9_spill]] }
 0x705   : > { %p21_p8 = scmp.ge.s32.totalorder %s24_s17, 6   ;;  %s3680_s0 = sld [smem:[#allocation14_spill]] }
 0x706   : > { %s3681_s13 = sld [smem:[#allocation10_spill]]  ;;  %s3685_s10 = smov %s2971_s11 }
 0x707   : > { %s3682_s14 = sld [smem:[#allocation11_spill]]  ;;  %s3686_s11 = smov %s3122_s28 }
 0x708   : > { %s3683_s15 = sld [smem:[#allocation12_spill]]  ;;  %23 = sbr.rel (!%p21_p8) target bundleno = 20 (0x14), region = 178 }
 0x709   : > { %s3684_s16 = sld [smem:[#allocation13_spill]] }

// kernel: decoder_rnn_forward.2
= control target key start
LH: loop header
LB: loop body
LE: loop exit
PB: predicated region body
PF: predicated region fallthrough
CT: control target
= control target key end

     0   :  { %v14199_v3 = vmov 0.0   ;;  %vm9460_vm0 = vmmov 0   ;;  %s14194_s2 = inlined_call_operand.vmem [shape: f32[128,384], index: 2, kind: input, shape index: {}]   ;;  %s14195_s1 = inlined_call_operand.vmem [shape: f32[8,128], index: 1, kind: input, shape index: {}]   ;;  %s14196_s0 = inlined_call_operand.vmem [shape: f32[32,8,384], index: 0, kind: input, shape index: {}]   ;;  %s14197_s3 = inlined_call_operand.vmem [shape: f32[1,128], index: 3, kind: input, shape index: {}]   ;;  %s14198_s4 = inlined_call_operand.vmem [shape: f32[32,8,128], index: 4, kind: output, shape index: {}]  }
   0x1   :  { %v9489_v0 = vld [vmem:[%s14194_s2 + $0x170] sm:$0xff]  ;;  %v9494_v1 = vld [vmem:[%s14194_s2 + $0x168] sm:$0xff]  ;;  %v9499_v2 = vld [vmem:[%s14194_s2 + $0x158] sm:$0xff]  ;;  %8017 = vmatprep.subr.mxu1 %v14199_v3  ;;  %135 = vmatprep.mubr.f32.mxu0 %v14199_v3 }
   0x2   :  { %71 = vmatprep.subr.mxu0 %v9489_v0  ;;  %v9507_v4 = vld [vmem:[%s14194_s2 + $0x150] sm:$0xff]  ;;  %8049 = vmatprep.mubr.msk.f32.mxu1 %vm9460_vm0, %v14199_v3  ;;  %v9515_v5 = vld [vmem:[%s14194_s2 + $0x140] sm:$0xff]  ;;  %v9521_v6 = vld [vmem:[%s14194_s2 + $0x138] sm:$0xff] }
   0x3   :  { %72 = vmatpush1.msra.mxu0 %v9494_v1  ;;  %v9527_v7 = vld [vmem:[%s14194_s2 + $0x128] sm:$0xff]  ;;  %v9533_v8 = vld [vmem:[%s14194_s2 + $0x120] sm:$0xff]  ;;  %v9539_v9 = vld [vmem:[%s14194_s2 + $0x110] sm:$0xff] }
   0x4   :  { %73 = vmatprep.subr.mxu0 %v9499_v2  ;;  %v9545_v10 = vld [vmem:[%s14194_s2 + $0x108] sm:$0xff]  ;;  %v9551_v11 = vld [vmem:[%s14194_s2 + $0xf8] sm:$0xff]  ;;  %v9557_v12 = vld [vmem:[%s14194_s2 + $0xf0] sm:$0xff] }
   0x5   :  { %74 = vmatpush1.msra.mxu0 %v9507_v4  ;;  %v9563_v13 = vld [vmem:[%s14194_s2 + $0xe0] sm:$0xff]  ;;  %v9568_v14 = vld [vmem:[%s14194_s2 + $0x178] sm:$0xff]  ;;  %v9586_v17 = vld [vmem:[%s14194_s2 + $0xc8] sm:$0xff] }
   0x6   :  { %75 = vmatprep.subr.mxu0 %v9515_v5  ;;  %v9574_v15 = vld [vmem:[%s14194_s2 + $0xd8] sm:$0xff]  ;;  %8018 = vmatpush3.msra.mxu1 %v9568_v14  ;;  %v9580_v16 = vld [vmem:[%s14194_s2 + $0x160] sm:$0xff]  ;;  %v9592_v18 = vld [vmem:[%s14194_s2 + $0x148] sm:$0xff] }
   0x7   :  { %76 = vmatpush1.msra.mxu0 %v9521_v6  ;;  %8019 = vmatprep.subr.mxu1 %v14199_v3  ;;  %v9598_v19 = vld [vmem:[%s14194_s2 + $0xc0] sm:$0xff]  ;;  %v9605_v20 = vld [vmem:[%s14194_s2 + $0xb0] sm:$0xff]  ;;  %v9617_v22 = vld [vmem:[%s14194_s2 + $0xa8] sm:$0xff] }
   0x8   :  { %77 = vmatprep.subr.mxu0 %v9527_v7  ;;  %8020 = vmatpush3.msra.mxu1 %v9580_v16  ;;  %v9611_v21 = vld [vmem:[%s14194_s2 + $0x130] sm:$0xff]  ;;  %v9624_v23 = vld [vmem:[%s14194_s2 + $0x98] sm:$0xff]  ;;  %v9643_v26 = vld [vmem:[%s14194_s2 + $0x80] sm:$0xff] }
   0x9   :  { %78 = vmatpush1.msra.mxu0 %v9533_v8  ;;  %8021 = vmatprep.subr.mxu1 %v14199_v3  ;;  %v9630_v24 = vld [vmem:[%s14194_s2 + $0x118] sm:$0xff]  ;;  %v9636_v25 = vld [vmem:[%s14194_s2 + $0x90] sm:$0xff]  ;;  %v9649_v27 = vld [vmem:[%s14194_s2 + $0x100] sm:$0xff] }
   0xa   :  { %79 = vmatprep.subr.mxu0 %v9539_v9  ;;  %8022 = vmatpush3.msra.mxu1 %v9592_v18  ;;  %v9655_v28 = vld [vmem:[%s14194_s2 + $0x78] sm:$0xff]  ;;  %v9662_v29 = vld [vmem:[%s14194_s2 + $0x68] sm:$0xff]  ;;  %v9674_v31 = vld [vmem:[%s14194_s2 + $0x60] sm:$0xff] }
   0xb   :  { %80 = vmatpush1.msra.mxu0 %v9545_v10  ;;  %8023 = vmatprep.subr.mxu1 %v14199_v3  ;;  %v9668_v30 = vld [vmem:[%s14194_s2 + $0xe8] sm:$0xff]  ;;  %v9681_v32 = vld [vmem:[%s14194_s2 + $0x50] sm:$0xff]  ;;  %v9700_v35 = vld [vmem:[%s14194_s2 + $0x38] sm:$0xff] }
   0xc   :  { %81 = vmatprep.subr.mxu0 %v9551_v11  ;;  %8024 = vmatpush3.msra.mxu1 %v9611_v21  ;;  %v9687_v33 = vld [vmem:[%s14194_s2 + $0xd0] sm:$0xff]  ;;  %v9693_v34 = vld [vmem:[%s14194_s2 + $0x48] sm:$0xff]  ;;  %v9706_v36 = vld [vmem:[%s14194_s2 + $0xb8] sm:$0xff] }
   0xd   :  { %82 = vmatpush1.msra.mxu0 %v9557_v12  ;;  %8025 = vmatprep.subr.mxu1 %v14199_v3  ;;  %v9712_v37 = vld [vmem:[%s14194_s2 + $0x30] sm:$0xff]  ;;  %v9719_v38 = vld [vmem:[%s14194_s2 + $0x20] sm:$0xff]  ;;  %v9731_v40 = vld [vmem:[%s14194_s2 + $0x18] sm:$0xff] }
   0xe   :  { %83 = vmatprep.subr.mxu0 %v9563_v13  ;;  %8026 = vmatpush3.msra.mxu1 %v9630_v24  ;;  %v9725_v39 = vld [vmem:[%s14194_s2 + $0xa0] sm:$0xff]  ;;  %v9738_v41 = vld [vmem:[%s14194_s2 + $0x8] sm:$0xff]  ;;  %v9763_v45 = vld [vmem:[%s14194_s2 + $0x70] sm:$0xff] }
   0xf   :  { %84 = vmatpush1.msra.mxu0 %v9574_v15  ;;  %8027 = vmatprep.subr.mxu1 %v14199_v3  ;;  %v9744_v42 = vld [vmem:[%s14194_s2 + $0x88] sm:$0xff]  ;;  %v9750_v43 = vld [vmem:[%s14194_s2] sm:$0xff]  ;;  %v9772_v46 = vld [vmem:[%s14194_s2 + $0x58] sm:$0xff] }
  0x10   :  { %85 = vmatprep.subr.mxu0 %v9586_v17  ;;  %8028 = vmatpush3.msra.mxu1 %v9649_v27  ;;  %14252 = vst [vmem:[#allocation3_spill] sm:$0xff] %v9750_v43  ;;  %v9757_v44 = vld [vmem:[%s14195_s1] sm:$0xff]  ;;  %v9789_v48 = vld [vmem:[%s14194_s2 + $0x28] sm:$0xff]  ;;  %v9798_v49 = vld [vmem:[%s14194_s2 + $0x10] sm:$0xff] }
  0x11   :  { %86 = vmatpush1.msra.mxu0 %v9598_v19  ;;  %8029 = vmatprep.subr.mxu1 %v14199_v3  ;;  %v9780_v47 = vld [vmem:[%s14194_s2 + $0x40] sm:$0xff]  ;;  %14253 = vst [vmem:[#allocation4_spill] sm:$0xff] %v9798_v49  ;;  %v21_v54 = vld [vmem:[%s14196_s0 + $0x8] sm:$0xff] }
  0x12   :  { %87 = vmatprep.subr.mxu0 %v9605_v20  ;;  %8030 = vmatpush3.msra.mxu1 %v9668_v30  ;;  %v20_v50 = vld [vmem:[%s14196_s0] sm:$0xff] }
  0x13   :  { %88 = vmatpush1.msra.mxu0 %v9617_v22  ;;  %8031 = vmatprep.subr.mxu1 %v14199_v3  ;;  %v9878_v63 = vld [vmem:[%s14197_s3] ss:$0 sm:$0xff] }
  0x14   :  { %89 = vmatprep.subr.mxu0 %v9624_v23  ;;  %8032 = vmatpush3.msra.mxu1 %v9687_v33 }
  0x15   :  { %90 = vmatpush1.msra.mxu0 %v9636_v25  ;;  %8033 = vmatprep.subr.mxu1 %v14199_v3 }
  0x16   :  { %91 = vmatprep.subr.mxu0 %v9643_v26  ;;  %8034 = vmatpush3.msra.mxu1 %v9706_v36 }
  0x17   :  { %92 = vmatpush1.msra.mxu0 %v9655_v28  ;;  %8035 = vmatprep.subr.mxu1 %v14199_v3 }
  0x18   :  { %93 = vmatprep.subr.mxu0 %v9662_v29  ;;  %8036 = vmatpush3.msra.mxu1 %v9725_v39 }
  0x19   :  { %94 = vmatpush1.msra.mxu0 %v9674_v31  ;;  %8037 = vmatprep.subr.mxu1 %v14199_v3 }
  0x1a   :  { %95 = vmatprep.subr.mxu0 %v9681_v32  ;;  %8038 = vmatpush3.msra.mxu1 %v9744_v42 }
  0x1b   :  { %96 = vmatpush1.msra.mxu0 %v9693_v34  ;;  %8039 = vmatprep.subr.mxu1 %v14199_v3 }
  0x1c   :  { %97 = vmatprep.subr.mxu0 %v9700_v35  ;;  %8040 = vmatpush3.msra.mxu1 %v9763_v45 }
  0x1d   :  { %98 = vmatpush1.msra.mxu0 %v9712_v37  ;;  %8041 = vmatprep.subr.mxu1 %v14199_v3 }
  0x1e   :  { %99 = vmatprep.subr.mxu0 %v9719_v38  ;;  %8042 = vmatpush3.msra.mxu1 %v9772_v46 }
  0x1f   :  { %100 = vmatpush1.msra.mxu0 %v9731_v40  ;;  %8043 = vmatprep.subr.mxu1 %v14199_v3 }
  0x20   :  { %101 = vmatprep.subr.mxu0 %v9738_v41  ;;  %8044 = vmatpush3.msra.mxu1 %v9780_v47 }
  0x21   :  { %102 = vmatpush1.msra.mxu0 %v9750_v43  ;;  %8045 = vmatprep.subr.mxu1 %v14199_v3 }
  0x22   :  { %136 = vmatmul.mubr.f32.vlgmr.msra.gmra.mxu0 %v9757_v44  ;;  %296 = vmatprep.subr.mxu0 %v9489_v0 }
  0x23   :  { %297 = vmatpush1.msra.mxu0 %v9494_v1  ;;  %8046 = vmatpush3.msra.mxu1 %v9789_v48 }
  0x24   :  { %298 = vmatprep.subr.mxu0 %v9499_v2  ;;  %8047 = vmatprep.subr.mxu1 %v14199_v3 }
  0x25   :  { %299 = vmatpush1.msra.mxu0 %v9507_v4  ;;  %8048 = vmatpush3.msra.mxu1 %v9798_v49 }
  0x26   :  { %300 = vmatprep.subr.mxu0 %v9515_v5  ;;  %8050 = vmatmul.mubr.f32.vlgmr.msra.gmra.mxu1 %v9757_v44 }
  0x27   :  { %301 = vmatpush1.msra.mxu0 %v9521_v6  ;;  %8052 = vmatprep.subr.mxu1 %v14199_v3 }
  0x28   :  { %302 = vmatprep.subr.mxu0 %v9527_v7  ;;  %8053 = vmatpush3.msra.mxu1 %v9568_v14 }
  0x29   :  { %303 = vmatpush1.msra.mxu0 %v9533_v8  ;;  %8054 = vmatprep.subr.mxu1 %v14199_v3 }
  0x2a   :  { %304 = vmatprep.subr.mxu0 %v9539_v9  ;;  %8055 = vmatpush3.msra.mxu1 %v9580_v16 }
  0x2b   :  { %305 = vmatpush1.msra.mxu0 %v9545_v10  ;;  %8056 = vmatprep.subr.mxu1 %v14199_v3 }
  0x2c   :  { %306 = vmatprep.subr.mxu0 %v9551_v11  ;;  %8057 = vmatpush3.msra.mxu1 %v9592_v18 }
  0x2d   :  { %307 = vmatpush1.msra.mxu0 %v9557_v12  ;;  %8058 = vmatprep.subr.mxu1 %v14199_v3 }
  0x2e   :  { %308 = vmatprep.subr.mxu0 %v9563_v13  ;;  %8059 = vmatpush3.msra.mxu1 %v9611_v21 }
  0x2f   :  { %309 = vmatpush1.msra.mxu0 %v9574_v15  ;;  %8060 = vmatprep.subr.mxu1 %v14199_v3 }
  0x30   :  { %310 = vmatprep.subr.mxu0 %v9586_v17  ;;  %8061 = vmatpush3.msra.mxu1 %v9630_v24 }
  0x31   :  { %311 = vmatpush1.msra.mxu0 %v9598_v19  ;;  %8062 = vmatprep.subr.mxu1 %v14199_v3 }
  0x32   :  { %312 = vmatprep.subr.mxu0 %v9605_v20  ;;  %8063 = vmatpush3.msra.mxu1 %v9649_v27 }
  0x33   :  { %313 = vmatpush1.msra.mxu0 %v9617_v22  ;;  %8064 = vmatprep.subr.mxu1 %v14199_v3 }
  0x34   :  { %314 = vmatprep.subr.mxu0 %v9624_v23  ;;  %8065 = vmatpush3.msra.mxu1 %v9668_v30 }
  0x35   :  { %315 = vmatpush1.msra.mxu0 %v9636_v25  ;;  %8066 = vmatprep.subr.mxu1 %v14199_v3 }
  0x36   :  { %316 = vmatprep.subr.mxu0 %v9643_v26  ;;  %8067 = vmatpush3.msra.mxu1 %v9687_v33 }
  0x37   :  { %317 = vmatpush1.msra.mxu0 %v9655_v28  ;;  %8068 = vmatprep.subr.mxu1 %v14199_v3 }
  0x38   :  { %318 = vmatprep.subr.mxu0 %v9662_v29  ;;  %8069 = vmatpush3.msra.mxu1 %v9706_v36 }
  0x39   :  { %319 = vmatpush1.msra.mxu0 %v9674_v31  ;;  %8070 = vmatprep.subr.mxu1 %v14199_v3 }
  0x3a   :  { %320 = vmatprep.subr.mxu0 %v9681_v32  ;;  %8071 = vmatpush3.msra.mxu1 %v9725_v39 }
  0x3b   :  { %321 = vmatpush1.msra.mxu0 %v9693_v34  ;;  %8072 = vmatprep.subr.mxu1 %v14199_v3 }
  0x3c   :  { %322 = vmatprep.subr.mxu0 %v9700_v35  ;;  %8073 = vmatpush3.msra.mxu1 %v9744_v42 }
  0x3d   :  { %323 = vmatpush1.msra.mxu0 %v9712_v37  ;;  %8074 = vmatprep.subr.mxu1 %v14199_v3 }
  0x3e   :  { %324 = vmatprep.subr.mxu0 %v9719_v38  ;;  %8075 = vmatpush3.msra.mxu1 %v9763_v45 }
  0x3f   :  { %325 = vmatpush1.msra.mxu0 %v9731_v40  ;;  %8076 = vmatprep.subr.mxu1 %v14199_v3 }
  0x40   :  { %326 = vmatprep.subr.mxu0 %v9738_v41  ;;  %8077 = vmatpush3.msra.mxu1 %v9772_v46 }
  0x41   :  { %327 = vmatpush1.msra.mxu0 %v9750_v43  ;;  %360 = vmatprep.mubr.f32.mxu0 %v14199_v3 }
  0x42   :  { %8078 = vmatprep.subr.mxu1 %v14199_v3  ;;  %8084 = vmatprep.mubr.msk.f32.mxu1 %vm9460_vm0, %v14199_v3 }
  0x43   :  { %8079 = vmatpush3.msra.mxu1 %v9780_v47  ;;  %522 = vmatprep.subr.mxu0 %v9489_v0 }
  0x44   :  { %8080 = vmatprep.subr.mxu1 %v14199_v3 }
  0x45   :  { %8081 = vmatpush3.msra.mxu1 %v9789_v48 }
  0x46   :  { %8082 = vmatprep.subr.mxu1 %v14199_v3 }
  0x47   :  { %8083 = vmatpush3.msra.mxu1 %v9798_v49 }
  0x48   :  { %8087 = vmatprep.subr.mxu1 %v14199_v3 }
  0xe2   :  { %v137_v51 = vpop.f32.mrf.mxu0 }
  0xe3   :  { %v212_v52 = vadd.f32 %v137_v51, %v20_v50 }
  0xe4   :  { %v139_v55 = vpop.f32.mrf.mxu0 }
  0xe5   :  { %v7253_v53 = vmul.f32 -1.442695, %v212_v52  ;;  %v219_v56 = vadd.f32 %v139_v55, %v21_v54 }
  0xe6   :  { %v208_v57 = vpop.f32.mrf.mxu1 }
  0xe7   :  { %9139 = vpow2.f32 %v7253_v53  ;;  %v7254_v58 = vmul.f32 -1.442695, %v219_v56  ;;  %v233_v51 = vadd.f32 %v9878_v63, %v208_v57  ;;  %v22_v53 = vld [vmem:[%s14196_s0 + $0x10] sm:$0xff]  ;;  %v14254_v57 = vmov 0.0  }
  0xe8   :  { %v8051_v59 = vpop.f32.mrf.mxu1 }
  0xe9   :  { %9141 = vpow2.f32 %v7254_v58 }
  0xf4   :  { %v9140_v60 = vpop.eup %9139 }
  0xf5   :  { %v216_v61 = vadd.f32 1.0, %v9140_v60 }
  0xf6   :  { %v9142_v62 = vpop.eup %9141 }
  0xf7   :  { %9143 = vrcp.f32 %v216_v61  ;;  %v223_v50 = vadd.f32 1.0, %v9142_v62 }
  0xf9   :  { %9145 = vrcp.f32 %v223_v50 }
 0x104   :  { %v9144_v52 = vpop.eup %9143 }
 0x105   :  { %v234_v54 = vmul.f32 %v9144_v52, %v233_v51 }
 0x106   :  { %v9146_v56 = vpop.eup %9145 }
 0x107   :  { %v235_v55 = vadd.f32 %v234_v54, %v22_v53  ;;  %v237_v58 = vsub.f32 1.0, %v9146_v56  ;;  %v239_v61 = vmul.f32 %v9146_v56, %v9757_v44  ;;  %v7256_v44 = vld [vmem:[%s14196_s0 + $0x18] sm:$0xff]  ;;  %v7257_v54 = vld [vmem:[%s14196_s0 + $0x20] sm:$0xff] }
 0x109   :  { %9147 = vtanh.f32 %v235_v55 }
 0x116   :  { %v9148_v59 = vpop.eup %9147 }
 0x117   :  { %v238_v60 = vmul.f32 %v9148_v59, %v237_v58 }
 0x119   :  { %v9885_v3 = vadd.f32 %v239_v61, %v238_v60 }
 0x11b   :  { %242 = vst [vmem:[%s14198_s4] sm:$0xff] %v9885_v3  ;;  %361 = vmatmul.mubr.f32.vlgmr.msra.gmra.mxu0 %v9885_v3  ;;  %8085 = vmatmul.mubr.f32.vlgmr.msra.gmra.mxu1 %v9885_v3 }
 0x11c   :  { %523 = vmatpush1.msra.mxu0 %v9494_v1  ;;  %8088 = vmatpush3.msra.mxu1 %v9568_v14 }
 0x11d   :  { %524 = vmatprep.subr.mxu0 %v9499_v2  ;;  %8089 = vmatprep.subr.mxu1 %v14254_v57 }
 0x11e   :  { %525 = vmatpush1.msra.mxu0 %v9507_v4  ;;  %8090 = vmatpush3.msra.mxu1 %v9580_v16 }
 0x11f   :  { %526 = vmatprep.subr.mxu0 %v9515_v5  ;;  %8091 = vmatprep.subr.mxu1 %v14254_v57 }
 0x120   :  { %527 = vmatpush1.msra.mxu0 %v9521_v6  ;;  %8092 = vmatpush3.msra.mxu1 %v9592_v18 }
 0x121   :  { %528 = vmatprep.subr.mxu0 %v9527_v7  ;;  %8093 = vmatprep.subr.mxu1 %v14254_v57 }
 0x122   :  { %529 = vmatpush1.msra.mxu0 %v9533_v8  ;;  %8094 = vmatpush3.msra.mxu1 %v9611_v21 }
 0x123   :  { %530 = vmatprep.subr.mxu0 %v9539_v9  ;;  %8095 = vmatprep.subr.mxu1 %v14254_v57 }
 0x124   :  { %531 = vmatpush1.msra.mxu0 %v9545_v10  ;;  %8096 = vmatpush3.msra.mxu1 %v9630_v24 }
 0x125   :  { %532 = vmatprep.subr.mxu0 %v9551_v11  ;;  %8097 = vmatprep.subr.mxu1 %v14254_v57 }
 0x126   :  { %533 = vmatpush1.msra.mxu0 %v9557_v12  ;;  %8098 = vmatpush3.msra.mxu1 %v9649_v27 }
 0x127   :  { %534 = vmatprep.subr.mxu0 %v9563_v13  ;;  %8099 = vmatprep.subr.mxu1 %v14254_v57 }
 0x128   :  { %535 = vmatpush1.msra.mxu0 %v9574_v15  ;;  %8100 = vmatpush3.msra.mxu1 %v9668_v30 }
 0x129   :  { %536 = vmatprep.subr.mxu0 %v9586_v17  ;;  %8101 = vmatprep.subr.mxu1 %v14254_v57 }
 0x12a   :  { %537 = vmatpush1.msra.mxu0 %v9598_v19  ;;  %8102 = vmatpush3.msra.mxu1 %v9687_v33 }
 0x12b   :  { %538 = vmatprep.subr.mxu0 %v9605_v20  ;;  %8103 = vmatprep.subr.mxu1 %v14254_v57 }
 0x12c   :  { %539 = vmatpush1.msra.mxu0 %v9617_v22  ;;  %8104 = vmatpush3.msra.mxu1 %v9706_v36 }
 0x12d   :  { %540 = vmatprep.subr.mxu0 %v9624_v23  ;;  %8105 = vmatprep.subr.mxu1 %v14254_v57 }
 0x12e   :  { %541 = vmatpush1.msra.mxu0 %v9636_v25  ;;  %8106 = vmatpush3.msra.mxu1 %v9725_v39 }
 0x12f   :  { %542 = vmatprep.subr.mxu0 %v9643_v26  ;;  %8107 = vmatprep.subr.mxu1 %v14254_v57 }
 0x130   :  { %543 = vmatpush1.msra.mxu0 %v9655_v28  ;;  %8108 = vmatpush3.msra.mxu1 %v9744_v42 }
 0x131   :  { %544 = vmatprep.subr.mxu0 %v9662_v29  ;;  %8109 = vmatprep.subr.mxu1 %v14254_v57 }
 0x132   :  { %545 = vmatpush1.msra.mxu0 %v9674_v31  ;;  %8110 = vmatpush3.msra.mxu1 %v9763_v45 }
 0x133   :  { %546 = vmatprep.subr.mxu0 %v9681_v32  ;;  %8111 = vmatprep.subr.mxu1 %v14254_v57 }
 0x134   :  { %547 = vmatpush1.msra.mxu0 %v9693_v34  ;;  %8112 = vmatpush3.msra.mxu1 %v9772_v46 }
 0x135   :  { %548 = vmatprep.subr.mxu0 %v9700_v35  ;;  %8113 = vmatprep.subr.mxu1 %v14254_v57 }
 0x136   :  { %549 = vmatpush1.msra.mxu0 %v9712_v37  ;;  %8114 = vmatpush3.msra.mxu1 %v9780_v47 }
 0x137   :  { %550 = vmatprep.subr.mxu0 %v9719_v38  ;;  %8115 = vmatprep.subr.mxu1 %v14254_v57 }
 0x138   :  { %551 = vmatpush1.msra.mxu0 %v9731_v40  ;;  %8116 = vmatpush3.msra.mxu1 %v9789_v48 }
 0x139   :  { %552 = vmatprep.subr.mxu0 %v9738_v41  ;;  %8117 = vmatprep.subr.mxu1 %v14254_v57 }
 0x13a   :  { %553 = vmatpush1.msra.mxu0 %v9750_v43  ;;  %586 = vmatprep.mubr.f32.mxu0 %v14254_v57 }
 0x13b   :  { %8118 = vmatpush3.msra.mxu1 %v9798_v49  ;;  %8119 = vmatprep.mubr.msk.f32.mxu1 %vm9460_vm0, %v14254_v57 }
 0x13c   :  { %748 = vmatprep.subr.mxu0 %v9489_v0  ;;  %8122 = vmatprep.subr.mxu1 %v14254_v57 }
 0x1db   :  { %v362_v62 = vpop.f32.mrf.mxu0  ;;  %v433_v50 = vpop.f32.mrf.mxu1 }
 0x1dc   :  { %v437_v51 = vadd.f32 %v7256_v44, %v362_v62  ;;  %v458_v49 = vadd.f32 %v9878_v63, %v433_v50  ;;  %v7258_v44 = vld [vmem:[%s14196_s0 + $0x28] sm:$0xff]  ;;  %v10204_v50 = vld [vmem:[%s14194_s2 + $0xc0] sm:$0xff] }
 0x1dd   :  { %v8086_v52 = vpop.f32.mrf.mxu1  ;;  %v364_v55 = vpop.f32.mrf.mxu0 }
 0x1de   :  { %v7259_v53 = vmul.f32 -1.442695, %v437_v51  ;;  %v444_v56 = vadd.f32 %v7257_v54, %v364_v55 }
 0x1e0   :  { %9149 = vpow2.f32 %v7259_v53  ;;  %v7260_v58 = vmul.f32 -1.442695, %v444_v56 }
 0x1e2   :  { %9151 = vpow2.f32 %v7260_v58 }
 0x1ed   :  { %v9150_v0 = vpop.eup %9149 }
 0x1ee   :  { %v441_v59 = vadd.f32 1.0, %v9150_v0  ;;  %v10209_v0 = vld [vmem:[%s14194_s2 + $0xd0] sm:$0xff] }
 0x1ef   :  { %v9152_v60 = vpop.eup %9151 }
 0x1f0   :  { %9153 = vrcp.f32 %v441_v59  ;;  %v448_v61 = vadd.f32 1.0, %v9152_v60  ;;  %v10214_v59 = vld [vmem:[%s14194_s2 + $0xb0] sm:$0xff]  ;;  %v10221_v60 = vld [vmem:[%s14194_s2 + $0xa8] sm:$0xff] }
 0x1f2   :  { %9155 = vrcp.f32 %v448_v61  ;;  %v10226_v61 = vld [vmem:[%s14194_s2 + $0xb8] sm:$0xff] }
 0x1fd   :  { %v9154_v43 = vpop.eup %9153 }
 0x1fe   :  { %v459_v62 = vmul.f32 %v9154_v43, %v458_v49  ;;  %v10166_v43 = vld [vmem:[%s14194_s2 + $0xf0] sm:$0xff]  ;;  %v10197_v49 = vld [vmem:[%s14194_s2 + $0xc8] sm:$0xff] }
 0x1ff   :  { %v9156_v52 = vpop.eup %9155 }
 0x200   :  { %v460_v51 = vadd.f32 %v7258_v44, %v459_v62  ;;  %v462_v53 = vsub.f32 1.0, %v9156_v52  ;;  %v464_v56 = vmul.f32 %v9156_v52, %v9885_v3  ;;  %v7263_v3 = vld [vmem:[%s14196_s0 + $0x30] sm:$0xff]  ;;  %v10231_v44 = vld [vmem:[%s14194_s2 + $0x98] sm:$0xff]  ;;  %v10250_v52 = vld [vmem:[%s14194_s2 + $0x80] sm:$0xff] }
 0x201   :  { %v10238_v62 = vld [vmem:[%s14194_s2 + $0x90] sm:$0xff] }
 0x202   :  { %9157 = vtanh.f32 %v460_v51  ;;  %v10243_v51 = vld [vmem:[%s14194_s2 + $0xa0] sm:$0xff] }
 0x20f   :  { %v9158_v54 = vpop.eup %9157 }
 0x210   :  { %v463_v55 = vmul.f32 %v9158_v54, %v462_v53  ;;  %v10257_v53 = vld [vmem:[%s14194_s2 + $0x78] sm:$0xff]  ;;  %v10262_v54 = vld [vmem:[%s14194_s2 + $0x88] sm:$0xff] }
 0x212   :  { %v9971_v58 = vadd.f32 %v464_v56, %v463_v55  ;;  %v10269_v55 = vld [vmem:[%s14194_s2 + $0x68] sm:$0xff]  ;;  %v10276_v56 = vld [vmem:[%s14194_s2 + $0x60] sm:$0xff] }
 0x214   :  { %7262 = vst [vmem:[%s14198_s4 + $0x8] sm:$0xff] %v9971_v58  ;;  %587 = vmatmul.mubr.f32.vlgmr.msra.gmra.mxu0 %v9971_v58  ;;  %8120 = vmatmul.mubr.f32.vlgmr.msra.gmra.mxu1 %v9971_v58 }
 0x215   :  { %749 = vmatpush1.msra.mxu0 %v9494_v1  ;;  %8123 = vmatpush3.msra.mxu1 %v9568_v14  ;;  %v14255_v1 = vld [vmem:[#allocation3_spill] sm:$0xff] }
 0x216   :  { %750 = vmatprep.subr.mxu0 %v9499_v2  ;;  %8124 = vmatprep.subr.mxu1 %v14254_v57  ;;  %v14256_v2 = vld [vmem:[#allocation4_spill] sm:$0xff] }
 0x217   :  { %751 = vmatpush1.msra.mxu0 %v9507_v4  ;;  %8125 = vmatpush3.msra.mxu1 %v9580_v16 }
 0x218   :  { %752 = vmatprep.subr.mxu0 %v9515_v5  ;;  %8126 = vmatprep.subr.mxu1 %v14254_v57 }
 0x219   :  { %753 = vmatpush1.msra.mxu0 %v9521_v6  ;;  %8127 = vmatpush3.msra.mxu1 %v9592_v18 }
 0x21a   :  { %754 = vmatprep.subr.mxu0 %v9527_v7  ;;  %8128 = vmatprep.subr.mxu1 %v14254_v57 }
 0x21b   :  { %755 = vmatpush1.msra.mxu0 %v9533_v8  ;;  %8129 = vmatpush3.msra.mxu1 %v9611_v21 }
 0x21c   :  { %756 = vmatprep.subr.mxu0 %v9539_v9  ;;  %8130 = vmatprep.subr.mxu1 %v14254_v57  ;;  %v7264_v9 = vld [vmem:[%s14196_s0 + $0x38] sm:$0xff] }
 0x21d   :  { %757 = vmatpush1.msra.mxu0 %v9545_v10  ;;  %8131 = vmatpush3.msra.mxu1 %v9630_v24 }
 0x21e   :  { %758 = vmatprep.subr.mxu0 %v9551_v11  ;;  %8132 = vmatprep.subr.mxu1 %v14254_v57 }
 0x21f   :  { %759 = vmatpush1.msra.mxu0 %v9557_v12  ;;  %8133 = vmatpush3.msra.mxu1 %v9649_v27 }
 0x220   :  { %760 = vmatprep.subr.mxu0 %v9563_v13  ;;  %8134 = vmatprep.subr.mxu1 %v14254_v57 }
 0x221   :  { %761 = vmatpush1.msra.mxu0 %v9574_v15  ;;  %8135 = vmatpush3.msra.mxu1 %v9668_v30  ;;  %v10078_v30 = vld [vmem:[%s14194_s2 + $0x168] sm:$0xff] }
 0x222   :  { %762 = vmatprep.subr.mxu0 %v9586_v17  ;;  %8136 = vmatprep.subr.mxu1 %v14254_v57 }
 0x223   :  { %763 = vmatpush1.msra.mxu0 %v9598_v19  ;;  %8137 = vmatpush3.msra.mxu1 %v9687_v33  ;;  %v10102_v33 = vld [vmem:[%s14194_s2 + $0x140] sm:$0xff] }
 0x224   :  { %764 = vmatprep.subr.mxu0 %v9605_v20  ;;  %8138 = vmatprep.subr.mxu1 %v14254_v57  ;;  %v7265_v20 = vld [vmem:[%s14196_s0 + $0x40] sm:$0xff] }
 0x225   :  { %765 = vmatpush1.msra.mxu0 %v9617_v22  ;;  %8139 = vmatpush3.msra.mxu1 %v9706_v36  ;;  %v10121_v36 = vld [vmem:[%s14194_s2 + $0x128] sm:$0xff] }
 0x226   :  { %766 = vmatprep.subr.mxu0 %v9624_v23  ;;  %8140 = vmatprep.subr.mxu1 %v14254_v57 }
 0x227   :  { %767 = vmatpush1.msra.mxu0 %v9636_v25  ;;  %8141 = vmatpush3.msra.mxu1 %v9725_v39  ;;  %v10140_v39 = vld [vmem:[%s14194_s2 + $0x110] sm:$0xff] }
 0x228   :  { %768 = vmatprep.subr.mxu0 %v9643_v26  ;;  %8142 = vmatprep.subr.mxu1 %v14254_v57 }
 0x229   :  { %769 = vmatpush1.msra.mxu0 %v9655_v28  ;;  %8143 = vmatpush3.msra.mxu1 %v9744_v42  ;;  %v10159_v42 = vld [vmem:[%s14194_s2 + $0xf8] sm:$0xff] }
 0x22a   :  { %770 = vmatprep.subr.mxu0 %v9662_v29  ;;  %8144 = vmatprep.subr.mxu1 %v14254_v57  ;;  %v10072_v29 = vld [vmem:[%s14194_s2 + $0x170] sm:$0xff] }
 0x22b   :  { %771 = vmatpush1.msra.mxu0 %v9674_v31  ;;  %8145 = vmatpush3.msra.mxu1 %v9763_v45  ;;  %14257 = vst [vmem:[#allocation3_spill] sm:$0xff] %v10072_v29  ;;  %v10090_v31 = vld [vmem:[%s14194_s2 + $0x150] sm:$0xff]  ;;  %v10171_v45 = vld [vmem:[%s14194_s2 + $0x100] sm:$0xff] }
 0x22c   :  { %772 = vmatprep.subr.mxu0 %v9681_v32  ;;  %8146 = vmatprep.subr.mxu1 %v14254_v57  ;;  %v10095_v32 = vld [vmem:[%s14194_s2 + $0x160] sm:$0xff] }
 0x22d   :  { %773 = vmatpush1.msra.mxu0 %v9693_v34  ;;  %8147 = vmatpush3.msra.mxu1 %v9772_v46  ;;  %v10109_v34 = vld [vmem:[%s14194_s2 + $0x138] sm:$0xff]  ;;  %v10178_v46 = vld [vmem:[%s14194_s2 + $0xe0] sm:$0xff] }
 0x22e   :  { %774 = vmatprep.subr.mxu0 %v9700_v35  ;;  %8148 = vmatprep.subr.mxu1 %v14254_v57  ;;  %v10114_v35 = vld [vmem:[%s14194_s2 + $0x148] sm:$0xff] }
 0x22f   :  { %775 = vmatpush1.msra.mxu0 %v9712_v37  ;;  %8149 = vmatpush3.msra.mxu1 %v9780_v47  ;;  %v10128_v37 = vld [vmem:[%s14194_s2 + $0x120] sm:$0xff]  ;;  %v10185_v47 = vld [vmem:[%s14194_s2 + $0xd8] sm:$0xff] }
 0x230   :  { %776 = vmatprep.subr.mxu0 %v9719_v38  ;;  %8150 = vmatprep.subr.mxu1 %v14254_v57  ;;  %v10133_v38 = vld [vmem:[%s14194_s2 + $0x130] sm:$0xff] }
 0x231   :  { %777 = vmatpush1.msra.mxu0 %v9731_v40  ;;  %8151 = vmatpush3.msra.mxu1 %v9789_v48  ;;  %v10147_v40 = vld [vmem:[%s14194_s2 + $0x108] sm:$0xff] }
 0x232   :  { %778 = vmatprep.subr.mxu0 %v9738_v41  ;;  %8152 = vmatprep.subr.mxu1 %v14254_v57  ;;  %v10152_v41 = vld [vmem:[%s14194_s2 + $0x118] sm:$0xff]  ;;  %v10190_v48 = vld [vmem:[%s14194_s2 + $0xe8] sm:$0xff] }
 0x233   :  { %779 = vmatpush1.msra.mxu0 %v14255_v1  ;;  %812 = vmatprep.mubr.f32.mxu0 %v14254_v57  ;;  %v10288_v1 = vld [vmem:[%s14194_s2 + $0x50] sm:$0xff] }
 0x234   :  { %8153 = vmatpush3.msra.mxu1 %v14256_v2  ;;  %8154 = vmatprep.mubr.msk.f32.mxu1 %vm9460_vm0, %v14254_v57  ;;  %v10295_v2 = vld [vmem:[%s14194_s2 + $0x48] sm:$0xff] }
 0x235   :  { %8157 = vmatprep.subr.mxu1 %v14254_v57  ;;  %974 = vmatprep.subr.mxu0 %v10072_v29 }
 0x2d4   :  { %v588_v4 = vpop.f32.mrf.mxu0  ;;  %v659_v5 = vpop.f32.mrf.mxu1 }
 0x2d5   :  { %v663_v6 = vadd.f32 %v7263_v3, %v588_v4  ;;  %v684_v18 = vadd.f32 %v9878_v63, %v659_v5  ;;  %v10300_v3 = vld [vmem:[%s14194_s2 + $0x58] sm:$0xff]  ;;  %v10314_v5 = vld [vmem:[%s14194_s2 + $0x30] sm:$0xff] }
 0x2d6   :  { %v8121_v7 = vpop.f32.mrf.mxu1  ;;  %v590_v10 = vpop.f32.mrf.mxu0  ;;  %v10307_v4 = vld [vmem:[%s14194_s2 + $0x38] sm:$0xff] }
 0x2d7   :  { %v7266_v8 = vmul.f32 -1.442695, %v663_v6  ;;  %v670_v11 = vadd.f32 %v7264_v9, %v590_v10  ;;  %v10319_v6 = vld [vmem:[%s14194_s2 + $0x40] sm:$0xff]  ;;  %v10338_v9 = vld [vmem:[%s14194_s2 + $0x28] sm:$0xff] }
 0x2d8   :  { %v10326_v7 = vld [vmem:[%s14194_s2 + $0x20] sm:$0xff]  ;;  %14258 = vst [vmem:[#allocation4_spill] sm:$0xff] %v10338_v9  ;;  %v10345_v10 = vld [vmem:[%s14194_s2 + $0x8] sm:$0xff] }
 0x2d9   :  { %9159 = vpow2.f32 %v7266_v8  ;;  %v7267_v12 = vmul.f32 -1.442695, %v670_v11  ;;  %v10333_v8 = vld [vmem:[%s14194_s2 + $0x18] sm:$0xff]  ;;  %v10352_v11 = vld [vmem:[%s14194_s2] sm:$0xff] }
 0x2da   :  { %14259 = vst [vmem:[#allocation5_spill] sm:$0xff] %v10352_v11 }
 0x2db   :  { %9161 = vpow2.f32 %v7267_v12  ;;  %v10357_v12 = vld [vmem:[%s14194_s2 + $0x10] sm:$0xff] }
 0x2dc   :  { %14260 = vst [vmem:[#allocation6_spill] sm:$0xff] %v10357_v12 }
 0x2e6   :  { %v9160_v13 = vpop.eup %9159 }
 0x2e7   :  { %v667_v15 = vadd.f32 1.0, %v9160_v13  ;;  %v7270_v13 = vld [vmem:[%s14196_s0 + $0x48] sm:$0xff] }
 0x2e8   :  { %v9162_v16 = vpop.eup %9161 }
 0x2e9   :  { %9163 = vrcp.f32 %v667_v15  ;;  %v674_v17 = vadd.f32 1.0, %v9162_v16 }
 0x2eb   :  { %9165 = vrcp.f32 %v674_v17 }
 0x2f6   :  { %v9164_v19 = vpop.eup %9163 }
 0x2f7   :  { %v685_v21 = vmul.f32 %v9164_v19, %v684_v18 }
 0x2f8   :  { %v9166_v23 = vpop.eup %9165 }
 0x2f9   :  { %v686_v22 = vadd.f32 %v7265_v20, %v685_v21  ;;  %v688_v24 = vsub.f32 1.0, %v9166_v23  ;;  %v690_v27 = vmul.f32 %v9166_v23, %v9971_v58  ;;  %v10281_v58 = vld [vmem:[%s14194_s2 + $0x70] sm:$0xff] }
 0x2fa   :  { %v7271_v20 = vld [vmem:[%s14196_s0 + $0x50] sm:$0xff] }
 0x2fb   :  { %9167 = vtanh.f32 %v686_v22 }
 0x308   :  { %v9168_v25 = vpop.eup %9167 }
 0x309   :  { %v689_v26 = vmul.f32 %v9168_v25, %v688_v24 }
 0x30b   :  { %v10056_v28 = vadd.f32 %v690_v27, %v689_v26 }
 0x30d   :  { %7269 = vst [vmem:[%s14198_s4 + $0x10] sm:$0xff] %v10056_v28  ;;  %813 = vmatmul.mubr.f32.vlgmr.msra.gmra.mxu0 %v10056_v28  ;;  %8155 = vmatmul.mubr.f32.vlgmr.msra.gmra.mxu1 %v10056_v28 }
 0x30e   :  { %8158 = vmatpush3.msra.mxu1 %v9568_v14  ;;  %1038 = vmatprep.mubr.f32.mxu0 %v14254_v57  ;;  %v10084_v14 = vld [vmem:[%s14194_s2 + $0x158] sm:$0xff] }
 0x30f   :  { %8159 = vmatprep.subr.mxu1 %v14254_v57  ;;  %8189 = vmatprep.mubr.msk.f32.mxu1 %vm9460_vm0, %v14254_v57 }
 0x310   :  { %975 = vmatpush1.msra.mxu0 %v10078_v30  ;;  %8160 = vmatpush3.msra.mxu1 %v10095_v32 }
 0x311   :  { %976 = vmatprep.subr.mxu0 %v10084_v14  ;;  %8161 = vmatprep.subr.mxu1 %v14254_v57 }
 0x312   :  { %977 = vmatpush1.msra.mxu0 %v10090_v31  ;;  %8162 = vmatpush3.msra.mxu1 %v10114_v35 }
 0x313   :  { %978 = vmatprep.subr.mxu0 %v10102_v33  ;;  %8163 = vmatprep.subr.mxu1 %v14254_v57 }
 0x314   :  { %979 = vmatpush1.msra.mxu0 %v10109_v34  ;;  %8164 = vmatpush3.msra.mxu1 %v10133_v38 }
 0x315   :  { %980 = vmatprep.subr.mxu0 %v10121_v36  ;;  %8165 = vmatprep.subr.mxu1 %v14254_v57 }
 0x316   :  { %981 = vmatpush1.msra.mxu0 %v10128_v37  ;;  %8166 = vmatpush3.msra.mxu1 %v10152_v41 }
 0x317   :  { %982 = vmatprep.subr.mxu0 %v10140_v39  ;;  %8167 = vmatprep.subr.mxu1 %v14254_v57 }
 0x318   :  { %983 = vmatpush1.msra.mxu0 %v10147_v40  ;;  %8168 = vmatpush3.msra.mxu1 %v10171_v45 }
 0x319   :  { %984 = vmatprep.subr.mxu0 %v10159_v42  ;;  %8169 = vmatprep.subr.mxu1 %v14254_v57 }
 0x31a   :  { %985 = vmatpush1.msra.mxu0 %v10166_v43  ;;  %8170 = vmatpush3.msra.mxu1 %v10190_v48 }
 0x31b   :  { %986 = vmatprep.subr.mxu0 %v10178_v46  ;;  %8171 = vmatprep.subr.mxu1 %v14254_v57 }
 0x31c   :  { %987 = vmatpush1.msra.mxu0 %v10185_v47  ;;  %8172 = vmatpush3.msra.mxu1 %v10209_v0 }
 0x31d   :  { %988 = vmatprep.subr.mxu0 %v10197_v49  ;;  %8173 = vmatprep.subr.mxu1 %v14254_v57 }
 0x31e   :  { %989 = vmatpush1.msra.mxu0 %v10204_v50  ;;  %8174 = vmatpush3.msra.mxu1 %v10226_v61 }
 0x31f   :  { %990 = vmatprep.subr.mxu0 %v10214_v59  ;;  %8175 = vmatprep.subr.mxu1 %v14254_v57 }
 0x320   :  { %991 = vmatpush1.msra.mxu0 %v10221_v60  ;;  %8176 = vmatpush3.msra.mxu1 %v10243_v51 }
 0x321   :  { %992 = vmatprep.subr.mxu0 %v10231_v44  ;;  %8177 = vmatprep.subr.mxu1 %v14254_v57 }
 0x322   :  { %993 = vmatpush1.msra.mxu0 %v10238_v62  ;;  %8178 = vmatpush3.msra.mxu1 %v10262_v54 }
 0x323   :  { %994 = vmatprep.subr.mxu0 %v10250_v52  ;;  %8179 = vmatprep.subr.mxu1 %v14254_v57 }
 0x324   :  { %995 = vmatpush1.msra.mxu0 %v10257_v53  ;;  %8180 = vmatpush3.msra.mxu1 %v10281_v58 }
 0x325   :  { %996 = vmatprep.subr.mxu0 %v10269_v55  ;;  %8181 = vmatprep.subr.mxu1 %v14254_v57 }
 0x326   :  { %997 = vmatpush1.msra.mxu0 %v10276_v56  ;;  %8182 = vmatpush3.msra.mxu1 %v10300_v3 }
 0x327   :  { %998 = vmatprep.subr.mxu0 %v10288_v1  ;;  %8183 = vmatprep.subr.mxu1 %v14254_v57 }
 0x328   :  { %999 = vmatpush1.msra.mxu0 %v10295_v2  ;;  %8184 = vmatpush3.msra.mxu1 %v10319_v6 }
 0x329   :  { %1000 = vmatprep.subr.mxu0 %v10307_v4  ;;  %8185 = vmatprep.subr.mxu1 %v14254_v57 }
 0x32a   :  { %1001 = vmatpush1.msra.mxu0 %v10314_v5  ;;  %8186 = vmatpush3.msra.mxu1 %v10338_v9 }
 0x32b   :  { %1002 = vmatprep.subr.mxu0 %v10326_v7  ;;  %8187 = vmatprep.subr.mxu1 %v14254_v57 }
 0x32c   :  { %1003 = vmatpush1.msra.mxu0 %v10333_v8  ;;  %8188 = vmatpush3.msra.mxu1 %v10357_v12 }
 0x32d   :  { %1004 = vmatprep.subr.mxu0 %v10345_v10  ;;  %8192 = vmatprep.subr.mxu1 %v14254_v57 }
 0x32e   :  { %1005 = vmatpush1.msra.mxu0 %v10352_v11 }
 0x32f   :  { %1200 = vmatprep.subr.mxu0 %v10072_v29 }
 0x3cd   :  { %v814_v15 = vpop.f32.mrf.mxu0  ;;  %v885_v16 = vpop.f32.mrf.mxu1 }
 0x3ce   :  { %v889_v17 = vadd.f32 %v7270_v13, %v814_v15  ;;  %v910_v12 = vadd.f32 %v9878_v63, %v885_v16  ;;  %v7272_v13 = vld [vmem:[%s14196_s0 + $0x58] sm:$0xff] }
 0x3cf   :  { %v8156_v18 = vpop.f32.mrf.mxu1  ;;  %v816_v21 = vpop.f32.mrf.mxu0  ;;  %v10424_v63 = vld [vmem:[%s14194_s2 + $0x178] sm:$0xff] }
 0x3d0   :  { %v7273_v19 = vmul.f32 -1.442695, %v889_v17  ;;  %v896_v22 = vadd.f32 %v7271_v20, %v816_v21 }
 0x3d2   :  { %9169 = vpow2.f32 %v7273_v19  ;;  %v7274_v23 = vmul.f32 -1.442695, %v896_v22 }
 0x3d4   :  { %9171 = vpow2.f32 %v7274_v23 }
 0x3df   :  { %v9170_v24 = vpop.eup %9169 }
 0x3e0   :  { %v893_v25 = vadd.f32 1.0, %v9170_v24 }
 0x3e1   :  { %v9172_v26 = vpop.eup %9171 }
 0x3e2   :  { %9173 = vrcp.f32 %v893_v25  ;;  %v900_v27 = vadd.f32 1.0, %v9172_v26 }
 0x3e4   :  { %9175 = vrcp.f32 %v900_v27 }
 0x3ef   :  { %v9174_v9 = vpop.eup %9173 }
 0x3f0   :  { %v911_v15 = vmul.f32 %v9174_v9, %v910_v12  ;;  %v14262_v9 = vld [vmem:[#allocation6_spill] sm:$0xff]  ;;  %v7277_v12 = vld [vmem:[%s14196_s0 + $0x60] sm:$0xff] }
 0x3f1   :  { %v9176_v18 = vpop.eup %9175 }
 0x3f2   :  { %v912_v17 = vadd.f32 %v7272_v13, %v911_v15  ;;  %v914_v19 = vsub.f32 1.0, %v9176_v18  ;;  %v916_v22 = vmul.f32 %v9176_v18, %v10056_v28  ;;  %v14261_v28 = vld [vmem:[#allocation4_spill] sm:$0xff] }
 0x3f3   :  { %v7278_v13 = vld [vmem:[%s14196_s0 + $0x68] sm:$0xff] }
 0x3f4   :  { %9177 = vtanh.f32 %v912_v17 }
 0x401   :  { %v9178_v20 = vpop.eup %9177 }
 0x402   :  { %v915_v21 = vmul.f32 %v9178_v20, %v914_v19 }
 0x404   :  { %v10378_v23 = vadd.f32 %v916_v22, %v915_v21  ;;  %v10467_v22 = vld [vmem:[%s14197_s3] ss:$0 sm:$0xff] }
 0x406   :  { %7276 = vst [vmem:[%s14198_s4 + $0x18] sm:$0xff] %v10378_v23  ;;  %1039 = vmatmul.mubr.f32.vlgmr.msra.gmra.mxu0 %v10378_v23  ;;  %8190 = vmatmul.mubr.f32.vlgmr.msra.gmra.mxu1 %v10378_v23 }
 0x407   :  { %1201 = vmatpush1.msra.mxu0 %v10078_v30  ;;  %1264 = vmatprep.mubr.f32.mxu0 %v14254_v57 }
 0x408   :  { %1202 = vmatprep.subr.mxu0 %v10084_v14  ;;  %8224 = vmatprep.mubr.msk.f32.mxu1 %vm9460_vm0, %v14254_v57 }
 0x409   :  { %1203 = vmatpush1.msra.mxu0 %v10090_v31  ;;  %8193 = vmatpush3.msra.mxu1 %v10424_v63 }
 0x40a   :  { %1204 = vmatprep.subr.mxu0 %v10102_v33  ;;  %8194 = vmatprep.subr.mxu1 %v14254_v57 }
 0x40b   :  { %1205 = vmatpush1.msra.mxu0 %v10109_v34  ;;  %8195 = vmatpush3.msra.mxu1 %v10095_v32 }
 0x40c   :  { %1206 = vmatprep.subr.mxu0 %v10121_v36  ;;  %8196 = vmatprep.subr.mxu1 %v14254_v57 }
 0x40d   :  { %1207 = vmatpush1.msra.mxu0 %v10128_v37  ;;  %8197 = vmatpush3.msra.mxu1 %v10114_v35 }
 0x40e   :  { %1208 = vmatprep.subr.mxu0 %v10140_v39  ;;  %8198 = vmatprep.subr.mxu1 %v14254_v57 }
 0x40f   :  { %1209 = vmatpush1.msra.mxu0 %v10147_v40  ;;  %8199 = vmatpush3.msra.mxu1 %v10133_v38 }
 0x410   :  { %1210 = vmatprep.subr.mxu0 %v10159_v42  ;;  %8200 = vmatprep.subr.mxu1 %v14254_v57 }
 0x411   :  { %1211 = vmatpush1.msra.mxu0 %v10166_v43  ;;  %8201 = vmatpush3.msra.mxu1 %v10152_v41 }
 0x412   :  { %1212 = vmatprep.subr.mxu0 %v10178_v46  ;;  %8202 = vmatprep.subr.mxu1 %v14254_v57 }
 0x413   :  { %1213 = vmatpush1.msra.mxu0 %v10185_v47  ;;  %8203 = vmatpush3.msra.mxu1 %v10171_v45 }
 0x414   :  { %1214 = vmatprep.subr.mxu0 %v10197_v49  ;;  %8204 = vmatprep.subr.mxu1 %v14254_v57 }
 0x415   :  { %1215 = vmatpush1.msra.mxu0 %v10204_v50  ;;  %8205 = vmatpush3.msra.mxu1 %v10190_v48 }
 0x416   :  { %1216 = vmatprep.subr.mxu0 %v10214_v59  ;;  %8206 = vmatprep.subr.mxu1 %v14254_v57 }
 0x417   :  { %1217 = vmatpush1.msra.mxu0 %v10221_v60  ;;  %8207 = vmatpush3.msra.mxu1 %v10209_v0 }
 0x418   :  { %1218 = vmatprep.subr.mxu0 %v10231_v44  ;;  %8208 = vmatprep.subr.mxu1 %v14254_v57 }
 0x419   :  { %1219 = vmatpush1.msra.mxu0 %v10238_v62  ;;  %8209 = vmatpush3.msra.mxu1 %v10226_v61 }
 0x41a   :  { %1220 = vmatprep.subr.mxu0 %v10250_v52  ;;  %8210 = vmatprep.subr.mxu1 %v14254_v57 }
 0x41b   :  { %1221 = vmatpush1.msra.mxu0 %v10257_v53  ;;  %8211 = vmatpush3.msra.mxu1 %v10243_v51 }
 0x41c   :  { %1222 = vmatprep.subr.mxu0 %v10269_v55  ;;  %8212 = vmatprep.subr.mxu1 %v14254_v57 }
 0x41d   :  { %1223 = vmatpush1.msra.mxu0 %v10276_v56  ;;  %8213 = vmatpush3.msra.mxu1 %v10262_v54 }
 0x41e   :  { %1224 = vmatprep.subr.mxu0 %v10288_v1  ;;  %8214 = vmatprep.subr.mxu1 %v14254_v57 }
 0x41f   :  { %1225 = vmatpush1.msra.mxu0 %v10295_v2  ;;  %8215 = vmatpush3.msra.mxu1 %v10281_v58 }
 0x420   :  { %1226 = vmatprep.subr.mxu0 %v10307_v4  ;;  %8216 = vmatprep.subr.mxu1 %v14254_v57 }
 0x421   :  { %1227 = vmatpush1.msra.mxu0 %v10314_v5  ;;  %8217 = vmatpush3.msra.mxu1 %v10300_v3 }
 0x422   :  { %1228 = vmatprep.subr.mxu0 %v10326_v7  ;;  %8218 = vmatprep.subr.mxu1 %v14254_v57 }
 0x423   :  { %1229 = vmatpush1.msra.mxu0 %v10333_v8  ;;  %8219 = vmatpush3.msra.mxu1 %v10319_v6 }
 0x424   :  { %1230 = vmatprep.subr.mxu0 %v10345_v10  ;;  %8220 = vmatprep.subr.mxu1 %v14254_v57 }
 0x425   :  { %1231 = vmatpush1.msra.mxu0 %v10352_v11  ;;  %8221 = vmatpush3.msra.mxu1 %v14261_v28 }
 0x426   :  { %1426 = vmatprep.subr.mxu0 %v10072_v29  ;;  %8222 = vmatprep.subr.mxu1 %v14254_v57 }
 0x427   :  { %8223 = vmatpush3.msra.mxu1 %v14262_v9 }
 0x428   :  { %8227 = vmatprep.subr.mxu1 %v14254_v57 }
 0x4c6   :  { %v1040_v16 = vpop.f32.mrf.mxu0  ;;  %v1111_v24 = vpop.f32.mrf.mxu1 }
 0x4c7   :  { %v1115_v25 = vadd.f32 %v7277_v12, %v1040_v16  ;;  %v1136_v16 = vadd.f32 %v10467_v22, %v1111_v24  ;;  %v7284_v24 = vld [vmem:[%s14196_s0 + $0x78] sm:$0xff] }
 0x4c8   :  { %v8191_v26 = vpop.f32.mrf.mxu1  ;;  %v1042_v15 = vpop.f32.mrf.mxu0 }
 0x4c9   :  { %v7280_v27 = vmul.f32 -1.442695, %v1115_v25  ;;  %v1122_v17 = vadd.f32 %v7278_v13, %v1042_v15  ;;  %v7279_v26 = vld [vmem:[%s14196_s0 + $0x70] sm:$0xff] }
 0x4cb   :  { %9179 = vpow2.f32 %v7280_v27  ;;  %v7281_v18 = vmul.f32 -1.442695, %v1122_v17 }
 0x4cd   :  { %9181 = vpow2.f32 %v7281_v18 }
 0x4d8   :  { %v9180_v19 = vpop.eup %9179 }
 0x4d9   :  { %v1119_v20 = vadd.f32 1.0, %v9180_v19 }
 0x4da   :  { %v9182_v21 = vpop.eup %9181 }
 0x4db   :  { %9183 = vrcp.f32 %v1119_v20  ;;  %v1126_v12 = vadd.f32 1.0, %v9182_v21 }
 0x4dd   :  { %9185 = vrcp.f32 %v1126_v12 }
 0x4e8   :  { %v9184_v25 = vpop.eup %9183 }
 0x4e9   :  { %v1137_v27 = vmul.f32 %v9184_v25, %v1136_v16 }
 0x4ea   :  { %v9186_v15 = vpop.eup %9185 }
 0x4eb   :  { %v1138_v13 = vadd.f32 %v7279_v26, %v1137_v27  ;;  %v1140_v17 = vsub.f32 1.0, %v9186_v15  ;;  %v1142_v20 = vmul.f32 %v9186_v15, %v10378_v23  ;;  %v14263_v23 = vld [vmem:[#allocation3_spill] sm:$0xff] }
 0x4ec   :  { %v7285_v27 = vld [vmem:[%s14196_s0 + $0x80] sm:$0xff] }
 0x4ed   :  { %9187 = vtanh.f32 %v1138_v13 }
 0x4fa   :  { %v9188_v18 = vpop.eup %9187 }
 0x4fb   :  { %v1141_v19 = vmul.f32 %v9188_v18, %v1140_v17 }
 0x4fd   :  { %v10474_v29 = vadd.f32 %v1142_v20, %v1141_v19 }
 0x4ff   :  { %7283 = vst [vmem:[%s14198_s4 + $0x20] sm:$0xff] %v10474_v29  ;;  %1265 = vmatmul.mubr.f32.vlgmr.msra.gmra.mxu0 %v10474_v29  ;;  %8225 = vmatmul.mubr.f32.vlgmr.msra.gmra.mxu1 %v10474_v29 }
 0x500   :  { %1427 = vmatpush1.msra.mxu0 %v10078_v30  ;;  %8228 = vmatpush3.msra.mxu1 %v10424_v63 }
 0x501   :  { %1428 = vmatprep.subr.mxu0 %v10084_v14  ;;  %8229 = vmatprep.subr.mxu1 %v14254_v57 }
 0x502   :  { %1429 = vmatpush1.msra.mxu0 %v10090_v31  ;;  %8230 = vmatpush3.msra.mxu1 %v10095_v32 }
 0x503   :  { %1430 = vmatprep.subr.mxu0 %v10102_v33  ;;  %8231 = vmatprep.subr.mxu1 %v14254_v57 }
 0x504   :  { %1431 = vmatpush1.msra.mxu0 %v10109_v34  ;;  %8232 = vmatpush3.msra.mxu1 %v10114_v35 }
 0x505   :  { %1432 = vmatprep.subr.mxu0 %v10121_v36  ;;  %8233 = vmatprep.subr.mxu1 %v14254_v57 }
 0x506   :  { %1433 = vmatpush1.msra.mxu0 %v10128_v37  ;;  %8234 = vmatpush3.msra.mxu1 %v10133_v38 }
 0x507   :  { %1434 = vmatprep.subr.mxu0 %v10140_v39  ;;  %8235 = vmatprep.subr.mxu1 %v14254_v57 }
 0x508   :  { %1435 = vmatpush1.msra.mxu0 %v10147_v40  ;;  %8236 = vmatpush3.msra.mxu1 %v10152_v41 }
 0x509   :  { %1436 = vmatprep.subr.mxu0 %v10159_v42  ;;  %8237 = vmatprep.subr.mxu1 %v14254_v57 }
 0x50a   :  { %1437 = vmatpush1.msra.mxu0 %v10166_v43  ;;  %8238 = vmatpush3.msra.mxu1 %v10171_v45 }
 0x50b   :  { %1438 = vmatprep.subr.mxu0 %v10178_v46  ;;  %8239 = vmatprep.subr.mxu1 %v14254_v57 }
 0x50c   :  { %1439 = vmatpush1.msra.mxu0 %v10185_v47  ;;  %8240 = vmatpush3.msra.mxu1 %v10190_v48 }
 0x50d   :  { %1440 = vmatprep.subr.mxu0 %v10197_v49  ;;  %8241 = vmatprep.subr.mxu1 %v14254_v57 }
 0x50e   :  { %1441 = vmatpush1.msra.mxu0 %v10204_v50  ;;  %8242 = vmatpush3.msra.mxu1 %v10209_v0 }
 0x50f   :  { %1442 = vmatprep.subr.mxu0 %v10214_v59  ;;  %8243 = vmatprep.subr.mxu1 %v14254_v57 }
 0x510   :  { %1443 = vmatpush1.msra.mxu0 %v10221_v60  ;;  %8244 = vmatpush3.msra.mxu1 %v10226_v61 }
 0x511   :  { %1444 = vmatprep.subr.mxu0 %v10231_v44  ;;  %8245 = vmatprep.subr.mxu1 %v14254_v57 }
 0x512   :  { %1445 = vmatpush1.msra.mxu0 %v10238_v62  ;;  %8246 = vmatpush3.msra.mxu1 %v10243_v51 }
 0x513   :  { %1446 = vmatprep.subr.mxu0 %v10250_v52  ;;  %8247 = vmatprep.subr.mxu1 %v14254_v57 }
 0x514   :  { %1447 = vmatpush1.msra.mxu0 %v10257_v53  ;;  %8248 = vmatpush3.msra.mxu1 %v10262_v54 }
 0x515   :  { %1448 = vmatprep.subr.mxu0 %v10269_v55  ;;  %8249 = vmatprep.subr.mxu1 %v14254_v57 }
 0x516   :  { %1449 = vmatpush1.msra.mxu0 %v10276_v56  ;;  %8250 = vmatpush3.msra.mxu1 %v10281_v58 }
 0x517   :  { %1450 = vmatprep.subr.mxu0 %v10288_v1  ;;  %8251 = vmatprep.subr.mxu1 %v14254_v57 }
 0x518   :  { %1451 = vmatpush1.msra.mxu0 %v10295_v2  ;;  %8252 = vmatpush3.msra.mxu1 %v10300_v3 }
 0x519   :  { %1452 = vmatprep.subr.mxu0 %v10307_v4  ;;  %8253 = vmatprep.subr.mxu1 %v14254_v57 }
 0x51a   :  { %1453 = vmatpush1.msra.mxu0 %v10314_v5  ;;  %8254 = vmatpush3.msra.mxu1 %v10319_v6 }
 0x51b   :  { %1454 = vmatprep.subr.mxu0 %v10326_v7  ;;  %8255 = vmatprep.subr.mxu1 %v14254_v57 }
 0x51c   :  { %1455 = vmatpush1.msra.mxu0 %v10333_v8  ;;  %8256 = vmatpush3.msra.mxu1 %v14261_v28 }
 0x51d   :  { %1456 = vmatprep.subr.mxu0 %v10345_v10  ;;  %8257 = vmatprep.subr.mxu1 %v14254_v57 }
 0x51e   :  { %1457 = vmatpush1.msra.mxu0 %v10352_v11  ;;  %1490 = vmatprep.mubr.f32.mxu0 %v14254_v57 }
 0x51f   :  { %8258 = vmatpush3.msra.mxu1 %v14262_v9  ;;  %8259 = vmatprep.mubr.msk.f32.mxu1 %vm9460_vm0, %v14254_v57 }
 0x520   :  { %1652 = vmatprep.subr.mxu0 %v14263_v23  ;;  %8262 = vmatprep.subr.mxu1 %v14254_v57 }
 0x5bf   :  { %v1266_v21 = vpop.f32.mrf.mxu0  ;;  %v1337_v12 = vpop.f32.mrf.mxu1 }
 0x5c0   :  { %v1341_v16 = vadd.f32 %v7284_v24, %v1266_v21  ;;  %v1362_v9 = vadd.f32 %v10467_v22, %v1337_v12  ;;  %v7286_v24 = vld [vmem:[%s14196_s0 + $0x88] sm:$0xff]  ;;  %v10793_v12 = vld [vmem:[%s14194_s2 + $0xc0] sm:$0xff] }
 0x5c1   :  { %v8226_v25 = vpop.f32.mrf.mxu1  ;;  %v1268_v13 = vpop.f32.mrf.mxu0 }
 0x5c2   :  { %v7287_v26 = vmul.f32 -1.442695, %v1341_v16  ;;  %v1348_v15 = vadd.f32 %v7285_v27, %v1268_v13 }
 0x5c4   :  { %9189 = vpow2.f32 %v7287_v26  ;;  %v7288_v17 = vmul.f32 -1.442695, %v1348_v15 }
 0x5c6   :  { %9191 = vpow2.f32 %v7288_v17 }
 0x5d1   :  { %v9190_v18 = vpop.eup %9189 }
 0x5d2   :  { %v1345_v19 = vadd.f32 1.0, %v9190_v18  ;;  %v10798_v18 = vld [vmem:[%s14194_s2 + $0xd0] sm:$0xff] }
 0x5d3   :  { %v9192_v20 = vpop.eup %9191 }
 0x5d4   :  { %9193 = vrcp.f32 %v1345_v19  ;;  %v1352_v23 = vadd.f32 1.0, %v9192_v20  ;;  %v10803_v19 = vld [vmem:[%s14194_s2 + $0xb0] sm:$0xff]  ;;  %v10810_v20 = vld [vmem:[%s14194_s2 + $0xa8] sm:$0xff] }
 0x5d6   :  { %9195 = vrcp.f32 %v1352_v23  ;;  %v10815_v23 = vld [vmem:[%s14194_s2 + $0xb8] sm:$0xff] }
 0x5e1   :  { %v9194_v11 = vpop.eup %9193 }
 0x5e2   :  { %v1363_v21 = vmul.f32 %v9194_v11, %v1362_v9  ;;  %v10767_v11 = vld [vmem:[%s14194_s2 + $0xe0] sm:$0xff]  ;;  %v10786_v9 = vld [vmem:[%s14194_s2 + $0xc8] sm:$0xff] }
 0x5e3   :  { %v9196_v25 = vpop.eup %9195 }
 0x5e4   :  { %v1364_v16 = vadd.f32 %v7286_v24, %v1363_v21  ;;  %v1366_v26 = vsub.f32 1.0, %v9196_v25  ;;  %v1368_v15 = vmul.f32 %v9196_v25, %v10474_v29  ;;  %v14264_v29 = vld [vmem:[#allocation5_spill] sm:$0xff]  ;;  %v10820_v24 = vld [vmem:[%s14194_s2 + $0x98] sm:$0xff]  ;;  %v10839_v25 = vld [vmem:[%s14194_s2 + $0x80] sm:$0xff] }
 0x5e5   :  { %v10827_v21 = vld [vmem:[%s14194_s2 + $0x90] sm:$0xff] }
 0x5e6   :  { %9197 = vtanh.f32 %v1364_v16  ;;  %v10832_v16 = vld [vmem:[%s14194_s2 + $0xa0] sm:$0xff] }
 0x5f3   :  { %v9198_v27 = vpop.eup %9197 }
 0x5f4   :  { %v1367_v13 = vmul.f32 %v9198_v27, %v1366_v26  ;;  %v10846_v26 = vld [vmem:[%s14194_s2 + $0x78] sm:$0xff]  ;;  %v10851_v27 = vld [vmem:[%s14194_s2 + $0x88] sm:$0xff] }
 0x5f6   :  { %v10560_v17 = vadd.f32 %v1368_v15, %v1367_v13  ;;  %v10858_v13 = vld [vmem:[%s14194_s2 + $0x68] sm:$0xff]  ;;  %v10865_v15 = vld [vmem:[%s14194_s2 + $0x60] sm:$0xff] }
 0x5f8   :  { %7290 = vst [vmem:[%s14198_s4 + $0x28] sm:$0xff] %v10560_v17  ;;  %1491 = vmatmul.mubr.f32.vlgmr.msra.gmra.mxu0 %v10560_v17  ;;  %8260 = vmatmul.mubr.f32.vlgmr.msra.gmra.mxu1 %v10560_v17 }
 0x5f9   :  { %1653 = vmatpush1.msra.mxu0 %v10078_v30  ;;  %8263 = vmatpush3.msra.mxu1 %v10424_v63  ;;  %v14265_v30 = vld [vmem:[#allocation6_spill] sm:$0xff] }
 0x5fa   :  { %1654 = vmatprep.subr.mxu0 %v10084_v14  ;;  %8264 = vmatprep.subr.mxu1 %v14254_v57  ;;  %v7291_v14 = vld [vmem:[%s14196_s0 + $0x90] sm:$0xff] }
 0x5fb   :  { %1655 = vmatpush1.msra.mxu0 %v10090_v31  ;;  %8265 = vmatpush3.msra.mxu1 %v10095_v32 }
 0x5fc   :  { %1656 = vmatprep.subr.mxu0 %v10102_v33  ;;  %8266 = vmatprep.subr.mxu1 %v14254_v57 }
 0x5fd   :  { %1657 = vmatpush1.msra.mxu0 %v10109_v34  ;;  %8267 = vmatpush3.msra.mxu1 %v10114_v35 }
 0x5fe   :  { %1658 = vmatprep.subr.mxu0 %v10121_v36  ;;  %8268 = vmatprep.subr.mxu1 %v14254_v57  ;;  %v7292_v36 = vld [vmem:[%s14196_s0 + $0x98] sm:$0xff] }
 0x5ff   :  { %1659 = vmatpush1.msra.mxu0 %v10128_v37  ;;  %8269 = vmatpush3.msra.mxu1 %v10133_v38 }
 0x600   :  { %1660 = vmatprep.subr.mxu0 %v10140_v39  ;;  %8270 = vmatprep.subr.mxu1 %v14254_v57 }
 0x601   :  { %1661 = vmatpush1.msra.mxu0 %v10147_v40  ;;  %8271 = vmatpush3.msra.mxu1 %v10152_v41 }
 0x602   :  { %1662 = vmatprep.subr.mxu0 %v10159_v42  ;;  %8272 = vmatprep.subr.mxu1 %v14254_v57 }
 0x603   :  { %1663 = vmatpush1.msra.mxu0 %v10166_v43  ;;  %8273 = vmatpush3.msra.mxu1 %v10171_v45 }
 0x604   :  { %1664 = vmatprep.subr.mxu0 %v10178_v46  ;;  %8274 = vmatprep.subr.mxu1 %v14254_v57 }
 0x605   :  { %1665 = vmatpush1.msra.mxu0 %v10185_v47  ;;  %8275 = vmatpush3.msra.mxu1 %v10190_v48  ;;  %v7293_v47 = vld [vmem:[%s14196_s0 + $0xa0] sm:$0xff] }
 0x606   :  { %1666 = vmatprep.subr.mxu0 %v10197_v49  ;;  %8276 = vmatprep.subr.mxu1 %v14254_v57 }
 0x607   :  { %1667 = vmatpush1.msra.mxu0 %v10204_v50  ;;  %8277 = vmatpush3.msra.mxu1 %v10209_v0 }
 0x608   :  { %1668 = vmatprep.subr.mxu0 %v10214_v59  ;;  %8278 = vmatprep.subr.mxu1 %v14254_v57 }
 0x609   :  { %1669 = vmatpush1.msra.mxu0 %v10221_v60  ;;  %8279 = vmatpush3.msra.mxu1 %v10226_v61 }
 0x60a   :  { %1670 = vmatprep.subr.mxu0 %v10231_v44  ;;  %8280 = vmatprep.subr.mxu1 %v14254_v57 }
 0x60b   :  { %1671 = vmatpush1.msra.mxu0 %v10238_v62  ;;  %8281 = vmatpush3.msra.mxu1 %v10243_v51  ;;  %v10661_v62 = vld [vmem:[%s14194_s2 + $0x170] sm:$0xff]  ;;  %v10667_v51 = vld [vmem:[%s14194_s2 + $0x168] sm:$0xff] }
 0x60c   :  { %1672 = vmatprep.subr.mxu0 %v10250_v52  ;;  %8282 = vmatprep.subr.mxu1 %v14254_v57  ;;  %14266 = vst [vmem:[#allocation4_spill] sm:$0xff] %v10661_v62  ;;  %v10673_v52 = vld [vmem:[%s14194_s2 + $0x158] sm:$0xff] }
 0x60d   :  { %1673 = vmatpush1.msra.mxu0 %v10257_v53  ;;  %8283 = vmatpush3.msra.mxu1 %v10262_v54  ;;  %v10679_v53 = vld [vmem:[%s14194_s2 + $0x150] sm:$0xff]  ;;  %v10684_v54 = vld [vmem:[%s14194_s2 + $0x160] sm:$0xff] }
 0x60e   :  { %1674 = vmatprep.subr.mxu0 %v10269_v55  ;;  %8284 = vmatprep.subr.mxu1 %v14254_v57  ;;  %v10691_v55 = vld [vmem:[%s14194_s2 + $0x140] sm:$0xff] }
 0x60f   :  { %1675 = vmatpush1.msra.mxu0 %v10276_v56  ;;  %8285 = vmatpush3.msra.mxu1 %v10281_v58  ;;  %v10698_v56 = vld [vmem:[%s14194_s2 + $0x138] sm:$0xff]  ;;  %v10703_v58 = vld [vmem:[%s14194_s2 + $0x148] sm:$0xff] }
 0x610   :  { %1676 = vmatprep.subr.mxu0 %v10288_v1  ;;  %8286 = vmatprep.subr.mxu1 %v14254_v57  ;;  %v10710_v1 = vld [vmem:[%s14194_s2 + $0x128] sm:$0xff] }
 0x611   :  { %1677 = vmatpush1.msra.mxu0 %v10295_v2  ;;  %8287 = vmatpush3.msra.mxu1 %v10300_v3  ;;  %v10717_v2 = vld [vmem:[%s14194_s2 + $0x120] sm:$0xff]  ;;  %v10722_v3 = vld [vmem:[%s14194_s2 + $0x130] sm:$0xff] }
 0x612   :  { %1678 = vmatprep.subr.mxu0 %v10307_v4  ;;  %8288 = vmatprep.subr.mxu1 %v14254_v57  ;;  %v10729_v4 = vld [vmem:[%s14194_s2 + $0x110] sm:$0xff] }
 0x613   :  { %1679 = vmatpush1.msra.mxu0 %v10314_v5  ;;  %8289 = vmatpush3.msra.mxu1 %v10319_v6  ;;  %v10736_v5 = vld [vmem:[%s14194_s2 + $0x108] sm:$0xff]  ;;  %v10741_v6 = vld [vmem:[%s14194_s2 + $0x118] sm:$0xff] }
 0x614   :  { %1680 = vmatprep.subr.mxu0 %v10326_v7  ;;  %8290 = vmatprep.subr.mxu1 %v14254_v57  ;;  %v10748_v7 = vld [vmem:[%s14194_s2 + $0xf8] sm:$0xff] }
 0x615   :  { %1681 = vmatpush1.msra.mxu0 %v10333_v8  ;;  %8291 = vmatpush3.msra.mxu1 %v14261_v28  ;;  %v10755_v8 = vld [vmem:[%s14194_s2 + $0xf0] sm:$0xff]  ;;  %v10779_v28 = vld [vmem:[%s14194_s2 + $0xe8] sm:$0xff] }
 0x616   :  { %1682 = vmatprep.subr.mxu0 %v10345_v10  ;;  %8292 = vmatprep.subr.mxu1 %v14254_v57  ;;  %v10760_v10 = vld [vmem:[%s14194_s2 + $0x100] sm:$0xff] }
 0x617   :  { %1683 = vmatpush1.msra.mxu0 %v14264_v29  ;;  %1716 = vmatprep.mubr.f32.mxu0 %v14254_v57  ;;  %v10877_v29 = vld [vmem:[%s14194_s2 + $0x50] sm:$0xff] }
 0x618   :  { %8293 = vmatpush3.msra.mxu1 %v14265_v30  ;;  %8294 = vmatprep.mubr.msk.f32.mxu1 %vm9460_vm0, %v14254_v57  ;;  %v10884_v30 = vld [vmem:[%s14194_s2 + $0x48] sm:$0xff] }
 0x619   :  { %8297 = vmatprep.subr.mxu1 %v14254_v57  ;;  %1878 = vmatprep.subr.mxu0 %v10661_v62 }
 0x6b8   :  { %v1492_v31 = vpop.f32.mrf.mxu0  ;;  %v1563_v32 = vpop.f32.mrf.mxu1 }
 0x6b9   :  { %v1567_v33 = vadd.f32 %v7291_v14, %v1492_v31  ;;  %v1588_v45 = vadd.f32 %v10467_v22, %v1563_v32  ;;  %v10889_v14 = vld [vmem:[%s14194_s2 + $0x58] sm:$0xff]  ;;  %v10903_v32 = vld [vmem:[%s14194_s2 + $0x30] sm:$0xff] }
 0x6ba   :  { %v8261_v34 = vpop.f32.mrf.mxu1  ;;  %v1494_v37 = vpop.f32.mrf.mxu0  ;;  %v10896_v31 = vld [vmem:[%s14194_s2 + $0x38] sm:$0xff] }
 0x6bb   :  { %v7294_v35 = vmul.f32 -1.442695, %v1567_v33  ;;  %v1574_v38 = vadd.f32 %v7292_v36, %v1494_v37  ;;  %v10908_v33 = vld [vmem:[%s14194_s2 + $0x40] sm:$0xff]  ;;  %v10927_v36 = vld [vmem:[%s14194_s2 + $0x28] sm:$0xff] }
 0x6bc   :  { %v10915_v34 = vld [vmem:[%s14194_s2 + $0x20] sm:$0xff]  ;;  %14267 = vst [vmem:[#allocation3_spill] sm:$0xff] %v10927_v36  ;;  %v10934_v37 = vld [vmem:[%s14194_s2 + $0x8] sm:$0xff] }
 0x6bd   :  { %9199 = vpow2.f32 %v7294_v35  ;;  %v7295_v39 = vmul.f32 -1.442695, %v1574_v38  ;;  %v10922_v35 = vld [vmem:[%s14194_s2 + $0x18] sm:$0xff]  ;;  %v10941_v38 = vld [vmem:[%s14194_s2] sm:$0xff] }
 0x6be   :  { %14268 = vst [vmem:[#allocation5_spill] sm:$0xff] %v10941_v38 }
 0x6bf   :  { %9201 = vpow2.f32 %v7295_v39  ;;  %v10946_v39 = vld [vmem:[%s14194_s2 + $0x10] sm:$0xff] }
 0x6c0   :  { %14269 = vst [vmem:[#allocation6_spill] sm:$0xff] %v10946_v39 }
 0x6ca   :  { %v9200_v40 = vpop.eup %9199 }
 0x6cb   :  { %v1571_v41 = vadd.f32 1.0, %v9200_v40  ;;  %v7298_v40 = vld [vmem:[%s14196_s0 + $0xa8] sm:$0xff] }
 0x6cc   :  { %v9202_v42 = vpop.eup %9201 }
 0x6cd   :  { %9203 = vrcp.f32 %v1571_v41  ;;  %v1578_v43 = vadd.f32 1.0, %v9202_v42 }
 0x6cf   :  { %9205 = vrcp.f32 %v1578_v43 }
 0x6da   :  { %v9204_v46 = vpop.eup %9203 }
 0x6db   :  { %v1589_v48 = vmul.f32 %v9204_v46, %v1588_v45 }
 0x6dc   :  { %v9206_v50 = vpop.eup %9205 }
 0x6dd   :  { %v1590_v49 = vadd.f32 %v7293_v47, %v1589_v48  ;;  %v1592_v0 = vsub.f32 1.0, %v9206_v50  ;;  %v1594_v61 = vmul.f32 %v9206_v50, %v10560_v17  ;;  %v10870_v17 = vld [vmem:[%s14194_s2 + $0x70] sm:$0xff] }
 0x6de   :  { %v7299_v47 = vld [vmem:[%s14196_s0 + $0xb0] sm:$0xff] }
 0x6df   :  { %9207 = vtanh.f32 %v1590_v49 }
 0x6ec   :  { %v9208_v59 = vpop.eup %9207 }
 0x6ed   :  { %v1593_v60 = vmul.f32 %v9208_v59, %v1592_v0 }
 0x6ef   :  { %v10645_v44 = vadd.f32 %v1594_v61, %v1593_v60 }
 0x6f1   :  { %7297 = vst [vmem:[%s14198_s4 + $0x30] sm:$0xff] %v10645_v44  ;;  %1717 = vmatmul.mubr.f32.vlgmr.msra.gmra.mxu0 %v10645_v44  ;;  %8295 = vmatmul.mubr.f32.vlgmr.msra.gmra.mxu1 %v10645_v44 }
 0x6f2   :  { %8298 = vmatpush3.msra.mxu1 %v10424_v63  ;;  %1942 = vmatprep.mubr.f32.mxu0 %v14254_v57  ;;  %v10774_v63 = vld [vmem:[%s14194_s2 + $0xd8] sm:$0xff] }
 0x6f3   :  { %8299 = vmatprep.subr.mxu1 %v14254_v57  ;;  %8329 = vmatprep.mubr.msk.f32.mxu1 %vm9460_vm0, %v14254_v57 }
 0x6f4   :  { %1879 = vmatpush1.msra.mxu0 %v10667_v51  ;;  %8300 = vmatpush3.msra.mxu1 %v10684_v54 }
 0x6f5   :  { %1880 = vmatprep.subr.mxu0 %v10673_v52  ;;  %8301 = vmatprep.subr.mxu1 %v14254_v57 }
 0x6f6   :  { %1881 = vmatpush1.msra.mxu0 %v10679_v53  ;;  %8302 = vmatpush3.msra.mxu1 %v10703_v58 }
 0x6f7   :  { %1882 = vmatprep.subr.mxu0 %v10691_v55  ;;  %8303 = vmatprep.subr.mxu1 %v14254_v57 }
 0x6f8   :  { %1883 = vmatpush1.msra.mxu0 %v10698_v56  ;;  %8304 = vmatpush3.msra.mxu1 %v10722_v3 }
 0x6f9   :  { %1884 = vmatprep.subr.mxu0 %v10710_v1  ;;  %8305 = vmatprep.subr.mxu1 %v14254_v57 }
 0x6fa   :  { %1885 = vmatpush1.msra.mxu0 %v10717_v2  ;;  %8306 = vmatpush3.msra.mxu1 %v10741_v6 }
 0x6fb   :  { %1886 = vmatprep.subr.mxu0 %v10729_v4  ;;  %8307 = vmatprep.subr.mxu1 %v14254_v57 }
 0x6fc   :  { %1887 = vmatpush1.msra.mxu0 %v10736_v5  ;;  %8308 = vmatpush3.msra.mxu1 %v10760_v10 }
 0x6fd   :  { %1888 = vmatprep.subr.mxu0 %v10748_v7  ;;  %8309 = vmatprep.subr.mxu1 %v14254_v57 }
 0x6fe   :  { %1889 = vmatpush1.msra.mxu0 %v10755_v8  ;;  %8310 = vmatpush3.msra.mxu1 %v10779_v28 }
 0x6ff   :  { %1890 = vmatprep.subr.mxu0 %v10767_v11  ;;  %8311 = vmatprep.subr.mxu1 %v14254_v57 }
 0x700   :  { %1891 = vmatpush1.msra.mxu0 %v10774_v63  ;;  %8312 = vmatpush3.msra.mxu1 %v10798_v18 }
 0x701   :  { %1892 = vmatprep.subr.mxu0 %v10786_v9  ;;  %8313 = vmatprep.subr.mxu1 %v14254_v57 }
 0x702   :  { %1893 = vmatpush1.msra.mxu0 %v10793_v12  ;;  %8314 = vmatpush3.msra.mxu1 %v10815_v23 }
 0x703   :  { %1894 = vmatprep.subr.mxu0 %v10803_v19  ;;  %8315 = vmatprep.subr.mxu1 %v14254_v57 }
 0x704   :  { %1895 = vmatpush1.msra.mxu0 %v10810_v20  ;;  %8316 = vmatpush3.msra.mxu1 %v10832_v16 }
 0x705   :  { %1896 = vmatprep.subr.mxu0 %v10820_v24  ;;  %8317 = vmatprep.subr.mxu1 %v14254_v57 }
 0x706   :  { %1897 = vmatpush1.msra.mxu0 %v10827_v21  ;;  %8318 = vmatpush3.msra.mxu1 %v10851_v27 }
 0x707   :  { %1898 = vmatprep.subr.mxu0 %v10839_v25  ;;  %8319 = vmatprep.subr.mxu1 %v14254_v57 }
 0x708   :  { %1899 = vmatpush1.msra.mxu0 %v10846_v26  ;;  %8320 = vmatpush3.msra.mxu1 %v10870_v17 }
 0x709   :  { %1900 = vmatprep.subr.mxu0 %v10858_v13  ;;  %8321 = vmatprep.subr.mxu1 %v14254_v57 }
 0x70a   :  { %1901 = vmatpush1.msra.mxu0 %v10865_v15  ;;  %8322 = vmatpush3.msra.mxu1 %v10889_v14 }
 0x70b   :  { %1902 = vmatprep.subr.mxu0 %v10877_v29  ;;  %8323 = vmatprep.subr.mxu1 %v14254_v57 }
 0x70c   :  { %1903 = vmatpush1.msra.mxu0 %v10884_v30  ;;  %8324 = vmatpush3.msra.mxu1 %v10908_v33 }
 0x70d   :  { %1904 = vmatprep.subr.mxu0 %v10896_v31  ;;  %8325 = vmatprep.subr.mxu1 %v14254_v57 }
 0x70e   :  { %1905 = vmatpush1.msra.mxu0 %v10903_v32  ;;  %8326 = vmatpush3.msra.mxu1 %v10927_v36 }
 0x70f   :  { %1906 = vmatprep.subr.mxu0 %v10915_v34  ;;  %8327 = vmatprep.subr.mxu1 %v14254_v57 }
 0x710   :  { %1907 = vmatpush1.msra.mxu0 %v10922_v35  ;;  %8328 = vmatpush3.msra.mxu1 %v10946_v39 }
 0x711   :  { %1908 = vmatprep.subr.mxu0 %v10934_v37  ;;  %8332 = vmatprep.subr.mxu1 %v14254_v57 }
 0x712   :  { %1909 = vmatpush1.msra.mxu0 %v10941_v38 }
 0x713   :  { %2104 = vmatprep.subr.mxu0 %v10661_v62 }
 0x7b1   :  { %v1718_v41 = vpop.f32.mrf.mxu0  ;;  %v1789_v42 = vpop.f32.mrf.mxu1 }
 0x7b2   :  { %v1793_v43 = vadd.f32 %v7298_v40, %v1718_v41  ;;  %v1814_v39 = vadd.f32 %v10467_v22, %v1789_v42  ;;  %v7300_v40 = vld [vmem:[%s14196_s0 + $0xb8] sm:$0xff] }
 0x7b3   :  { %v8296_v45 = vpop.f32.mrf.mxu1  ;;  %v1720_v48 = vpop.f32.mrf.mxu0  ;;  %v11013_v22 = vld [vmem:[%s14194_s2 + $0x178] sm:$0xff] }
 0x7b4   :  { %v7301_v46 = vmul.f32 -1.442695, %v1793_v43  ;;  %v1800_v49 = vadd.f32 %v7299_v47, %v1720_v48 }
 0x7b6   :  { %9209 = vpow2.f32 %v7301_v46  ;;  %v7302_v50 = vmul.f32 -1.442695, %v1800_v49 }
 0x7b8   :  { %9211 = vpow2.f32 %v7302_v50 }
 0x7c3   :  { %v9210_v0 = vpop.eup %9209 }
 0x7c4   :  { %v1797_v59 = vadd.f32 1.0, %v9210_v0 }
 0x7c5   :  { %v9212_v60 = vpop.eup %9211 }
 0x7c6   :  { %9213 = vrcp.f32 %v1797_v59  ;;  %v1804_v61 = vadd.f32 1.0, %v9212_v60 }
 0x7c8   :  { %9215 = vrcp.f32 %v1804_v61 }
 0x7d3   :  { %v9214_v36 = vpop.eup %9213 }
 0x7d4   :  { %v1815_v41 = vmul.f32 %v9214_v36, %v1814_v39  ;;  %v14271_v36 = vld [vmem:[#allocation6_spill] sm:$0xff]  ;;  %v7305_v39 = vld [vmem:[%s14196_s0 + $0xc0] sm:$0xff] }
 0x7d5   :  { %v9216_v45 = vpop.eup %9215 }
 0x7d6   :  { %v1816_v43 = vadd.f32 %v7300_v40, %v1815_v41  ;;  %v1818_v46 = vsub.f32 1.0, %v9216_v45  ;;  %v1820_v49 = vmul.f32 %v9216_v45, %v10645_v44  ;;  %v14270_v44 = vld [vmem:[#allocation3_spill] sm:$0xff]  ;;  %v7306_v40 = vld [vmem:[%s14196_s0 + $0xc8] sm:$0xff] }
 0x7d8   :  { %9217 = vtanh.f32 %v1816_v43 }
 0x7e5   :  { %v9218_v47 = vpop.eup %9217 }
 0x7e6   :  { %v1819_v48 = vmul.f32 %v9218_v47, %v1818_v46 }
 0x7e8   :  { %v10967_v50 = vadd.f32 %v1820_v49, %v1819_v48  ;;  %v11056_v49 = vld [vmem:[%s14197_s3] ss:$0 sm:$0xff] }
 0x7ea   :  { %7304 = vst [vmem:[%s14198_s4 + $0x38] sm:$0xff] %v10967_v50  ;;  %1943 = vmatmul.mubr.f32.vlgmr.msra.gmra.mxu0 %v10967_v50  ;;  %8330 = vmatmul.mubr.f32.vlgmr.msra.gmra.mxu1 %v10967_v50 }
 0x7eb   :  { %2105 = vmatpush1.msra.mxu0 %v10667_v51  ;;  %2168 = vmatprep.mubr.f32.mxu0 %v14254_v57 }
 0x7ec   :  { %2106 = vmatprep.subr.mxu0 %v10673_v52  ;;  %8364 = vmatprep.mubr.msk.f32.mxu1 %vm9460_vm0, %v14254_v57 }
 0x7ed   :  { %2107 = vmatpush1.msra.mxu0 %v10679_v53  ;;  %8333 = vmatpush3.msra.mxu1 %v11013_v22 }
 0x7ee   :  { %2108 = vmatprep.subr.mxu0 %v10691_v55  ;;  %8334 = vmatprep.subr.mxu1 %v14254_v57 }
 0x7ef   :  { %2109 = vmatpush1.msra.mxu0 %v10698_v56  ;;  %8335 = vmatpush3.msra.mxu1 %v10684_v54 }
 0x7f0   :  { %2110 = vmatprep.subr.mxu0 %v10710_v1  ;;  %8336 = vmatprep.subr.mxu1 %v14254_v57 }
 0x7f1   :  { %2111 = vmatpush1.msra.mxu0 %v10717_v2  ;;  %8337 = vmatpush3.msra.mxu1 %v10703_v58 }
 0x7f2   :  { %2112 = vmatprep.subr.mxu0 %v10729_v4  ;;  %8338 = vmatprep.subr.mxu1 %v14254_v57 }
 0x7f3   :  { %2113 = vmatpush1.msra.mxu0 %v10736_v5  ;;  %8339 = vmatpush3.msra.mxu1 %v10722_v3 }
 0x7f4   :  { %2114 = vmatprep.subr.mxu0 %v10748_v7  ;;  %8340 = vmatprep.subr.mxu1 %v14254_v57 }
 0x7f5   :  { %2115 = vmatpush1.msra.mxu0 %v10755_v8  ;;  %8341 = vmatpush3.msra.mxu1 %v10741_v6 }
 0x7f6   :  { %2116 = vmatprep.subr.mxu0 %v10767_v11  ;;  %8342 = vmatprep.subr.mxu1 %v14254_v57 }
 0x7f7   :  { %2117 = vmatpush1.msra.mxu0 %v10774_v63  ;;  %8343 = vmatpush3.msra.mxu1 %v10760_v10 }
 0x7f8   :  { %2118 = vmatprep.subr.mxu0 %v10786_v9  ;;  %8344 = vmatprep.subr.mxu1 %v14254_v57 }
 0x7f9   :  { %2119 = vmatpush1.msra.mxu0 %v10793_v12  ;;  %8345 = vmatpush3.msra.mxu1 %v10779_v28 }
 0x7fa   :  { %2120 = vmatprep.subr.mxu0 %v10803_v19  ;;  %8346 = vmatprep.subr.mxu1 %v14254_v57 }
 0x7fb   :  { %2121 = vmatpush1.msra.mxu0 %v10810_v20  ;;  %8347 = vmatpush3.msra.mxu1 %v10798_v18 }
 0x7fc   :  { %2122 = vmatprep.subr.mxu0 %v10820_v24  ;;  %8348 = vmatprep.subr.mxu1 %v14254_v57 }
 0x7fd   :  { %2123 = vmatpush1.msra.mxu0 %v10827_v21  ;;  %8349 = vmatpush3.msra.mxu1 %v10815_v23 }
 0x7fe   :  { %2124 = vmatprep.subr.mxu0 %v10839_v25  ;;  %8350 = vmatprep.subr.mxu1 %v14254_v57 }
 0x7ff   :  { %2125 = vmatpush1.msra.mxu0 %v10846_v26  ;;  %8351 = vmatpush3.msra.mxu1 %v10832_v16 }
 0x800   :  { %2126 = vmatprep.subr.mxu0 %v10858_v13  ;;  %8352 = vmatprep.subr.mxu1 %v14254_v57 }
 0x801   :  { %2127 = vmatpush1.msra.mxu0 %v10865_v15  ;;  %8353 = vmatpush3.msra.mxu1 %v10851_v27 }
 0x802   :  { %2128 = vmatprep.subr.mxu0 %v10877_v29  ;;  %8354 = vmatprep.subr.mxu1 %v14254_v57 }
 0x803   :  { %2129 = vmatpush1.msra.mxu0 %v10884_v30  ;;  %8355 = vmatpush3.msra.mxu1 %v10870_v17 }
 0x804   :  { %2130 = vmatprep.subr.mxu0 %v10896_v31  ;;  %8356 = vmatprep.subr.mxu1 %v14254_v57 }
 0x805   :  { %2131 = vmatpush1.msra.mxu0 %v10903_v32  ;;  %8357 = vmatpush3.msra.mxu1 %v10889_v14 }
 0x806   :  { %2132 = vmatprep.subr.mxu0 %v10915_v34  ;;  %8358 = vmatprep.subr.mxu1 %v14254_v57 }
 0x807   :  { %2133 = vmatpush1.msra.mxu0 %v10922_v35  ;;  %8359 = vmatpush3.msra.mxu1 %v10908_v33 }
 0x808   :  { %2134 = vmatprep.subr.mxu0 %v10934_v37  ;;  %8360 = vmatprep.subr.mxu1 %v14254_v57 }
 0x809   :  { %2135 = vmatpush1.msra.mxu0 %v10941_v38  ;;  %8361 = vmatpush3.msra.mxu1 %v14270_v44 }
 0x80a   :  { %2330 = vmatprep.subr.mxu0 %v10661_v62  ;;  %8362 = vmatprep.subr.mxu1 %v14254_v57 }
 0x80b   :  { %8363 = vmatpush3.msra.mxu1 %v14271_v36 }
 0x80c   :  { %8367 = vmatprep.subr.mxu1 %v14254_v57 }
 0x8aa   :  { %v1944_v42 = vpop.f32.mrf.mxu0  ;;  %v2015_v0 = vpop.f32.mrf.mxu1 }
 0x8ab   :  { %v2019_v59 = vadd.f32 %v7305_v39, %v1944_v42  ;;  %v2040_v42 = vadd.f32 %v11056_v49, %v2015_v0  ;;  %v7312_v0 = vld [vmem:[%s14196_s0 + $0xd8] sm:$0xff] }
 0x8ac   :  { %v8331_v60 = vpop.f32.mrf.mxu1  ;;  %v1946_v41 = vpop.f32.mrf.mxu0 }
 0x8ad   :  { %v7308_v61 = vmul.f32 -1.442695, %v2019_v59  ;;  %v2026_v43 = vadd.f32 %v7306_v40, %v1946_v41  ;;  %v7307_v60 = vld [vmem:[%s14196_s0 + $0xd0] sm:$0xff] }
 0x8af   :  { %9219 = vpow2.f32 %v7308_v61  ;;  %v7309_v45 = vmul.f32 -1.442695, %v2026_v43 }
 0x8b1   :  { %9221 = vpow2.f32 %v7309_v45 }
 0x8bc   :  { %v9220_v46 = vpop.eup %9219 }
 0x8bd   :  { %v2023_v47 = vadd.f32 1.0, %v9220_v46 }
 0x8be   :  { %v9222_v48 = vpop.eup %9221 }
 0x8bf   :  { %9223 = vrcp.f32 %v2023_v47  ;;  %v2030_v39 = vadd.f32 1.0, %v9222_v48 }
 0x8c1   :  { %9225 = vrcp.f32 %v2030_v39 }
 0x8cc   :  { %v9224_v59 = vpop.eup %9223 }
 0x8cd   :  { %v2041_v61 = vmul.f32 %v9224_v59, %v2040_v42 }
 0x8ce   :  { %v9226_v41 = vpop.eup %9225 }
 0x8cf   :  { %v2042_v40 = vadd.f32 %v7307_v60, %v2041_v61  ;;  %v2044_v43 = vsub.f32 1.0, %v9226_v41  ;;  %v2046_v47 = vmul.f32 %v9226_v41, %v10967_v50  ;;  %v14272_v50 = vld [vmem:[#allocation4_spill] sm:$0xff]  ;;  %v7313_v61 = vld [vmem:[%s14196_s0 + $0xe0] sm:$0xff] }
 0x8d1   :  { %9227 = vtanh.f32 %v2042_v40 }
 0x8de   :  { %v9228_v45 = vpop.eup %9227 }
 0x8df   :  { %v2045_v46 = vmul.f32 %v9228_v45, %v2044_v43 }
 0x8e1   :  { %v11063_v62 = vadd.f32 %v2046_v47, %v2045_v46 }
 0x8e3   :  { %7311 = vst [vmem:[%s14198_s4 + $0x40] sm:$0xff] %v11063_v62  ;;  %2169 = vmatmul.mubr.f32.vlgmr.msra.gmra.mxu0 %v11063_v62  ;;  %8365 = vmatmul.mubr.f32.vlgmr.msra.gmra.mxu1 %v11063_v62 }
 0x8e4   :  { %2331 = vmatpush1.msra.mxu0 %v10667_v51  ;;  %8368 = vmatpush3.msra.mxu1 %v11013_v22 }
 0x8e5   :  { %2332 = vmatprep.subr.mxu0 %v10673_v52  ;;  %8369 = vmatprep.subr.mxu1 %v14254_v57 }
 0x8e6   :  { %2333 = vmatpush1.msra.mxu0 %v10679_v53  ;;  %8370 = vmatpush3.msra.mxu1 %v10684_v54 }
 0x8e7   :  { %2334 = vmatprep.subr.mxu0 %v10691_v55  ;;  %8371 = vmatprep.subr.mxu1 %v14254_v57 }
 0x8e8   :  { %2335 = vmatpush1.msra.mxu0 %v10698_v56  ;;  %8372 = vmatpush3.msra.mxu1 %v10703_v58 }
 0x8e9   :  { %2336 = vmatprep.subr.mxu0 %v10710_v1  ;;  %8373 = vmatprep.subr.mxu1 %v14254_v57 }
 0x8ea   :  { %2337 = vmatpush1.msra.mxu0 %v10717_v2  ;;  %8374 = vmatpush3.msra.mxu1 %v10722_v3 }
 0x8eb   :  { %2338 = vmatprep.subr.mxu0 %v10729_v4  ;;  %8375 = vmatprep.subr.mxu1 %v14254_v57 }
 0x8ec   :  { %2339 = vmatpush1.msra.mxu0 %v10736_v5  ;;  %8376 = vmatpush3.msra.mxu1 %v10741_v6 }
 0x8ed   :  { %2340 = vmatprep.subr.mxu0 %v10748_v7  ;;  %8377 = vmatprep.subr.mxu1 %v14254_v57 }
 0x8ee   :  { %2341 = vmatpush1.msra.mxu0 %v10755_v8  ;;  %8378 = vmatpush3.msra.mxu1 %v10760_v10 }
 0x8ef   :  { %2342 = vmatprep.subr.mxu0 %v10767_v11  ;;  %8379 = vmatprep.subr.mxu1 %v14254_v57 }
 0x8f0   :  { %2343 = vmatpush1.msra.mxu0 %v10774_v63  ;;  %8380 = vmatpush3.msra.mxu1 %v10779_v28 }
 0x8f1   :  { %2344 = vmatprep.subr.mxu0 %v10786_v9  ;;  %8381 = vmatprep.subr.mxu1 %v14254_v57 }
 0x8f2   :  { %2345 = vmatpush1.msra.mxu0 %v10793_v12  ;;  %8382 = vmatpush3.msra.mxu1 %v10798_v18 }
 0x8f3   :  { %2346 = vmatprep.subr.mxu0 %v10803_v19  ;;  %8383 = vmatprep.subr.mxu1 %v14254_v57 }
 0x8f4   :  { %2347 = vmatpush1.msra.mxu0 %v10810_v20  ;;  %8384 = vmatpush3.msra.mxu1 %v10815_v23 }
 0x8f5   :  { %2348 = vmatprep.subr.mxu0 %v10820_v24  ;;  %8385 = vmatprep.subr.mxu1 %v14254_v57 }
 0x8f6   :  { %2349 = vmatpush1.msra.mxu0 %v10827_v21  ;;  %8386 = vmatpush3.msra.mxu1 %v10832_v16 }
 0x8f7   :  { %2350 = vmatprep.subr.mxu0 %v10839_v25  ;;  %8387 = vmatprep.subr.mxu1 %v14254_v57 }
 0x8f8   :  { %2351 = vmatpush1.msra.mxu0 %v10846_v26  ;;  %8388 = vmatpush3.msra.mxu1 %v10851_v27 }
 0x8f9   :  { %2352 = vmatprep.subr.mxu0 %v10858_v13  ;;  %8389 = vmatprep.subr.mxu1 %v14254_v57 }
 0x8fa   :  { %2353 = vmatpush1.msra.mxu0 %v10865_v15  ;;  %8390 = vmatpush3.msra.mxu1 %v10870_v17 }
 0x8fb   :  { %2354 = vmatprep.subr.mxu0 %v10877_v29  ;;  %8391 = vmatprep.subr.mxu1 %v14254_v57 }
 0x8fc   :  { %2355 = vmatpush1.msra.mxu0 %v10884_v30  ;;  %8392 = vmatpush3.msra.mxu1 %v10889_v14 }
 0x8fd   :  { %2356 = vmatprep.subr.mxu0 %v10896_v31  ;;  %8393 = vmatprep.subr.mxu1 %v14254_v57 }
 0x8fe   :  { %2357 = vmatpush1.msra.mxu0 %v10903_v32  ;;  %8394 = vmatpush3.msra.mxu1 %v10908_v33 }
 0x8ff   :  { %2358 = vmatprep.subr.mxu0 %v10915_v34  ;;  %8395 = vmatprep.subr.mxu1 %v14254_v57 }
 0x900   :  { %2359 = vmatpush1.msra.mxu0 %v10922_v35  ;;  %8396 = vmatpush3.msra.mxu1 %v14270_v44 }
 0x901   :  { %2360 = vmatprep.subr.mxu0 %v10934_v37  ;;  %8397 = vmatprep.subr.mxu1 %v14254_v57 }
 0x902   :  { %2361 = vmatpush1.msra.mxu0 %v10941_v38  ;;  %2394 = vmatprep.mubr.f32.mxu0 %v14254_v57 }
 0x903   :  { %8398 = vmatpush3.msra.mxu1 %v14271_v36  ;;  %8399 = vmatprep.mubr.msk.f32.mxu1 %vm9460_vm0, %v14254_v57 }
 0x904   :  { %2556 = vmatprep.subr.mxu0 %v14272_v50  ;;  %8402 = vmatprep.subr.mxu1 %v14254_v57 }
 0x9a3   :  { %v2170_v48 = vpop.f32.mrf.mxu0  ;;  %v2241_v39 = vpop.f32.mrf.mxu1 }
 0x9a4   :  { %v2245_v42 = vadd.f32 %v7312_v0, %v2170_v48  ;;  %v2266_v36 = vadd.f32 %v11056_v49, %v2241_v39  ;;  %v7314_v0 = vld [vmem:[%s14196_s0 + $0xe8] sm:$0xff]  ;;  %v11382_v39 = vld [vmem:[%s14194_s2 + $0xc0] sm:$0xff] }
 0x9a5   :  { %v8366_v59 = vpop.f32.mrf.mxu1  ;;  %v2172_v40 = vpop.f32.mrf.mxu0 }
 0x9a6   :  { %v7315_v60 = vmul.f32 -1.442695, %v2245_v42  ;;  %v2252_v41 = vadd.f32 %v7313_v61, %v2172_v40 }
 0x9a8   :  { %9229 = vpow2.f32 %v7315_v60  ;;  %v7316_v43 = vmul.f32 -1.442695, %v2252_v41 }
 0x9aa   :  { %9231 = vpow2.f32 %v7316_v43 }
 0x9b5   :  { %v9230_v45 = vpop.eup %9229 }
 0x9b6   :  { %v2249_v46 = vadd.f32 1.0, %v9230_v45  ;;  %v11387_v45 = vld [vmem:[%s14194_s2 + $0xd0] sm:$0xff] }
 0x9b7   :  { %v9232_v47 = vpop.eup %9231 }
 0x9b8   :  { %9233 = vrcp.f32 %v2249_v46  ;;  %v2256_v50 = vadd.f32 1.0, %v9232_v47  ;;  %v11392_v46 = vld [vmem:[%s14194_s2 + $0xb0] sm:$0xff]  ;;  %v11399_v47 = vld [vmem:[%s14194_s2 + $0xa8] sm:$0xff] }
 0x9ba   :  { %9235 = vrcp.f32 %v2256_v50  ;;  %v11404_v50 = vld [vmem:[%s14194_s2 + $0xb8] sm:$0xff] }
 0x9c5   :  { %v9234_v38 = vpop.eup %9233 }
 0x9c6   :  { %v2267_v48 = vmul.f32 %v9234_v38, %v2266_v36  ;;  %v11356_v38 = vld [vmem:[%s14194_s2 + $0xe0] sm:$0xff]  ;;  %v11375_v36 = vld [vmem:[%s14194_s2 + $0xc8] sm:$0xff] }
 0x9c7   :  { %v9236_v59 = vpop.eup %9235 }
 0x9c8   :  { %v2268_v42 = vadd.f32 %v7314_v0, %v2267_v48  ;;  %v2270_v60 = vsub.f32 1.0, %v9236_v59  ;;  %v2272_v41 = vmul.f32 %v9236_v59, %v11063_v62  ;;  %v14273_v62 = vld [vmem:[#allocation5_spill] sm:$0xff]  ;;  %v11409_v0 = vld [vmem:[%s14194_s2 + $0x98] sm:$0xff]  ;;  %v11428_v59 = vld [vmem:[%s14194_s2 + $0x80] sm:$0xff] }
 0x9c9   :  { %v11416_v48 = vld [vmem:[%s14194_s2 + $0x90] sm:$0xff] }
 0x9ca   :  { %9237 = vtanh.f32 %v2268_v42  ;;  %v11421_v42 = vld [vmem:[%s14194_s2 + $0xa0] sm:$0xff] }
 0x9d7   :  { %v9238_v61 = vpop.eup %9237 }
 0x9d8   :  { %v2271_v40 = vmul.f32 %v9238_v61, %v2270_v60  ;;  %v11435_v60 = vld [vmem:[%s14194_s2 + $0x78] sm:$0xff]  ;;  %v11440_v61 = vld [vmem:[%s14194_s2 + $0x88] sm:$0xff] }
 0x9da   :  { %v11149_v43 = vadd.f32 %v2272_v41, %v2271_v40  ;;  %v11447_v40 = vld [vmem:[%s14194_s2 + $0x68] sm:$0xff]  ;;  %v11454_v41 = vld [vmem:[%s14194_s2 + $0x60] sm:$0xff] }
 0x9dc   :  { %7318 = vst [vmem:[%s14198_s4 + $0x48] sm:$0xff] %v11149_v43  ;;  %2395 = vmatmul.mubr.f32.vlgmr.msra.gmra.mxu0 %v11149_v43  ;;  %8400 = vmatmul.mubr.f32.vlgmr.msra.gmra.mxu1 %v11149_v43 }
 0x9dd   :  { %2557 = vmatpush1.msra.mxu0 %v10667_v51  ;;  %8403 = vmatpush3.msra.mxu1 %v11013_v22  ;;  %v14274_v51 = vld [vmem:[#allocation6_spill] sm:$0xff] }
 0x9de   :  { %2558 = vmatprep.subr.mxu0 %v10673_v52  ;;  %8404 = vmatprep.subr.mxu1 %v14254_v57  ;;  %v7319_v52 = vld [vmem:[%s14196_s0 + $0xf0] sm:$0xff] }
 0x9df   :  { %2559 = vmatpush1.msra.mxu0 %v10679_v53  ;;  %8405 = vmatpush3.msra.mxu1 %v10684_v54 }
 0x9e0   :  { %2560 = vmatprep.subr.mxu0 %v10691_v55  ;;  %8406 = vmatprep.subr.mxu1 %v14254_v57 }
 0x9e1   :  { %2561 = vmatpush1.msra.mxu0 %v10698_v56  ;;  %8407 = vmatpush3.msra.mxu1 %v10703_v58 }
 0x9e2   :  { %2562 = vmatprep.subr.mxu0 %v10710_v1  ;;  %8408 = vmatprep.subr.mxu1 %v14254_v57  ;;  %v7320_v1 = vld [vmem:[%s14196_s0 + $0xf8] sm:$0xff] }
 0x9e3   :  { %2563 = vmatpush1.msra.mxu0 %v10717_v2  ;;  %8409 = vmatpush3.msra.mxu1 %v10722_v3 }
 0x9e4   :  { %2564 = vmatprep.subr.mxu0 %v10729_v4  ;;  %8410 = vmatprep.subr.mxu1 %v14254_v57 }
 0x9e5   :  { %2565 = vmatpush1.msra.mxu0 %v10736_v5  ;;  %8411 = vmatpush3.msra.mxu1 %v10741_v6 }
 0x9e6   :  { %2566 = vmatprep.subr.mxu0 %v10748_v7  ;;  %8412 = vmatprep.subr.mxu1 %v14254_v57 }
 0x9e7   :  { %2567 = vmatpush1.msra.mxu0 %v10755_v8  ;;  %8413 = vmatpush3.msra.mxu1 %v10760_v10 }
 0x9e8   :  { %2568 = vmatprep.subr.mxu0 %v10767_v11  ;;  %8414 = vmatprep.subr.mxu1 %v14254_v57 }
 0x9e9   :  { %2569 = vmatpush1.msra.mxu0 %v10774_v63  ;;  %8415 = vmatpush3.msra.mxu1 %v10779_v28  ;;  %v7321_v63 = vld [vmem:[%s14196_s0 + $0x100] sm:$0xff] }
 0x9ea   :  { %2570 = vmatprep.subr.mxu0 %v10786_v9  ;;  %8416 = vmatprep.subr.mxu1 %v14254_v57 }
 0x9eb   :  { %2571 = vmatpush1.msra.mxu0 %v10793_v12  ;;  %8417 = vmatpush3.msra.mxu1 %v10798_v18 }
 0x9ec   :  { %2572 = vmatprep.subr.mxu0 %v10803_v19  ;;  %8418 = vmatprep.subr.mxu1 %v14254_v57 }
 0x9ed   :  { %2573 = vmatpush1.msra.mxu0 %v10810_v20  ;;  %8419 = vmatpush3.msra.mxu1 %v10815_v23 }
 0x9ee   :  { %2574 = vmatprep.subr.mxu0 %v10820_v24  ;;  %8420 = vmatprep.subr.mxu1 %v14254_v57 }
 0x9ef   :  { %2575 = vmatpush1.msra.mxu0 %v10827_v21  ;;  %8421 = vmatpush3.msra.mxu1 %v10832_v16  ;;  %v11250_v21 = vld [vmem:[%s14194_s2 + $0x170] sm:$0xff]  ;;  %v11256_v16 = vld [vmem:[%s14194_s2 + $0x168] sm:$0xff] }
 0x9f0   :  { %2576 = vmatprep.subr.mxu0 %v10839_v25  ;;  %8422 = vmatprep.subr.mxu1 %v14254_v57  ;;  %14275 = vst [vmem:[#allocation3_spill] sm:$0xff] %v11250_v21  ;;  %v11262_v25 = vld [vmem:[%s14194_s2 + $0x158] sm:$0xff] }
 0x9f1   :  { %2577 = vmatpush1.msra.mxu0 %v10846_v26  ;;  %8423 = vmatpush3.msra.mxu1 %v10851_v27  ;;  %v11268_v26 = vld [vmem:[%s14194_s2 + $0x150] sm:$0xff]  ;;  %v11273_v27 = vld [vmem:[%s14194_s2 + $0x160] sm:$0xff] }
 0x9f2   :  { %2578 = vmatprep.subr.mxu0 %v10858_v13  ;;  %8424 = vmatprep.subr.mxu1 %v14254_v57  ;;  %v11280_v13 = vld [vmem:[%s14194_s2 + $0x140] sm:$0xff] }
 0x9f3   :  { %2579 = vmatpush1.msra.mxu0 %v10865_v15  ;;  %8425 = vmatpush3.msra.mxu1 %v10870_v17  ;;  %v11287_v15 = vld [vmem:[%s14194_s2 + $0x138] sm:$0xff]  ;;  %v11292_v17 = vld [vmem:[%s14194_s2 + $0x148] sm:$0xff] }
 0x9f4   :  { %2580 = vmatprep.subr.mxu0 %v10877_v29  ;;  %8426 = vmatprep.subr.mxu1 %v14254_v57  ;;  %v11299_v29 = vld [vmem:[%s14194_s2 + $0x128] sm:$0xff] }
 0x9f5   :  { %2581 = vmatpush1.msra.mxu0 %v10884_v30  ;;  %8427 = vmatpush3.msra.mxu1 %v10889_v14  ;;  %v11306_v30 = vld [vmem:[%s14194_s2 + $0x120] sm:$0xff]  ;;  %v11311_v14 = vld [vmem:[%s14194_s2 + $0x130] sm:$0xff] }
 0x9f6   :  { %2582 = vmatprep.subr.mxu0 %v10896_v31  ;;  %8428 = vmatprep.subr.mxu1 %v14254_v57  ;;  %v11318_v31 = vld [vmem:[%s14194_s2 + $0x110] sm:$0xff] }
 0x9f7   :  { %2583 = vmatpush1.msra.mxu0 %v10903_v32  ;;  %8429 = vmatpush3.msra.mxu1 %v10908_v33  ;;  %v11325_v32 = vld [vmem:[%s14194_s2 + $0x108] sm:$0xff]  ;;  %v11330_v33 = vld [vmem:[%s14194_s2 + $0x118] sm:$0xff] }
 0x9f8   :  { %2584 = vmatprep.subr.mxu0 %v10915_v34  ;;  %8430 = vmatprep.subr.mxu1 %v14254_v57  ;;  %v11337_v34 = vld [vmem:[%s14194_s2 + $0xf8] sm:$0xff] }
 0x9f9   :  { %2585 = vmatpush1.msra.mxu0 %v10922_v35  ;;  %8431 = vmatpush3.msra.mxu1 %v14270_v44  ;;  %v11344_v35 = vld [vmem:[%s14194_s2 + $0xf0] sm:$0xff]  ;;  %v11368_v44 = vld [vmem:[%s14194_s2 + $0xe8] sm:$0xff] }
 0x9fa   :  { %2586 = vmatprep.subr.mxu0 %v10934_v37  ;;  %8432 = vmatprep.subr.mxu1 %v14254_v57  ;;  %v11349_v37 = vld [vmem:[%s14194_s2 + $0x100] sm:$0xff] }
 0x9fb   :  { %2587 = vmatpush1.msra.mxu0 %v14273_v62  ;;  %2620 = vmatprep.mubr.f32.mxu0 %v14254_v57  ;;  %v11466_v62 = vld [vmem:[%s14194_s2 + $0x50] sm:$0xff] }
 0x9fc   :  { %8433 = vmatpush3.msra.mxu1 %v14274_v51  ;;  %8434 = vmatprep.mubr.msk.f32.mxu1 %vm9460_vm0, %v14254_v57  ;;  %v11473_v51 = vld [vmem:[%s14194_s2 + $0x48] sm:$0xff] }
 0x9fd   :  { %8437 = vmatprep.subr.mxu1 %v14254_v57  ;;  %2782 = vmatprep.subr.mxu0 %v11250_v21 }
 0xa9c   :  { %v2396_v53 = vpop.f32.mrf.mxu0  ;;  %v2467_v54 = vpop.f32.mrf.mxu1 }
 0xa9d   :  { %v2471_v55 = vadd.f32 %v7319_v52, %v2396_v53  ;;  %v2492_v10 = vadd.f32 %v11056_v49, %v2467_v54  ;;  %v11478_v52 = vld [vmem:[%s14194_s2 + $0x58] sm:$0xff]  ;;  %v11492_v54 = vld [vmem:[%s14194_s2 + $0x30] sm:$0xff] }
 0xa9e   :  { %v8401_v56 = vpop.f32.mrf.mxu1  ;;  %v2398_v2 = vpop.f32.mrf.mxu0  ;;  %v11485_v53 = vld [vmem:[%s14194_s2 + $0x38] sm:$0xff] }
 0xa9f   :  { %v7322_v58 = vmul.f32 -1.442695, %v2471_v55  ;;  %v2478_v3 = vadd.f32 %v7320_v1, %v2398_v2  ;;  %v11497_v55 = vld [vmem:[%s14194_s2 + $0x40] sm:$0xff]  ;;  %v11516_v1 = vld [vmem:[%s14194_s2 + $0x28] sm:$0xff] }
 0xaa0   :  { %v11504_v56 = vld [vmem:[%s14194_s2 + $0x20] sm:$0xff]  ;;  %14276 = vst [vmem:[#allocation4_spill] sm:$0xff] %v11516_v1  ;;  %v11523_v2 = vld [vmem:[%s14194_s2 + $0x8] sm:$0xff] }
 0xaa1   :  { %9239 = vpow2.f32 %v7322_v58  ;;  %v7323_v4 = vmul.f32 -1.442695, %v2478_v3  ;;  %v11511_v58 = vld [vmem:[%s14194_s2 + $0x18] sm:$0xff]  ;;  %v11530_v3 = vld [vmem:[%s14194_s2] sm:$0xff] }
 0xaa2   :  { %14277 = vst [vmem:[#allocation5_spill] sm:$0xff] %v11530_v3 }
 0xaa3   :  { %9241 = vpow2.f32 %v7323_v4  ;;  %v11535_v4 = vld [vmem:[%s14194_s2 + $0x10] sm:$0xff] }
 0xaa4   :  { %14278 = vst [vmem:[#allocation6_spill] sm:$0xff] %v11535_v4 }
 0xaae   :  { %v9240_v5 = vpop.eup %9239 }
 0xaaf   :  { %v2475_v6 = vadd.f32 1.0, %v9240_v5  ;;  %v7326_v5 = vld [vmem:[%s14196_s0 + $0x108] sm:$0xff] }
 0xab0   :  { %v9242_v7 = vpop.eup %9241 }
 0xab1   :  { %9243 = vrcp.f32 %v2475_v6  ;;  %v2482_v8 = vadd.f32 1.0, %v9242_v7 }
 0xab3   :  { %9245 = vrcp.f32 %v2482_v8 }
 0xabe   :  { %v9244_v11 = vpop.eup %9243 }
 0xabf   :  { %v2493_v28 = vmul.f32 %v9244_v11, %v2492_v10 }
 0xac0   :  { %v9246_v12 = vpop.eup %9245 }
 0xac1   :  { %v2494_v9 = vadd.f32 %v7321_v63, %v2493_v28  ;;  %v2496_v18 = vsub.f32 1.0, %v9246_v12  ;;  %v2498_v23 = vmul.f32 %v9246_v12, %v11149_v43  ;;  %v11459_v43 = vld [vmem:[%s14194_s2 + $0x70] sm:$0xff] }
 0xac2   :  { %v7327_v63 = vld [vmem:[%s14196_s0 + $0x110] sm:$0xff] }
 0xac3   :  { %9247 = vtanh.f32 %v2494_v9 }
 0xad0   :  { %v9248_v19 = vpop.eup %9247 }
 0xad1   :  { %v2497_v20 = vmul.f32 %v9248_v19, %v2496_v18 }
 0xad3   :  { %v11234_v24 = vadd.f32 %v2498_v23, %v2497_v20 }
 0xad5   :  { %7325 = vst [vmem:[%s14198_s4 + $0x50] sm:$0xff] %v11234_v24  ;;  %2621 = vmatmul.mubr.f32.vlgmr.msra.gmra.mxu0 %v11234_v24  ;;  %8435 = vmatmul.mubr.f32.vlgmr.msra.gmra.mxu1 %v11234_v24 }
 0xad6   :  { %8438 = vmatpush3.msra.mxu1 %v11013_v22  ;;  %2846 = vmatprep.mubr.f32.mxu0 %v14254_v57  ;;  %v11363_v22 = vld [vmem:[%s14194_s2 + $0xd8] sm:$0xff] }
 0xad7   :  { %8439 = vmatprep.subr.mxu1 %v14254_v57  ;;  %8469 = vmatprep.mubr.msk.f32.mxu1 %vm9460_vm0, %v14254_v57 }
 0xad8   :  { %2783 = vmatpush1.msra.mxu0 %v11256_v16  ;;  %8440 = vmatpush3.msra.mxu1 %v11273_v27 }
 0xad9   :  { %2784 = vmatprep.subr.mxu0 %v11262_v25  ;;  %8441 = vmatprep.subr.mxu1 %v14254_v57 }
 0xada   :  { %2785 = vmatpush1.msra.mxu0 %v11268_v26  ;;  %8442 = vmatpush3.msra.mxu1 %v11292_v17 }
 0xadb   :  { %2786 = vmatprep.subr.mxu0 %v11280_v13  ;;  %8443 = vmatprep.subr.mxu1 %v14254_v57 }
 0xadc   :  { %2787 = vmatpush1.msra.mxu0 %v11287_v15  ;;  %8444 = vmatpush3.msra.mxu1 %v11311_v14 }
 0xadd   :  { %2788 = vmatprep.subr.mxu0 %v11299_v29  ;;  %8445 = vmatprep.subr.mxu1 %v14254_v57 }
 0xade   :  { %2789 = vmatpush1.msra.mxu0 %v11306_v30  ;;  %8446 = vmatpush3.msra.mxu1 %v11330_v33 }
 0xadf   :  { %2790 = vmatprep.subr.mxu0 %v11318_v31  ;;  %8447 = vmatprep.subr.mxu1 %v14254_v57 }
 0xae0   :  { %2791 = vmatpush1.msra.mxu0 %v11325_v32  ;;  %8448 = vmatpush3.msra.mxu1 %v11349_v37 }
 0xae1   :  { %2792 = vmatprep.subr.mxu0 %v11337_v34  ;;  %8449 = vmatprep.subr.mxu1 %v14254_v57 }
 0xae2   :  { %2793 = vmatpush1.msra.mxu0 %v11344_v35  ;;  %8450 = vmatpush3.msra.mxu1 %v11368_v44 }
 0xae3   :  { %2794 = vmatprep.subr.mxu0 %v11356_v38  ;;  %8451 = vmatprep.subr.mxu1 %v14254_v57 }
 0xae4   :  { %2795 = vmatpush1.msra.mxu0 %v11363_v22  ;;  %8452 = vmatpush3.msra.mxu1 %v11387_v45 }
 0xae5   :  { %2796 = vmatprep.subr.mxu0 %v11375_v36  ;;  %8453 = vmatprep.subr.mxu1 %v14254_v57 }
 0xae6   :  { %2797 = vmatpush1.msra.mxu0 %v11382_v39  ;;  %8454 = vmatpush3.msra.mxu1 %v11404_v50 }
 0xae7   :  { %2798 = vmatprep.subr.mxu0 %v11392_v46  ;;  %8455 = vmatprep.subr.mxu1 %v14254_v57 }
 0xae8   :  { %2799 = vmatpush1.msra.mxu0 %v11399_v47  ;;  %8456 = vmatpush3.msra.mxu1 %v11421_v42 }
 0xae9   :  { %2800 = vmatprep.subr.mxu0 %v11409_v0  ;;  %8457 = vmatprep.subr.mxu1 %v14254_v57 }
 0xaea   :  { %2801 = vmatpush1.msra.mxu0 %v11416_v48  ;;  %8458 = vmatpush3.msra.mxu1 %v11440_v61 }
 0xaeb   :  { %2802 = vmatprep.subr.mxu0 %v11428_v59  ;;  %8459 = vmatprep.subr.mxu1 %v14254_v57 }
 0xaec   :  { %2803 = vmatpush1.msra.mxu0 %v11435_v60  ;;  %8460 = vmatpush3.msra.mxu1 %v11459_v43 }
 0xaed   :  { %2804 = vmatprep.subr.mxu0 %v11447_v40  ;;  %8461 = vmatprep.subr.mxu1 %v14254_v57 }
 0xaee   :  { %2805 = vmatpush1.msra.mxu0 %v11454_v41  ;;  %8462 = vmatpush3.msra.mxu1 %v11478_v52 }
 0xaef   :  { %2806 = vmatprep.subr.mxu0 %v11466_v62  ;;  %8463 = vmatprep.subr.mxu1 %v14254_v57 }
 0xaf0   :  { %2807 = vmatpush1.msra.mxu0 %v11473_v51  ;;  %8464 = vmatpush3.msra.mxu1 %v11497_v55 }
 0xaf1   :  { %2808 = vmatprep.subr.mxu0 %v11485_v53  ;;  %8465 = vmatprep.subr.mxu1 %v14254_v57 }
 0xaf2   :  { %2809 = vmatpush1.msra.mxu0 %v11492_v54  ;;  %8466 = vmatpush3.msra.mxu1 %v11516_v1 }
 0xaf3   :  { %2810 = vmatprep.subr.mxu0 %v11504_v56  ;;  %8467 = vmatprep.subr.mxu1 %v14254_v57 }
 0xaf4   :  { %2811 = vmatpush1.msra.mxu0 %v11511_v58  ;;  %8468 = vmatpush3.msra.mxu1 %v11535_v4 }
 0xaf5   :  { %2812 = vmatprep.subr.mxu0 %v11523_v2  ;;  %8472 = vmatprep.subr.mxu1 %v14254_v57 }
 0xaf6   :  { %2813 = vmatpush1.msra.mxu0 %v11530_v3 }
 0xaf7   :  { %3008 = vmatprep.subr.mxu0 %v11250_v21 }
 0xb95   :  { %v2622_v6 = vpop.f32.mrf.mxu0  ;;  %v2693_v7 = vpop.f32.mrf.mxu1 }
 0xb96   :  { %v2697_v8 = vadd.f32 %v7326_v5, %v2622_v6  ;;  %v2718_v4 = vadd.f32 %v11056_v49, %v2693_v7  ;;  %v7328_v5 = vld [vmem:[%s14196_s0 + $0x118] sm:$0xff] }
 0xb97   :  { %v8436_v10 = vpop.f32.mrf.mxu1  ;;  %v2624_v28 = vpop.f32.mrf.mxu0  ;;  %v11602_v49 = vld [vmem:[%s14194_s2 + $0x178] sm:$0xff] }
 0xb98   :  { %v7329_v11 = vmul.f32 -1.442695, %v2697_v8  ;;  %v2704_v9 = vadd.f32 %v7327_v63, %v2624_v28 }
 0xb9a   :  { %9249 = vpow2.f32 %v7329_v11  ;;  %v7330_v12 = vmul.f32 -1.442695, %v2704_v9 }
 0xb9c   :  { %9251 = vpow2.f32 %v7330_v12 }
 0xba7   :  { %v9250_v18 = vpop.eup %9249 }
 0xba8   :  { %v2701_v19 = vadd.f32 1.0, %v9250_v18 }
 0xba9   :  { %v9252_v20 = vpop.eup %9251 }
 0xbaa   :  { %9253 = vrcp.f32 %v2701_v19  ;;  %v2708_v23 = vadd.f32 1.0, %v9252_v20 }
 0xbac   :  { %9255 = vrcp.f32 %v2708_v23 }
 0xbb7   :  { %v9254_v1 = vpop.eup %9253 }
 0xbb8   :  { %v2719_v6 = vmul.f32 %v9254_v1, %v2718_v4  ;;  %v14280_v1 = vld [vmem:[#allocation6_spill] sm:$0xff]  ;;  %v7333_v4 = vld [vmem:[%s14196_s0 + $0x120] sm:$0xff] }
 0xbb9   :  { %v9256_v10 = vpop.eup %9255 }
 0xbba   :  { %v2720_v8 = vadd.f32 %v7328_v5, %v2719_v6  ;;  %v2722_v11 = vsub.f32 1.0, %v9256_v10  ;;  %v2724_v9 = vmul.f32 %v9256_v10, %v11234_v24  ;;  %v14279_v24 = vld [vmem:[#allocation4_spill] sm:$0xff] }
 0xbbb   :  { %v7334_v5 = vld [vmem:[%s14196_s0 + $0x128] sm:$0xff] }
 0xbbc   :  { %9257 = vtanh.f32 %v2720_v8 }
 0xbc9   :  { %v9258_v63 = vpop.eup %9257 }
 0xbca   :  { %v2723_v28 = vmul.f32 %v9258_v63, %v2722_v11 }
 0xbcc   :  { %v11556_v12 = vadd.f32 %v2724_v9, %v2723_v28  ;;  %v11645_v9 = vld [vmem:[%s14197_s3] ss:$0 sm:$0xff] }
 0xbce   :  { %7332 = vst [vmem:[%s14198_s4 + $0x58] sm:$0xff] %v11556_v12  ;;  %2847 = vmatmul.mubr.f32.vlgmr.msra.gmra.mxu0 %v11556_v12  ;;  %8470 = vmatmul.mubr.f32.vlgmr.msra.gmra.mxu1 %v11556_v12 }
 0xbcf   :  { %3009 = vmatpush1.msra.mxu0 %v11256_v16  ;;  %3072 = vmatprep.mubr.f32.mxu0 %v14254_v57 }
 0xbd0   :  { %3010 = vmatprep.subr.mxu0 %v11262_v25  ;;  %8504 = vmatprep.mubr.msk.f32.mxu1 %vm9460_vm0, %v14254_v57 }
 0xbd1   :  { %3011 = vmatpush1.msra.mxu0 %v11268_v26  ;;  %8473 = vmatpush3.msra.mxu1 %v11602_v49 }
 0xbd2   :  { %3012 = vmatprep.subr.mxu0 %v11280_v13  ;;  %8474 = vmatprep.subr.mxu1 %v14254_v57 }
 0xbd3   :  { %3013 = vmatpush1.msra.mxu0 %v11287_v15  ;;  %8475 = vmatpush3.msra.mxu1 %v11273_v27 }
 0xbd4   :  { %3014 = vmatprep.subr.mxu0 %v11299_v29  ;;  %8476 = vmatprep.subr.mxu1 %v14254_v57 }
 0xbd5   :  { %3015 = vmatpush1.msra.mxu0 %v11306_v30  ;;  %8477 = vmatpush3.msra.mxu1 %v11292_v17 }
 0xbd6   :  { %3016 = vmatprep.subr.mxu0 %v11318_v31  ;;  %8478 = vmatprep.subr.mxu1 %v14254_v57 }
 0xbd7   :  { %3017 = vmatpush1.msra.mxu0 %v11325_v32  ;;  %8479 = vmatpush3.msra.mxu1 %v11311_v14 }
 0xbd8   :  { %3018 = vmatprep.subr.mxu0 %v11337_v34  ;;  %8480 = vmatprep.subr.mxu1 %v14254_v57 }
 0xbd9   :  { %3019 = vmatpush1.msra.mxu0 %v11344_v35  ;;  %8481 = vmatpush3.msra.mxu1 %v11330_v33 }
 0xbda   :  { %3020 = vmatprep.subr.mxu0 %v11356_v38  ;;  %8482 = vmatprep.subr.mxu1 %v14254_v57 }
 0xbdb   :  { %3021 = vmatpush1.msra.mxu0 %v11363_v22  ;;  %8483 = vmatpush3.msra.mxu1 %v11349_v37 }
 0xbdc   :  { %3022 = vmatprep.subr.mxu0 %v11375_v36  ;;  %8484 = vmatprep.subr.mxu1 %v14254_v57 }
 0xbdd   :  { %3023 = vmatpush1.msra.mxu0 %v11382_v39  ;;  %8485 = vmatpush3.msra.mxu1 %v11368_v44 }
 0xbde   :  { %3024 = vmatprep.subr.mxu0 %v11392_v46  ;;  %8486 = vmatprep.subr.mxu1 %v14254_v57 }
 0xbdf   :  { %3025 = vmatpush1.msra.mxu0 %v11399_v47  ;;  %8487 = vmatpush3.msra.mxu1 %v11387_v45 }
 0xbe0   :  { %3026 = vmatprep.subr.mxu0 %v11409_v0  ;;  %8488 = vmatprep.subr.mxu1 %v14254_v57 }
 0xbe1   :  { %3027 = vmatpush1.msra.mxu0 %v11416_v48  ;;  %8489 = vmatpush3.msra.mxu1 %v11404_v50 }
 0xbe2   :  { %3028 = vmatprep.subr.mxu0 %v11428_v59  ;;  %8490 = vmatprep.subr.mxu1 %v14254_v57 }
 0xbe3   :  { %3029 = vmatpush1.msra.mxu0 %v11435_v60  ;;  %8491 = vmatpush3.msra.mxu1 %v11421_v42 }
 0xbe4   :  { %3030 = vmatprep.subr.mxu0 %v11447_v40  ;;  %8492 = vmatprep.subr.mxu1 %v14254_v57 }
 0xbe5   :  { %3031 = vmatpush1.msra.mxu0 %v11454_v41  ;;  %8493 = vmatpush3.msra.mxu1 %v11440_v61 }
 0xbe6   :  { %3032 = vmatprep.subr.mxu0 %v11466_v62  ;;  %8494 = vmatprep.subr.mxu1 %v14254_v57 }
 0xbe7   :  { %3033 = vmatpush1.msra.mxu0 %v11473_v51  ;;  %8495 = vmatpush3.msra.mxu1 %v11459_v43 }
 0xbe8   :  { %3034 = vmatprep.subr.mxu0 %v11485_v53  ;;  %8496 = vmatprep.subr.mxu1 %v14254_v57 }
 0xbe9   :  { %3035 = vmatpush1.msra.mxu0 %v11492_v54  ;;  %8497 = vmatpush3.msra.mxu1 %v11478_v52 }
 0xbea   :  { %3036 = vmatprep.subr.mxu0 %v11504_v56  ;;  %8498 = vmatprep.subr.mxu1 %v14254_v57 }
 0xbeb   :  { %3037 = vmatpush1.msra.mxu0 %v11511_v58  ;;  %8499 = vmatpush3.msra.mxu1 %v11497_v55 }
 0xbec   :  { %3038 = vmatprep.subr.mxu0 %v11523_v2  ;;  %8500 = vmatprep.subr.mxu1 %v14254_v57 }
 0xbed   :  { %3039 = vmatpush1.msra.mxu0 %v11530_v3  ;;  %8501 = vmatpush3.msra.mxu1 %v14279_v24 }
 0xbee   :  { %3234 = vmatprep.subr.mxu0 %v11250_v21  ;;  %8502 = vmatprep.subr.mxu1 %v14254_v57 }
 0xbef   :  { %8503 = vmatpush3.msra.mxu1 %v14280_v1 }
 0xbf0   :  { %8507 = vmatprep.subr.mxu1 %v14254_v57 }
 0xc8e   :  { %v2848_v7 = vpop.f32.mrf.mxu0  ;;  %v2919_v18 = vpop.f32.mrf.mxu1 }
 0xc8f   :  { %v2923_v19 = vadd.f32 %v7333_v4, %v2848_v7  ;;  %v2944_v7 = vadd.f32 %v11645_v9, %v2919_v18  ;;  %v7340_v18 = vld [vmem:[%s14196_s0 + $0x138] sm:$0xff] }
 0xc90   :  { %v8471_v20 = vpop.f32.mrf.mxu1  ;;  %v2850_v6 = vpop.f32.mrf.mxu0 }
 0xc91   :  { %v7336_v23 = vmul.f32 -1.442695, %v2923_v19  ;;  %v2930_v8 = vadd.f32 %v7334_v5, %v2850_v6  ;;  %v7335_v20 = vld [vmem:[%s14196_s0 + $0x130] sm:$0xff] }
 0xc93   :  { %9259 = vpow2.f32 %v7336_v23  ;;  %v7337_v10 = vmul.f32 -1.442695, %v2930_v8 }
 0xc95   :  { %9261 = vpow2.f32 %v7337_v10 }
 0xca0   :  { %v9260_v11 = vpop.eup %9259 }
 0xca1   :  { %v2927_v63 = vadd.f32 1.0, %v9260_v11 }
 0xca2   :  { %v9262_v28 = vpop.eup %9261 }
 0xca3   :  { %9263 = vrcp.f32 %v2927_v63  ;;  %v2934_v4 = vadd.f32 1.0, %v9262_v28 }
 0xca5   :  { %9265 = vrcp.f32 %v2934_v4 }
 0xcb0   :  { %v9264_v19 = vpop.eup %9263 }
 0xcb1   :  { %v2945_v23 = vmul.f32 %v9264_v19, %v2944_v7 }
 0xcb2   :  { %v9266_v6 = vpop.eup %9265 }
 0xcb3   :  { %v2946_v5 = vadd.f32 %v7335_v20, %v2945_v23  ;;  %v2948_v8 = vsub.f32 1.0, %v9266_v6  ;;  %v2950_v63 = vmul.f32 %v9266_v6, %v11556_v12  ;;  %v14281_v12 = vld [vmem:[#allocation3_spill] sm:$0xff] }
 0xcb4   :  { %v7341_v23 = vld [vmem:[%s14196_s0 + $0x140] sm:$0xff] }
 0xcb5   :  { %9267 = vtanh.f32 %v2946_v5 }
 0xcc2   :  { %v9268_v10 = vpop.eup %9267 }
 0xcc3   :  { %v2949_v11 = vmul.f32 %v9268_v10, %v2948_v8 }
 0xcc5   :  { %v11652_v21 = vadd.f32 %v2950_v63, %v2949_v11 }
 0xcc7   :  { %7339 = vst [vmem:[%s14198_s4 + $0x60] sm:$0xff] %v11652_v21  ;;  %3073 = vmatmul.mubr.f32.vlgmr.msra.gmra.mxu0 %v11652_v21  ;;  %8505 = vmatmul.mubr.f32.vlgmr.msra.gmra.mxu1 %v11652_v21 }
 0xcc8   :  { %3235 = vmatpush1.msra.mxu0 %v11256_v16  ;;  %8508 = vmatpush3.msra.mxu1 %v11602_v49 }
 0xcc9   :  { %3236 = vmatprep.subr.mxu0 %v11262_v25  ;;  %8509 = vmatprep.subr.mxu1 %v14254_v57 }
 0xcca   :  { %3237 = vmatpush1.msra.mxu0 %v11268_v26  ;;  %8510 = vmatpush3.msra.mxu1 %v11273_v27 }
 0xccb   :  { %3238 = vmatprep.subr.mxu0 %v11280_v13  ;;  %8511 = vmatprep.subr.mxu1 %v14254_v57 }
 0xccc   :  { %3239 = vmatpush1.msra.mxu0 %v11287_v15  ;;  %8512 = vmatpush3.msra.mxu1 %v11292_v17 }
 0xccd   :  { %3240 = vmatprep.subr.mxu0 %v11299_v29  ;;  %8513 = vmatprep.subr.mxu1 %v14254_v57 }
 0xcce   :  { %3241 = vmatpush1.msra.mxu0 %v11306_v30  ;;  %8514 = vmatpush3.msra.mxu1 %v11311_v14 }
 0xccf   :  { %3242 = vmatprep.subr.mxu0 %v11318_v31  ;;  %8515 = vmatprep.subr.mxu1 %v14254_v57 }
 0xcd0   :  { %3243 = vmatpush1.msra.mxu0 %v11325_v32  ;;  %8516 = vmatpush3.msra.mxu1 %v11330_v33 }
 0xcd1   :  { %3244 = vmatprep.subr.mxu0 %v11337_v34  ;;  %8517 = vmatprep.subr.mxu1 %v14254_v57 }
 0xcd2   :  { %3245 = vmatpush1.msra.mxu0 %v11344_v35  ;;  %8518 = vmatpush3.msra.mxu1 %v11349_v37 }
 0xcd3   :  { %3246 = vmatprep.subr.mxu0 %v11356_v38  ;;  %8519 = vmatprep.subr.mxu1 %v14254_v57 }
 0xcd4   :  { %3247 = vmatpush1.msra.mxu0 %v11363_v22  ;;  %8520 = vmatpush3.msra.mxu1 %v11368_v44 }
 0xcd5   :  { %3248 = vmatprep.subr.mxu0 %v11375_v36  ;;  %8521 = vmatprep.subr.mxu1 %v14254_v57 }
 0xcd6   :  { %3249 = vmatpush1.msra.mxu0 %v11382_v39  ;;  %8522 = vmatpush3.msra.mxu1 %v11387_v45 }
 0xcd7   :  { %3250 = vmatprep.subr.mxu0 %v11392_v46  ;;  %8523 = vmatprep.subr.mxu1 %v14254_v57 }
 0xcd8   :  { %3251 = vmatpush1.msra.mxu0 %v11399_v47  ;;  %8524 = vmatpush3.msra.mxu1 %v11404_v50 }
 0xcd9   :  { %3252 = vmatprep.subr.mxu0 %v11409_v0  ;;  %8525 = vmatprep.subr.mxu1 %v14254_v57 }
 0xcda   :  { %3253 = vmatpush1.msra.mxu0 %v11416_v48  ;;  %8526 = vmatpush3.msra.mxu1 %v11421_v42 }
 0xcdb   :  { %3254 = vmatprep.subr.mxu0 %v11428_v59  ;;  %8527 = vmatprep.subr.mxu1 %v14254_v57 }
 0xcdc   :  { %3255 = vmatpush1.msra.mxu0 %v11435_v60  ;;  %8528 = vmatpush3.msra.mxu1 %v11440_v61 }
 0xcdd   :  { %3256 = vmatprep.subr.mxu0 %v11447_v40  ;;  %8529 = vmatprep.subr.mxu1 %v14254_v57 }
 0xcde   :  { %3257 = vmatpush1.msra.mxu0 %v11454_v41  ;;  %8530 = vmatpush3.msra.mxu1 %v11459_v43 }
 0xcdf   :  { %3258 = vmatprep.subr.mxu0 %v11466_v62  ;;  %8531 = vmatprep.subr.mxu1 %v14254_v57 }
 0xce0   :  { %3259 = vmatpush1.msra.mxu0 %v11473_v51  ;;  %8532 = vmatpush3.msra.mxu1 %v11478_v52 }
 0xce1   :  { %3260 = vmatprep.subr.mxu0 %v11485_v53  ;;  %8533 = vmatprep.subr.mxu1 %v14254_v57 }
 0xce2   :  { %3261 = vmatpush1.msra.mxu0 %v11492_v54  ;;  %8534 = vmatpush3.msra.mxu1 %v11497_v55 }
 0xce3   :  { %3262 = vmatprep.subr.mxu0 %v11504_v56  ;;  %8535 = vmatprep.subr.mxu1 %v14254_v57 }
 0xce4   :  { %3263 = vmatpush1.msra.mxu0 %v11511_v58  ;;  %8536 = vmatpush3.msra.mxu1 %v14279_v24 }
 0xce5   :  { %3264 = vmatprep.subr.mxu0 %v11523_v2  ;;  %8537 = vmatprep.subr.mxu1 %v14254_v57 }
 0xce6   :  { %3265 = vmatpush1.msra.mxu0 %v11530_v3  ;;  %3298 = vmatprep.mubr.f32.mxu0 %v14254_v57 }
 0xce7   :  { %8538 = vmatpush3.msra.mxu1 %v14280_v1  ;;  %8539 = vmatprep.mubr.msk.f32.mxu1 %vm9460_vm0, %v14254_v57 }
 0xce8   :  { %3460 = vmatprep.subr.mxu0 %v14281_v12  ;;  %8542 = vmatprep.subr.mxu1 %v14254_v57 }
 0xd87   :  { %v3074_v28 = vpop.f32.mrf.mxu0  ;;  %v3145_v4 = vpop.f32.mrf.mxu1 }
 0xd88   :  { %v3149_v7 = vadd.f32 %v7340_v18, %v3074_v28  ;;  %v3170_v1 = vadd.f32 %v11645_v9, %v3145_v4  ;;  %v7342_v18 = vld [vmem:[%s14196_s0 + $0x148] sm:$0xff]  ;;  %v11971_v4 = vld [vmem:[%s14194_s2 + $0xc0] sm:$0xff] }
 0xd89   :  { %v8506_v19 = vpop.f32.mrf.mxu1  ;;  %v3076_v5 = vpop.f32.mrf.mxu0 }
 0xd8a   :  { %v7343_v20 = vmul.f32 -1.442695, %v3149_v7  ;;  %v3156_v6 = vadd.f32 %v7341_v23, %v3076_v5 }
 0xd8c   :  { %9269 = vpow2.f32 %v7343_v20  ;;  %v7344_v8 = vmul.f32 -1.442695, %v3156_v6 }
 0xd8e   :  { %9271 = vpow2.f32 %v7344_v8 }
 0xd99   :  { %v9270_v10 = vpop.eup %9269 }
 0xd9a   :  { %v3153_v11 = vadd.f32 1.0, %v9270_v10  ;;  %v11976_v10 = vld [vmem:[%s14194_s2 + $0xd0] sm:$0xff] }
 0xd9b   :  { %v9272_v63 = vpop.eup %9271 }
 0xd9c   :  { %9273 = vrcp.f32 %v3153_v11  ;;  %v3160_v12 = vadd.f32 1.0, %v9272_v63  ;;  %v11981_v11 = vld [vmem:[%s14194_s2 + $0xb0] sm:$0xff]  ;;  %v11988_v63 = vld [vmem:[%s14194_s2 + $0xa8] sm:$0xff] }
 0xd9e   :  { %9275 = vrcp.f32 %v3160_v12  ;;  %v11993_v12 = vld [vmem:[%s14194_s2 + $0xb8] sm:$0xff] }
 0xda9   :  { %v9274_v3 = vpop.eup %9273 }
 0xdaa   :  { %v3171_v28 = vmul.f32 %v9274_v3, %v3170_v1  ;;  %v11945_v3 = vld [vmem:[%s14194_s2 + $0xe0] sm:$0xff]  ;;  %v11964_v1 = vld [vmem:[%s14194_s2 + $0xc8] sm:$0xff] }
 0xdab   :  { %v9276_v19 = vpop.eup %9275 }
 0xdac   :  { %v3172_v7 = vadd.f32 %v7342_v18, %v3171_v28  ;;  %v3174_v20 = vsub.f32 1.0, %v9276_v19  ;;  %v3176_v6 = vmul.f32 %v9276_v19, %v11652_v21  ;;  %v14282_v21 = vld [vmem:[#allocation5_spill] sm:$0xff]  ;;  %v11998_v18 = vld [vmem:[%s14194_s2 + $0x98] sm:$0xff]  ;;  %v12017_v19 = vld [vmem:[%s14194_s2 + $0x80] sm:$0xff] }
 0xdad   :  { %v12005_v28 = vld [vmem:[%s14194_s2 + $0x90] sm:$0xff] }
 0xdae   :  { %9277 = vtanh.f32 %v3172_v7  ;;  %v12010_v7 = vld [vmem:[%s14194_s2 + $0xa0] sm:$0xff] }
 0xdbb   :  { %v9278_v23 = vpop.eup %9277 }
 0xdbc   :  { %v3175_v5 = vmul.f32 %v9278_v23, %v3174_v20  ;;  %v12024_v20 = vld [vmem:[%s14194_s2 + $0x78] sm:$0xff]  ;;  %v12029_v23 = vld [vmem:[%s14194_s2 + $0x88] sm:$0xff] }
 0xdbe   :  { %v11738_v8 = vadd.f32 %v3176_v6, %v3175_v5  ;;  %v12036_v5 = vld [vmem:[%s14194_s2 + $0x68] sm:$0xff]  ;;  %v12043_v6 = vld [vmem:[%s14194_s2 + $0x60] sm:$0xff] }
 0xdc0   :  { %7346 = vst [vmem:[%s14198_s4 + $0x68] sm:$0xff] %v11738_v8  ;;  %3299 = vmatmul.mubr.f32.vlgmr.msra.gmra.mxu0 %v11738_v8  ;;  %8540 = vmatmul.mubr.f32.vlgmr.msra.gmra.mxu1 %v11738_v8 }
 0xdc1   :  { %3461 = vmatpush1.msra.mxu0 %v11256_v16  ;;  %8543 = vmatpush3.msra.mxu1 %v11602_v49  ;;  %v14283_v16 = vld [vmem:[#allocation6_spill] sm:$0xff] }
 0xdc2   :  { %3462 = vmatprep.subr.mxu0 %v11262_v25  ;;  %8544 = vmatprep.subr.mxu1 %v14254_v57  ;;  %v7347_v25 = vld [vmem:[%s14196_s0 + $0x150] sm:$0xff] }
 0xdc3   :  { %3463 = vmatpush1.msra.mxu0 %v11268_v26  ;;  %8545 = vmatpush3.msra.mxu1 %v11273_v27 }
 0xdc4   :  { %3464 = vmatprep.subr.mxu0 %v11280_v13  ;;  %8546 = vmatprep.subr.mxu1 %v14254_v57 }
 0xdc5   :  { %3465 = vmatpush1.msra.mxu0 %v11287_v15  ;;  %8547 = vmatpush3.msra.mxu1 %v11292_v17 }
 0xdc6   :  { %3466 = vmatprep.subr.mxu0 %v11299_v29  ;;  %8548 = vmatprep.subr.mxu1 %v14254_v57  ;;  %v7348_v29 = vld [vmem:[%s14196_s0 + $0x158] sm:$0xff] }
 0xdc7   :  { %3467 = vmatpush1.msra.mxu0 %v11306_v30  ;;  %8549 = vmatpush3.msra.mxu1 %v11311_v14 }
 0xdc8   :  { %3468 = vmatprep.subr.mxu0 %v11318_v31  ;;  %8550 = vmatprep.subr.mxu1 %v14254_v57 }
 0xdc9   :  { %3469 = vmatpush1.msra.mxu0 %v11325_v32  ;;  %8551 = vmatpush3.msra.mxu1 %v11330_v33 }
 0xdca   :  { %3470 = vmatprep.subr.mxu0 %v11337_v34  ;;  %8552 = vmatprep.subr.mxu1 %v14254_v57 }
 0xdcb   :  { %3471 = vmatpush1.msra.mxu0 %v11344_v35  ;;  %8553 = vmatpush3.msra.mxu1 %v11349_v37 }
 0xdcc   :  { %3472 = vmatprep.subr.mxu0 %v11356_v38  ;;  %8554 = vmatprep.subr.mxu1 %v14254_v57 }
 0xdcd   :  { %3473 = vmatpush1.msra.mxu0 %v11363_v22  ;;  %8555 = vmatpush3.msra.mxu1 %v11368_v44  ;;  %v7349_v22 = vld [vmem:[%s14196_s0 + $0x160] sm:$0xff] }
 0xdce   :  { %3474 = vmatprep.subr.mxu0 %v11375_v36  ;;  %8556 = vmatprep.subr.mxu1 %v14254_v57 }
 0xdcf   :  { %3475 = vmatpush1.msra.mxu0 %v11382_v39  ;;  %8557 = vmatpush3.msra.mxu1 %v11387_v45 }
 0xdd0   :  { %3476 = vmatprep.subr.mxu0 %v11392_v46  ;;  %8558 = vmatprep.subr.mxu1 %v14254_v57 }
 0xdd1   :  { %3477 = vmatpush1.msra.mxu0 %v11399_v47  ;;  %8559 = vmatpush3.msra.mxu1 %v11404_v50 }
 0xdd2   :  { %3478 = vmatprep.subr.mxu0 %v11409_v0  ;;  %8560 = vmatprep.subr.mxu1 %v14254_v57 }
 0xdd3   :  { %3479 = vmatpush1.msra.mxu0 %v11416_v48  ;;  %8561 = vmatpush3.msra.mxu1 %v11421_v42  ;;  %v11839_v48 = vld [vmem:[%s14194_s2 + $0x170] sm:$0xff]  ;;  %v11845_v42 = vld [vmem:[%s14194_s2 + $0x168] sm:$0xff] }
 0xdd4   :  { %3480 = vmatprep.subr.mxu0 %v11428_v59  ;;  %8562 = vmatprep.subr.mxu1 %v14254_v57  ;;  %14284 = vst [vmem:[#allocation4_spill] sm:$0xff] %v11839_v48  ;;  %v11851_v59 = vld [vmem:[%s14194_s2 + $0x158] sm:$0xff] }
 0xdd5   :  { %3481 = vmatpush1.msra.mxu0 %v11435_v60  ;;  %8563 = vmatpush3.msra.mxu1 %v11440_v61  ;;  %v11857_v60 = vld [vmem:[%s14194_s2 + $0x150] sm:$0xff]  ;;  %v11862_v61 = vld [vmem:[%s14194_s2 + $0x160] sm:$0xff] }
 0xdd6   :  { %3482 = vmatprep.subr.mxu0 %v11447_v40  ;;  %8564 = vmatprep.subr.mxu1 %v14254_v57  ;;  %v11869_v40 = vld [vmem:[%s14194_s2 + $0x140] sm:$0xff] }
 0xdd7   :  { %3483 = vmatpush1.msra.mxu0 %v11454_v41  ;;  %8565 = vmatpush3.msra.mxu1 %v11459_v43  ;;  %v11876_v41 = vld [vmem:[%s14194_s2 + $0x138] sm:$0xff]  ;;  %v11881_v43 = vld [vmem:[%s14194_s2 + $0x148] sm:$0xff] }
 0xdd8   :  { %3484 = vmatprep.subr.mxu0 %v11466_v62  ;;  %8566 = vmatprep.subr.mxu1 %v14254_v57  ;;  %v11888_v62 = vld [vmem:[%s14194_s2 + $0x128] sm:$0xff] }
 0xdd9   :  { %3485 = vmatpush1.msra.mxu0 %v11473_v51  ;;  %8567 = vmatpush3.msra.mxu1 %v11478_v52  ;;  %v11895_v51 = vld [vmem:[%s14194_s2 + $0x120] sm:$0xff]  ;;  %v11900_v52 = vld [vmem:[%s14194_s2 + $0x130] sm:$0xff] }
 0xdda   :  { %3486 = vmatprep.subr.mxu0 %v11485_v53  ;;  %8568 = vmatprep.subr.mxu1 %v14254_v57  ;;  %v11907_v53 = vld [vmem:[%s14194_s2 + $0x110] sm:$0xff] }
 0xddb   :  { %3487 = vmatpush1.msra.mxu0 %v11492_v54  ;;  %8569 = vmatpush3.msra.mxu1 %v11497_v55  ;;  %v11914_v54 = vld [vmem:[%s14194_s2 + $0x108] sm:$0xff]  ;;  %v11919_v55 = vld [vmem:[%s14194_s2 + $0x118] sm:$0xff] }
 0xddc   :  { %3488 = vmatprep.subr.mxu0 %v11504_v56  ;;  %8570 = vmatprep.subr.mxu1 %v14254_v57  ;;  %v11926_v56 = vld [vmem:[%s14194_s2 + $0xf8] sm:$0xff] }
 0xddd   :  { %3489 = vmatpush1.msra.mxu0 %v11511_v58  ;;  %8571 = vmatpush3.msra.mxu1 %v14279_v24  ;;  %v11933_v58 = vld [vmem:[%s14194_s2 + $0xf0] sm:$0xff]  ;;  %v11957_v24 = vld [vmem:[%s14194_s2 + $0xe8] sm:$0xff] }
 0xdde   :  { %3490 = vmatprep.subr.mxu0 %v11523_v2  ;;  %8572 = vmatprep.subr.mxu1 %v14254_v57  ;;  %v11938_v2 = vld [vmem:[%s14194_s2 + $0x100] sm:$0xff] }
 0xddf   :  { %3491 = vmatpush1.msra.mxu0 %v14282_v21  ;;  %3524 = vmatprep.mubr.f32.mxu0 %v14254_v57  ;;  %v12055_v21 = vld [vmem:[%s14194_s2 + $0x50] sm:$0xff] }
 0xde0   :  { %8573 = vmatpush3.msra.mxu1 %v14283_v16  ;;  %8574 = vmatprep.mubr.msk.f32.mxu1 %vm9460_vm0, %v14254_v57  ;;  %v12062_v16 = vld [vmem:[%s14194_s2 + $0x48] sm:$0xff] }
 0xde1   :  { %8577 = vmatprep.subr.mxu1 %v14254_v57  ;;  %3686 = vmatprep.subr.mxu0 %v11839_v48 }
 0xe80   :  { %v3300_v26 = vpop.f32.mrf.mxu0  ;;  %v3371_v27 = vpop.f32.mrf.mxu1 }
 0xe81   :  { %v3375_v13 = vadd.f32 %v7347_v25, %v3300_v26  ;;  %v3396_v37 = vadd.f32 %v11645_v9, %v3371_v27  ;;  %v12067_v25 = vld [vmem:[%s14194_s2 + $0x58] sm:$0xff]  ;;  %v12081_v27 = vld [vmem:[%s14194_s2 + $0x30] sm:$0xff] }
 0xe82   :  { %v8541_v15 = vpop.f32.mrf.mxu1  ;;  %v3302_v30 = vpop.f32.mrf.mxu0  ;;  %v12074_v26 = vld [vmem:[%s14194_s2 + $0x38] sm:$0xff] }
 0xe83   :  { %v7350_v17 = vmul.f32 -1.442695, %v3375_v13  ;;  %v3382_v14 = vadd.f32 %v7348_v29, %v3302_v30  ;;  %v12086_v13 = vld [vmem:[%s14194_s2 + $0x40] sm:$0xff]  ;;  %v12105_v29 = vld [vmem:[%s14194_s2 + $0x28] sm:$0xff] }
 0xe84   :  { %v12093_v15 = vld [vmem:[%s14194_s2 + $0x20] sm:$0xff]  ;;  %14285 = vst [vmem:[#allocation3_spill] sm:$0xff] %v12105_v29  ;;  %v12112_v30 = vld [vmem:[%s14194_s2 + $0x8] sm:$0xff] }
 0xe85   :  { %9279 = vpow2.f32 %v7350_v17  ;;  %v7351_v31 = vmul.f32 -1.442695, %v3382_v14  ;;  %v12100_v17 = vld [vmem:[%s14194_s2 + $0x18] sm:$0xff]  ;;  %v12119_v14 = vld [vmem:[%s14194_s2] sm:$0xff] }
 0xe86   :  { %14286 = vst [vmem:[#allocation5_spill] sm:$0xff] %v12119_v14 }
 0xe87   :  { %9281 = vpow2.f32 %v7351_v31  ;;  %v12124_v31 = vld [vmem:[%s14194_s2 + $0x10] sm:$0xff] }
 0xe88   :  { %14287 = vst [vmem:[#allocation6_spill] sm:$0xff] %v12124_v31 }
 0xe92   :  { %v9280_v32 = vpop.eup %9279 }
 0xe93   :  { %v3379_v33 = vadd.f32 1.0, %v9280_v32  ;;  %v7354_v32 = vld [vmem:[%s14196_s0 + $0x168] sm:$0xff] }
 0xe94   :  { %v9282_v34 = vpop.eup %9281 }
 0xe95   :  { %9283 = vrcp.f32 %v3379_v33  ;;  %v3386_v35 = vadd.f32 1.0, %v9282_v34 }
 0xe97   :  { %9285 = vrcp.f32 %v3386_v35 }
 0xea2   :  { %v9284_v38 = vpop.eup %9283 }
 0xea3   :  { %v3397_v44 = vmul.f32 %v9284_v38, %v3396_v37 }
 0xea4   :  { %v9286_v39 = vpop.eup %9285 }
 0xea5   :  { %v3398_v36 = vadd.f32 %v7349_v22, %v3397_v44  ;;  %v3400_v45 = vsub.f32 1.0, %v9286_v39  ;;  %v3402_v50 = vmul.f32 %v9286_v39, %v11738_v8  ;;  %v12048_v8 = vld [vmem:[%s14194_s2 + $0x70] sm:$0xff] }
 0xea6   :  { %v7355_v22 = vld [vmem:[%s14196_s0 + $0x170] sm:$0xff] }
 0xea7   :  { %9287 = vtanh.f32 %v3398_v36 }
 0xeb4   :  { %v9288_v46 = vpop.eup %9287 }
 0xeb5   :  { %v3401_v47 = vmul.f32 %v9288_v46, %v3400_v45 }
 0xeb7   :  { %v11823_v0 = vadd.f32 %v3402_v50, %v3401_v47 }
 0xeb9   :  { %7353 = vst [vmem:[%s14198_s4 + $0x70] sm:$0xff] %v11823_v0  ;;  %3525 = vmatmul.mubr.f32.vlgmr.msra.gmra.mxu0 %v11823_v0  ;;  %8575 = vmatmul.mubr.f32.vlgmr.msra.gmra.mxu1 %v11823_v0 }
 0xeba   :  { %8578 = vmatpush3.msra.mxu1 %v11602_v49  ;;  %3750 = vmatprep.mubr.f32.mxu0 %v14254_v57  ;;  %v11952_v49 = vld [vmem:[%s14194_s2 + $0xd8] sm:$0xff] }
 0xebb   :  { %8579 = vmatprep.subr.mxu1 %v14254_v57  ;;  %8609 = vmatprep.mubr.msk.f32.mxu1 %vm9460_vm0, %v14254_v57 }
 0xebc   :  { %3687 = vmatpush1.msra.mxu0 %v11845_v42  ;;  %8580 = vmatpush3.msra.mxu1 %v11862_v61 }
 0xebd   :  { %3688 = vmatprep.subr.mxu0 %v11851_v59  ;;  %8581 = vmatprep.subr.mxu1 %v14254_v57 }
 0xebe   :  { %3689 = vmatpush1.msra.mxu0 %v11857_v60  ;;  %8582 = vmatpush3.msra.mxu1 %v11881_v43 }
 0xebf   :  { %3690 = vmatprep.subr.mxu0 %v11869_v40  ;;  %8583 = vmatprep.subr.mxu1 %v14254_v57 }
 0xec0   :  { %3691 = vmatpush1.msra.mxu0 %v11876_v41  ;;  %8584 = vmatpush3.msra.mxu1 %v11900_v52 }
 0xec1   :  { %3692 = vmatprep.subr.mxu0 %v11888_v62  ;;  %8585 = vmatprep.subr.mxu1 %v14254_v57 }
 0xec2   :  { %3693 = vmatpush1.msra.mxu0 %v11895_v51  ;;  %8586 = vmatpush3.msra.mxu1 %v11919_v55 }
 0xec3   :  { %3694 = vmatprep.subr.mxu0 %v11907_v53  ;;  %8587 = vmatprep.subr.mxu1 %v14254_v57 }
 0xec4   :  { %3695 = vmatpush1.msra.mxu0 %v11914_v54  ;;  %8588 = vmatpush3.msra.mxu1 %v11938_v2 }
 0xec5   :  { %3696 = vmatprep.subr.mxu0 %v11926_v56  ;;  %8589 = vmatprep.subr.mxu1 %v14254_v57 }
 0xec6   :  { %3697 = vmatpush1.msra.mxu0 %v11933_v58  ;;  %8590 = vmatpush3.msra.mxu1 %v11957_v24 }
 0xec7   :  { %3698 = vmatprep.subr.mxu0 %v11945_v3  ;;  %8591 = vmatprep.subr.mxu1 %v14254_v57 }
 0xec8   :  { %3699 = vmatpush1.msra.mxu0 %v11952_v49  ;;  %8592 = vmatpush3.msra.mxu1 %v11976_v10 }
 0xec9   :  { %3700 = vmatprep.subr.mxu0 %v11964_v1  ;;  %8593 = vmatprep.subr.mxu1 %v14254_v57 }
 0xeca   :  { %3701 = vmatpush1.msra.mxu0 %v11971_v4  ;;  %8594 = vmatpush3.msra.mxu1 %v11993_v12 }
 0xecb   :  { %3702 = vmatprep.subr.mxu0 %v11981_v11  ;;  %8595 = vmatprep.subr.mxu1 %v14254_v57 }
 0xecc   :  { %3703 = vmatpush1.msra.mxu0 %v11988_v63  ;;  %8596 = vmatpush3.msra.mxu1 %v12010_v7 }
 0xecd   :  { %3704 = vmatprep.subr.mxu0 %v11998_v18  ;;  %8597 = vmatprep.subr.mxu1 %v14254_v57 }
 0xece   :  { %3705 = vmatpush1.msra.mxu0 %v12005_v28  ;;  %8598 = vmatpush3.msra.mxu1 %v12029_v23 }
 0xecf   :  { %3706 = vmatprep.subr.mxu0 %v12017_v19  ;;  %8599 = vmatprep.subr.mxu1 %v14254_v57 }
 0xed0   :  { %3707 = vmatpush1.msra.mxu0 %v12024_v20  ;;  %8600 = vmatpush3.msra.mxu1 %v12048_v8 }
 0xed1   :  { %3708 = vmatprep.subr.mxu0 %v12036_v5  ;;  %8601 = vmatprep.subr.mxu1 %v14254_v57 }
 0xed2   :  { %3709 = vmatpush1.msra.mxu0 %v12043_v6  ;;  %8602 = vmatpush3.msra.mxu1 %v12067_v25 }
 0xed3   :  { %3710 = vmatprep.subr.mxu0 %v12055_v21  ;;  %8603 = vmatprep.subr.mxu1 %v14254_v57 }
 0xed4   :  { %3711 = vmatpush1.msra.mxu0 %v12062_v16  ;;  %8604 = vmatpush3.msra.mxu1 %v12086_v13 }
 0xed5   :  { %3712 = vmatprep.subr.mxu0 %v12074_v26  ;;  %8605 = vmatprep.subr.mxu1 %v14254_v57 }
 0xed6   :  { %3713 = vmatpush1.msra.mxu0 %v12081_v27  ;;  %8606 = vmatpush3.msra.mxu1 %v12105_v29 }
 0xed7   :  { %3714 = vmatprep.subr.mxu0 %v12093_v15  ;;  %8607 = vmatprep.subr.mxu1 %v14254_v57 }
 0xed8   :  { %3715 = vmatpush1.msra.mxu0 %v12100_v17  ;;  %8608 = vmatpush3.msra.mxu1 %v12124_v31 }
 0xed9   :  { %3716 = vmatprep.subr.mxu0 %v12112_v30  ;;  %8612 = vmatprep.subr.mxu1 %v14254_v57 }
 0xeda   :  { %3717 = vmatpush1.msra.mxu0 %v12119_v14 }
 0xedb   :  { %3912 = vmatprep.subr.mxu0 %v11839_v48 }
 0xf79   :  { %v3526_v33 = vpop.f32.mrf.mxu0  ;;  %v3597_v34 = vpop.f32.mrf.mxu1 }
 0xf7a   :  { %v3601_v35 = vadd.f32 %v7354_v32, %v3526_v33  ;;  %v3622_v31 = vadd.f32 %v11645_v9, %v3597_v34  ;;  %v7356_v32 = vld [vmem:[%s14196_s0 + $0x178] sm:$0xff] }
 0xf7b   :  { %v8576_v37 = vpop.f32.mrf.mxu1  ;;  %v3528_v44 = vpop.f32.mrf.mxu0  ;;  %v12191_v9 = vld [vmem:[%s14194_s2 + $0x178] sm:$0xff] }
 0xf7c   :  { %v7357_v38 = vmul.f32 -1.442695, %v3601_v35  ;;  %v3608_v36 = vadd.f32 %v7355_v22, %v3528_v44 }
 0xf7e   :  { %9289 = vpow2.f32 %v7357_v38  ;;  %v7358_v39 = vmul.f32 -1.442695, %v3608_v36 }
 0xf80   :  { %9291 = vpow2.f32 %v7358_v39 }
 0xf8b   :  { %v9290_v45 = vpop.eup %9289 }
 0xf8c   :  { %v3605_v46 = vadd.f32 1.0, %v9290_v45 }
 0xf8d   :  { %v9292_v47 = vpop.eup %9291 }
 0xf8e   :  { %9293 = vrcp.f32 %v3605_v46  ;;  %v3612_v50 = vadd.f32 1.0, %v9292_v47 }
 0xf90   :  { %9295 = vrcp.f32 %v3612_v50 }
 0xf9b   :  { %v9294_v29 = vpop.eup %9293 }
 0xf9c   :  { %v3623_v33 = vmul.f32 %v9294_v29, %v3622_v31  ;;  %v14289_v29 = vld [vmem:[#allocation6_spill] sm:$0xff]  ;;  %v7361_v31 = vld [vmem:[%s14196_s0 + $0x180] sm:$0xff] }
 0xf9d   :  { %v9296_v37 = vpop.eup %9295 }
 0xf9e   :  { %v3624_v35 = vadd.f32 %v7356_v32, %v3623_v33  ;;  %v3626_v38 = vsub.f32 1.0, %v9296_v37  ;;  %v3628_v36 = vmul.f32 %v9296_v37, %v11823_v0  ;;  %v14288_v0 = vld [vmem:[#allocation3_spill] sm:$0xff]  ;;  %v7362_v32 = vld [vmem:[%s14196_s0 + $0x188] sm:$0xff] }
 0xfa0   :  { %9297 = vtanh.f32 %v3624_v35 }
 0xfad   :  { %v9298_v22 = vpop.eup %9297 }
 0xfae   :  { %v3627_v44 = vmul.f32 %v9298_v22, %v3626_v38 }
 0xfb0   :  { %v12145_v39 = vadd.f32 %v3628_v36, %v3627_v44  ;;  %v12234_v36 = vld [vmem:[%s14197_s3] ss:$0 sm:$0xff] }
 0xfb2   :  { %7360 = vst [vmem:[%s14198_s4 + $0x78] sm:$0xff] %v12145_v39  ;;  %3751 = vmatmul.mubr.f32.vlgmr.msra.gmra.mxu0 %v12145_v39  ;;  %8610 = vmatmul.mubr.f32.vlgmr.msra.gmra.mxu1 %v12145_v39 }
 0xfb3   :  { %3913 = vmatpush1.msra.mxu0 %v11845_v42  ;;  %3976 = vmatprep.mubr.f32.mxu0 %v14254_v57 }
 0xfb4   :  { %3914 = vmatprep.subr.mxu0 %v11851_v59  ;;  %8644 = vmatprep.mubr.msk.f32.mxu1 %vm9460_vm0, %v14254_v57 }
 0xfb5   :  { %3915 = vmatpush1.msra.mxu0 %v11857_v60  ;;  %8613 = vmatpush3.msra.mxu1 %v12191_v9 }
 0xfb6   :  { %3916 = vmatprep.subr.mxu0 %v11869_v40  ;;  %8614 = vmatprep.subr.mxu1 %v14254_v57 }
 0xfb7   :  { %3917 = vmatpush1.msra.mxu0 %v11876_v41  ;;  %8615 = vmatpush3.msra.mxu1 %v11862_v61 }
 0xfb8   :  { %3918 = vmatprep.subr.mxu0 %v11888_v62  ;;  %8616 = vmatprep.subr.mxu1 %v14254_v57 }
 0xfb9   :  { %3919 = vmatpush1.msra.mxu0 %v11895_v51  ;;  %8617 = vmatpush3.msra.mxu1 %v11881_v43 }
 0xfba   :  { %3920 = vmatprep.subr.mxu0 %v11907_v53  ;;  %8618 = vmatprep.subr.mxu1 %v14254_v57 }
 0xfbb   :  { %3921 = vmatpush1.msra.mxu0 %v11914_v54  ;;  %8619 = vmatpush3.msra.mxu1 %v11900_v52 }
 0xfbc   :  { %3922 = vmatprep.subr.mxu0 %v11926_v56  ;;  %8620 = vmatprep.subr.mxu1 %v14254_v57 }
 0xfbd   :  { %3923 = vmatpush1.msra.mxu0 %v11933_v58  ;;  %8621 = vmatpush3.msra.mxu1 %v11919_v55 }
 0xfbe   :  { %3924 = vmatprep.subr.mxu0 %v11945_v3  ;;  %8622 = vmatprep.subr.mxu1 %v14254_v57 }
 0xfbf   :  { %3925 = vmatpush1.msra.mxu0 %v11952_v49  ;;  %8623 = vmatpush3.msra.mxu1 %v11938_v2 }
 0xfc0   :  { %3926 = vmatprep.subr.mxu0 %v11964_v1  ;;  %8624 = vmatprep.subr.mxu1 %v14254_v57 }
 0xfc1   :  { %3927 = vmatpush1.msra.mxu0 %v11971_v4  ;;  %8625 = vmatpush3.msra.mxu1 %v11957_v24 }
 0xfc2   :  { %3928 = vmatprep.subr.mxu0 %v11981_v11  ;;  %8626 = vmatprep.subr.mxu1 %v14254_v57 }
 0xfc3   :  { %3929 = vmatpush1.msra.mxu0 %v11988_v63  ;;  %8627 = vmatpush3.msra.mxu1 %v11976_v10 }
 0xfc4   :  { %3930 = vmatprep.subr.mxu0 %v11998_v18  ;;  %8628 = vmatprep.subr.mxu1 %v14254_v57 }
 0xfc5   :  { %3931 = vmatpush1.msra.mxu0 %v12005_v28  ;;  %8629 = vmatpush3.msra.mxu1 %v11993_v12 }
 0xfc6   :  { %3932 = vmatprep.subr.mxu0 %v12017_v19  ;;  %8630 = vmatprep.subr.mxu1 %v14254_v57 }
 0xfc7   :  { %3933 = vmatpush1.msra.mxu0 %v12024_v20  ;;  %8631 = vmatpush3.msra.mxu1 %v12010_v7 }
 0xfc8   :  { %3934 = vmatprep.subr.mxu0 %v12036_v5  ;;  %8632 = vmatprep.subr.mxu1 %v14254_v57 }
 0xfc9   :  { %3935 = vmatpush1.msra.mxu0 %v12043_v6  ;;  %8633 = vmatpush3.msra.mxu1 %v12029_v23 }
 0xfca   :  { %3936 = vmatprep.subr.mxu0 %v12055_v21  ;;  %8634 = vmatprep.subr.mxu1 %v14254_v57 }
 0xfcb   :  { %3937 = vmatpush1.msra.mxu0 %v12062_v16  ;;  %8635 = vmatpush3.msra.mxu1 %v12048_v8 }
 0xfcc   :  { %3938 = vmatprep.subr.mxu0 %v12074_v26  ;;  %8636 = vmatprep.subr.mxu1 %v14254_v57 }
 0xfcd   :  { %3939 = vmatpush1.msra.mxu0 %v12081_v27  ;;  %8637 = vmatpush3.msra.mxu1 %v12067_v25 }
 0xfce   :  { %3940 = vmatprep.subr.mxu0 %v12093_v15  ;;  %8638 = vmatprep.subr.mxu1 %v14254_v57 }
 0xfcf   :  { %3941 = vmatpush1.msra.mxu0 %v12100_v17  ;;  %8639 = vmatpush3.msra.mxu1 %v12086_v13 }
 0xfd0   :  { %3942 = vmatprep.subr.mxu0 %v12112_v30  ;;  %8640 = vmatprep.subr.mxu1 %v14254_v57 }
 0xfd1   :  { %3943 = vmatpush1.msra.mxu0 %v12119_v14  ;;  %8641 = vmatpush3.msra.mxu1 %v14288_v0 }
 0xfd2   :  { %4138 = vmatprep.subr.mxu0 %v11839_v48  ;;  %8642 = vmatprep.subr.mxu1 %v14254_v57 }
 0xfd3   :  { %8643 = vmatpush3.msra.mxu1 %v14289_v29 }
 0xfd4   :  { %8647 = vmatprep.subr.mxu1 %v14254_v57 }
0x1072   :  { %v3752_v34 = vpop.f32.mrf.mxu0  ;;  %v3823_v45 = vpop.f32.mrf.mxu1 }
0x1073   :  { %v3827_v46 = vadd.f32 %v7361_v31, %v3752_v34  ;;  %v3848_v34 = vadd.f32 %v12234_v36, %v3823_v45  ;;  %v7368_v45 = vld [vmem:[%s14196_s0 + $0x198] sm:$0xff] }
0x1074   :  { %v8611_v47 = vpop.f32.mrf.mxu1  ;;  %v3754_v33 = vpop.f32.mrf.mxu0 }
0x1075   :  { %v7364_v50 = vmul.f32 -1.442695, %v3827_v46  ;;  %v3834_v35 = vadd.f32 %v7362_v32, %v3754_v33  ;;  %v7363_v47 = vld [vmem:[%s14196_s0 + $0x190] sm:$0xff] }
0x1077   :  { %9299 = vpow2.f32 %v7364_v50  ;;  %v7365_v37 = vmul.f32 -1.442695, %v3834_v35 }
0x1079   :  { %9301 = vpow2.f32 %v7365_v37 }
0x1084   :  { %v9300_v38 = vpop.eup %9299 }
0x1085   :  { %v3831_v22 = vadd.f32 1.0, %v9300_v38 }
0x1086   :  { %v9302_v44 = vpop.eup %9301 }
0x1087   :  { %9303 = vrcp.f32 %v3831_v22  ;;  %v3838_v31 = vadd.f32 1.0, %v9302_v44 }
0x1089   :  { %9305 = vrcp.f32 %v3838_v31 }
0x1094   :  { %v9304_v46 = vpop.eup %9303 }
0x1095   :  { %v3849_v50 = vmul.f32 %v9304_v46, %v3848_v34 }
0x1096   :  { %v9306_v33 = vpop.eup %9305 }
0x1097   :  { %v3850_v32 = vadd.f32 %v7363_v47, %v3849_v50  ;;  %v3852_v35 = vsub.f32 1.0, %v9306_v33  ;;  %v3854_v22 = vmul.f32 %v9306_v33, %v12145_v39  ;;  %v14290_v39 = vld [vmem:[#allocation4_spill] sm:$0xff]  ;;  %v7369_v50 = vld [vmem:[%s14196_s0 + $0x1a0] sm:$0xff] }
0x1099   :  { %9307 = vtanh.f32 %v3850_v32 }
0x10a6   :  { %v9308_v37 = vpop.eup %9307 }
0x10a7   :  { %v3853_v38 = vmul.f32 %v9308_v37, %v3852_v35 }
0x10a9   :  { %v12241_v48 = vadd.f32 %v3854_v22, %v3853_v38 }
0x10ab   :  { %7367 = vst [vmem:[%s14198_s4 + $0x80] sm:$0xff] %v12241_v48  ;;  %3977 = vmatmul.mubr.f32.vlgmr.msra.gmra.mxu0 %v12241_v48  ;;  %8645 = vmatmul.mubr.f32.vlgmr.msra.gmra.mxu1 %v12241_v48 }
0x10ac   :  { %4139 = vmatpush1.msra.mxu0 %v11845_v42  ;;  %8648 = vmatpush3.msra.mxu1 %v12191_v9 }
0x10ad   :  { %4140 = vmatprep.subr.mxu0 %v11851_v59  ;;  %8649 = vmatprep.subr.mxu1 %v14254_v57 }
0x10ae   :  { %4141 = vmatpush1.msra.mxu0 %v11857_v60  ;;  %8650 = vmatpush3.msra.mxu1 %v11862_v61 }
0x10af   :  { %4142 = vmatprep.subr.mxu0 %v11869_v40  ;;  %8651 = vmatprep.subr.mxu1 %v14254_v57 }
0x10b0   :  { %4143 = vmatpush1.msra.mxu0 %v11876_v41  ;;  %8652 = vmatpush3.msra.mxu1 %v11881_v43 }
0x10b1   :  { %4144 = vmatprep.subr.mxu0 %v11888_v62  ;;  %8653 = vmatprep.subr.mxu1 %v14254_v57 }
0x10b2   :  { %4145 = vmatpush1.msra.mxu0 %v11895_v51  ;;  %8654 = vmatpush3.msra.mxu1 %v11900_v52 }
0x10b3   :  { %4146 = vmatprep.subr.mxu0 %v11907_v53  ;;  %8655 = vmatprep.subr.mxu1 %v14254_v57 }
0x10b4   :  { %4147 = vmatpush1.msra.mxu0 %v11914_v54  ;;  %8656 = vmatpush3.msra.mxu1 %v11919_v55 }
0x10b5   :  { %4148 = vmatprep.subr.mxu0 %v11926_v56  ;;  %8657 = vmatprep.subr.mxu1 %v14254_v57 }
0x10b6   :  { %4149 = vmatpush1.msra.mxu0 %v11933_v58  ;;  %8658 = vmatpush3.msra.mxu1 %v11938_v2 }
0x10b7   :  { %4150 = vmatprep.subr.mxu0 %v11945_v3  ;;  %8659 = vmatprep.subr.mxu1 %v14254_v57 }
0x10b8   :  { %4151 = vmatpush1.msra.mxu0 %v11952_v49  ;;  %8660 = vmatpush3.msra.mxu1 %v11957_v24 }
0x10b9   :  { %4152 = vmatprep.subr.mxu0 %v11964_v1  ;;  %8661 = vmatprep.subr.mxu1 %v14254_v57 }
0x10ba   :  { %4153 = vmatpush1.msra.mxu0 %v11971_v4  ;;  %8662 = vmatpush3.msra.mxu1 %v11976_v10 }
0x10bb   :  { %4154 = vmatprep.subr.mxu0 %v11981_v11  ;;  %8663 = vmatprep.subr.mxu1 %v14254_v57 }
0x10bc   :  { %4155 = vmatpush1.msra.mxu0 %v11988_v63  ;;  %8664 = vmatpush3.msra.mxu1 %v11993_v12 }
0x10bd   :  { %4156 = vmatprep.subr.mxu0 %v11998_v18  ;;  %8665 = vmatprep.subr.mxu1 %v14254_v57 }
0x10be   :  { %4157 = vmatpush1.msra.mxu0 %v12005_v28  ;;  %8666 = vmatpush3.msra.mxu1 %v12010_v7 }
0x10bf   :  { %4158 = vmatprep.subr.mxu0 %v12017_v19  ;;  %8667 = vmatprep.subr.mxu1 %v14254_v57 }
0x10c0   :  { %4159 = vmatpush1.msra.mxu0 %v12024_v20  ;;  %8668 = vmatpush3.msra.mxu1 %v12029_v23 }
0x10c1   :  { %4160 = vmatprep.subr.mxu0 %v12036_v5  ;;  %8669 = vmatprep.subr.mxu1 %v14254_v57 }
0x10c2   :  { %4161 = vmatpush1.msra.mxu0 %v12043_v6  ;;  %8670 = vmatpush3.msra.mxu1 %v12048_v8 }
0x10c3   :  { %4162 = vmatprep.subr.mxu0 %v12055_v21  ;;  %8671 = vmatprep.subr.mxu1 %v14254_v57 }
0x10c4   :  { %4163 = vmatpush1.msra.mxu0 %v12062_v16  ;;  %8672 = vmatpush3.msra.mxu1 %v12067_v25 }
0x10c5   :  { %4164 = vmatprep.subr.mxu0 %v12074_v26  ;;  %8673 = vmatprep.subr.mxu1 %v14254_v57 }
0x10c6   :  { %4165 = vmatpush1.msra.mxu0 %v12081_v27  ;;  %8674 = vmatpush3.msra.mxu1 %v12086_v13 }
0x10c7   :  { %4166 = vmatprep.subr.mxu0 %v12093_v15  ;;  %8675 = vmatprep.subr.mxu1 %v14254_v57 }
0x10c8   :  { %4167 = vmatpush1.msra.mxu0 %v12100_v17  ;;  %8676 = vmatpush3.msra.mxu1 %v14288_v0 }
0x10c9   :  { %4168 = vmatprep.subr.mxu0 %v12112_v30  ;;  %8677 = vmatprep.subr.mxu1 %v14254_v57 }
0x10ca   :  { %4169 = vmatpush1.msra.mxu0 %v12119_v14  ;;  %4202 = vmatprep.mubr.f32.mxu0 %v14254_v57 }
0x10cb   :  { %8678 = vmatpush3.msra.mxu1 %v14289_v29  ;;  %8679 = vmatprep.mubr.msk.f32.mxu1 %vm9460_vm0, %v14254_v57 }
0x10cc   :  { %4364 = vmatprep.subr.mxu0 %v14290_v39  ;;  %8682 = vmatprep.subr.mxu1 %v14254_v57 }
0x116b   :  { %v3978_v44 = vpop.f32.mrf.mxu0  ;;  %v4049_v31 = vpop.f32.mrf.mxu1 }
0x116c   :  { %v4053_v34 = vadd.f32 %v7368_v45, %v3978_v44  ;;  %v4074_v29 = vadd.f32 %v12234_v36, %v4049_v31  ;;  %v7370_v45 = vld [vmem:[%s14196_s0 + $0x1a8] sm:$0xff]  ;;  %v12560_v31 = vld [vmem:[%s14194_s2 + $0xc0] sm:$0xff] }
0x116d   :  { %v8646_v46 = vpop.f32.mrf.mxu1  ;;  %v3980_v32 = vpop.f32.mrf.mxu0 }
0x116e   :  { %v7371_v47 = vmul.f32 -1.442695, %v4053_v34  ;;  %v4060_v33 = vadd.f32 %v7369_v50, %v3980_v32 }
0x1170   :  { %9309 = vpow2.f32 %v7371_v47  ;;  %v7372_v35 = vmul.f32 -1.442695, %v4060_v33 }
0x1172   :  { %9311 = vpow2.f32 %v7372_v35 }
0x117d   :  { %v9310_v37 = vpop.eup %9309 }
0x117e   :  { %v4057_v38 = vadd.f32 1.0, %v9310_v37  ;;  %v12565_v37 = vld [vmem:[%s14194_s2 + $0xd0] sm:$0xff] }
0x117f   :  { %v9312_v22 = vpop.eup %9311 }
0x1180   :  { %9313 = vrcp.f32 %v4057_v38  ;;  %v4064_v39 = vadd.f32 1.0, %v9312_v22  ;;  %v12570_v38 = vld [vmem:[%s14194_s2 + $0xb0] sm:$0xff]  ;;  %v12577_v22 = vld [vmem:[%s14194_s2 + $0xa8] sm:$0xff] }
0x1182   :  { %9315 = vrcp.f32 %v4064_v39  ;;  %v12582_v39 = vld [vmem:[%s14194_s2 + $0xb8] sm:$0xff] }
0x118d   :  { %v9314_v14 = vpop.eup %9313 }
0x118e   :  { %v4075_v44 = vmul.f32 %v9314_v14, %v4074_v29  ;;  %v12534_v14 = vld [vmem:[%s14194_s2 + $0xe0] sm:$0xff]  ;;  %v12553_v29 = vld [vmem:[%s14194_s2 + $0xc8] sm:$0xff] }
0x118f   :  { %v9316_v46 = vpop.eup %9315 }
0x1190   :  { %v4076_v34 = vadd.f32 %v7370_v45, %v4075_v44  ;;  %v4078_v47 = vsub.f32 1.0, %v9316_v46  ;;  %v4080_v33 = vmul.f32 %v9316_v46, %v12241_v48  ;;  %v14291_v48 = vld [vmem:[#allocation5_spill] sm:$0xff]  ;;  %v12587_v45 = vld [vmem:[%s14194_s2 + $0x98] sm:$0xff]  ;;  %v12606_v46 = vld [vmem:[%s14194_s2 + $0x80] sm:$0xff] }
0x1191   :  { %v12594_v44 = vld [vmem:[%s14194_s2 + $0x90] sm:$0xff] }
0x1192   :  { %9317 = vtanh.f32 %v4076_v34  ;;  %v12599_v34 = vld [vmem:[%s14194_s2 + $0xa0] sm:$0xff] }
0x119f   :  { %v9318_v50 = vpop.eup %9317 }
0x11a0   :  { %v4079_v32 = vmul.f32 %v9318_v50, %v4078_v47  ;;  %v12613_v47 = vld [vmem:[%s14194_s2 + $0x78] sm:$0xff]  ;;  %v12618_v50 = vld [vmem:[%s14194_s2 + $0x88] sm:$0xff] }
0x11a2   :  { %v12327_v35 = vadd.f32 %v4080_v33, %v4079_v32  ;;  %v12625_v32 = vld [vmem:[%s14194_s2 + $0x68] sm:$0xff]  ;;  %v12632_v33 = vld [vmem:[%s14194_s2 + $0x60] sm:$0xff] }
0x11a4   :  { %7374 = vst [vmem:[%s14198_s4 + $0x88] sm:$0xff] %v12327_v35  ;;  %4203 = vmatmul.mubr.f32.vlgmr.msra.gmra.mxu0 %v12327_v35  ;;  %8680 = vmatmul.mubr.f32.vlgmr.msra.gmra.mxu1 %v12327_v35 }
0x11a5   :  { %4365 = vmatpush1.msra.mxu0 %v11845_v42  ;;  %8683 = vmatpush3.msra.mxu1 %v12191_v9  ;;  %v14292_v42 = vld [vmem:[#allocation6_spill] sm:$0xff] }
0x11a6   :  { %4366 = vmatprep.subr.mxu0 %v11851_v59  ;;  %8684 = vmatprep.subr.mxu1 %v14254_v57  ;;  %v7375_v59 = vld [vmem:[%s14196_s0 + $0x1b0] sm:$0xff] }
0x11a7   :  { %4367 = vmatpush1.msra.mxu0 %v11857_v60  ;;  %8685 = vmatpush3.msra.mxu1 %v11862_v61 }
0x11a8   :  { %4368 = vmatprep.subr.mxu0 %v11869_v40  ;;  %8686 = vmatprep.subr.mxu1 %v14254_v57 }
0x11a9   :  { %4369 = vmatpush1.msra.mxu0 %v11876_v41  ;;  %8687 = vmatpush3.msra.mxu1 %v11881_v43 }
0x11aa   :  { %4370 = vmatprep.subr.mxu0 %v11888_v62  ;;  %8688 = vmatprep.subr.mxu1 %v14254_v57  ;;  %v7376_v62 = vld [vmem:[%s14196_s0 + $0x1b8] sm:$0xff] }
0x11ab   :  { %4371 = vmatpush1.msra.mxu0 %v11895_v51  ;;  %8689 = vmatpush3.msra.mxu1 %v11900_v52 }
0x11ac   :  { %4372 = vmatprep.subr.mxu0 %v11907_v53  ;;  %8690 = vmatprep.subr.mxu1 %v14254_v57 }
0x11ad   :  { %4373 = vmatpush1.msra.mxu0 %v11914_v54  ;;  %8691 = vmatpush3.msra.mxu1 %v11919_v55 }
0x11ae   :  { %4374 = vmatprep.subr.mxu0 %v11926_v56  ;;  %8692 = vmatprep.subr.mxu1 %v14254_v57 }
0x11af   :  { %4375 = vmatpush1.msra.mxu0 %v11933_v58  ;;  %8693 = vmatpush3.msra.mxu1 %v11938_v2 }
0x11b0   :  { %4376 = vmatprep.subr.mxu0 %v11945_v3  ;;  %8694 = vmatprep.subr.mxu1 %v14254_v57 }
0x11b1   :  { %4377 = vmatpush1.msra.mxu0 %v11952_v49  ;;  %8695 = vmatpush3.msra.mxu1 %v11957_v24  ;;  %v7377_v49 = vld [vmem:[%s14196_s0 + $0x1c0] sm:$0xff] }
0x11b2   :  { %4378 = vmatprep.subr.mxu0 %v11964_v1  ;;  %8696 = vmatprep.subr.mxu1 %v14254_v57 }
0x11b3   :  { %4379 = vmatpush1.msra.mxu0 %v11971_v4  ;;  %8697 = vmatpush3.msra.mxu1 %v11976_v10 }
0x11b4   :  { %4380 = vmatprep.subr.mxu0 %v11981_v11  ;;  %8698 = vmatprep.subr.mxu1 %v14254_v57 }
0x11b5   :  { %4381 = vmatpush1.msra.mxu0 %v11988_v63  ;;  %8699 = vmatpush3.msra.mxu1 %v11993_v12 }
0x11b6   :  { %4382 = vmatprep.subr.mxu0 %v11998_v18  ;;  %8700 = vmatprep.subr.mxu1 %v14254_v57 }
0x11b7   :  { %4383 = vmatpush1.msra.mxu0 %v12005_v28  ;;  %8701 = vmatpush3.msra.mxu1 %v12010_v7  ;;  %v12428_v28 = vld [vmem:[%s14194_s2 + $0x170] sm:$0xff]  ;;  %v12434_v7 = vld [vmem:[%s14194_s2 + $0x168] sm:$0xff] }
0x11b8   :  { %4384 = vmatprep.subr.mxu0 %v12017_v19  ;;  %8702 = vmatprep.subr.mxu1 %v14254_v57  ;;  %14293 = vst [vmem:[#allocation3_spill] sm:$0xff] %v12428_v28  ;;  %v12440_v19 = vld [vmem:[%s14194_s2 + $0x158] sm:$0xff] }
0x11b9   :  { %4385 = vmatpush1.msra.mxu0 %v12024_v20  ;;  %8703 = vmatpush3.msra.mxu1 %v12029_v23  ;;  %v12446_v20 = vld [vmem:[%s14194_s2 + $0x150] sm:$0xff]  ;;  %v12451_v23 = vld [vmem:[%s14194_s2 + $0x160] sm:$0xff] }
0x11ba   :  { %4386 = vmatprep.subr.mxu0 %v12036_v5  ;;  %8704 = vmatprep.subr.mxu1 %v14254_v57  ;;  %v12458_v5 = vld [vmem:[%s14194_s2 + $0x140] sm:$0xff] }
0x11bb   :  { %4387 = vmatpush1.msra.mxu0 %v12043_v6  ;;  %8705 = vmatpush3.msra.mxu1 %v12048_v8  ;;  %v12465_v6 = vld [vmem:[%s14194_s2 + $0x138] sm:$0xff]  ;;  %v12470_v8 = vld [vmem:[%s14194_s2 + $0x148] sm:$0xff] }
0x11bc   :  { %4388 = vmatprep.subr.mxu0 %v12055_v21  ;;  %8706 = vmatprep.subr.mxu1 %v14254_v57  ;;  %v12477_v21 = vld [vmem:[%s14194_s2 + $0x128] sm:$0xff] }
0x11bd   :  { %4389 = vmatpush1.msra.mxu0 %v12062_v16  ;;  %8707 = vmatpush3.msra.mxu1 %v12067_v25  ;;  %v12484_v16 = vld [vmem:[%s14194_s2 + $0x120] sm:$0xff]  ;;  %v12489_v25 = vld [vmem:[%s14194_s2 + $0x130] sm:$0xff] }
0x11be   :  { %4390 = vmatprep.subr.mxu0 %v12074_v26  ;;  %8708 = vmatprep.subr.mxu1 %v14254_v57  ;;  %v12496_v26 = vld [vmem:[%s14194_s2 + $0x110] sm:$0xff] }
0x11bf   :  { %4391 = vmatpush1.msra.mxu0 %v12081_v27  ;;  %8709 = vmatpush3.msra.mxu1 %v12086_v13  ;;  %v12503_v27 = vld [vmem:[%s14194_s2 + $0x108] sm:$0xff]  ;;  %v12508_v13 = vld [vmem:[%s14194_s2 + $0x118] sm:$0xff] }
0x11c0   :  { %4392 = vmatprep.subr.mxu0 %v12093_v15  ;;  %8710 = vmatprep.subr.mxu1 %v14254_v57  ;;  %v12515_v15 = vld [vmem:[%s14194_s2 + $0xf8] sm:$0xff] }
0x11c1   :  { %4393 = vmatpush1.msra.mxu0 %v12100_v17  ;;  %8711 = vmatpush3.msra.mxu1 %v14288_v0  ;;  %v12522_v17 = vld [vmem:[%s14194_s2 + $0xf0] sm:$0xff]  ;;  %v12546_v0 = vld [vmem:[%s14194_s2 + $0xe8] sm:$0xff] }
0x11c2   :  { %4394 = vmatprep.subr.mxu0 %v12112_v30  ;;  %8712 = vmatprep.subr.mxu1 %v14254_v57  ;;  %v12527_v30 = vld [vmem:[%s14194_s2 + $0x100] sm:$0xff] }
0x11c3   :  { %4395 = vmatpush1.msra.mxu0 %v14291_v48  ;;  %4428 = vmatprep.mubr.f32.mxu0 %v14254_v57  ;;  %v12644_v48 = vld [vmem:[%s14194_s2 + $0x50] sm:$0xff] }
0x11c4   :  { %8713 = vmatpush3.msra.mxu1 %v14292_v42  ;;  %8714 = vmatprep.mubr.msk.f32.mxu1 %vm9460_vm0, %v14254_v57  ;;  %v12651_v42 = vld [vmem:[%s14194_s2 + $0x48] sm:$0xff] }
0x11c5   :  { %8717 = vmatprep.subr.mxu1 %v14254_v57  ;;  %4590 = vmatprep.subr.mxu0 %v12428_v28 }
0x1264   :  { %v4204_v60 = vpop.f32.mrf.mxu0  ;;  %v4275_v61 = vpop.f32.mrf.mxu1 }
0x1265   :  { %v4279_v40 = vadd.f32 %v7375_v59, %v4204_v60  ;;  %v4300_v2 = vadd.f32 %v12234_v36, %v4275_v61  ;;  %v12656_v59 = vld [vmem:[%s14194_s2 + $0x58] sm:$0xff]  ;;  %v12670_v61 = vld [vmem:[%s14194_s2 + $0x30] sm:$0xff] }
0x1266   :  { %v8681_v41 = vpop.f32.mrf.mxu1  ;;  %v4206_v51 = vpop.f32.mrf.mxu0  ;;  %v12663_v60 = vld [vmem:[%s14194_s2 + $0x38] sm:$0xff] }
0x1267   :  { %v7378_v43 = vmul.f32 -1.442695, %v4279_v40  ;;  %v4286_v52 = vadd.f32 %v7376_v62, %v4206_v51  ;;  %v12675_v40 = vld [vmem:[%s14194_s2 + $0x40] sm:$0xff]  ;;  %v12694_v62 = vld [vmem:[%s14194_s2 + $0x28] sm:$0xff] }
0x1268   :  { %v12682_v41 = vld [vmem:[%s14194_s2 + $0x20] sm:$0xff]  ;;  %14294 = vst [vmem:[#allocation4_spill] sm:$0xff] %v12694_v62  ;;  %v12701_v51 = vld [vmem:[%s14194_s2 + $0x8] sm:$0xff] }
0x1269   :  { %9319 = vpow2.f32 %v7378_v43  ;;  %v7379_v53 = vmul.f32 -1.442695, %v4286_v52  ;;  %v12689_v43 = vld [vmem:[%s14194_s2 + $0x18] sm:$0xff]  ;;  %v12708_v52 = vld [vmem:[%s14194_s2] sm:$0xff] }
0x126a   :  { %14295 = vst [vmem:[#allocation5_spill] sm:$0xff] %v12708_v52 }
0x126b   :  { %9321 = vpow2.f32 %v7379_v53  ;;  %v12713_v53 = vld [vmem:[%s14194_s2 + $0x10] sm:$0xff] }
0x126c   :  { %14296 = vst [vmem:[#allocation6_spill] sm:$0xff] %v12713_v53 }
0x1276   :  { %v9320_v54 = vpop.eup %9319 }
0x1277   :  { %v4283_v55 = vadd.f32 1.0, %v9320_v54  ;;  %v7382_v54 = vld [vmem:[%s14196_s0 + $0x1c8] sm:$0xff] }
0x1278   :  { %v9322_v56 = vpop.eup %9321 }
0x1279   :  { %9323 = vrcp.f32 %v4283_v55  ;;  %v4290_v58 = vadd.f32 1.0, %v9322_v56 }
0x127b   :  { %9325 = vrcp.f32 %v4290_v58 }
0x1286   :  { %v9324_v3 = vpop.eup %9323 }
0x1287   :  { %v4301_v24 = vmul.f32 %v9324_v3, %v4300_v2 }
0x1288   :  { %v9326_v4 = vpop.eup %9325 }
0x1289   :  { %v4302_v1 = vadd.f32 %v7377_v49, %v4301_v24  ;;  %v4304_v10 = vsub.f32 1.0, %v9326_v4  ;;  %v4306_v12 = vmul.f32 %v9326_v4, %v12327_v35  ;;  %v12637_v35 = vld [vmem:[%s14194_s2 + $0x70] sm:$0xff] }
0x128a   :  { %v7383_v49 = vld [vmem:[%s14196_s0 + $0x1d0] sm:$0xff] }
0x128b   :  { %9327 = vtanh.f32 %v4302_v1 }
0x1298   :  { %v9328_v11 = vpop.eup %9327 }
0x1299   :  { %v4305_v63 = vmul.f32 %v9328_v11, %v4304_v10 }
0x129b   :  { %v12412_v18 = vadd.f32 %v4306_v12, %v4305_v63 }
0x129d   :  { %7381 = vst [vmem:[%s14198_s4 + $0x90] sm:$0xff] %v12412_v18  ;;  %4429 = vmatmul.mubr.f32.vlgmr.msra.gmra.mxu0 %v12412_v18  ;;  %8715 = vmatmul.mubr.f32.vlgmr.msra.gmra.mxu1 %v12412_v18 }
0x129e   :  { %8718 = vmatpush3.msra.mxu1 %v12191_v9  ;;  %4654 = vmatprep.mubr.f32.mxu0 %v14254_v57  ;;  %v12541_v9 = vld [vmem:[%s14194_s2 + $0xd8] sm:$0xff] }
0x129f   :  { %8719 = vmatprep.subr.mxu1 %v14254_v57  ;;  %8749 = vmatprep.mubr.msk.f32.mxu1 %vm9460_vm0, %v14254_v57 }
0x12a0   :  { %4591 = vmatpush1.msra.mxu0 %v12434_v7  ;;  %8720 = vmatpush3.msra.mxu1 %v12451_v23 }
0x12a1   :  { %4592 = vmatprep.subr.mxu0 %v12440_v19  ;;  %8721 = vmatprep.subr.mxu1 %v14254_v57 }
0x12a2   :  { %4593 = vmatpush1.msra.mxu0 %v12446_v20  ;;  %8722 = vmatpush3.msra.mxu1 %v12470_v8 }
0x12a3   :  { %4594 = vmatprep.subr.mxu0 %v12458_v5  ;;  %8723 = vmatprep.subr.mxu1 %v14254_v57 }
0x12a4   :  { %4595 = vmatpush1.msra.mxu0 %v12465_v6  ;;  %8724 = vmatpush3.msra.mxu1 %v12489_v25 }
0x12a5   :  { %4596 = vmatprep.subr.mxu0 %v12477_v21  ;;  %8725 = vmatprep.subr.mxu1 %v14254_v57 }
0x12a6   :  { %4597 = vmatpush1.msra.mxu0 %v12484_v16  ;;  %8726 = vmatpush3.msra.mxu1 %v12508_v13 }
0x12a7   :  { %4598 = vmatprep.subr.mxu0 %v12496_v26  ;;  %8727 = vmatprep.subr.mxu1 %v14254_v57 }
0x12a8   :  { %4599 = vmatpush1.msra.mxu0 %v12503_v27  ;;  %8728 = vmatpush3.msra.mxu1 %v12527_v30 }
0x12a9   :  { %4600 = vmatprep.subr.mxu0 %v12515_v15  ;;  %8729 = vmatprep.subr.mxu1 %v14254_v57 }
0x12aa   :  { %4601 = vmatpush1.msra.mxu0 %v12522_v17  ;;  %8730 = vmatpush3.msra.mxu1 %v12546_v0 }
0x12ab   :  { %4602 = vmatprep.subr.mxu0 %v12534_v14  ;;  %8731 = vmatprep.subr.mxu1 %v14254_v57 }
0x12ac   :  { %4603 = vmatpush1.msra.mxu0 %v12541_v9  ;;  %8732 = vmatpush3.msra.mxu1 %v12565_v37 }
0x12ad   :  { %4604 = vmatprep.subr.mxu0 %v12553_v29  ;;  %8733 = vmatprep.subr.mxu1 %v14254_v57 }
0x12ae   :  { %4605 = vmatpush1.msra.mxu0 %v12560_v31  ;;  %8734 = vmatpush3.msra.mxu1 %v12582_v39 }
0x12af   :  { %4606 = vmatprep.subr.mxu0 %v12570_v38  ;;  %8735 = vmatprep.subr.mxu1 %v14254_v57 }
0x12b0   :  { %4607 = vmatpush1.msra.mxu0 %v12577_v22  ;;  %8736 = vmatpush3.msra.mxu1 %v12599_v34 }
0x12b1   :  { %4608 = vmatprep.subr.mxu0 %v12587_v45  ;;  %8737 = vmatprep.subr.mxu1 %v14254_v57 }
0x12b2   :  { %4609 = vmatpush1.msra.mxu0 %v12594_v44  ;;  %8738 = vmatpush3.msra.mxu1 %v12618_v50 }
0x12b3   :  { %4610 = vmatprep.subr.mxu0 %v12606_v46  ;;  %8739 = vmatprep.subr.mxu1 %v14254_v57 }
0x12b4   :  { %4611 = vmatpush1.msra.mxu0 %v12613_v47  ;;  %8740 = vmatpush3.msra.mxu1 %v12637_v35 }
0x12b5   :  { %4612 = vmatprep.subr.mxu0 %v12625_v32  ;;  %8741 = vmatprep.subr.mxu1 %v14254_v57 }
0x12b6   :  { %4613 = vmatpush1.msra.mxu0 %v12632_v33  ;;  %8742 = vmatpush3.msra.mxu1 %v12656_v59 }
0x12b7   :  { %4614 = vmatprep.subr.mxu0 %v12644_v48  ;;  %8743 = vmatprep.subr.mxu1 %v14254_v57 }
0x12b8   :  { %4615 = vmatpush1.msra.mxu0 %v12651_v42  ;;  %8744 = vmatpush3.msra.mxu1 %v12675_v40 }
0x12b9   :  { %4616 = vmatprep.subr.mxu0 %v12663_v60  ;;  %8745 = vmatprep.subr.mxu1 %v14254_v57 }
0x12ba   :  { %4617 = vmatpush1.msra.mxu0 %v12670_v61  ;;  %8746 = vmatpush3.msra.mxu1 %v12694_v62 }
0x12bb   :  { %4618 = vmatprep.subr.mxu0 %v12682_v41  ;;  %8747 = vmatprep.subr.mxu1 %v14254_v57 }
0x12bc   :  { %4619 = vmatpush1.msra.mxu0 %v12689_v43  ;;  %8748 = vmatpush3.msra.mxu1 %v12713_v53 }
0x12bd   :  { %4620 = vmatprep.subr.mxu0 %v12701_v51  ;;  %8752 = vmatprep.subr.mxu1 %v14254_v57 }
0x12be   :  { %4621 = vmatpush1.msra.mxu0 %v12708_v52 }
0x12bf   :  { %4816 = vmatprep.subr.mxu0 %v12428_v28 }
0x135d   :  { %v4430_v55 = vpop.f32.mrf.mxu0  ;;  %v4501_v56 = vpop.f32.mrf.mxu1 }
0x135e   :  { %v4505_v58 = vadd.f32 %v7382_v54, %v4430_v55  ;;  %v4526_v53 = vadd.f32 %v12234_v36, %v4501_v56  ;;  %v7384_v54 = vld [vmem:[%s14196_s0 + $0x1d8] sm:$0xff] }
0x135f   :  { %v8716_v2 = vpop.f32.mrf.mxu1  ;;  %v4432_v24 = vpop.f32.mrf.mxu0  ;;  %v12780_v36 = vld [vmem:[%s14194_s2 + $0x178] sm:$0xff] }
0x1360   :  { %v7385_v3 = vmul.f32 -1.442695, %v4505_v58  ;;  %v4512_v1 = vadd.f32 %v7383_v49, %v4432_v24 }
0x1362   :  { %9329 = vpow2.f32 %v7385_v3  ;;  %v7386_v4 = vmul.f32 -1.442695, %v4512_v1 }
0x1364   :  { %9331 = vpow2.f32 %v7386_v4 }
0x136f   :  { %v9330_v10 = vpop.eup %9329 }
0x1370   :  { %v4509_v11 = vadd.f32 1.0, %v9330_v10 }
0x1371   :  { %v9332_v63 = vpop.eup %9331 }
0x1372   :  { %9333 = vrcp.f32 %v4509_v11  ;;  %v4516_v12 = vadd.f32 1.0, %v9332_v63 }
0x1374   :  { %9335 = vrcp.f32 %v4516_v12 }
0x137f   :  { %v9334_v62 = vpop.eup %9333 }
0x1380   :  { %v4527_v55 = vmul.f32 %v9334_v62, %v4526_v53  ;;  %v14298_v62 = vld [vmem:[#allocation6_spill] sm:$0xff]  ;;  %v7389_v53 = vld [vmem:[%s14196_s0 + $0x1e0] sm:$0xff] }
0x1381   :  { %v9336_v2 = vpop.eup %9335 }
0x1382   :  { %v4528_v58 = vadd.f32 %v7384_v54, %v4527_v55  ;;  %v4530_v3 = vsub.f32 1.0, %v9336_v2  ;;  %v4532_v1 = vmul.f32 %v9336_v2, %v12412_v18  ;;  %v14297_v18 = vld [vmem:[#allocation4_spill] sm:$0xff] }
0x1383   :  { %v7390_v54 = vld [vmem:[%s14196_s0 + $0x1e8] sm:$0xff] }
0x1384   :  { %9337 = vtanh.f32 %v4528_v58 }
0x1391   :  { %v9338_v49 = vpop.eup %9337 }
0x1392   :  { %v4531_v24 = vmul.f32 %v9338_v49, %v4530_v3 }
0x1394   :  { %v12734_v4 = vadd.f32 %v4532_v1, %v4531_v24  ;;  %v12823_v1 = vld [vmem:[%s14197_s3] ss:$0 sm:$0xff] }
0x1396   :  { %7388 = vst [vmem:[%s14198_s4 + $0x98] sm:$0xff] %v12734_v4  ;;  %4655 = vmatmul.mubr.f32.vlgmr.msra.gmra.mxu0 %v12734_v4  ;;  %8750 = vmatmul.mubr.f32.vlgmr.msra.gmra.mxu1 %v12734_v4 }
0x1397   :  { %4817 = vmatpush1.msra.mxu0 %v12434_v7  ;;  %4880 = vmatprep.mubr.f32.mxu0 %v14254_v57 }
0x1398   :  { %4818 = vmatprep.subr.mxu0 %v12440_v19  ;;  %8784 = vmatprep.mubr.msk.f32.mxu1 %vm9460_vm0, %v14254_v57 }
0x1399   :  { %4819 = vmatpush1.msra.mxu0 %v12446_v20  ;;  %8753 = vmatpush3.msra.mxu1 %v12780_v36 }
0x139a   :  { %4820 = vmatprep.subr.mxu0 %v12458_v5  ;;  %8754 = vmatprep.subr.mxu1 %v14254_v57 }
0x139b   :  { %4821 = vmatpush1.msra.mxu0 %v12465_v6  ;;  %8755 = vmatpush3.msra.mxu1 %v12451_v23 }
0x139c   :  { %4822 = vmatprep.subr.mxu0 %v12477_v21  ;;  %8756 = vmatprep.subr.mxu1 %v14254_v57 }
0x139d   :  { %4823 = vmatpush1.msra.mxu0 %v12484_v16  ;;  %8757 = vmatpush3.msra.mxu1 %v12470_v8 }
0x139e   :  { %4824 = vmatprep.subr.mxu0 %v12496_v26  ;;  %8758 = vmatprep.subr.mxu1 %v14254_v57 }
0x139f   :  { %4825 = vmatpush1.msra.mxu0 %v12503_v27  ;;  %8759 = vmatpush3.msra.mxu1 %v12489_v25 }
0x13a0   :  { %4826 = vmatprep.subr.mxu0 %v12515_v15  ;;  %8760 = vmatprep.subr.mxu1 %v14254_v57 }
0x13a1   :  { %4827 = vmatpush1.msra.mxu0 %v12522_v17  ;;  %8761 = vmatpush3.msra.mxu1 %v12508_v13 }
0x13a2   :  { %4828 = vmatprep.subr.mxu0 %v12534_v14  ;;  %8762 = vmatprep.subr.mxu1 %v14254_v57 }
0x13a3   :  { %4829 = vmatpush1.msra.mxu0 %v12541_v9  ;;  %8763 = vmatpush3.msra.mxu1 %v12527_v30 }
0x13a4   :  { %4830 = vmatprep.subr.mxu0 %v12553_v29  ;;  %8764 = vmatprep.subr.mxu1 %v14254_v57 }
0x13a5   :  { %4831 = vmatpush1.msra.mxu0 %v12560_v31  ;;  %8765 = vmatpush3.msra.mxu1 %v12546_v0 }
0x13a6   :  { %4832 = vmatprep.subr.mxu0 %v12570_v38  ;;  %8766 = vmatprep.subr.mxu1 %v14254_v57 }
0x13a7   :  { %4833 = vmatpush1.msra.mxu0 %v12577_v22  ;;  %8767 = vmatpush3.msra.mxu1 %v12565_v37 }
0x13a8   :  { %4834 = vmatprep.subr.mxu0 %v12587_v45  ;;  %8768 = vmatprep.subr.mxu1 %v14254_v57 }
0x13a9   :  { %4835 = vmatpush1.msra.mxu0 %v12594_v44  ;;  %8769 = vmatpush3.msra.mxu1 %v12582_v39 }
0x13aa   :  { %4836 = vmatprep.subr.mxu0 %v12606_v46  ;;  %8770 = vmatprep.subr.mxu1 %v14254_v57 }
0x13ab   :  { %4837 = vmatpush1.msra.mxu0 %v12613_v47  ;;  %8771 = vmatpush3.msra.mxu1 %v12599_v34 }
0x13ac   :  { %4838 = vmatprep.subr.mxu0 %v12625_v32  ;;  %8772 = vmatprep.subr.mxu1 %v14254_v57 }
0x13ad   :  { %4839 = vmatpush1.msra.mxu0 %v12632_v33  ;;  %8773 = vmatpush3.msra.mxu1 %v12618_v50 }
0x13ae   :  { %4840 = vmatprep.subr.mxu0 %v12644_v48  ;;  %8774 = vmatprep.subr.mxu1 %v14254_v57 }
0x13af   :  { %4841 = vmatpush1.msra.mxu0 %v12651_v42  ;;  %8775 = vmatpush3.msra.mxu1 %v12637_v35 }
0x13b0   :  { %4842 = vmatprep.subr.mxu0 %v12663_v60  ;;  %8776 = vmatprep.subr.mxu1 %v14254_v57 }
0x13b1   :  { %4843 = vmatpush1.msra.mxu0 %v12670_v61  ;;  %8777 = vmatpush3.msra.mxu1 %v12656_v59 }
0x13b2   :  { %4844 = vmatprep.subr.mxu0 %v12682_v41  ;;  %8778 = vmatprep.subr.mxu1 %v14254_v57 }
0x13b3   :  { %4845 = vmatpush1.msra.mxu0 %v12689_v43  ;;  %8779 = vmatpush3.msra.mxu1 %v12675_v40 }
0x13b4   :  { %4846 = vmatprep.subr.mxu0 %v12701_v51  ;;  %8780 = vmatprep.subr.mxu1 %v14254_v57 }
0x13b5   :  { %4847 = vmatpush1.msra.mxu0 %v12708_v52  ;;  %8781 = vmatpush3.msra.mxu1 %v14297_v18 }
0x13b6   :  { %5042 = vmatprep.subr.mxu0 %v12428_v28  ;;  %8782 = vmatprep.subr.mxu1 %v14254_v57 }
0x13b7   :  { %8783 = vmatpush3.msra.mxu1 %v14298_v62 }
0x13b8   :  { %8787 = vmatprep.subr.mxu1 %v14254_v57 }
0x1456   :  { %v4656_v56 = vpop.f32.mrf.mxu0  ;;  %v4727_v10 = vpop.f32.mrf.mxu1 }
0x1457   :  { %v4731_v11 = vadd.f32 %v7389_v53, %v4656_v56  ;;  %v4752_v56 = vadd.f32 %v12823_v1, %v4727_v10  ;;  %v7396_v10 = vld [vmem:[%s14196_s0 + $0x1f8] sm:$0xff] }
0x1458   :  { %v8751_v63 = vpop.f32.mrf.mxu1  ;;  %v4658_v55 = vpop.f32.mrf.mxu0 }
0x1459   :  { %v7392_v12 = vmul.f32 -1.442695, %v4731_v11  ;;  %v4738_v58 = vadd.f32 %v7390_v54, %v4658_v55  ;;  %v7391_v63 = vld [vmem:[%s14196_s0 + $0x1f0] sm:$0xff] }
0x145b   :  { %9339 = vpow2.f32 %v7392_v12  ;;  %v7393_v2 = vmul.f32 -1.442695, %v4738_v58 }
0x145d   :  { %9341 = vpow2.f32 %v7393_v2 }
0x1468   :  { %v9340_v3 = vpop.eup %9339 }
0x1469   :  { %v4735_v49 = vadd.f32 1.0, %v9340_v3 }
0x146a   :  { %v9342_v24 = vpop.eup %9341 }
0x146b   :  { %9343 = vrcp.f32 %v4735_v49  ;;  %v4742_v53 = vadd.f32 1.0, %v9342_v24 }
0x146d   :  { %9345 = vrcp.f32 %v4742_v53 }
0x1478   :  { %v9344_v11 = vpop.eup %9343 }
0x1479   :  { %v4753_v12 = vmul.f32 %v9344_v11, %v4752_v56 }
0x147a   :  { %v9346_v55 = vpop.eup %9345 }
0x147b   :  { %v4754_v54 = vadd.f32 %v7391_v63, %v4753_v12  ;;  %v4756_v58 = vsub.f32 1.0, %v9346_v55  ;;  %v4758_v49 = vmul.f32 %v9346_v55, %v12734_v4  ;;  %v14299_v4 = vld [vmem:[#allocation3_spill] sm:$0xff] }
0x147c   :  { %v7397_v12 = vld [vmem:[%s14196_s0 + $0x200] sm:$0xff] }
0x147d   :  { %9347 = vtanh.f32 %v4754_v54 }
0x148a   :  { %v9348_v2 = vpop.eup %9347 }
0x148b   :  { %v4757_v3 = vmul.f32 %v9348_v2, %v4756_v58 }
0x148d   :  { %v12830_v28 = vadd.f32 %v4758_v49, %v4757_v3 }
0x148f   :  { %7395 = vst [vmem:[%s14198_s4 + $0xa0] sm:$0xff] %v12830_v28  ;;  %4881 = vmatmul.mubr.f32.vlgmr.msra.gmra.mxu0 %v12830_v28  ;;  %8785 = vmatmul.mubr.f32.vlgmr.msra.gmra.mxu1 %v12830_v28 }
0x1490   :  { %5043 = vmatpush1.msra.mxu0 %v12434_v7  ;;  %8788 = vmatpush3.msra.mxu1 %v12780_v36 }
0x1491   :  { %5044 = vmatprep.subr.mxu0 %v12440_v19  ;;  %8789 = vmatprep.subr.mxu1 %v14254_v57 }
0x1492   :  { %5045 = vmatpush1.msra.mxu0 %v12446_v20  ;;  %8790 = vmatpush3.msra.mxu1 %v12451_v23 }
0x1493   :  { %5046 = vmatprep.subr.mxu0 %v12458_v5  ;;  %8791 = vmatprep.subr.mxu1 %v14254_v57 }
0x1494   :  { %5047 = vmatpush1.msra.mxu0 %v12465_v6  ;;  %8792 = vmatpush3.msra.mxu1 %v12470_v8 }
0x1495   :  { %5048 = vmatprep.subr.mxu0 %v12477_v21  ;;  %8793 = vmatprep.subr.mxu1 %v14254_v57 }
0x1496   :  { %5049 = vmatpush1.msra.mxu0 %v12484_v16  ;;  %8794 = vmatpush3.msra.mxu1 %v12489_v25 }
0x1497   :  { %5050 = vmatprep.subr.mxu0 %v12496_v26  ;;  %8795 = vmatprep.subr.mxu1 %v14254_v57 }
0x1498   :  { %5051 = vmatpush1.msra.mxu0 %v12503_v27  ;;  %8796 = vmatpush3.msra.mxu1 %v12508_v13 }
0x1499   :  { %5052 = vmatprep.subr.mxu0 %v12515_v15  ;;  %8797 = vmatprep.subr.mxu1 %v14254_v57 }
0x149a   :  { %5053 = vmatpush1.msra.mxu0 %v12522_v17  ;;  %8798 = vmatpush3.msra.mxu1 %v12527_v30 }
0x149b   :  { %5054 = vmatprep.subr.mxu0 %v12534_v14  ;;  %8799 = vmatprep.subr.mxu1 %v14254_v57 }
0x149c   :  { %5055 = vmatpush1.msra.mxu0 %v12541_v9  ;;  %8800 = vmatpush3.msra.mxu1 %v12546_v0 }
0x149d   :  { %5056 = vmatprep.subr.mxu0 %v12553_v29  ;;  %8801 = vmatprep.subr.mxu1 %v14254_v57 }
0x149e   :  { %5057 = vmatpush1.msra.mxu0 %v12560_v31  ;;  %8802 = vmatpush3.msra.mxu1 %v12565_v37 }
0x149f   :  { %5058 = vmatprep.subr.mxu0 %v12570_v38  ;;  %8803 = vmatprep.subr.mxu1 %v14254_v57 }
0x14a0   :  { %5059 = vmatpush1.msra.mxu0 %v12577_v22  ;;  %8804 = vmatpush3.msra.mxu1 %v12582_v39 }
0x14a1   :  { %5060 = vmatprep.subr.mxu0 %v12587_v45  ;;  %8805 = vmatprep.subr.mxu1 %v14254_v57 }
0x14a2   :  { %5061 = vmatpush1.msra.mxu0 %v12594_v44  ;;  %8806 = vmatpush3.msra.mxu1 %v12599_v34 }
0x14a3   :  { %5062 = vmatprep.subr.mxu0 %v12606_v46  ;;  %8807 = vmatprep.subr.mxu1 %v14254_v57 }
0x14a4   :  { %5063 = vmatpush1.msra.mxu0 %v12613_v47  ;;  %8808 = vmatpush3.msra.mxu1 %v12618_v50 }
0x14a5   :  { %5064 = vmatprep.subr.mxu0 %v12625_v32  ;;  %8809 = vmatprep.subr.mxu1 %v14254_v57 }
0x14a6   :  { %5065 = vmatpush1.msra.mxu0 %v12632_v33  ;;  %8810 = vmatpush3.msra.mxu1 %v12637_v35 }
0x14a7   :  { %5066 = vmatprep.subr.mxu0 %v12644_v48  ;;  %8811 = vmatprep.subr.mxu1 %v14254_v57 }
0x14a8   :  { %5067 = vmatpush1.msra.mxu0 %v12651_v42  ;;  %8812 = vmatpush3.msra.mxu1 %v12656_v59 }
0x14a9   :  { %5068 = vmatprep.subr.mxu0 %v12663_v60  ;;  %8813 = vmatprep.subr.mxu1 %v14254_v57 }
0x14aa   :  { %5069 = vmatpush1.msra.mxu0 %v12670_v61  ;;  %8814 = vmatpush3.msra.mxu1 %v12675_v40 }
0x14ab   :  { %5070 = vmatprep.subr.mxu0 %v12682_v41  ;;  %8815 = vmatprep.subr.mxu1 %v14254_v57 }
0x14ac   :  { %5071 = vmatpush1.msra.mxu0 %v12689_v43  ;;  %8816 = vmatpush3.msra.mxu1 %v14297_v18 }
0x14ad   :  { %5072 = vmatprep.subr.mxu0 %v12701_v51  ;;  %8817 = vmatprep.subr.mxu1 %v14254_v57 }
0x14ae   :  { %5073 = vmatpush1.msra.mxu0 %v12708_v52  ;;  %5106 = vmatprep.mubr.f32.mxu0 %v14254_v57 }
0x14af   :  { %8818 = vmatpush3.msra.mxu1 %v14298_v62  ;;  %8819 = vmatprep.mubr.msk.f32.mxu1 %vm9460_vm0, %v14254_v57 }
0x14b0   :  { %5268 = vmatprep.subr.mxu0 %v14299_v4  ;;  %8822 = vmatprep.subr.mxu1 %v14254_v57 }
0x154f   :  { %v4882_v24 = vpop.f32.mrf.mxu0  ;;  %v4953_v53 = vpop.f32.mrf.mxu1 }
0x1550   :  { %v4957_v56 = vadd.f32 %v7396_v10, %v4882_v24  ;;  %v4978_v62 = vadd.f32 %v12823_v1, %v4953_v53  ;;  %v7398_v10 = vld [vmem:[%s14196_s0 + $0x208] sm:$0xff]  ;;  %v13149_v53 = vld [vmem:[%s14194_s2 + $0xc0] sm:$0xff] }
0x1551   :  { %v8786_v11 = vpop.f32.mrf.mxu1  ;;  %v4884_v54 = vpop.f32.mrf.mxu0 }
0x1552   :  { %v7399_v63 = vmul.f32 -1.442695, %v4957_v56  ;;  %v4964_v55 = vadd.f32 %v7397_v12, %v4884_v54 }
0x1554   :  { %9349 = vpow2.f32 %v7399_v63  ;;  %v7400_v58 = vmul.f32 -1.442695, %v4964_v55 }
0x1556   :  { %9351 = vpow2.f32 %v7400_v58 }
0x1561   :  { %v9350_v2 = vpop.eup %9349 }
0x1562   :  { %v4961_v3 = vadd.f32 1.0, %v9350_v2  ;;  %v13154_v2 = vld [vmem:[%s14194_s2 + $0xd0] sm:$0xff] }
0x1563   :  { %v9352_v49 = vpop.eup %9351 }
0x1564   :  { %9353 = vrcp.f32 %v4961_v3  ;;  %v4968_v4 = vadd.f32 1.0, %v9352_v49  ;;  %v13159_v3 = vld [vmem:[%s14194_s2 + $0xb0] sm:$0xff]  ;;  %v13166_v49 = vld [vmem:[%s14194_s2 + $0xa8] sm:$0xff] }
0x1566   :  { %9355 = vrcp.f32 %v4968_v4  ;;  %v13171_v4 = vld [vmem:[%s14194_s2 + $0xb8] sm:$0xff] }
0x1571   :  { %v9354_v52 = vpop.eup %9353 }
0x1572   :  { %v4979_v24 = vmul.f32 %v9354_v52, %v4978_v62  ;;  %v13123_v52 = vld [vmem:[%s14194_s2 + $0xe0] sm:$0xff]  ;;  %v13142_v62 = vld [vmem:[%s14194_s2 + $0xc8] sm:$0xff] }
0x1573   :  { %v9356_v11 = vpop.eup %9355 }
0x1574   :  { %v4980_v56 = vadd.f32 %v7398_v10, %v4979_v24  ;;  %v4982_v63 = vsub.f32 1.0, %v9356_v11  ;;  %v4984_v55 = vmul.f32 %v9356_v11, %v12830_v28  ;;  %v14300_v28 = vld [vmem:[#allocation5_spill] sm:$0xff]  ;;  %v13176_v10 = vld [vmem:[%s14194_s2 + $0x98] sm:$0xff]  ;;  %v13195_v11 = vld [vmem:[%s14194_s2 + $0x80] sm:$0xff] }
0x1575   :  { %v13183_v24 = vld [vmem:[%s14194_s2 + $0x90] sm:$0xff] }
0x1576   :  { %9357 = vtanh.f32 %v4980_v56  ;;  %v13188_v56 = vld [vmem:[%s14194_s2 + $0xa0] sm:$0xff] }
0x1583   :  { %v9358_v12 = vpop.eup %9357 }
0x1584   :  { %v4983_v54 = vmul.f32 %v9358_v12, %v4982_v63  ;;  %v13202_v63 = vld [vmem:[%s14194_s2 + $0x78] sm:$0xff]  ;;  %v13207_v12 = vld [vmem:[%s14194_s2 + $0x88] sm:$0xff] }
0x1586   :  { %v12916_v58 = vadd.f32 %v4984_v55, %v4983_v54  ;;  %v13214_v54 = vld [vmem:[%s14194_s2 + $0x68] sm:$0xff]  ;;  %v13221_v55 = vld [vmem:[%s14194_s2 + $0x60] sm:$0xff] }
0x1588   :  { %7402 = vst [vmem:[%s14198_s4 + $0xa8] sm:$0xff] %v12916_v58  ;;  %5107 = vmatmul.mubr.f32.vlgmr.msra.gmra.mxu0 %v12916_v58  ;;  %8820 = vmatmul.mubr.f32.vlgmr.msra.gmra.mxu1 %v12916_v58 }
0x1589   :  { %5269 = vmatpush1.msra.mxu0 %v12434_v7  ;;  %8823 = vmatpush3.msra.mxu1 %v12780_v36  ;;  %v14301_v7 = vld [vmem:[#allocation6_spill] sm:$0xff] }
0x158a   :  { %5270 = vmatprep.subr.mxu0 %v12440_v19  ;;  %8824 = vmatprep.subr.mxu1 %v14254_v57  ;;  %v7403_v19 = vld [vmem:[%s14196_s0 + $0x210] sm:$0xff] }
0x158b   :  { %5271 = vmatpush1.msra.mxu0 %v12446_v20  ;;  %8825 = vmatpush3.msra.mxu1 %v12451_v23 }
0x158c   :  { %5272 = vmatprep.subr.mxu0 %v12458_v5  ;;  %8826 = vmatprep.subr.mxu1 %v14254_v57 }
0x158d   :  { %5273 = vmatpush1.msra.mxu0 %v12465_v6  ;;  %8827 = vmatpush3.msra.mxu1 %v12470_v8 }
0x158e   :  { %5274 = vmatprep.subr.mxu0 %v12477_v21  ;;  %8828 = vmatprep.subr.mxu1 %v14254_v57  ;;  %v7404_v21 = vld [vmem:[%s14196_s0 + $0x218] sm:$0xff] }
0x158f   :  { %5275 = vmatpush1.msra.mxu0 %v12484_v16  ;;  %8829 = vmatpush3.msra.mxu1 %v12489_v25 }
0x1590   :  { %5276 = vmatprep.subr.mxu0 %v12496_v26  ;;  %8830 = vmatprep.subr.mxu1 %v14254_v57 }
0x1591   :  { %5277 = vmatpush1.msra.mxu0 %v12503_v27  ;;  %8831 = vmatpush3.msra.mxu1 %v12508_v13 }
0x1592   :  { %5278 = vmatprep.subr.mxu0 %v12515_v15  ;;  %8832 = vmatprep.subr.mxu1 %v14254_v57 }
0x1593   :  { %5279 = vmatpush1.msra.mxu0 %v12522_v17  ;;  %8833 = vmatpush3.msra.mxu1 %v12527_v30 }
0x1594   :  { %5280 = vmatprep.subr.mxu0 %v12534_v14  ;;  %8834 = vmatprep.subr.mxu1 %v14254_v57 }
0x1595   :  { %5281 = vmatpush1.msra.mxu0 %v12541_v9  ;;  %8835 = vmatpush3.msra.mxu1 %v12546_v0  ;;  %v7405_v9 = vld [vmem:[%s14196_s0 + $0x220] sm:$0xff] }
0x1596   :  { %5282 = vmatprep.subr.mxu0 %v12553_v29  ;;  %8836 = vmatprep.subr.mxu1 %v14254_v57 }
0x1597   :  { %5283 = vmatpush1.msra.mxu0 %v12560_v31  ;;  %8837 = vmatpush3.msra.mxu1 %v12565_v37 }
0x1598   :  { %5284 = vmatprep.subr.mxu0 %v12570_v38  ;;  %8838 = vmatprep.subr.mxu1 %v14254_v57 }
0x1599   :  { %5285 = vmatpush1.msra.mxu0 %v12577_v22  ;;  %8839 = vmatpush3.msra.mxu1 %v12582_v39 }
0x159a   :  { %5286 = vmatprep.subr.mxu0 %v12587_v45  ;;  %8840 = vmatprep.subr.mxu1 %v14254_v57 }
0x159b   :  { %5287 = vmatpush1.msra.mxu0 %v12594_v44  ;;  %8841 = vmatpush3.msra.mxu1 %v12599_v34  ;;  %v13017_v44 = vld [vmem:[%s14194_s2 + $0x170] sm:$0xff]  ;;  %v13023_v34 = vld [vmem:[%s14194_s2 + $0x168] sm:$0xff] }
0x159c   :  { %5288 = vmatprep.subr.mxu0 %v12606_v46  ;;  %8842 = vmatprep.subr.mxu1 %v14254_v57  ;;  %14302 = vst [vmem:[#allocation4_spill] sm:$0xff] %v13017_v44  ;;  %v13029_v46 = vld [vmem:[%s14194_s2 + $0x158] sm:$0xff] }
0x159d   :  { %5289 = vmatpush1.msra.mxu0 %v12613_v47  ;;  %8843 = vmatpush3.msra.mxu1 %v12618_v50  ;;  %v13035_v47 = vld [vmem:[%s14194_s2 + $0x150] sm:$0xff]  ;;  %v13040_v50 = vld [vmem:[%s14194_s2 + $0x160] sm:$0xff] }
0x159e   :  { %5290 = vmatprep.subr.mxu0 %v12625_v32  ;;  %8844 = vmatprep.subr.mxu1 %v14254_v57  ;;  %v13047_v32 = vld [vmem:[%s14194_s2 + $0x140] sm:$0xff] }
0x159f   :  { %5291 = vmatpush1.msra.mxu0 %v12632_v33  ;;  %8845 = vmatpush3.msra.mxu1 %v12637_v35  ;;  %v13054_v33 = vld [vmem:[%s14194_s2 + $0x138] sm:$0xff]  ;;  %v13059_v35 = vld [vmem:[%s14194_s2 + $0x148] sm:$0xff] }
0x15a0   :  { %5292 = vmatprep.subr.mxu0 %v12644_v48  ;;  %8846 = vmatprep.subr.mxu1 %v14254_v57  ;;  %v13066_v48 = vld [vmem:[%s14194_s2 + $0x128] sm:$0xff] }
0x15a1   :  { %5293 = vmatpush1.msra.mxu0 %v12651_v42  ;;  %8847 = vmatpush3.msra.mxu1 %v12656_v59  ;;  %v13073_v42 = vld [vmem:[%s14194_s2 + $0x120] sm:$0xff]  ;;  %v13078_v59 = vld [vmem:[%s14194_s2 + $0x130] sm:$0xff] }
0x15a2   :  { %5294 = vmatprep.subr.mxu0 %v12663_v60  ;;  %8848 = vmatprep.subr.mxu1 %v14254_v57  ;;  %v13085_v60 = vld [vmem:[%s14194_s2 + $0x110] sm:$0xff] }
0x15a3   :  { %5295 = vmatpush1.msra.mxu0 %v12670_v61  ;;  %8849 = vmatpush3.msra.mxu1 %v12675_v40  ;;  %v13092_v61 = vld [vmem:[%s14194_s2 + $0x108] sm:$0xff]  ;;  %v13097_v40 = vld [vmem:[%s14194_s2 + $0x118] sm:$0xff] }
0x15a4   :  { %5296 = vmatprep.subr.mxu0 %v12682_v41  ;;  %8850 = vmatprep.subr.mxu1 %v14254_v57  ;;  %v13104_v41 = vld [vmem:[%s14194_s2 + $0xf8] sm:$0xff] }
0x15a5   :  { %5297 = vmatpush1.msra.mxu0 %v12689_v43  ;;  %8851 = vmatpush3.msra.mxu1 %v14297_v18  ;;  %v13111_v43 = vld [vmem:[%s14194_s2 + $0xf0] sm:$0xff]  ;;  %v13135_v18 = vld [vmem:[%s14194_s2 + $0xe8] sm:$0xff] }
0x15a6   :  { %5298 = vmatprep.subr.mxu0 %v12701_v51  ;;  %8852 = vmatprep.subr.mxu1 %v14254_v57  ;;  %v13116_v51 = vld [vmem:[%s14194_s2 + $0x100] sm:$0xff] }
0x15a7   :  { %5299 = vmatpush1.msra.mxu0 %v14300_v28  ;;  %5332 = vmatprep.mubr.f32.mxu0 %v14254_v57  ;;  %v13233_v28 = vld [vmem:[%s14194_s2 + $0x50] sm:$0xff] }
0x15a8   :  { %8853 = vmatpush3.msra.mxu1 %v14301_v7  ;;  %8854 = vmatprep.mubr.msk.f32.mxu1 %vm9460_vm0, %v14254_v57  ;;  %v13240_v7 = vld [vmem:[%s14194_s2 + $0x48] sm:$0xff] }
0x15a9   :  { %8857 = vmatprep.subr.mxu1 %v14254_v57  ;;  %5494 = vmatprep.subr.mxu0 %v13017_v44 }
0x1648   :  { %v5108_v20 = vpop.f32.mrf.mxu0  ;;  %v5179_v23 = vpop.f32.mrf.mxu1 }
0x1649   :  { %v5183_v5 = vadd.f32 %v7403_v19, %v5108_v20  ;;  %v5204_v30 = vadd.f32 %v12823_v1, %v5179_v23  ;;  %v13245_v19 = vld [vmem:[%s14194_s2 + $0x58] sm:$0xff]  ;;  %v13259_v23 = vld [vmem:[%s14194_s2 + $0x30] sm:$0xff] }
0x164a   :  { %v8821_v6 = vpop.f32.mrf.mxu1  ;;  %v5110_v16 = vpop.f32.mrf.mxu0  ;;  %v13252_v20 = vld [vmem:[%s14194_s2 + $0x38] sm:$0xff] }
0x164b   :  { %v7406_v8 = vmul.f32 -1.442695, %v5183_v5  ;;  %v5190_v25 = vadd.f32 %v7404_v21, %v5110_v16  ;;  %v13264_v5 = vld [vmem:[%s14194_s2 + $0x40] sm:$0xff]  ;;  %v13283_v21 = vld [vmem:[%s14194_s2 + $0x28] sm:$0xff] }
0x164c   :  { %v13271_v6 = vld [vmem:[%s14194_s2 + $0x20] sm:$0xff]  ;;  %14303 = vst [vmem:[#allocation3_spill] sm:$0xff] %v13283_v21  ;;  %v13290_v16 = vld [vmem:[%s14194_s2 + $0x8] sm:$0xff] }
0x164d   :  { %9359 = vpow2.f32 %v7406_v8  ;;  %v7407_v26 = vmul.f32 -1.442695, %v5190_v25  ;;  %v13278_v8 = vld [vmem:[%s14194_s2 + $0x18] sm:$0xff]  ;;  %v13297_v25 = vld [vmem:[%s14194_s2] sm:$0xff] }
0x164e   :  { %14304 = vst [vmem:[#allocation5_spill] sm:$0xff] %v13297_v25 }
0x164f   :  { %9361 = vpow2.f32 %v7407_v26  ;;  %v13302_v26 = vld [vmem:[%s14194_s2 + $0x10] sm:$0xff] }
0x1650   :  { %14305 = vst [vmem:[#allocation6_spill] sm:$0xff] %v13302_v26 }
0x165a   :  { %v9360_v27 = vpop.eup %9359 }
0x165b   :  { %v5187_v13 = vadd.f32 1.0, %v9360_v27  ;;  %v7410_v27 = vld [vmem:[%s14196_s0 + $0x228] sm:$0xff] }
0x165c   :  { %v9362_v15 = vpop.eup %9361 }
0x165d   :  { %9363 = vrcp.f32 %v5187_v13  ;;  %v5194_v17 = vadd.f32 1.0, %v9362_v15 }
0x165f   :  { %9365 = vrcp.f32 %v5194_v17 }
0x166a   :  { %v9364_v14 = vpop.eup %9363 }
0x166b   :  { %v5205_v0 = vmul.f32 %v9364_v14, %v5204_v30 }
0x166c   :  { %v9366_v31 = vpop.eup %9365 }
0x166d   :  { %v5206_v29 = vadd.f32 %v7405_v9, %v5205_v0  ;;  %v5208_v37 = vsub.f32 1.0, %v9366_v31  ;;  %v5210_v39 = vmul.f32 %v9366_v31, %v12916_v58  ;;  %v13226_v58 = vld [vmem:[%s14194_s2 + $0x70] sm:$0xff] }
0x166e   :  { %v7411_v9 = vld [vmem:[%s14196_s0 + $0x230] sm:$0xff] }
0x166f   :  { %9367 = vtanh.f32 %v5206_v29 }
0x167c   :  { %v9368_v38 = vpop.eup %9367 }
0x167d   :  { %v5209_v22 = vmul.f32 %v9368_v38, %v5208_v37 }
0x167f   :  { %v13001_v45 = vadd.f32 %v5210_v39, %v5209_v22 }
0x1681   :  { %7409 = vst [vmem:[%s14198_s4 + $0xb0] sm:$0xff] %v13001_v45  ;;  %5333 = vmatmul.mubr.f32.vlgmr.msra.gmra.mxu0 %v13001_v45  ;;  %8855 = vmatmul.mubr.f32.vlgmr.msra.gmra.mxu1 %v13001_v45 }
0x1682   :  { %8858 = vmatpush3.msra.mxu1 %v12780_v36  ;;  %5558 = vmatprep.mubr.f32.mxu0 %v14254_v57  ;;  %v13130_v36 = vld [vmem:[%s14194_s2 + $0xd8] sm:$0xff] }
0x1683   :  { %8859 = vmatprep.subr.mxu1 %v14254_v57  ;;  %8889 = vmatprep.mubr.msk.f32.mxu1 %vm9460_vm0, %v14254_v57 }
0x1684   :  { %5495 = vmatpush1.msra.mxu0 %v13023_v34  ;;  %8860 = vmatpush3.msra.mxu1 %v13040_v50 }
0x1685   :  { %5496 = vmatprep.subr.mxu0 %v13029_v46  ;;  %8861 = vmatprep.subr.mxu1 %v14254_v57 }
0x1686   :  { %5497 = vmatpush1.msra.mxu0 %v13035_v47  ;;  %8862 = vmatpush3.msra.mxu1 %v13059_v35 }
0x1687   :  { %5498 = vmatprep.subr.mxu0 %v13047_v32  ;;  %8863 = vmatprep.subr.mxu1 %v14254_v57 }
0x1688   :  { %5499 = vmatpush1.msra.mxu0 %v13054_v33  ;;  %8864 = vmatpush3.msra.mxu1 %v13078_v59 }
0x1689   :  { %5500 = vmatprep.subr.mxu0 %v13066_v48  ;;  %8865 = vmatprep.subr.mxu1 %v14254_v57 }
0x168a   :  { %5501 = vmatpush1.msra.mxu0 %v13073_v42  ;;  %8866 = vmatpush3.msra.mxu1 %v13097_v40 }
0x168b   :  { %5502 = vmatprep.subr.mxu0 %v13085_v60  ;;  %8867 = vmatprep.subr.mxu1 %v14254_v57 }
0x168c   :  { %5503 = vmatpush1.msra.mxu0 %v13092_v61  ;;  %8868 = vmatpush3.msra.mxu1 %v13116_v51 }
0x168d   :  { %5504 = vmatprep.subr.mxu0 %v13104_v41  ;;  %8869 = vmatprep.subr.mxu1 %v14254_v57 }
0x168e   :  { %5505 = vmatpush1.msra.mxu0 %v13111_v43  ;;  %8870 = vmatpush3.msra.mxu1 %v13135_v18 }
0x168f   :  { %5506 = vmatprep.subr.mxu0 %v13123_v52  ;;  %8871 = vmatprep.subr.mxu1 %v14254_v57 }
0x1690   :  { %5507 = vmatpush1.msra.mxu0 %v13130_v36  ;;  %8872 = vmatpush3.msra.mxu1 %v13154_v2 }
0x1691   :  { %5508 = vmatprep.subr.mxu0 %v13142_v62  ;;  %8873 = vmatprep.subr.mxu1 %v14254_v57 }
0x1692   :  { %5509 = vmatpush1.msra.mxu0 %v13149_v53  ;;  %8874 = vmatpush3.msra.mxu1 %v13171_v4 }
0x1693   :  { %5510 = vmatprep.subr.mxu0 %v13159_v3  ;;  %8875 = vmatprep.subr.mxu1 %v14254_v57 }
0x1694   :  { %5511 = vmatpush1.msra.mxu0 %v13166_v49  ;;  %8876 = vmatpush3.msra.mxu1 %v13188_v56 }
0x1695   :  { %5512 = vmatprep.subr.mxu0 %v13176_v10  ;;  %8877 = vmatprep.subr.mxu1 %v14254_v57 }
0x1696   :  { %5513 = vmatpush1.msra.mxu0 %v13183_v24  ;;  %8878 = vmatpush3.msra.mxu1 %v13207_v12 }
0x1697   :  { %5514 = vmatprep.subr.mxu0 %v13195_v11  ;;  %8879 = vmatprep.subr.mxu1 %v14254_v57 }
0x1698   :  { %5515 = vmatpush1.msra.mxu0 %v13202_v63  ;;  %8880 = vmatpush3.msra.mxu1 %v13226_v58 }
0x1699   :  { %5516 = vmatprep.subr.mxu0 %v13214_v54  ;;  %8881 = vmatprep.subr.mxu1 %v14254_v57 }
0x169a   :  { %5517 = vmatpush1.msra.mxu0 %v13221_v55  ;;  %8882 = vmatpush3.msra.mxu1 %v13245_v19 }
0x169b   :  { %5518 = vmatprep.subr.mxu0 %v13233_v28  ;;  %8883 = vmatprep.subr.mxu1 %v14254_v57 }
0x169c   :  { %5519 = vmatpush1.msra.mxu0 %v13240_v7  ;;  %8884 = vmatpush3.msra.mxu1 %v13264_v5 }
0x169d   :  { %5520 = vmatprep.subr.mxu0 %v13252_v20  ;;  %8885 = vmatprep.subr.mxu1 %v14254_v57 }
0x169e   :  { %5521 = vmatpush1.msra.mxu0 %v13259_v23  ;;  %8886 = vmatpush3.msra.mxu1 %v13283_v21 }
0x169f   :  { %5522 = vmatprep.subr.mxu0 %v13271_v6  ;;  %8887 = vmatprep.subr.mxu1 %v14254_v57 }
0x16a0   :  { %5523 = vmatpush1.msra.mxu0 %v13278_v8  ;;  %8888 = vmatpush3.msra.mxu1 %v13302_v26 }
0x16a1   :  { %5524 = vmatprep.subr.mxu0 %v13290_v16  ;;  %8892 = vmatprep.subr.mxu1 %v14254_v57 }
0x16a2   :  { %5525 = vmatpush1.msra.mxu0 %v13297_v25 }
0x16a3   :  { %5720 = vmatprep.subr.mxu0 %v13017_v44 }
0x1741   :  { %v5334_v13 = vpop.f32.mrf.mxu0  ;;  %v5405_v15 = vpop.f32.mrf.mxu1 }
0x1742   :  { %v5409_v17 = vadd.f32 %v7410_v27, %v5334_v13  ;;  %v5430_v26 = vadd.f32 %v12823_v1, %v5405_v15  ;;  %v7412_v27 = vld [vmem:[%s14196_s0 + $0x238] sm:$0xff] }
0x1743   :  { %v8856_v30 = vpop.f32.mrf.mxu1  ;;  %v5336_v0 = vpop.f32.mrf.mxu0  ;;  %v13369_v1 = vld [vmem:[%s14194_s2 + $0x178] sm:$0xff] }
0x1744   :  { %v7413_v14 = vmul.f32 -1.442695, %v5409_v17  ;;  %v5416_v29 = vadd.f32 %v7411_v9, %v5336_v0 }
0x1746   :  { %9369 = vpow2.f32 %v7413_v14  ;;  %v7414_v31 = vmul.f32 -1.442695, %v5416_v29 }
0x1748   :  { %9371 = vpow2.f32 %v7414_v31 }
0x1753   :  { %v9370_v37 = vpop.eup %9369 }
0x1754   :  { %v5413_v38 = vadd.f32 1.0, %v9370_v37 }
0x1755   :  { %v9372_v22 = vpop.eup %9371 }
0x1756   :  { %9373 = vrcp.f32 %v5413_v38  ;;  %v5420_v39 = vadd.f32 1.0, %v9372_v22 }
0x1758   :  { %9375 = vrcp.f32 %v5420_v39 }
0x1763   :  { %v9374_v21 = vpop.eup %9373 }
0x1764   :  { %v5431_v13 = vmul.f32 %v9374_v21, %v5430_v26  ;;  %v14307_v21 = vld [vmem:[#allocation6_spill] sm:$0xff]  ;;  %v7417_v26 = vld [vmem:[%s14196_s0 + $0x240] sm:$0xff] }
0x1765   :  { %v9376_v30 = vpop.eup %9375 }
0x1766   :  { %v5432_v17 = vadd.f32 %v7412_v27, %v5431_v13  ;;  %v5434_v14 = vsub.f32 1.0, %v9376_v30  ;;  %v5436_v29 = vmul.f32 %v9376_v30, %v13001_v45  ;;  %v14306_v45 = vld [vmem:[#allocation3_spill] sm:$0xff]  ;;  %v7418_v27 = vld [vmem:[%s14196_s0 + $0x248] sm:$0xff] }
0x1768   :  { %9377 = vtanh.f32 %v5432_v17 }
0x1775   :  { %v9378_v9 = vpop.eup %9377 }
0x1776   :  { %v5435_v0 = vmul.f32 %v9378_v9, %v5434_v14 }
0x1778   :  { %v13323_v31 = vadd.f32 %v5436_v29, %v5435_v0  ;;  %v13412_v29 = vld [vmem:[%s14197_s3] ss:$0 sm:$0xff] }
0x177a   :  { %7416 = vst [vmem:[%s14198_s4 + $0xb8] sm:$0xff] %v13323_v31  ;;  %5559 = vmatmul.mubr.f32.vlgmr.msra.gmra.mxu0 %v13323_v31  ;;  %8890 = vmatmul.mubr.f32.vlgmr.msra.gmra.mxu1 %v13323_v31 }
0x177b   :  { %5721 = vmatpush1.msra.mxu0 %v13023_v34  ;;  %5784 = vmatprep.mubr.f32.mxu0 %v14254_v57 }
0x177c   :  { %5722 = vmatprep.subr.mxu0 %v13029_v46  ;;  %8924 = vmatprep.mubr.msk.f32.mxu1 %vm9460_vm0, %v14254_v57 }
0x177d   :  { %5723 = vmatpush1.msra.mxu0 %v13035_v47  ;;  %8893 = vmatpush3.msra.mxu1 %v13369_v1 }
0x177e   :  { %5724 = vmatprep.subr.mxu0 %v13047_v32  ;;  %8894 = vmatprep.subr.mxu1 %v14254_v57 }
0x177f   :  { %5725 = vmatpush1.msra.mxu0 %v13054_v33  ;;  %8895 = vmatpush3.msra.mxu1 %v13040_v50 }
0x1780   :  { %5726 = vmatprep.subr.mxu0 %v13066_v48  ;;  %8896 = vmatprep.subr.mxu1 %v14254_v57 }
0x1781   :  { %5727 = vmatpush1.msra.mxu0 %v13073_v42  ;;  %8897 = vmatpush3.msra.mxu1 %v13059_v35 }
0x1782   :  { %5728 = vmatprep.subr.mxu0 %v13085_v60  ;;  %8898 = vmatprep.subr.mxu1 %v14254_v57 }
0x1783   :  { %5729 = vmatpush1.msra.mxu0 %v13092_v61  ;;  %8899 = vmatpush3.msra.mxu1 %v13078_v59 }
0x1784   :  { %5730 = vmatprep.subr.mxu0 %v13104_v41  ;;  %8900 = vmatprep.subr.mxu1 %v14254_v57 }
0x1785   :  { %5731 = vmatpush1.msra.mxu0 %v13111_v43  ;;  %8901 = vmatpush3.msra.mxu1 %v13097_v40 }
0x1786   :  { %5732 = vmatprep.subr.mxu0 %v13123_v52  ;;  %8902 = vmatprep.subr.mxu1 %v14254_v57 }
0x1787   :  { %5733 = vmatpush1.msra.mxu0 %v13130_v36  ;;  %8903 = vmatpush3.msra.mxu1 %v13116_v51 }
0x1788   :  { %5734 = vmatprep.subr.mxu0 %v13142_v62  ;;  %8904 = vmatprep.subr.mxu1 %v14254_v57 }
0x1789   :  { %5735 = vmatpush1.msra.mxu0 %v13149_v53  ;;  %8905 = vmatpush3.msra.mxu1 %v13135_v18 }
0x178a   :  { %5736 = vmatprep.subr.mxu0 %v13159_v3  ;;  %8906 = vmatprep.subr.mxu1 %v14254_v57 }
0x178b   :  { %5737 = vmatpush1.msra.mxu0 %v13166_v49  ;;  %8907 = vmatpush3.msra.mxu1 %v13154_v2 }
0x178c   :  { %5738 = vmatprep.subr.mxu0 %v13176_v10  ;;  %8908 = vmatprep.subr.mxu1 %v14254_v57 }
0x178d   :  { %5739 = vmatpush1.msra.mxu0 %v13183_v24  ;;  %8909 = vmatpush3.msra.mxu1 %v13171_v4 }
0x178e   :  { %5740 = vmatprep.subr.mxu0 %v13195_v11  ;;  %8910 = vmatprep.subr.mxu1 %v14254_v57 }
0x178f   :  { %5741 = vmatpush1.msra.mxu0 %v13202_v63  ;;  %8911 = vmatpush3.msra.mxu1 %v13188_v56 }
0x1790   :  { %5742 = vmatprep.subr.mxu0 %v13214_v54  ;;  %8912 = vmatprep.subr.mxu1 %v14254_v57 }
0x1791   :  { %5743 = vmatpush1.msra.mxu0 %v13221_v55  ;;  %8913 = vmatpush3.msra.mxu1 %v13207_v12 }
0x1792   :  { %5744 = vmatprep.subr.mxu0 %v13233_v28  ;;  %8914 = vmatprep.subr.mxu1 %v14254_v57 }
0x1793   :  { %5745 = vmatpush1.msra.mxu0 %v13240_v7  ;;  %8915 = vmatpush3.msra.mxu1 %v13226_v58 }
0x1794   :  { %5746 = vmatprep.subr.mxu0 %v13252_v20  ;;  %8916 = vmatprep.subr.mxu1 %v14254_v57 }
0x1795   :  { %5747 = vmatpush1.msra.mxu0 %v13259_v23  ;;  %8917 = vmatpush3.msra.mxu1 %v13245_v19 }
0x1796   :  { %5748 = vmatprep.subr.mxu0 %v13271_v6  ;;  %8918 = vmatprep.subr.mxu1 %v14254_v57 }
0x1797   :  { %5749 = vmatpush1.msra.mxu0 %v13278_v8  ;;  %8919 = vmatpush3.msra.mxu1 %v13264_v5 }
0x1798   :  { %5750 = vmatprep.subr.mxu0 %v13290_v16  ;;  %8920 = vmatprep.subr.mxu1 %v14254_v57 }
0x1799   :  { %5751 = vmatpush1.msra.mxu0 %v13297_v25  ;;  %8921 = vmatpush3.msra.mxu1 %v14306_v45 }
0x179a   :  { %5946 = vmatprep.subr.mxu0 %v13017_v44  ;;  %8922 = vmatprep.subr.mxu1 %v14254_v57 }
0x179b   :  { %8923 = vmatpush3.msra.mxu1 %v14307_v21 }
0x179c   :  { %8927 = vmatprep.subr.mxu1 %v14254_v57 }
0x183a   :  { %v5560_v15 = vpop.f32.mrf.mxu0  ;;  %v5631_v37 = vpop.f32.mrf.mxu1 }
0x183b   :  { %v5635_v38 = vadd.f32 %v7417_v26, %v5560_v15  ;;  %v5656_v15 = vadd.f32 %v13412_v29, %v5631_v37  ;;  %v7424_v37 = vld [vmem:[%s14196_s0 + $0x258] sm:$0xff] }
0x183c   :  { %v8891_v22 = vpop.f32.mrf.mxu1  ;;  %v5562_v13 = vpop.f32.mrf.mxu0 }
0x183d   :  { %v7420_v39 = vmul.f32 -1.442695, %v5635_v38  ;;  %v5642_v17 = vadd.f32 %v7418_v27, %v5562_v13  ;;  %v7419_v22 = vld [vmem:[%s14196_s0 + $0x250] sm:$0xff] }
0x183f   :  { %9379 = vpow2.f32 %v7420_v39  ;;  %v7421_v30 = vmul.f32 -1.442695, %v5642_v17 }
0x1841   :  { %9381 = vpow2.f32 %v7421_v30 }
0x184c   :  { %v9380_v14 = vpop.eup %9379 }
0x184d   :  { %v5639_v9 = vadd.f32 1.0, %v9380_v14 }
0x184e   :  { %v9382_v0 = vpop.eup %9381 }
0x184f   :  { %9383 = vrcp.f32 %v5639_v9  ;;  %v5646_v26 = vadd.f32 1.0, %v9382_v0 }
0x1851   :  { %9385 = vrcp.f32 %v5646_v26 }
0x185c   :  { %v9384_v38 = vpop.eup %9383 }
0x185d   :  { %v5657_v39 = vmul.f32 %v9384_v38, %v5656_v15 }
0x185e   :  { %v9386_v13 = vpop.eup %9385 }
0x185f   :  { %v5658_v27 = vadd.f32 %v7419_v22, %v5657_v39  ;;  %v5660_v17 = vsub.f32 1.0, %v9386_v13  ;;  %v5662_v9 = vmul.f32 %v9386_v13, %v13323_v31  ;;  %v14308_v31 = vld [vmem:[#allocation4_spill] sm:$0xff]  ;;  %v7425_v39 = vld [vmem:[%s14196_s0 + $0x260] sm:$0xff] }
0x1861   :  { %9387 = vtanh.f32 %v5658_v27 }
0x186e   :  { %v9388_v30 = vpop.eup %9387 }
0x186f   :  { %v5661_v14 = vmul.f32 %v9388_v30, %v5660_v17 }
0x1871   :  { %v13419_v44 = vadd.f32 %v5662_v9, %v5661_v14 }
0x1873   :  { %7423 = vst [vmem:[%s14198_s4 + $0xc0] sm:$0xff] %v13419_v44  ;;  %5785 = vmatmul.mubr.f32.vlgmr.msra.gmra.mxu0 %v13419_v44  ;;  %8925 = vmatmul.mubr.f32.vlgmr.msra.gmra.mxu1 %v13419_v44 }
0x1874   :  { %5947 = vmatpush1.msra.mxu0 %v13023_v34  ;;  %8928 = vmatpush3.msra.mxu1 %v13369_v1 }
0x1875   :  { %5948 = vmatprep.subr.mxu0 %v13029_v46  ;;  %8929 = vmatprep.subr.mxu1 %v14254_v57 }
0x1876   :  { %5949 = vmatpush1.msra.mxu0 %v13035_v47  ;;  %8930 = vmatpush3.msra.mxu1 %v13040_v50 }
0x1877   :  { %5950 = vmatprep.subr.mxu0 %v13047_v32  ;;  %8931 = vmatprep.subr.mxu1 %v14254_v57 }
0x1878   :  { %5951 = vmatpush1.msra.mxu0 %v13054_v33  ;;  %8932 = vmatpush3.msra.mxu1 %v13059_v35 }
0x1879   :  { %5952 = vmatprep.subr.mxu0 %v13066_v48  ;;  %8933 = vmatprep.subr.mxu1 %v14254_v57 }
0x187a   :  { %5953 = vmatpush1.msra.mxu0 %v13073_v42  ;;  %8934 = vmatpush3.msra.mxu1 %v13078_v59 }
0x187b   :  { %5954 = vmatprep.subr.mxu0 %v13085_v60  ;;  %8935 = vmatprep.subr.mxu1 %v14254_v57 }
0x187c   :  { %5955 = vmatpush1.msra.mxu0 %v13092_v61  ;;  %8936 = vmatpush3.msra.mxu1 %v13097_v40 }
0x187d   :  { %5956 = vmatprep.subr.mxu0 %v13104_v41  ;;  %8937 = vmatprep.subr.mxu1 %v14254_v57 }
0x187e   :  { %5957 = vmatpush1.msra.mxu0 %v13111_v43  ;;  %8938 = vmatpush3.msra.mxu1 %v13116_v51 }
0x187f   :  { %5958 = vmatprep.subr.mxu0 %v13123_v52  ;;  %8939 = vmatprep.subr.mxu1 %v14254_v57 }
0x1880   :  { %5959 = vmatpush1.msra.mxu0 %v13130_v36  ;;  %8940 = vmatpush3.msra.mxu1 %v13135_v18 }
0x1881   :  { %5960 = vmatprep.subr.mxu0 %v13142_v62  ;;  %8941 = vmatprep.subr.mxu1 %v14254_v57 }
0x1882   :  { %5961 = vmatpush1.msra.mxu0 %v13149_v53  ;;  %8942 = vmatpush3.msra.mxu1 %v13154_v2 }
0x1883   :  { %5962 = vmatprep.subr.mxu0 %v13159_v3  ;;  %8943 = vmatprep.subr.mxu1 %v14254_v57 }
0x1884   :  { %5963 = vmatpush1.msra.mxu0 %v13166_v49  ;;  %8944 = vmatpush3.msra.mxu1 %v13171_v4 }
0x1885   :  { %5964 = vmatprep.subr.mxu0 %v13176_v10  ;;  %8945 = vmatprep.subr.mxu1 %v14254_v57 }
0x1886   :  { %5965 = vmatpush1.msra.mxu0 %v13183_v24  ;;  %8946 = vmatpush3.msra.mxu1 %v13188_v56 }
0x1887   :  { %5966 = vmatprep.subr.mxu0 %v13195_v11  ;;  %8947 = vmatprep.subr.mxu1 %v14254_v57 }
0x1888   :  { %5967 = vmatpush1.msra.mxu0 %v13202_v63  ;;  %8948 = vmatpush3.msra.mxu1 %v13207_v12 }
0x1889   :  { %5968 = vmatprep.subr.mxu0 %v13214_v54  ;;  %8949 = vmatprep.subr.mxu1 %v14254_v57 }
0x188a   :  { %5969 = vmatpush1.msra.mxu0 %v13221_v55  ;;  %8950 = vmatpush3.msra.mxu1 %v13226_v58 }
0x188b   :  { %5970 = vmatprep.subr.mxu0 %v13233_v28  ;;  %8951 = vmatprep.subr.mxu1 %v14254_v57 }
0x188c   :  { %5971 = vmatpush1.msra.mxu0 %v13240_v7  ;;  %8952 = vmatpush3.msra.mxu1 %v13245_v19 }
0x188d   :  { %5972 = vmatprep.subr.mxu0 %v13252_v20  ;;  %8953 = vmatprep.subr.mxu1 %v14254_v57 }
0x188e   :  { %5973 = vmatpush1.msra.mxu0 %v13259_v23  ;;  %8954 = vmatpush3.msra.mxu1 %v13264_v5 }
0x188f   :  { %5974 = vmatprep.subr.mxu0 %v13271_v6  ;;  %8955 = vmatprep.subr.mxu1 %v14254_v57 }
0x1890   :  { %5975 = vmatpush1.msra.mxu0 %v13278_v8  ;;  %8956 = vmatpush3.msra.mxu1 %v14306_v45 }
0x1891   :  { %5976 = vmatprep.subr.mxu0 %v13290_v16  ;;  %8957 = vmatprep.subr.mxu1 %v14254_v57 }
0x1892   :  { %5977 = vmatpush1.msra.mxu0 %v13297_v25  ;;  %6010 = vmatprep.mubr.f32.mxu0 %v14254_v57 }
0x1893   :  { %8958 = vmatpush3.msra.mxu1 %v14307_v21  ;;  %8959 = vmatprep.mubr.msk.f32.mxu1 %vm9460_vm0, %v14254_v57 }
0x1894   :  { %6172 = vmatprep.subr.mxu0 %v14308_v31  ;;  %8962 = vmatprep.subr.mxu1 %v14254_v57 }
0x1933   :  { %v5786_v0 = vpop.f32.mrf.mxu0  ;;  %v5857_v26 = vpop.f32.mrf.mxu1 }
0x1934   :  { %v5861_v15 = vadd.f32 %v7424_v37, %v5786_v0  ;;  %v5882_v21 = vadd.f32 %v13412_v29, %v5857_v26  ;;  %v7426_v37 = vld [vmem:[%s14196_s0 + $0x268] sm:$0xff]  ;;  %v13738_v26 = vld [vmem:[%s14194_s2 + $0xc0] sm:$0xff] }
0x1935   :  { %v8926_v38 = vpop.f32.mrf.mxu1  ;;  %v5788_v27 = vpop.f32.mrf.mxu0 }
0x1936   :  { %v7427_v22 = vmul.f32 -1.442695, %v5861_v15  ;;  %v5868_v13 = vadd.f32 %v7425_v39, %v5788_v27 }
0x1938   :  { %9389 = vpow2.f32 %v7427_v22  ;;  %v7428_v17 = vmul.f32 -1.442695, %v5868_v13 }
0x193a   :  { %9391 = vpow2.f32 %v7428_v17 }
0x1945   :  { %v9390_v30 = vpop.eup %9389 }
0x1946   :  { %v5865_v14 = vadd.f32 1.0, %v9390_v30  ;;  %v13743_v30 = vld [vmem:[%s14194_s2 + $0xd0] sm:$0xff] }
0x1947   :  { %v9392_v9 = vpop.eup %9391 }
0x1948   :  { %9393 = vrcp.f32 %v5865_v14  ;;  %v5872_v31 = vadd.f32 1.0, %v9392_v9  ;;  %v13748_v14 = vld [vmem:[%s14194_s2 + $0xb0] sm:$0xff]  ;;  %v13755_v9 = vld [vmem:[%s14194_s2 + $0xa8] sm:$0xff] }
0x194a   :  { %9395 = vrcp.f32 %v5872_v31  ;;  %v13760_v31 = vld [vmem:[%s14194_s2 + $0xb8] sm:$0xff] }
0x1955   :  { %v9394_v25 = vpop.eup %9393 }
0x1956   :  { %v5883_v0 = vmul.f32 %v9394_v25, %v5882_v21  ;;  %v13712_v25 = vld [vmem:[%s14194_s2 + $0xe0] sm:$0xff]  ;;  %v13731_v21 = vld [vmem:[%s14194_s2 + $0xc8] sm:$0xff] }
0x1957   :  { %v9396_v38 = vpop.eup %9395 }
0x1958   :  { %v5884_v15 = vadd.f32 %v7426_v37, %v5883_v0  ;;  %v5886_v22 = vsub.f32 1.0, %v9396_v38  ;;  %v5888_v13 = vmul.f32 %v9396_v38, %v13419_v44  ;;  %v14309_v44 = vld [vmem:[#allocation5_spill] sm:$0xff]  ;;  %v13765_v37 = vld [vmem:[%s14194_s2 + $0x98] sm:$0xff]  ;;  %v13784_v38 = vld [vmem:[%s14194_s2 + $0x80] sm:$0xff] }
0x1959   :  { %v13772_v0 = vld [vmem:[%s14194_s2 + $0x90] sm:$0xff] }
0x195a   :  { %9397 = vtanh.f32 %v5884_v15  ;;  %v13777_v15 = vld [vmem:[%s14194_s2 + $0xa0] sm:$0xff] }
0x1967   :  { %v9398_v39 = vpop.eup %9397 }
0x1968   :  { %v5887_v27 = vmul.f32 %v9398_v39, %v5886_v22  ;;  %v13791_v22 = vld [vmem:[%s14194_s2 + $0x78] sm:$0xff]  ;;  %v13796_v39 = vld [vmem:[%s14194_s2 + $0x88] sm:$0xff] }
0x196a   :  { %v13505_v17 = vadd.f32 %v5888_v13, %v5887_v27  ;;  %v13803_v27 = vld [vmem:[%s14194_s2 + $0x68] sm:$0xff]  ;;  %v13810_v13 = vld [vmem:[%s14194_s2 + $0x60] sm:$0xff] }
0x196c   :  { %7430 = vst [vmem:[%s14198_s4 + $0xc8] sm:$0xff] %v13505_v17  ;;  %6011 = vmatmul.mubr.f32.vlgmr.msra.gmra.mxu0 %v13505_v17  ;;  %8960 = vmatmul.mubr.f32.vlgmr.msra.gmra.mxu1 %v13505_v17 }
0x196d   :  { %6173 = vmatpush1.msra.mxu0 %v13023_v34  ;;  %8963 = vmatpush3.msra.mxu1 %v13369_v1  ;;  %v14310_v34 = vld [vmem:[#allocation6_spill] sm:$0xff] }
0x196e   :  { %6174 = vmatprep.subr.mxu0 %v13029_v46  ;;  %8964 = vmatprep.subr.mxu1 %v14254_v57  ;;  %v7431_v46 = vld [vmem:[%s14196_s0 + $0x270] sm:$0xff] }
0x196f   :  { %6175 = vmatpush1.msra.mxu0 %v13035_v47  ;;  %8965 = vmatpush3.msra.mxu1 %v13040_v50 }
0x1970   :  { %6176 = vmatprep.subr.mxu0 %v13047_v32  ;;  %8966 = vmatprep.subr.mxu1 %v14254_v57 }
0x1971   :  { %6177 = vmatpush1.msra.mxu0 %v13054_v33  ;;  %8967 = vmatpush3.msra.mxu1 %v13059_v35 }
0x1972   :  { %6178 = vmatprep.subr.mxu0 %v13066_v48  ;;  %8968 = vmatprep.subr.mxu1 %v14254_v57  ;;  %v7432_v48 = vld [vmem:[%s14196_s0 + $0x278] sm:$0xff] }
0x1973   :  { %6179 = vmatpush1.msra.mxu0 %v13073_v42  ;;  %8969 = vmatpush3.msra.mxu1 %v13078_v59 }
0x1974   :  { %6180 = vmatprep.subr.mxu0 %v13085_v60  ;;  %8970 = vmatprep.subr.mxu1 %v14254_v57 }
0x1975   :  { %6181 = vmatpush1.msra.mxu0 %v13092_v61  ;;  %8971 = vmatpush3.msra.mxu1 %v13097_v40 }
0x1976   :  { %6182 = vmatprep.subr.mxu0 %v13104_v41  ;;  %8972 = vmatprep.subr.mxu1 %v14254_v57 }
0x1977   :  { %6183 = vmatpush1.msra.mxu0 %v13111_v43  ;;  %8973 = vmatpush3.msra.mxu1 %v13116_v51 }
0x1978   :  { %6184 = vmatprep.subr.mxu0 %v13123_v52  ;;  %8974 = vmatprep.subr.mxu1 %v14254_v57 }
0x1979   :  { %6185 = vmatpush1.msra.mxu0 %v13130_v36  ;;  %8975 = vmatpush3.msra.mxu1 %v13135_v18  ;;  %v7433_v36 = vld [vmem:[%s14196_s0 + $0x280] sm:$0xff] }
0x197a   :  { %6186 = vmatprep.subr.mxu0 %v13142_v62  ;;  %8976 = vmatprep.subr.mxu1 %v14254_v57 }
0x197b   :  { %6187 = vmatpush1.msra.mxu0 %v13149_v53  ;;  %8977 = vmatpush3.msra.mxu1 %v13154_v2 }
0x197c   :  { %6188 = vmatprep.subr.mxu0 %v13159_v3  ;;  %8978 = vmatprep.subr.mxu1 %v14254_v57 }
0x197d   :  { %6189 = vmatpush1.msra.mxu0 %v13166_v49  ;;  %8979 = vmatpush3.msra.mxu1 %v13171_v4 }
0x197e   :  { %6190 = vmatprep.subr.mxu0 %v13176_v10  ;;  %8980 = vmatprep.subr.mxu1 %v14254_v57 }
0x197f   :  { %6191 = vmatpush1.msra.mxu0 %v13183_v24  ;;  %8981 = vmatpush3.msra.mxu1 %v13188_v56  ;;  %v13606_v24 = vld [vmem:[%s14194_s2 + $0x170] sm:$0xff]  ;;  %v13612_v56 = vld [vmem:[%s14194_s2 + $0x168] sm:$0xff] }
0x1980   :  { %6192 = vmatprep.subr.mxu0 %v13195_v11  ;;  %8982 = vmatprep.subr.mxu1 %v14254_v57  ;;  %14311 = vst [vmem:[#allocation3_spill] sm:$0xff] %v13606_v24  ;;  %v13618_v11 = vld [vmem:[%s14194_s2 + $0x158] sm:$0xff] }
0x1981   :  { %6193 = vmatpush1.msra.mxu0 %v13202_v63  ;;  %8983 = vmatpush3.msra.mxu1 %v13207_v12  ;;  %v13624_v63 = vld [vmem:[%s14194_s2 + $0x150] sm:$0xff]  ;;  %v13629_v12 = vld [vmem:[%s14194_s2 + $0x160] sm:$0xff] }
0x1982   :  { %6194 = vmatprep.subr.mxu0 %v13214_v54  ;;  %8984 = vmatprep.subr.mxu1 %v14254_v57  ;;  %v13636_v54 = vld [vmem:[%s14194_s2 + $0x140] sm:$0xff] }
0x1983   :  { %6195 = vmatpush1.msra.mxu0 %v13221_v55  ;;  %8985 = vmatpush3.msra.mxu1 %v13226_v58  ;;  %v13643_v55 = vld [vmem:[%s14194_s2 + $0x138] sm:$0xff]  ;;  %v13648_v58 = vld [vmem:[%s14194_s2 + $0x148] sm:$0xff] }
0x1984   :  { %6196 = vmatprep.subr.mxu0 %v13233_v28  ;;  %8986 = vmatprep.subr.mxu1 %v14254_v57  ;;  %v13655_v28 = vld [vmem:[%s14194_s2 + $0x128] sm:$0xff] }
0x1985   :  { %6197 = vmatpush1.msra.mxu0 %v13240_v7  ;;  %8987 = vmatpush3.msra.mxu1 %v13245_v19  ;;  %v13662_v7 = vld [vmem:[%s14194_s2 + $0x120] sm:$0xff]  ;;  %v13667_v19 = vld [vmem:[%s14194_s2 + $0x130] sm:$0xff] }
0x1986   :  { %6198 = vmatprep.subr.mxu0 %v13252_v20  ;;  %8988 = vmatprep.subr.mxu1 %v14254_v57  ;;  %v13674_v20 = vld [vmem:[%s14194_s2 + $0x110] sm:$0xff] }
0x1987   :  { %6199 = vmatpush1.msra.mxu0 %v13259_v23  ;;  %8989 = vmatpush3.msra.mxu1 %v13264_v5  ;;  %v13681_v23 = vld [vmem:[%s14194_s2 + $0x108] sm:$0xff]  ;;  %v13686_v5 = vld [vmem:[%s14194_s2 + $0x118] sm:$0xff] }
0x1988   :  { %6200 = vmatprep.subr.mxu0 %v13271_v6  ;;  %8990 = vmatprep.subr.mxu1 %v14254_v57  ;;  %v13693_v6 = vld [vmem:[%s14194_s2 + $0xf8] sm:$0xff] }
0x1989   :  { %6201 = vmatpush1.msra.mxu0 %v13278_v8  ;;  %8991 = vmatpush3.msra.mxu1 %v14306_v45  ;;  %v13700_v8 = vld [vmem:[%s14194_s2 + $0xf0] sm:$0xff]  ;;  %v13724_v45 = vld [vmem:[%s14194_s2 + $0xe8] sm:$0xff] }
0x198a   :  { %6202 = vmatprep.subr.mxu0 %v13290_v16  ;;  %8992 = vmatprep.subr.mxu1 %v14254_v57  ;;  %v13705_v16 = vld [vmem:[%s14194_s2 + $0x100] sm:$0xff] }
0x198b   :  { %6203 = vmatpush1.msra.mxu0 %v14309_v44  ;;  %6236 = vmatprep.mubr.f32.mxu0 %v14254_v57  ;;  %v13822_v44 = vld [vmem:[%s14194_s2 + $0x50] sm:$0xff] }
0x198c   :  { %8993 = vmatpush3.msra.mxu1 %v14310_v34  ;;  %8994 = vmatprep.mubr.msk.f32.mxu1 %vm9460_vm0, %v14254_v57  ;;  %v13829_v34 = vld [vmem:[%s14194_s2 + $0x48] sm:$0xff] }
0x198d   :  { %8997 = vmatprep.subr.mxu1 %v14254_v57  ;;  %6398 = vmatprep.subr.mxu0 %v13606_v24 }
0x1a2c   :  { %v6012_v47 = vpop.f32.mrf.mxu0  ;;  %v6083_v50 = vpop.f32.mrf.mxu1 }
0x1a2d   :  { %v6087_v32 = vadd.f32 %v7431_v46, %v6012_v47  ;;  %v6108_v51 = vadd.f32 %v13412_v29, %v6083_v50  ;;  %v13834_v46 = vld [vmem:[%s14194_s2 + $0x58] sm:$0xff]  ;;  %v13848_v50 = vld [vmem:[%s14194_s2 + $0x30] sm:$0xff] }
0x1a2e   :  { %v8961_v33 = vpop.f32.mrf.mxu1  ;;  %v6014_v42 = vpop.f32.mrf.mxu0  ;;  %v13841_v47 = vld [vmem:[%s14194_s2 + $0x38] sm:$0xff] }
0x1a2f   :  { %v7434_v35 = vmul.f32 -1.442695, %v6087_v32  ;;  %v6094_v59 = vadd.f32 %v7432_v48, %v6014_v42  ;;  %v13853_v32 = vld [vmem:[%s14194_s2 + $0x40] sm:$0xff]  ;;  %v13872_v48 = vld [vmem:[%s14194_s2 + $0x28] sm:$0xff] }
0x1a30   :  { %v13860_v33 = vld [vmem:[%s14194_s2 + $0x20] sm:$0xff]  ;;  %14312 = vst [vmem:[#allocation4_spill] sm:$0xff] %v13872_v48  ;;  %v13879_v42 = vld [vmem:[%s14194_s2 + $0x8] sm:$0xff] }
0x1a31   :  { %9399 = vpow2.f32 %v7434_v35  ;;  %v7435_v60 = vmul.f32 -1.442695, %v6094_v59  ;;  %v13867_v35 = vld [vmem:[%s14194_s2 + $0x18] sm:$0xff]  ;;  %v13886_v59 = vld [vmem:[%s14194_s2] sm:$0xff] }
0x1a32   :  { %14313 = vst [vmem:[#allocation5_spill] sm:$0xff] %v13886_v59 }
0x1a33   :  { %9401 = vpow2.f32 %v7435_v60  ;;  %v13891_v60 = vld [vmem:[%s14194_s2 + $0x10] sm:$0xff] }
0x1a34   :  { %14314 = vst [vmem:[#allocation6_spill] sm:$0xff] %v13891_v60 }
0x1a3e   :  { %v9400_v61 = vpop.eup %9399 }
0x1a3f   :  { %v6091_v40 = vadd.f32 1.0, %v9400_v61  ;;  %v7438_v61 = vld [vmem:[%s14196_s0 + $0x288] sm:$0xff] }
0x1a40   :  { %v9402_v41 = vpop.eup %9401 }
0x1a41   :  { %9403 = vrcp.f32 %v6091_v40  ;;  %v6098_v43 = vadd.f32 1.0, %v9402_v41 }
0x1a43   :  { %9405 = vrcp.f32 %v6098_v43 }
0x1a4e   :  { %v9404_v52 = vpop.eup %9403 }
0x1a4f   :  { %v6109_v18 = vmul.f32 %v9404_v52, %v6108_v51 }
0x1a50   :  { %v9406_v53 = vpop.eup %9405 }
0x1a51   :  { %v6110_v62 = vadd.f32 %v7433_v36, %v6109_v18  ;;  %v6112_v2 = vsub.f32 1.0, %v9406_v53  ;;  %v6114_v4 = vmul.f32 %v9406_v53, %v13505_v17  ;;  %v13815_v17 = vld [vmem:[%s14194_s2 + $0x70] sm:$0xff] }
0x1a52   :  { %v7439_v36 = vld [vmem:[%s14196_s0 + $0x290] sm:$0xff] }
0x1a53   :  { %9407 = vtanh.f32 %v6110_v62 }
0x1a60   :  { %v9408_v3 = vpop.eup %9407 }
0x1a61   :  { %v6113_v49 = vmul.f32 %v9408_v3, %v6112_v2 }
0x1a63   :  { %v13590_v10 = vadd.f32 %v6114_v4, %v6113_v49 }
0x1a65   :  { %7437 = vst [vmem:[%s14198_s4 + $0xd0] sm:$0xff] %v13590_v10  ;;  %6237 = vmatmul.mubr.f32.vlgmr.msra.gmra.mxu0 %v13590_v10  ;;  %8995 = vmatmul.mubr.f32.vlgmr.msra.gmra.mxu1 %v13590_v10 }
0x1a66   :  { %8998 = vmatpush3.msra.mxu1 %v13369_v1  ;;  %6462 = vmatprep.mubr.f32.mxu0 %v14254_v57  ;;  %v13719_v1 = vld [vmem:[%s14194_s2 + $0xd8] sm:$0xff] }
0x1a67   :  { %8999 = vmatprep.subr.mxu1 %v14254_v57  ;;  %9029 = vmatprep.mubr.msk.f32.mxu1 %vm9460_vm0, %v14254_v57 }
0x1a68   :  { %6399 = vmatpush1.msra.mxu0 %v13612_v56  ;;  %9000 = vmatpush3.msra.mxu1 %v13629_v12 }
0x1a69   :  { %6400 = vmatprep.subr.mxu0 %v13618_v11  ;;  %9001 = vmatprep.subr.mxu1 %v14254_v57 }
0x1a6a   :  { %6401 = vmatpush1.msra.mxu0 %v13624_v63  ;;  %9002 = vmatpush3.msra.mxu1 %v13648_v58 }
0x1a6b   :  { %6402 = vmatprep.subr.mxu0 %v13636_v54  ;;  %9003 = vmatprep.subr.mxu1 %v14254_v57 }
0x1a6c   :  { %6403 = vmatpush1.msra.mxu0 %v13643_v55  ;;  %9004 = vmatpush3.msra.mxu1 %v13667_v19 }
0x1a6d   :  { %6404 = vmatprep.subr.mxu0 %v13655_v28  ;;  %9005 = vmatprep.subr.mxu1 %v14254_v57 }
0x1a6e   :  { %6405 = vmatpush1.msra.mxu0 %v13662_v7  ;;  %9006 = vmatpush3.msra.mxu1 %v13686_v5 }
0x1a6f   :  { %6406 = vmatprep.subr.mxu0 %v13674_v20  ;;  %9007 = vmatprep.subr.mxu1 %v14254_v57 }
0x1a70   :  { %6407 = vmatpush1.msra.mxu0 %v13681_v23  ;;  %9008 = vmatpush3.msra.mxu1 %v13705_v16 }
0x1a71   :  { %6408 = vmatprep.subr.mxu0 %v13693_v6  ;;  %9009 = vmatprep.subr.mxu1 %v14254_v57 }
0x1a72   :  { %6409 = vmatpush1.msra.mxu0 %v13700_v8  ;;  %9010 = vmatpush3.msra.mxu1 %v13724_v45 }
0x1a73   :  { %6410 = vmatprep.subr.mxu0 %v13712_v25  ;;  %9011 = vmatprep.subr.mxu1 %v14254_v57 }
0x1a74   :  { %6411 = vmatpush1.msra.mxu0 %v13719_v1  ;;  %9012 = vmatpush3.msra.mxu1 %v13743_v30 }
0x1a75   :  { %6412 = vmatprep.subr.mxu0 %v13731_v21  ;;  %9013 = vmatprep.subr.mxu1 %v14254_v57 }
0x1a76   :  { %6413 = vmatpush1.msra.mxu0 %v13738_v26  ;;  %9014 = vmatpush3.msra.mxu1 %v13760_v31 }
0x1a77   :  { %6414 = vmatprep.subr.mxu0 %v13748_v14  ;;  %9015 = vmatprep.subr.mxu1 %v14254_v57 }
0x1a78   :  { %6415 = vmatpush1.msra.mxu0 %v13755_v9  ;;  %9016 = vmatpush3.msra.mxu1 %v13777_v15 }
0x1a79   :  { %6416 = vmatprep.subr.mxu0 %v13765_v37  ;;  %9017 = vmatprep.subr.mxu1 %v14254_v57 }
0x1a7a   :  { %6417 = vmatpush1.msra.mxu0 %v13772_v0  ;;  %9018 = vmatpush3.msra.mxu1 %v13796_v39 }
0x1a7b   :  { %6418 = vmatprep.subr.mxu0 %v13784_v38  ;;  %9019 = vmatprep.subr.mxu1 %v14254_v57 }
0x1a7c   :  { %6419 = vmatpush1.msra.mxu0 %v13791_v22  ;;  %9020 = vmatpush3.msra.mxu1 %v13815_v17 }
0x1a7d   :  { %6420 = vmatprep.subr.mxu0 %v13803_v27  ;;  %9021 = vmatprep.subr.mxu1 %v14254_v57 }
0x1a7e   :  { %6421 = vmatpush1.msra.mxu0 %v13810_v13  ;;  %9022 = vmatpush3.msra.mxu1 %v13834_v46 }
0x1a7f   :  { %6422 = vmatprep.subr.mxu0 %v13822_v44  ;;  %9023 = vmatprep.subr.mxu1 %v14254_v57 }
0x1a80   :  { %6423 = vmatpush1.msra.mxu0 %v13829_v34  ;;  %9024 = vmatpush3.msra.mxu1 %v13853_v32 }
0x1a81   :  { %6424 = vmatprep.subr.mxu0 %v13841_v47  ;;  %9025 = vmatprep.subr.mxu1 %v14254_v57 }
0x1a82   :  { %6425 = vmatpush1.msra.mxu0 %v13848_v50  ;;  %9026 = vmatpush3.msra.mxu1 %v13872_v48 }
0x1a83   :  { %6426 = vmatprep.subr.mxu0 %v13860_v33  ;;  %9027 = vmatprep.subr.mxu1 %v14254_v57 }
0x1a84   :  { %6427 = vmatpush1.msra.mxu0 %v13867_v35  ;;  %9028 = vmatpush3.msra.mxu1 %v13891_v60 }
0x1a85   :  { %6428 = vmatprep.subr.mxu0 %v13879_v42  ;;  %9032 = vmatprep.subr.mxu1 %v14254_v57 }
0x1a86   :  { %6429 = vmatpush1.msra.mxu0 %v13886_v59 }
0x1a87   :  { %6624 = vmatprep.subr.mxu0 %v13606_v24 }
0x1b25   :  { %v6238_v40 = vpop.f32.mrf.mxu0  ;;  %v6309_v41 = vpop.f32.mrf.mxu1 }
0x1b26   :  { %v6313_v43 = vadd.f32 %v7438_v61, %v6238_v40  ;;  %v6334_v60 = vadd.f32 %v13412_v29, %v6309_v41  ;;  %v7440_v61 = vld [vmem:[%s14196_s0 + $0x298] sm:$0xff] }
0x1b27   :  { %v8996_v51 = vpop.f32.mrf.mxu1  ;;  %v6240_v18 = vpop.f32.mrf.mxu0  ;;  %v13958_v29 = vld [vmem:[%s14194_s2 + $0x178] sm:$0xff] }
0x1b28   :  { %v7441_v52 = vmul.f32 -1.442695, %v6313_v43  ;;  %v6320_v62 = vadd.f32 %v7439_v36, %v6240_v18 }
0x1b2a   :  { %9409 = vpow2.f32 %v7441_v52  ;;  %v7442_v53 = vmul.f32 -1.442695, %v6320_v62 }
0x1b2c   :  { %9411 = vpow2.f32 %v7442_v53 }
0x1b37   :  { %v9410_v2 = vpop.eup %9409 }
0x1b38   :  { %v6317_v3 = vadd.f32 1.0, %v9410_v2 }
0x1b39   :  { %v9412_v49 = vpop.eup %9411 }
0x1b3a   :  { %9413 = vrcp.f32 %v6317_v3  ;;  %v6324_v4 = vadd.f32 1.0, %v9412_v49 }
0x1b3c   :  { %9415 = vrcp.f32 %v6324_v4 }
0x1b47   :  { %v9414_v48 = vpop.eup %9413 }
0x1b48   :  { %v6335_v40 = vmul.f32 %v9414_v48, %v6334_v60  ;;  %v14316_v48 = vld [vmem:[#allocation6_spill] sm:$0xff]  ;;  %v7445_v60 = vld [vmem:[%s14196_s0 + $0x2a0] sm:$0xff] }
0x1b49   :  { %v9416_v51 = vpop.eup %9415 }
0x1b4a   :  { %v6336_v43 = vadd.f32 %v7440_v61, %v6335_v40  ;;  %v6338_v52 = vsub.f32 1.0, %v9416_v51  ;;  %v6340_v62 = vmul.f32 %v9416_v51, %v13590_v10  ;;  %v14315_v10 = vld [vmem:[#allocation4_spill] sm:$0xff] }
0x1b4b   :  { %v7446_v61 = vld [vmem:[%s14196_s0 + $0x2a8] sm:$0xff] }
0x1b4c   :  { %9417 = vtanh.f32 %v6336_v43 }
0x1b59   :  { %v9418_v36 = vpop.eup %9417 }
0x1b5a   :  { %v6339_v18 = vmul.f32 %v9418_v36, %v6338_v52 }
0x1b5c   :  { %v13912_v53 = vadd.f32 %v6340_v62, %v6339_v18  ;;  %v14001_v62 = vld [vmem:[%s14197_s3] ss:$0 sm:$0xff] }
0x1b5e   :  { %7444 = vst [vmem:[%s14198_s4 + $0xd8] sm:$0xff] %v13912_v53  ;;  %6463 = vmatmul.mubr.f32.vlgmr.msra.gmra.mxu0 %v13912_v53  ;;  %9030 = vmatmul.mubr.f32.vlgmr.msra.gmra.mxu1 %v13912_v53 }
0x1b5f   :  { %6625 = vmatpush1.msra.mxu0 %v13612_v56  ;;  %6688 = vmatprep.mubr.f32.mxu0 %v14254_v57 }
0x1b60   :  { %6626 = vmatprep.subr.mxu0 %v13618_v11  ;;  %9064 = vmatprep.mubr.msk.f32.mxu1 %vm9460_vm0, %v14254_v57 }
0x1b61   :  { %6627 = vmatpush1.msra.mxu0 %v13624_v63  ;;  %9033 = vmatpush3.msra.mxu1 %v13958_v29 }
0x1b62   :  { %6628 = vmatprep.subr.mxu0 %v13636_v54  ;;  %9034 = vmatprep.subr.mxu1 %v14254_v57 }
0x1b63   :  { %6629 = vmatpush1.msra.mxu0 %v13643_v55  ;;  %9035 = vmatpush3.msra.mxu1 %v13629_v12 }
0x1b64   :  { %6630 = vmatprep.subr.mxu0 %v13655_v28  ;;  %9036 = vmatprep.subr.mxu1 %v14254_v57 }
0x1b65   :  { %6631 = vmatpush1.msra.mxu0 %v13662_v7  ;;  %9037 = vmatpush3.msra.mxu1 %v13648_v58 }
0x1b66   :  { %6632 = vmatprep.subr.mxu0 %v13674_v20  ;;  %9038 = vmatprep.subr.mxu1 %v14254_v57 }
0x1b67   :  { %6633 = vmatpush1.msra.mxu0 %v13681_v23  ;;  %9039 = vmatpush3.msra.mxu1 %v13667_v19 }
0x1b68   :  { %6634 = vmatprep.subr.mxu0 %v13693_v6  ;;  %9040 = vmatprep.subr.mxu1 %v14254_v57 }
0x1b69   :  { %6635 = vmatpush1.msra.mxu0 %v13700_v8  ;;  %9041 = vmatpush3.msra.mxu1 %v13686_v5 }
0x1b6a   :  { %6636 = vmatprep.subr.mxu0 %v13712_v25  ;;  %9042 = vmatprep.subr.mxu1 %v14254_v57 }
0x1b6b   :  { %6637 = vmatpush1.msra.mxu0 %v13719_v1  ;;  %9043 = vmatpush3.msra.mxu1 %v13705_v16 }
0x1b6c   :  { %6638 = vmatprep.subr.mxu0 %v13731_v21  ;;  %9044 = vmatprep.subr.mxu1 %v14254_v57 }
0x1b6d   :  { %6639 = vmatpush1.msra.mxu0 %v13738_v26  ;;  %9045 = vmatpush3.msra.mxu1 %v13724_v45 }
0x1b6e   :  { %6640 = vmatprep.subr.mxu0 %v13748_v14  ;;  %9046 = vmatprep.subr.mxu1 %v14254_v57 }
0x1b6f   :  { %6641 = vmatpush1.msra.mxu0 %v13755_v9  ;;  %9047 = vmatpush3.msra.mxu1 %v13743_v30 }
0x1b70   :  { %6642 = vmatprep.subr.mxu0 %v13765_v37  ;;  %9048 = vmatprep.subr.mxu1 %v14254_v57 }
0x1b71   :  { %6643 = vmatpush1.msra.mxu0 %v13772_v0  ;;  %9049 = vmatpush3.msra.mxu1 %v13760_v31 }
0x1b72   :  { %6644 = vmatprep.subr.mxu0 %v13784_v38  ;;  %9050 = vmatprep.subr.mxu1 %v14254_v57 }
0x1b73   :  { %6645 = vmatpush1.msra.mxu0 %v13791_v22  ;;  %9051 = vmatpush3.msra.mxu1 %v13777_v15 }
0x1b74   :  { %6646 = vmatprep.subr.mxu0 %v13803_v27  ;;  %9052 = vmatprep.subr.mxu1 %v14254_v57 }
0x1b75   :  { %6647 = vmatpush1.msra.mxu0 %v13810_v13  ;;  %9053 = vmatpush3.msra.mxu1 %v13796_v39 }
0x1b76   :  { %6648 = vmatprep.subr.mxu0 %v13822_v44  ;;  %9054 = vmatprep.subr.mxu1 %v14254_v57 }
0x1b77   :  { %6649 = vmatpush1.msra.mxu0 %v13829_v34  ;;  %9055 = vmatpush3.msra.mxu1 %v13815_v17 }
0x1b78   :  { %6650 = vmatprep.subr.mxu0 %v13841_v47  ;;  %9056 = vmatprep.subr.mxu1 %v14254_v57 }
0x1b79   :  { %6651 = vmatpush1.msra.mxu0 %v13848_v50  ;;  %9057 = vmatpush3.msra.mxu1 %v13834_v46 }
0x1b7a   :  { %6652 = vmatprep.subr.mxu0 %v13860_v33  ;;  %9058 = vmatprep.subr.mxu1 %v14254_v57 }
0x1b7b   :  { %6653 = vmatpush1.msra.mxu0 %v13867_v35  ;;  %9059 = vmatpush3.msra.mxu1 %v13853_v32 }
0x1b7c   :  { %6654 = vmatprep.subr.mxu0 %v13879_v42  ;;  %9060 = vmatprep.subr.mxu1 %v14254_v57 }
0x1b7d   :  { %6655 = vmatpush1.msra.mxu0 %v13886_v59  ;;  %9061 = vmatpush3.msra.mxu1 %v14315_v10 }
0x1b7e   :  { %6850 = vmatprep.subr.mxu0 %v13606_v24  ;;  %9062 = vmatprep.subr.mxu1 %v14254_v57 }
0x1b7f   :  { %9063 = vmatpush3.msra.mxu1 %v14316_v48 }
0x1b80   :  { %9067 = vmatprep.subr.mxu1 %v14254_v57 }
0x1c1e   :  { %v6464_v41 = vpop.f32.mrf.mxu0  ;;  %v6535_v2 = vpop.f32.mrf.mxu1 }
0x1c1f   :  { %v6539_v3 = vadd.f32 %v7445_v60, %v6464_v41  ;;  %v6560_v41 = vadd.f32 %v14001_v62, %v6535_v2  ;;  %v7452_v2 = vld [vmem:[%s14196_s0 + $0x2b8] sm:$0xff] }
0x1c20   :  { %v9031_v49 = vpop.f32.mrf.mxu1  ;;  %v6466_v40 = vpop.f32.mrf.mxu0 }
0x1c21   :  { %v7448_v4 = vmul.f32 -1.442695, %v6539_v3  ;;  %v6546_v43 = vadd.f32 %v7446_v61, %v6466_v40  ;;  %v7447_v49 = vld [vmem:[%s14196_s0 + $0x2b0] sm:$0xff] }
0x1c23   :  { %9419 = vpow2.f32 %v7448_v4  ;;  %v7449_v51 = vmul.f32 -1.442695, %v6546_v43 }
0x1c25   :  { %9421 = vpow2.f32 %v7449_v51 }
0x1c30   :  { %v9420_v52 = vpop.eup %9419 }
0x1c31   :  { %v6543_v36 = vadd.f32 1.0, %v9420_v52 }
0x1c32   :  { %v9422_v18 = vpop.eup %9421 }
0x1c33   :  { %9423 = vrcp.f32 %v6543_v36  ;;  %v6550_v60 = vadd.f32 1.0, %v9422_v18 }
0x1c35   :  { %9425 = vrcp.f32 %v6550_v60 }
0x1c40   :  { %v9424_v3 = vpop.eup %9423 }
0x1c41   :  { %v6561_v4 = vmul.f32 %v9424_v3, %v6560_v41 }
0x1c42   :  { %v9426_v40 = vpop.eup %9425 }
0x1c43   :  { %v6562_v61 = vadd.f32 %v7447_v49, %v6561_v4  ;;  %v6564_v43 = vsub.f32 1.0, %v9426_v40  ;;  %v6566_v36 = vmul.f32 %v9426_v40, %v13912_v53  ;;  %v14317_v53 = vld [vmem:[#allocation3_spill] sm:$0xff] }
0x1c44   :  { %v7453_v4 = vld [vmem:[%s14196_s0 + $0x2c0] sm:$0xff] }
0x1c45   :  { %9427 = vtanh.f32 %v6562_v61 }
0x1c52   :  { %v9428_v51 = vpop.eup %9427 }
0x1c53   :  { %v6565_v52 = vmul.f32 %v9428_v51, %v6564_v43 }
0x1c55   :  { %v14008_v24 = vadd.f32 %v6566_v36, %v6565_v52 }
0x1c57   :  { %7451 = vst [vmem:[%s14198_s4 + $0xe0] sm:$0xff] %v14008_v24  ;;  %6689 = vmatmul.mubr.f32.vlgmr.msra.gmra.mxu0 %v14008_v24  ;;  %9065 = vmatmul.mubr.f32.vlgmr.msra.gmra.mxu1 %v14008_v24 }
0x1c58   :  { %6851 = vmatpush1.msra.mxu0 %v13612_v56  ;;  %9068 = vmatpush3.msra.mxu1 %v13958_v29 }
0x1c59   :  { %6852 = vmatprep.subr.mxu0 %v13618_v11  ;;  %9069 = vmatprep.subr.mxu1 %v14254_v57 }
0x1c5a   :  { %6853 = vmatpush1.msra.mxu0 %v13624_v63  ;;  %9070 = vmatpush3.msra.mxu1 %v13629_v12 }
0x1c5b   :  { %6854 = vmatprep.subr.mxu0 %v13636_v54  ;;  %9071 = vmatprep.subr.mxu1 %v14254_v57 }
0x1c5c   :  { %6855 = vmatpush1.msra.mxu0 %v13643_v55  ;;  %9072 = vmatpush3.msra.mxu1 %v13648_v58 }
0x1c5d   :  { %6856 = vmatprep.subr.mxu0 %v13655_v28  ;;  %9073 = vmatprep.subr.mxu1 %v14254_v57 }
0x1c5e   :  { %6857 = vmatpush1.msra.mxu0 %v13662_v7  ;;  %9074 = vmatpush3.msra.mxu1 %v13667_v19 }
0x1c5f   :  { %6858 = vmatprep.subr.mxu0 %v13674_v20  ;;  %9075 = vmatprep.subr.mxu1 %v14254_v57 }
0x1c60   :  { %6859 = vmatpush1.msra.mxu0 %v13681_v23  ;;  %9076 = vmatpush3.msra.mxu1 %v13686_v5 }
0x1c61   :  { %6860 = vmatprep.subr.mxu0 %v13693_v6  ;;  %9077 = vmatprep.subr.mxu1 %v14254_v57 }
0x1c62   :  { %6861 = vmatpush1.msra.mxu0 %v13700_v8  ;;  %9078 = vmatpush3.msra.mxu1 %v13705_v16 }
0x1c63   :  { %6862 = vmatprep.subr.mxu0 %v13712_v25  ;;  %9079 = vmatprep.subr.mxu1 %v14254_v57 }
0x1c64   :  { %6863 = vmatpush1.msra.mxu0 %v13719_v1  ;;  %9080 = vmatpush3.msra.mxu1 %v13724_v45 }
0x1c65   :  { %6864 = vmatprep.subr.mxu0 %v13731_v21  ;;  %9081 = vmatprep.subr.mxu1 %v14254_v57 }
0x1c66   :  { %6865 = vmatpush1.msra.mxu0 %v13738_v26  ;;  %9082 = vmatpush3.msra.mxu1 %v13743_v30 }
0x1c67   :  { %6866 = vmatprep.subr.mxu0 %v13748_v14  ;;  %9083 = vmatprep.subr.mxu1 %v14254_v57 }
0x1c68   :  { %6867 = vmatpush1.msra.mxu0 %v13755_v9  ;;  %9084 = vmatpush3.msra.mxu1 %v13760_v31 }
0x1c69   :  { %6868 = vmatprep.subr.mxu0 %v13765_v37  ;;  %9085 = vmatprep.subr.mxu1 %v14254_v57 }
0x1c6a   :  { %6869 = vmatpush1.msra.mxu0 %v13772_v0  ;;  %9086 = vmatpush3.msra.mxu1 %v13777_v15 }
0x1c6b   :  { %6870 = vmatprep.subr.mxu0 %v13784_v38  ;;  %9087 = vmatprep.subr.mxu1 %v14254_v57 }
0x1c6c   :  { %6871 = vmatpush1.msra.mxu0 %v13791_v22  ;;  %9088 = vmatpush3.msra.mxu1 %v13796_v39 }
0x1c6d   :  { %6872 = vmatprep.subr.mxu0 %v13803_v27  ;;  %9089 = vmatprep.subr.mxu1 %v14254_v57 }
0x1c6e   :  { %6873 = vmatpush1.msra.mxu0 %v13810_v13  ;;  %9090 = vmatpush3.msra.mxu1 %v13815_v17 }
0x1c6f   :  { %6874 = vmatprep.subr.mxu0 %v13822_v44  ;;  %9091 = vmatprep.subr.mxu1 %v14254_v57 }
0x1c70   :  { %6875 = vmatpush1.msra.mxu0 %v13829_v34  ;;  %9092 = vmatpush3.msra.mxu1 %v13834_v46 }
0x1c71   :  { %6876 = vmatprep.subr.mxu0 %v13841_v47  ;;  %9093 = vmatprep.subr.mxu1 %v14254_v57 }
0x1c72   :  { %6877 = vmatpush1.msra.mxu0 %v13848_v50  ;;  %9094 = vmatpush3.msra.mxu1 %v13853_v32 }
0x1c73   :  { %6878 = vmatprep.subr.mxu0 %v13860_v33  ;;  %9095 = vmatprep.subr.mxu1 %v14254_v57 }
0x1c74   :  { %6879 = vmatpush1.msra.mxu0 %v13867_v35  ;;  %9096 = vmatpush3.msra.mxu1 %v14315_v10 }
0x1c75   :  { %6880 = vmatprep.subr.mxu0 %v13879_v42  ;;  %9097 = vmatprep.subr.mxu1 %v14254_v57 }
0x1c76   :  { %6881 = vmatpush1.msra.mxu0 %v13886_v59  ;;  %6914 = vmatprep.mubr.f32.mxu0 %v14254_v57 }
0x1c77   :  { %9098 = vmatpush3.msra.mxu1 %v14316_v48  ;;  %9099 = vmatprep.mubr.msk.f32.mxu1 %vm9460_vm0, %v14254_v57 }
0x1c78   :  { %7076 = vmatprep.subr.mxu0 %v14317_v53  ;;  %9102 = vmatprep.subr.mxu1 %v14254_v57 }
0x1d17   :  { %v6690_v18 = vpop.f32.mrf.mxu0  ;;  %v6761_v60 = vpop.f32.mrf.mxu1 }
0x1d18   :  { %v6765_v41 = vadd.f32 %v7452_v2, %v6690_v18  ;;  %v6786_v48 = vadd.f32 %v14001_v62, %v6761_v60  ;;  %v7454_v2 = vld [vmem:[%s14196_s0 + $0x2c8] sm:$0xff] }
0x1d19   :  { %v9066_v3 = vpop.f32.mrf.mxu1  ;;  %v6692_v61 = vpop.f32.mrf.mxu0 }
0x1d1a   :  { %v7455_v49 = vmul.f32 -1.442695, %v6765_v41  ;;  %v6772_v40 = vadd.f32 %v7453_v4, %v6692_v61 }
0x1d1c   :  { %9429 = vpow2.f32 %v7455_v49  ;;  %v7456_v43 = vmul.f32 -1.442695, %v6772_v40 }
0x1d1e   :  { %9431 = vpow2.f32 %v7456_v43 }
0x1d29   :  { %v9430_v51 = vpop.eup %9429 }
0x1d2a   :  { %v6769_v52 = vadd.f32 1.0, %v9430_v51 }
0x1d2b   :  { %v9432_v36 = vpop.eup %9431 }
0x1d2c   :  { %9433 = vrcp.f32 %v6769_v52  ;;  %v6776_v53 = vadd.f32 1.0, %v9432_v36 }
0x1d2e   :  { %9435 = vrcp.f32 %v6776_v53 }
0x1d39   :  { %v9434_v59 = vpop.eup %9433 }
0x1d3a   :  { %v6787_v18 = vmul.f32 %v9434_v59, %v6786_v48 }
0x1d3b   :  { %v9436_v3 = vpop.eup %9435 }
0x1d3c   :  { %v6788_v41 = vadd.f32 %v7454_v2, %v6787_v18  ;;  %v6790_v49 = vsub.f32 1.0, %v9436_v3  ;;  %v6792_v40 = vmul.f32 %v9436_v3, %v14008_v24  ;;  %v14318_v24 = vld [vmem:[#allocation5_spill] sm:$0xff] }
0x1d3e   :  { %9437 = vtanh.f32 %v6788_v41 }
0x1d4b   :  { %v9438_v4 = vpop.eup %9437 }
0x1d4c   :  { %v6791_v61 = vmul.f32 %v9438_v4, %v6790_v49 }
0x1d4e   :  { %v14094_v43 = vadd.f32 %v6792_v40, %v6791_v61 }
0x1d50   :  { %7458 = vst [vmem:[%s14198_s4 + $0xe8] sm:$0xff] %v14094_v43  ;;  %6915 = vmatmul.mubr.f32.vlgmr.msra.gmra.mxu0 %v14094_v43  ;;  %9100 = vmatmul.mubr.f32.vlgmr.msra.gmra.mxu1 %v14094_v43 }
0x1d51   :  { %7077 = vmatpush1.msra.mxu0 %v13612_v56  ;;  %9103 = vmatpush3.msra.mxu1 %v13958_v29  ;;  %v14319_v56 = vld [vmem:[#allocation6_spill] sm:$0xff] }
0x1d52   :  { %7078 = vmatprep.subr.mxu0 %v13618_v11  ;;  %9104 = vmatprep.subr.mxu1 %v14254_v57  ;;  %v7459_v11 = vld [vmem:[%s14196_s0 + $0x2d0] sm:$0xff] }
0x1d53   :  { %7079 = vmatpush1.msra.mxu0 %v13624_v63  ;;  %9105 = vmatpush3.msra.mxu1 %v13629_v12 }
0x1d54   :  { %7080 = vmatprep.subr.mxu0 %v13636_v54  ;;  %9106 = vmatprep.subr.mxu1 %v14254_v57 }
0x1d55   :  { %7081 = vmatpush1.msra.mxu0 %v13643_v55  ;;  %9107 = vmatpush3.msra.mxu1 %v13648_v58 }
0x1d56   :  { %7082 = vmatprep.subr.mxu0 %v13655_v28  ;;  %9108 = vmatprep.subr.mxu1 %v14254_v57  ;;  %v7460_v28 = vld [vmem:[%s14196_s0 + $0x2d8] sm:$0xff] }
0x1d57   :  { %7083 = vmatpush1.msra.mxu0 %v13662_v7  ;;  %9109 = vmatpush3.msra.mxu1 %v13667_v19 }
0x1d58   :  { %7084 = vmatprep.subr.mxu0 %v13674_v20  ;;  %9110 = vmatprep.subr.mxu1 %v14254_v57 }
0x1d59   :  { %7085 = vmatpush1.msra.mxu0 %v13681_v23  ;;  %9111 = vmatpush3.msra.mxu1 %v13686_v5 }
0x1d5a   :  { %7086 = vmatprep.subr.mxu0 %v13693_v6  ;;  %9112 = vmatprep.subr.mxu1 %v14254_v57 }
0x1d5b   :  { %7087 = vmatpush1.msra.mxu0 %v13700_v8  ;;  %9113 = vmatpush3.msra.mxu1 %v13705_v16 }
0x1d5c   :  { %7088 = vmatprep.subr.mxu0 %v13712_v25  ;;  %9114 = vmatprep.subr.mxu1 %v14254_v57  ;;  %v7461_v25 = vld [vmem:[%s14196_s0 + $0x2e0] sm:$0xff] }
0x1d5d   :  { %7089 = vmatpush1.msra.mxu0 %v13719_v1  ;;  %9115 = vmatpush3.msra.mxu1 %v13724_v45 }
0x1d5e   :  { %7090 = vmatprep.subr.mxu0 %v13731_v21  ;;  %9116 = vmatprep.subr.mxu1 %v14254_v57 }
0x1d5f   :  { %7091 = vmatpush1.msra.mxu0 %v13738_v26  ;;  %9117 = vmatpush3.msra.mxu1 %v13743_v30 }
0x1d60   :  { %7092 = vmatprep.subr.mxu0 %v13748_v14  ;;  %9118 = vmatprep.subr.mxu1 %v14254_v57 }
0x1d61   :  { %7093 = vmatpush1.msra.mxu0 %v13755_v9  ;;  %9119 = vmatpush3.msra.mxu1 %v13760_v31 }
0x1d62   :  { %7094 = vmatprep.subr.mxu0 %v13765_v37  ;;  %9120 = vmatprep.subr.mxu1 %v14254_v57  ;;  %v7466_v37 = vld [vmem:[%s14196_s0 + $0x2e8] sm:$0xff] }
0x1d63   :  { %7095 = vmatpush1.msra.mxu0 %v13772_v0  ;;  %9121 = vmatpush3.msra.mxu1 %v13777_v15 }
0x1d64   :  { %7096 = vmatprep.subr.mxu0 %v13784_v38  ;;  %9122 = vmatprep.subr.mxu1 %v14254_v57 }
0x1d65   :  { %7097 = vmatpush1.msra.mxu0 %v13791_v22  ;;  %9123 = vmatpush3.msra.mxu1 %v13796_v39 }
0x1d66   :  { %7098 = vmatprep.subr.mxu0 %v13803_v27  ;;  %9124 = vmatprep.subr.mxu1 %v14254_v57  ;;  %v7467_v27 = vld [vmem:[%s14196_s0 + $0x2f0] sm:$0xff] }
0x1d67   :  { %7099 = vmatpush1.msra.mxu0 %v13810_v13  ;;  %9125 = vmatpush3.msra.mxu1 %v13815_v17 }
0x1d68   :  { %7100 = vmatprep.subr.mxu0 %v13822_v44  ;;  %9126 = vmatprep.subr.mxu1 %v14254_v57 }
0x1d69   :  { %7101 = vmatpush1.msra.mxu0 %v13829_v34  ;;  %9127 = vmatpush3.msra.mxu1 %v13834_v46 }
0x1d6a   :  { %7102 = vmatprep.subr.mxu0 %v13841_v47  ;;  %9128 = vmatprep.subr.mxu1 %v14254_v57 }
0x1d6b   :  { %7103 = vmatpush1.msra.mxu0 %v13848_v50  ;;  %9129 = vmatpush3.msra.mxu1 %v13853_v32 }
0x1d6c   :  { %7104 = vmatprep.subr.mxu0 %v13860_v33  ;;  %9130 = vmatprep.subr.mxu1 %v14254_v57 }
0x1d6d   :  { %7105 = vmatpush1.msra.mxu0 %v13867_v35  ;;  %9131 = vmatpush3.msra.mxu1 %v14315_v10  ;;  %v7468_v35 = vld [vmem:[%s14196_s0 + $0x2f8] sm:$0xff] }
0x1d6e   :  { %7106 = vmatprep.subr.mxu0 %v13879_v42  ;;  %9132 = vmatprep.subr.mxu1 %v14254_v57 }
0x1d6f   :  { %7107 = vmatpush1.msra.mxu0 %v14318_v24  ;;  %7140 = vmatprep.mubr.f32.mxu0 %v14254_v57 }
0x1d70   :  { %9133 = vmatpush3.msra.mxu1 %v14319_v56  ;;  %9134 = vmatprep.mubr.msk.f32.mxu1 %vm9460_vm0, %v14254_v57 }
0x1e10   :  { %v6916_v63 = vpop.f32.mrf.mxu0  ;;  %v6987_v12 = vpop.f32.mrf.mxu1 }
0x1e11   :  { %v6991_v54 = vadd.f32 %v7459_v11, %v6916_v63  ;;  %v7012_v8 = vadd.f32 %v14001_v62, %v6987_v12 }
0x1e12   :  { %v9101_v55 = vpop.f32.mrf.mxu1  ;;  %v6918_v7 = vpop.f32.mrf.mxu0 }
0x1e13   :  { %v7462_v58 = vmul.f32 -1.442695, %v6991_v54  ;;  %v6998_v19 = vadd.f32 %v7460_v28, %v6918_v7 }
0x1e15   :  { %9439 = vpow2.f32 %v7462_v58  ;;  %v7463_v20 = vmul.f32 -1.442695, %v6998_v19 }
0x1e17   :  { %9441 = vpow2.f32 %v7463_v20 }
0x1e22   :  { %v9440_v23 = vpop.eup %9439 }
0x1e23   :  { %v6995_v57 = vadd.f32 1.0, %v9440_v23 }
0x1e24   :  { %v9442_v5 = vpop.eup %9441 }
0x1e25   :  { %9443 = vrcp.f32 %v6995_v57  ;;  %v7002_v6 = vadd.f32 1.0, %v9442_v5 }
0x1e27   :  { %9445 = vrcp.f32 %v7002_v6 }
0x1e32   :  { %v9444_v16 = vpop.eup %9443 }
0x1e33   :  { %v7013_v1 = vmul.f32 %v9444_v16, %v7012_v8 }
0x1e34   :  { %v9446_v21 = vpop.eup %9445 }
0x1e35   :  { %v7014_v45 = vadd.f32 %v7461_v25, %v7013_v1  ;;  %v7016_v26 = vsub.f32 1.0, %v9446_v21  ;;  %v7018_v9 = vmul.f32 %v9446_v21, %v14094_v43 }
0x1e37   :  { %9447 = vtanh.f32 %v7014_v45 }
0x1e44   :  { %v9448_v30 = vpop.eup %9447 }
0x1e45   :  { %v7017_v14 = vmul.f32 %v9448_v30, %v7016_v26 }
0x1e47   :  { %v7019_v31 = vadd.f32 %v7018_v9, %v7017_v14 }
0x1e49   :  { %7465 = vst [vmem:[%s14198_s4 + $0xf0] sm:$0xff] %v7019_v31  ;;  %7141 = vmatmul.mubr.f32.vlgmr.msra.gmra.mxu0 %v7019_v31  ;;  %9135 = vmatmul.mubr.f32.vlgmr.msra.gmra.mxu1 %v7019_v31 }
0x1f09   :  { %v7142_v0 = vpop.f32.mrf.mxu0  ;;  %v7213_v15 = vpop.f32.mrf.mxu1 }
0x1f0a   :  { %v7217_v38 = vadd.f32 %v7466_v37, %v7142_v0  ;;  %v7238_v32 = vadd.f32 %v14001_v62, %v7213_v15 }
0x1f0b   :  { %v9136_v22 = vpop.f32.mrf.mxu1  ;;  %v7144_v13 = vpop.f32.mrf.mxu0 }
0x1f0c   :  { %v7469_v39 = vmul.f32 -1.442695, %v7217_v38  ;;  %v7224_v17 = vadd.f32 %v7467_v27, %v7144_v13 }
0x1f0e   :  { %9449 = vpow2.f32 %v7469_v39  ;;  %v7470_v44 = vmul.f32 -1.442695, %v7224_v17 }
0x1f10   :  { %9451 = vpow2.f32 %v7470_v44 }
0x1f1b   :  { %v9450_v34 = vpop.eup %9449 }
0x1f1c   :  { %v7221_v46 = vadd.f32 1.0, %v9450_v34 }
0x1f1d   :  { %v9452_v47 = vpop.eup %9451 }
0x1f1e   :  { %9453 = vrcp.f32 %v7221_v46  ;;  %v7228_v50 = vadd.f32 1.0, %v9452_v47 }
0x1f20   :  { %9455 = vrcp.f32 %v7228_v50 }
0x1f2b   :  { %v9454_v33 = vpop.eup %9453 }
0x1f2c   :  { %v7239_v42 = vmul.f32 %v9454_v33, %v7238_v32 }
0x1f2d   :  { %v9456_v29 = vpop.eup %9455 }
0x1f2e   :  { %v7240_v59 = vadd.f32 %v7468_v35, %v7239_v42  ;;  %v7242_v10 = vsub.f32 1.0, %v9456_v29  ;;  %v7244_v51 = vmul.f32 %v9456_v29, %v7019_v31 }
0x1f30   :  { %9457 = vtanh.f32 %v7240_v59 }
0x1f3d   :  { %v9458_v48 = vpop.eup %9457 }
0x1f3e   :  { %v7243_v60 = vmul.f32 %v9458_v48, %v7242_v10 }
0x1f40   :  { %v7245_v52 = vadd.f32 %v7244_v51, %v7243_v60 }
0x1f42   :  { %7472 = vst [vmem:[%s14198_s4 + $0xf8] sm:$0xff] %v7245_v52 }

</bundles_post_ra>
